<compile_context>
chip_gen: v7x
topology: tpu7x:2x2x1
jax: 0.10.0
libtpu: 0.0.40
codegen_flags: <defaults>
</compile_context>

<pallas_src>
import jax
import jax.numpy as jnp
from jax.experimental import pallas as pl
from jax.experimental.pallas import tpu as pltpu

# ---------------- config (small shapes, consistent with EfficientViT.__init__) ----
IMAGE_SIZE = 14          # divisible by patch size (and by 7 for the stand-in pool)
PATCH = 1                # patch-size
NUM_CLASSES = 3
DIM = 32                 # model dim
DEPTH = 2
HEADS = 4
DIM_HEAD = 8
MLP_DIM = 64
EMB_DIM = 8              # rows of pos_embedding (must be >= batch)
CHANNELS = 32            # backbone feature channels ("channels" ctor arg)

NUM_PATCHES = (7 // PATCH) ** 2          # 49
PATCH_DIM = CHANNELS * PATCH ** 2        # 32
SEQ = NUM_PATCHES + 1                    # 50  (patches + cls token)
INNER = HEADS * DIM_HEAD                 # 32
SCALE = DIM_HEAD ** (-0.5)
LN_EPS = 1e-5
OUT_PAD = 128                            # lane-dense logits block (sliced outside)


# ---------------- in-kernel math helpers (Pallas-safe primitives only) ------------
def _mm(a, b):
    return jax.lax.dot_general(
        a, b, (((1,), (0,)), ((), ())), preferred_element_type=jnp.float32
    )


def _layernorm(x, g, b):
    # single-pass: E[x], E[x^2]  (halves the cross-lane XLU reductions)
    mu = jnp.mean(x, axis=-1, keepdims=True)
    var = jnp.mean(x * x, axis=-1, keepdims=True) - mu * mu
    return (x - mu) * jax.lax.rsqrt(var + LN_EPS) * g + b


def _erf_approx(x):
    # Abramowitz & Stegun 7.1.26, |error| <= 1.5e-7: matches exact erf (torch's
    # non-approximate nn.GELU) to float32 precision using only VPU/EUP-safe ops.
    a1, a2, a3, a4, a5 = 0.254829592, -0.284496736, 1.421413741, -1.453152027, 1.061405429
    p = 0.3275911
    sgn = jnp.where(x >= 0.0, 1.0, -1.0)
    ax = jnp.abs(x)
    t = 1.0 / (1.0 + p * ax)
    poly = ((((a5 * t + a4) * t + a3) * t + a2) * t + a1) * t
    return sgn * (1.0 - poly * jnp.exp(-ax * ax))


def _gelu_exact(x):
    return 0.5 * x * (1.0 + _erf_approx(x * 0.7071067811865476))


def _softmax_lastdim(x):
    m = jnp.max(x, axis=-1, keepdims=True)
    e = jnp.exp(x - m)
    s = jnp.sum(e, axis=-1, keepdims=True)
    return e * pl.reciprocal(s, approx=True)      # division -> EUP reciprocal


# ---------------- the fused ViT kernel (one batch block per grid step) ------------
def vit_kernel(
    patches_ref,     # (BB, NUM_PATCHES, PATCH_DIM)
    pos_ref,         # (BB, 1, DIM)          pos_embedding rows for this batch block
    cls_ref,         # (1, 1, DIM)
    w_emb_ref, b_emb_ref,
    ln1_g_ref, ln1_b_ref,
    w_qkv_ref,       # (DEPTH, DIM, 3*INNER)   [q heads | k heads | v heads]
    w_out_ref,       # (DEPTH, INNER, DIM)
    b_out_ref,       # (DEPTH, 1, DIM)
    ln2_g_ref, ln2_b_ref,
    w_f1_ref, b_f1_ref, w_f2_ref, b_f2_ref,
    w_h1_ref, b_h1_ref, w_h2_ref, b_h2_ref,     # head weights lane-padded to OUT_PAD
    out_ref,         # (BB, 1, OUT_PAD)
    x_buf,           # VMEM scratch (SEQ, DIM)
):
    bb_count = patches_ref.shape[0]
    cls_tok = cls_ref[0]                                             # (1, DIM)

    for bb in range(bb_count):
        pos_b = pos_ref[bb]                                          # (1, DIM)

        # patch_to_embedding on the 49 real patch rows
        emb = _mm(patches_ref[bb], w_emb_ref[...]) + b_emb_ref[...]  # (49, DIM)

        # assemble the 50-row sequence: rows 0..48 = patches, row 49 = cls token
        # (fill with cls first => only one extra full-tile store, aligned patch store)
        x_buf[...] = jnp.broadcast_to(cls_tok + pos_b, (SEQ, DIM))
        x_buf[pl.ds(0, NUM_PATCHES), :] = emb + pos_b
        x = x_buf[...]                                               # (SEQ, DIM)
        # (emb_dropout / dropout are identity at inference.)

        for d in range(DEPTH):
            # --- PreNorm + multi-head self attention + residual ---
            h = _layernorm(x, ln1_g_ref[d], ln1_b_ref[d])
            qkv = _mm(h, w_qkv_ref[d])                               # (SEQ, 96), lane dense
            head_outs = []
            for hh in range(HEADS):
                lo = hh * DIM_HEAD
                q = qkv[:, lo:lo + DIM_HEAD]                         # (SEQ, DIM_HEAD)
                k = qkv[:, INNER + lo:INNER + lo + DIM_HEAD]
                v = qkv[:, 2 * INNER + lo:2 * INNER + lo + DIM_HEAD]
                dots = jax.lax.dot_general(                          # q @ k^T
                    q, k, (((1,), (1,)), ((), ())),
                    preferred_element_type=jnp.float32,
                ) * SCALE                                            # (SEQ, SEQ)
                attn = _softmax_lastdim(dots)
                head_outs.append(_mm(attn, v))                       # (SEQ, DIM_HEAD)
            o = jnp.concatenate(head_outs, axis=-1)                  # (SEQ, INNER)
            x = x + _mm(o, w_out_ref[d]) + b_out_ref[d]              # fused to_out

            # --- PreNorm + FeedForward (Linear -> GELU -> Linear) + residual ---
            h = _layernorm(x, ln2_g_ref[d], ln2_b_ref[d])
            h1 = _gelu_exact(_mm(h, w_f1_ref[d]) + b_f1_ref[d])      # (SEQ, MLP_DIM)
            x = x + _mm(h1, w_f2_ref[d]) + b_f2_ref[d]

        # --- mlp_head on the cls token (last sequence slot) ---
        cls_out = x[NUM_PATCHES:SEQ, :]                              # (1, DIM)
        hid = jnp.maximum(_mm(cls_out, w_h1_ref[...]) + b_h1_ref[...], 0.0)
        out_ref[bb] = _mm(hid, w_h2_ref[...]) + b_h2_ref[...]        # (1, OUT_PAD)


# ---------------- wrapper ----------------------------------------------------------
def efficientvit_pallas(patches, params, batch_block=None):
    """patches: (B, NUM_PATCHES, PATCH_DIM) backbone patches; returns (B, NUM_CLASSES)."""
    B = patches.shape[0]
    # pos_embedding[0:B] semantics: B must not exceed the pos-embedding rows.
    assert B <= EMB_DIM, f"batch {B} exceeds pos_embedding rows {EMB_DIM}"

    if batch_block is None:
        # default: ~2 parallel grid steps (keeps both v7x TCs busy, folds batch for
        # larger B to amortize per-step overhead on single-TC v5e/v6e).
        cand = max(1, B // 2)
        batch_block = cand if B % cand == 0 else 1
    assert B % batch_block == 0
    grid = (B // batch_block,)

    # lane-pad mlp_head output weights -> full 128-lane final matmul + unmasked store
    w_h2p = jnp.zeros((MLP_DIM, OUT_PAD), jnp.float32).at[:, :NUM_CLASSES].set(params["w_h2"])
    b_h2p = jnp.zeros((1, OUT_PAD), jnp.float32).at[:, :NUM_CLASSES].set(params["b_h2"])

    weights = [
        params["w_emb"], params["b_emb"],
        params["ln1_g"], params["ln1_b"],
        params["w_qkv"], params["w_out"], params["b_out"],
        params["ln2_g"], params["ln2_b"],
        params["w_f1"], params["b_f1"], params["w_f2"], params["b_f2"],
        params["w_h1"], params["b_h1"], w_h2p, b_h2p,
    ]

    def const_spec(x):
        nd = x.ndim
        return pl.BlockSpec(x.shape, lambda i, nd=nd: (0,) * nd)

    in_specs = [
        pl.BlockSpec((batch_block, NUM_PATCHES, PATCH_DIM), lambda i: (i, 0, 0)),
        pl.BlockSpec((batch_block, 1, DIM), lambda i: (i, 0, 0)),   # pos rows per block
        pl.BlockSpec((1, 1, DIM), lambda i: (0, 0, 0)),             # cls token
    ] + [const_spec(w) for w in weights]

    out = pl.pallas_call(
        vit_kernel,
        out_shape=jax.ShapeDtypeStruct((B, 1, OUT_PAD), jnp.float32),
        grid=grid,
        in_specs=in_specs,
        out_specs=pl.BlockSpec((batch_block, 1, OUT_PAD), lambda i: (i, 0, 0)),
        scratch_shapes=[pltpu.VMEM((SEQ, DIM), jnp.float32)],
        compiler_params=pltpu.CompilerParams(dimension_semantics=("parallel",)),
    )(patches.astype(jnp.float32), params["pos"], params["cls"], *weights)

    return out[:, 0, :NUM_CLASSES]


# ---------------- plain-JAX glue ----------------------------------------------------
def standin_extract_features(img, w_proj):
    # TODO(synk): stand-in for EfficientNet.extract_features (pretrained backbone).
    B, C, H, W = img.shape
    pooled = img.reshape(B, C, 7, H // 7, 7, W // 7).mean(axis=(3, 5))   # (B, C, 7, 7)
    return jnp.einsum("bchw,cf->bfhw", pooled, w_proj)                   # (B, CHANNELS, 7, 7)


def rearrange_patches(x, p):
    # einops: 'b c (h p1) (w p2) -> b (h w) (p1 p2 c)'
    B, C, H, W = x.shape
    h, w = H // p, W // p
    x = x.reshape(B, C, h, p, w, p).transpose(0, 2, 4, 3, 5, 1)
    return x.reshape(B, h * w, p * p * C)


def init_params(key):
    keys = iter(jax.random.split(key, 32))

    def nrm(shape, scale=0.02):
        return scale * jax.random.normal(next(keys), shape, jnp.float32)

    return {
        "pos": jax.random.normal(next(keys), (EMB_DIM, 1, DIM), jnp.float32),
        "cls": jax.random.normal(next(keys), (1, 1, DIM), jnp.float32),
        "w_emb": nrm((PATCH_DIM, DIM)), "b_emb": nrm((1, DIM)),
        "ln1_g": jnp.ones((DEPTH, 1, DIM), jnp.float32),
        "ln1_b": jnp.zeros((DEPTH, 1, DIM), jnp.float32),
        # to_qkv: single Linear(dim, 3*inner, bias=False) -> columns [q | k | v],
        # each chunk head-major in blocks of DIM_HEAD (matches rearrange '(h d)').
        "w_qkv": nrm((DEPTH, DIM, 3 * INNER)),
        "w_out": nrm((DEPTH, INNER, DIM)),       # to_out Linear(inner, dim)
        "b_out": nrm((DEPTH, 1, DIM)),
        "ln2_g": jnp.ones((DEPTH, 1, DIM), jnp.float32),
        "ln2_b": jnp.zeros((DEPTH, 1, DIM), jnp.float32),
        "w_f1": nrm((DEPTH, DIM, MLP_DIM)), "b_f1": nrm((DEPTH, 1, MLP_DIM)),
        "w_f2": nrm((DEPTH, MLP_DIM, DIM)), "b_f2": nrm((DEPTH, 1, DIM)),
        "w_h1": nrm((DIM, MLP_DIM)), "b_h1": nrm((1, MLP_DIM)),
        "w_h2": nrm((MLP_DIM, NUM_CLASSES)), "b_h2": nrm((1, NUM_CLASSES)),
    }


def reference_forward(patches, params):
    """Pure-JAX reference mirroring the PyTorch forward (exact erf GELU, cls at pos 0)."""
    B = patches.shape[0]

    def ln(x, g, b):
        mu = x.mean(-1, keepdims=True)
        var = ((x - mu) ** 2).mean(-1, keepdims=True)
        return (x - mu) * jax.lax.rsqrt(var + LN_EPS) * g + b

    y = patches @ params["w_emb"] + params["b_emb"]
    cls = jnp.broadcast_to(params["cls"], (B, 1, DIM))
    x = jnp.concatenate([cls, y], axis=1) + params["pos"][:B]
    for d in range(DEPTH):
        h = ln(x, params["ln1_g"][d], params["ln1_b"][d])
        qkv = h @ params["w_qkv"][d]
        q, k, v = jnp.split(qkv, 3, axis=-1)

        def split_heads(t):
            return t.reshape(B, SEQ, HEADS, DIM_HEAD).transpose(0, 2, 1, 3)

        q, k, v = split_heads(q), split_heads(k), split_heads(v)
        attn = jax.nn.softmax(jnp.einsum("bhid,bhjd->bhij", q, k) * SCALE, axis=-1)
        o = jnp.einsum("bhij,bhjd->bhid", attn, v)
        o = o.transpose(0, 2, 1, 3).reshape(B, SEQ, INNER)
        x = x + o @ params["w_out"][d] + params["b_out"][d]

        h = ln(x, params["ln2_g"][d], params["ln2_b"][d])
        ff = jax.nn.gelu(h @ params["w_f1"][d] + params["b_f1"][d], approximate=False)
        x = x + ff @ params["w_f2"][d] + params["b_f2"][d]
    c = x[:, 0]
    hid = jax.nn.relu(c @ params["w_h1"] + params["b_h1"])
    return hid @ params["w_h2"] + params["b_h2"]


if __name__ == "__main__":
    key = jax.random.PRNGKey(0)
    kp, kproj, kimg = jax.random.split(key, 3)
    params = init_params(kp)
    w_proj = 0.1 * jax.random.normal(kproj, (3, CHANNELS), jnp.float32)

    B = 2
    img = jax.random.normal(kimg, (B, 3, IMAGE_SIZE, IMAGE_SIZE), jnp.float32)  # NCHW

    feats = standin_extract_features(img, w_proj)            # (B, CHANNELS, 7, 7)
    patches = rearrange_patches(feats, PATCH)                # (B, 49, PATCH_DIM)

    logits = jax.block_until_ready(efficientvit_pallas(patches, params))
    ref = jax.block_until_ready(reference_forward(patches, params))

    assert logits.shape == (B, NUM_CLASSES)
    assert jnp.all(jnp.isfinite(logits))
    assert jnp.allclose(logits, ref, atol=2e-3, rtol=1e-2), (logits, ref)
    print("KERNEL_OK")
</pallas_src>

<mosaic_0001>
module attributes {stable_mosaic.version = 11 : i64} {
  func.func @vit_kernel(%arg0: i32, %arg1: memref<1x49x32xf32, #tpu.memory_space<vmem>>, %arg2: memref<1x1x32xf32, #tpu.memory_space<vmem>>, %arg3: memref<1x1x32xf32, #tpu.memory_space<vmem>>, %arg4: memref<32x32xf32, #tpu.memory_space<vmem>>, %arg5: memref<1x32xf32, #tpu.memory_space<vmem>>, %arg6: memref<2x1x32xf32, #tpu.memory_space<vmem>>, %arg7: memref<2x1x32xf32, #tpu.memory_space<vmem>>, %arg8: memref<2x32x96xf32, #tpu.memory_space<vmem>>, %arg9: memref<2x32x32xf32, #tpu.memory_space<vmem>>, %arg10: memref<2x1x32xf32, #tpu.memory_space<vmem>>, %arg11: memref<2x1x32xf32, #tpu.memory_space<vmem>>, %arg12: memref<2x1x32xf32, #tpu.memory_space<vmem>>, %arg13: memref<2x32x64xf32, #tpu.memory_space<vmem>>, %arg14: memref<2x1x64xf32, #tpu.memory_space<vmem>>, %arg15: memref<2x64x32xf32, #tpu.memory_space<vmem>>, %arg16: memref<2x1x32xf32, #tpu.memory_space<vmem>>, %arg17: memref<32x64xf32, #tpu.memory_space<vmem>>, %arg18: memref<1x64xf32, #tpu.memory_space<vmem>>, %arg19: memref<64x128xf32, #tpu.memory_space<vmem>>, %arg20: memref<1x128xf32, #tpu.memory_space<vmem>>, %arg21: memref<1x1x128xf32, #tpu.memory_space<vmem>>, %arg22: memref<50x32xf32, #tpu.memory_space<vmem>>) attributes {dimension_semantics = [#tpu.dimension_semantics<parallel>], iteration_bounds = array<i64: 2>, scalar_prefetch = 0 : i64, scratch_operands = 1 : i64, tpu.core_type = #tpu.core_type<tc>, window_params = [{transform_indices = @transform_0, window_bounds = array<i64: 1, 49, 32>}, {transform_indices = @transform_1, window_bounds = array<i64: 1, 1, 32>}, {pipeline_mode = #tpu.pipeline_mode<synchronous>, transform_indices = @transform_2, window_bounds = array<i64: 1, 1, 32>}, {pipeline_mode = #tpu.pipeline_mode<synchronous>, transform_indices = @transform_3, window_bounds = array<i64: 32, 32>}, {pipeline_mode = #tpu.pipeline_mode<synchronous>, transform_indices = @transform_4, window_bounds = array<i64: 1, 32>}, {pipeline_mode = #tpu.pipeline_mode<synchronous>, transform_indices = @transform_5, window_bounds = array<i64: 2, 1, 32>}, {pipeline_mode = #tpu.pipeline_mode<synchronous>, transform_indices = @transform_6, window_bounds = array<i64: 2, 1, 32>}, {pipeline_mode = #tpu.pipeline_mode<synchronous>, transform_indices = @transform_7, window_bounds = array<i64: 2, 32, 96>}, {pipeline_mode = #tpu.pipeline_mode<synchronous>, transform_indices = @transform_8, window_bounds = array<i64: 2, 32, 32>}, {pipeline_mode = #tpu.pipeline_mode<synchronous>, transform_indices = @transform_9, window_bounds = array<i64: 2, 1, 32>}, {pipeline_mode = #tpu.pipeline_mode<synchronous>, transform_indices = @transform_10, window_bounds = array<i64: 2, 1, 32>}, {pipeline_mode = #tpu.pipeline_mode<synchronous>, transform_indices = @transform_11, window_bounds = array<i64: 2, 1, 32>}, {pipeline_mode = #tpu.pipeline_mode<synchronous>, transform_indices = @transform_12, window_bounds = array<i64: 2, 32, 64>}, {pipeline_mode = #tpu.pipeline_mode<synchronous>, transform_indices = @transform_13, window_bounds = array<i64: 2, 1, 64>}, {pipeline_mode = #tpu.pipeline_mode<synchronous>, transform_indices = @transform_14, window_bounds = array<i64: 2, 64, 32>}, {pipeline_mode = #tpu.pipeline_mode<synchronous>, transform_indices = @transform_15, window_bounds = array<i64: 2, 1, 32>}, {pipeline_mode = #tpu.pipeline_mode<synchronous>, transform_indices = @transform_16, window_bounds = array<i64: 32, 64>}, {pipeline_mode = #tpu.pipeline_mode<synchronous>, transform_indices = @transform_17, window_bounds = array<i64: 1, 64>}, {pipeline_mode = #tpu.pipeline_mode<synchronous>, transform_indices = @transform_18, window_bounds = array<i64: 64, 128>}, {pipeline_mode = #tpu.pipeline_mode<synchronous>, transform_indices = @transform_19, window_bounds = array<i64: 1, 128>}, {transform_indices = @transform_20, window_bounds = array<i64: 1, 1, 128>}]} {
    %c0 = arith.constant 0 : index
    %c0_0 = arith.constant 0 : index
    %c0_1 = arith.constant 0 : index
    %0 = vector.load %arg3[%c0, %c0_0, %c0_1] : memref<1x1x32xf32, #tpu.memory_space<vmem>>, vector<1x1x32xf32>
    %1 = vector.shape_cast %0 : vector<1x1x32xf32> to vector<1x32xf32>
    %c0_2 = arith.constant 0 : index
    %c0_3 = arith.constant 0 : index
    %c0_4 = arith.constant 0 : index
    %2 = vector.load %arg2[%c0_2, %c0_3, %c0_4] : memref<1x1x32xf32, #tpu.memory_space<vmem>>, vector<1x1x32xf32>
    %3 = vector.shape_cast %2 : vector<1x1x32xf32> to vector<1x32xf32>
    %c0_5 = arith.constant 0 : index
    %c0_6 = arith.constant 0 : index
    %c0_7 = arith.constant 0 : index
    %4 = vector.load %arg1[%c0_5, %c0_6, %c0_7] : memref<1x49x32xf32, #tpu.memory_space<vmem>>, vector<1x49x32xf32>
    %5 = vector.shape_cast %4 : vector<1x49x32xf32> to vector<49x32xf32>
    %c0_8 = arith.constant 0 : index
    %c0_9 = arith.constant 0 : index
    %6 = vector.load %arg4[%c0_8, %c0_9] : memref<32x32xf32, #tpu.memory_space<vmem>>, vector<32x32xf32>
    %cst = arith.constant dense<0.000000e+00> : vector<49x32xf32>
    %7 = tpu.matmul %5, %6, %cst {dimension_numbers = #tpu.dot_dimension_numbers<[1], [0], [0], [1], [0, 0, 1, 1], [], []>} : vector<49x32xf32>, vector<32x32xf32>, vector<49x32xf32> -> vector<49x32xf32>
    %c0_10 = arith.constant 0 : index
    %c0_11 = arith.constant 0 : index
    %8 = vector.load %arg5[%c0_10, %c0_11] : memref<1x32xf32, #tpu.memory_space<vmem>>, vector<1x32xf32>
    %9 = vector.broadcast %8 : vector<1x32xf32> to vector<49x32xf32>
    %10 = arith.addf %7, %9 : vector<49x32xf32>
    %11 = arith.addf %1, %3 : vector<1x32xf32>
    %12 = vector.shape_cast %11 : vector<1x32xf32> to vector<1x32xf32>
    %13 = vector.broadcast %12 : vector<1x32xf32> to vector<50x32xf32>
    %c0_12 = arith.constant 0 : index
    %c0_13 = arith.constant 0 : index
    %14 = vector.load %arg22[%c0_12, %c0_13] : memref<50x32xf32, #tpu.memory_space<vmem>>, vector<50x32xf32>
    tpu.vector_store %arg22[%c0_12, %c0_13], %13 {strides = array<i32>} : memref<50x32xf32, #tpu.memory_space<vmem>>, vector<50x32xf32>,
    %15 = vector.broadcast %3 : vector<1x32xf32> to vector<49x32xf32>
    %16 = arith.addf %10, %15 : vector<49x32xf32>
    %c0_14 = arith.constant 0 : index
    %c0_15 = arith.constant 0 : index
    %17 = vector.load %arg22[%c0_14, %c0_15] : memref<50x32xf32, #tpu.memory_space<vmem>>, vector<49x32xf32>
    tpu.vector_store %arg22[%c0_14, %c0_15], %16 {strides = array<i32>} : memref<50x32xf32, #tpu.memory_space<vmem>>, vector<49x32xf32>,
    %c0_16 = arith.constant 0 : index
    %c0_17 = arith.constant 0 : index
    %18 = vector.load %arg22[%c0_16, %c0_17] : memref<50x32xf32, #tpu.memory_space<vmem>>, vector<50x32xf32>
    %c0_18 = arith.constant 0 : index
    %c0_19 = arith.constant 0 : index
    %c0_20 = arith.constant 0 : index
    %19 = vector.load %arg6[%c0_18, %c0_19, %c0_20] : memref<2x1x32xf32, #tpu.memory_space<vmem>>, vector<1x1x32xf32>
    %20 = vector.shape_cast %19 : vector<1x1x32xf32> to vector<1x32xf32>
    %c0_21 = arith.constant 0 : index
    %c0_22 = arith.constant 0 : index
    %c0_23 = arith.constant 0 : index
    %21 = vector.load %arg7[%c0_21, %c0_22, %c0_23] : memref<2x1x32xf32, #tpu.memory_space<vmem>>, vector<1x1x32xf32>
    %22 = vector.shape_cast %21 : vector<1x1x32xf32> to vector<1x32xf32>
    %cst_24 = arith.constant dense<0.000000e+00> : vector<50xf32>
    %23 = vector.multi_reduction <add>, %18, %cst_24 [1] : vector<50x32xf32> to vector<50xf32>
    %24 = vector.shape_cast %23 : vector<50xf32> to vector<50x1xf32>
    %cst_25 = arith.constant 3.200000e+01 : f32
    %25 = vector.broadcast %cst_25 : f32 to vector<50x1xf32>
    %26 = arith.divf %24, %25 : vector<50x1xf32>
    %27 = arith.mulf %18, %18 : vector<50x32xf32>
    %cst_26 = arith.constant dense<0.000000e+00> : vector<50xf32>
    %28 = vector.multi_reduction <add>, %27, %cst_26 [1] : vector<50x32xf32> to vector<50xf32>
    %29 = vector.shape_cast %28 : vector<50xf32> to vector<50x1xf32>
    %cst_27 = arith.constant 3.200000e+01 : f32
    %30 = vector.broadcast %cst_27 : f32 to vector<50x1xf32>
    %31 = arith.divf %29, %30 : vector<50x1xf32>
    %32 = arith.mulf %26, %26 : vector<50x1xf32>
    %33 = arith.subf %31, %32 : vector<50x1xf32>
    %34 = vector.broadcast %26 : vector<50x1xf32> to vector<50x32xf32>
    %35 = arith.subf %18, %34 : vector<50x32xf32>
    %cst_28 = arith.constant 9.99999974E-6 : f32
    %36 = vector.broadcast %cst_28 : f32 to vector<50x1xf32>
    %37 = arith.addf %33, %36 : vector<50x1xf32>
    %38 = math.rsqrt %37 : vector<50x1xf32>
    %39 = vector.broadcast %38 : vector<50x1xf32> to vector<50x32xf32>
    %40 = arith.mulf %35, %39 : vector<50x32xf32>
    %41 = vector.broadcast %20 : vector<1x32xf32> to vector<50x32xf32>
    %42 = arith.mulf %40, %41 : vector<50x32xf32>
    %43 = vector.broadcast %22 : vector<1x32xf32> to vector<50x32xf32>
    %44 = arith.addf %42, %43 : vector<50x32xf32>
    %c0_29 = arith.constant 0 : index
    %c0_30 = arith.constant 0 : index
    %c0_31 = arith.constant 0 : index
    %45 = vector.load %arg8[%c0_29, %c0_30, %c0_31] : memref<2x32x96xf32, #tpu.memory_space<vmem>>, vector<1x32x96xf32>
    %46 = vector.shape_cast %45 : vector<1x32x96xf32> to vector<32x96xf32>
    %cst_32 = arith.constant dense<0.000000e+00> : vector<50x96xf32>
    %47 = tpu.matmul %44, %46, %cst_32 {dimension_numbers = #tpu.dot_dimension_numbers<[1], [0], [0], [1], [0, 0, 1, 1], [], []>} : vector<50x32xf32>, vector<32x96xf32>, vector<50x96xf32> -> vector<50x96xf32>
    %48 = vector.extract_strided_slice %47 {offsets = [0, 0], sizes = [50, 8], strides = [1, 1]} : vector<50x96xf32> to vector<50x8xf32>
    %49 = vector.extract_strided_slice %47 {offsets = [0, 32], sizes = [50, 8], strides = [1, 1]} : vector<50x96xf32> to vector<50x8xf32>
    %50 = vector.extract_strided_slice %47 {offsets = [0, 64], sizes = [50, 8], strides = [1, 1]} : vector<50x96xf32> to vector<50x8xf32>
    %cst_33 = arith.constant dense<0.000000e+00> : vector<50x50xf32>
    %51 = tpu.matmul %48, %49, %cst_33 {dimension_numbers = #tpu.dot_dimension_numbers<[1], [1], [0], [0], [0, 0, 1, 0], [], []>} : vector<50x8xf32>, vector<50x8xf32>, vector<50x50xf32> -> vector<50x50xf32>
    %cst_34 = arith.constant 0.353553385 : f32
    %52 = vector.broadcast %cst_34 : f32 to vector<50x50xf32>
    %53 = arith.mulf %51, %52 : vector<50x50xf32>
    %cst_35 = arith.constant dense<0xFF800000> : vector<50xf32>
    %54 = vector.multi_reduction <maximumf>, %53, %cst_35 [1] : vector<50x50xf32> to vector<50xf32>
    %55 = vector.shape_cast %54 : vector<50xf32> to vector<50x1xf32>
    %56 = vector.broadcast %55 : vector<50x1xf32> to vector<50x50xf32>
    %57 = arith.subf %53, %56 : vector<50x50xf32>
    %58 = math.exp %57 : vector<50x50xf32>
    %cst_36 = arith.constant dense<0.000000e+00> : vector<50xf32>
    %59 = vector.multi_reduction <add>, %58, %cst_36 [1] : vector<50x50xf32> to vector<50xf32>
    %60 = vector.shape_cast %59 : vector<50xf32> to vector<50x1xf32>
    %61 = tpu.reciprocal %60 {approx = true} : vector<50x1xf32> -> vector<50x1xf32>
    %62 = vector.broadcast %61 : vector<50x1xf32> to vector<50x50xf32>
    %63 = arith.mulf %58, %62 : vector<50x50xf32>
    %cst_37 = arith.constant dense<0.000000e+00> : vector<50x8xf32>
    %64 = tpu.matmul %63, %50, %cst_37 {dimension_numbers = #tpu.dot_dimension_numbers<[1], [0], [0], [1], [0, 0, 1, 1], [], []>} : vector<50x50xf32>, vector<50x8xf32>, vector<50x8xf32> -> vector<50x8xf32>
    %65 = vector.extract_strided_slice %47 {offsets = [0, 8], sizes = [50, 8], strides = [1, 1]} : vector<50x96xf32> to vector<50x8xf32>
    %66 = vector.extract_strided_slice %47 {offsets = [0, 40], sizes = [50, 8], strides = [1, 1]} : vector<50x96xf32> to vector<50x8xf32>
    %67 = vector.extract_strided_slice %47 {offsets = [0, 72], sizes = [50, 8], strides = [1, 1]} : vector<50x96xf32> to vector<50x8xf32>
    %cst_38 = arith.constant dense<0.000000e+00> : vector<50x50xf32>
    %68 = tpu.matmul %65, %66, %cst_38 {dimension_numbers = #tpu.dot_dimension_numbers<[1], [1], [0], [0], [0, 0, 1, 0], [], []>} : vector<50x8xf32>, vector<50x8xf32>, vector<50x50xf32> -> vector<50x50xf32>
    %cst_39 = arith.constant 0.353553385 : f32
    %69 = vector.broadcast %cst_39 : f32 to vector<50x50xf32>
    %70 = arith.mulf %68, %69 : vector<50x50xf32>
    %cst_40 = arith.constant dense<0xFF800000> : vector<50xf32>
    %71 = vector.multi_reduction <maximumf>, %70, %cst_40 [1] : vector<50x50xf32> to vector<50xf32>
    %72 = vector.shape_cast %71 : vector<50xf32> to vector<50x1xf32>
    %73 = vector.broadcast %72 : vector<50x1xf32> to vector<50x50xf32>
    %74 = arith.subf %70, %73 : vector<50x50xf32>
    %75 = math.exp %74 : vector<50x50xf32>
    %cst_41 = arith.constant dense<0.000000e+00> : vector<50xf32>
    %76 = vector.multi_reduction <add>, %75, %cst_41 [1] : vector<50x50xf32> to vector<50xf32>
    %77 = vector.shape_cast %76 : vector<50xf32> to vector<50x1xf32>
    %78 = tpu.reciprocal %77 {approx = true} : vector<50x1xf32> -> vector<50x1xf32>
    %79 = vector.broadcast %78 : vector<50x1xf32> to vector<50x50xf32>
    %80 = arith.mulf %75, %79 : vector<50x50xf32>
    %cst_42 = arith.constant dense<0.000000e+00> : vector<50x8xf32>
    %81 = tpu.matmul %80, %67, %cst_42 {dimension_numbers = #tpu.dot_dimension_numbers<[1], [0], [0], [1], [0, 0, 1, 1], [], []>} : vector<50x50xf32>, vector<50x8xf32>, vector<50x8xf32> -> vector<50x8xf32>
    %82 = vector.extract_strided_slice %47 {offsets = [0, 16], sizes = [50, 8], strides = [1, 1]} : vector<50x96xf32> to vector<50x8xf32>
    %83 = vector.extract_strided_slice %47 {offsets = [0, 48], sizes = [50, 8], strides = [1, 1]} : vector<50x96xf32> to vector<50x8xf32>
    %84 = vector.extract_strided_slice %47 {offsets = [0, 80], sizes = [50, 8], strides = [1, 1]} : vector<50x96xf32> to vector<50x8xf32>
    %cst_43 = arith.constant dense<0.000000e+00> : vector<50x50xf32>
    %85 = tpu.matmul %82, %83, %cst_43 {dimension_numbers = #tpu.dot_dimension_numbers<[1], [1], [0], [0], [0, 0, 1, 0], [], []>} : vector<50x8xf32>, vector<50x8xf32>, vector<50x50xf32> -> vector<50x50xf32>
    %cst_44 = arith.constant 0.353553385 : f32
    %86 = vector.broadcast %cst_44 : f32 to vector<50x50xf32>
    %87 = arith.mulf %85, %86 : vector<50x50xf32>
    %cst_45 = arith.constant dense<0xFF800000> : vector<50xf32>
    %88 = vector.multi_reduction <maximumf>, %87, %cst_45 [1] : vector<50x50xf32> to vector<50xf32>
    %89 = vector.shape_cast %88 : vector<50xf32> to vector<50x1xf32>
    %90 = vector.broadcast %89 : vector<50x1xf32> to vector<50x50xf32>
    %91 = arith.subf %87, %90 : vector<50x50xf32>
    %92 = math.exp %91 : vector<50x50xf32>
    %cst_46 = arith.constant dense<0.000000e+00> : vector<50xf32>
    %93 = vector.multi_reduction <add>, %92, %cst_46 [1] : vector<50x50xf32> to vector<50xf32>
    %94 = vector.shape_cast %93 : vector<50xf32> to vector<50x1xf32>
    %95 = tpu.reciprocal %94 {approx = true} : vector<50x1xf32> -> vector<50x1xf32>
    %96 = vector.broadcast %95 : vector<50x1xf32> to vector<50x50xf32>
    %97 = arith.mulf %92, %96 : vector<50x50xf32>
    %cst_47 = arith.constant dense<0.000000e+00> : vector<50x8xf32>
    %98 = tpu.matmul %97, %84, %cst_47 {dimension_numbers = #tpu.dot_dimension_numbers<[1], [0], [0], [1], [0, 0, 1, 1], [], []>} : vector<50x50xf32>, vector<50x8xf32>, vector<50x8xf32> -> vector<50x8xf32>
    %99 = vector.extract_strided_slice %47 {offsets = [0, 24], sizes = [50, 8], strides = [1, 1]} : vector<50x96xf32> to vector<50x8xf32>
    %100 = vector.extract_strided_slice %47 {offsets = [0, 56], sizes = [50, 8], strides = [1, 1]} : vector<50x96xf32> to vector<50x8xf32>
    %101 = vector.extract_strided_slice %47 {offsets = [0, 88], sizes = [50, 8], strides = [1, 1]} : vector<50x96xf32> to vector<50x8xf32>
    %cst_48 = arith.constant dense<0.000000e+00> : vector<50x50xf32>
    %102 = tpu.matmul %99, %100, %cst_48 {dimension_numbers = #tpu.dot_dimension_numbers<[1], [1], [0], [0], [0, 0, 1, 0], [], []>} : vector<50x8xf32>, vector<50x8xf32>, vector<50x50xf32> -> vector<50x50xf32>
    %cst_49 = arith.constant 0.353553385 : f32
    %103 = vector.broadcast %cst_49 : f32 to vector<50x50xf32>
    %104 = arith.mulf %102, %103 : vector<50x50xf32>
    %cst_50 = arith.constant dense<0xFF800000> : vector<50xf32>
    %105 = vector.multi_reduction <maximumf>, %104, %cst_50 [1] : vector<50x50xf32> to vector<50xf32>
    %106 = vector.shape_cast %105 : vector<50xf32> to vector<50x1xf32>
    %107 = vector.broadcast %106 : vector<50x1xf32> to vector<50x50xf32>
    %108 = arith.subf %104, %107 : vector<50x50xf32>
    %109 = math.exp %108 : vector<50x50xf32>
    %cst_51 = arith.constant dense<0.000000e+00> : vector<50xf32>
    %110 = vector.multi_reduction <add>, %109, %cst_51 [1] : vector<50x50xf32> to vector<50xf32>
    %111 = vector.shape_cast %110 : vector<50xf32> to vector<50x1xf32>
    %112 = tpu.reciprocal %111 {approx = true} : vector<50x1xf32> -> vector<50x1xf32>
    %113 = vector.broadcast %112 : vector<50x1xf32> to vector<50x50xf32>
    %114 = arith.mulf %109, %113 : vector<50x50xf32>
    %cst_52 = arith.constant dense<0.000000e+00> : vector<50x8xf32>
    %115 = tpu.matmul %114, %101, %cst_52 {dimension_numbers = #tpu.dot_dimension_numbers<[1], [0], [0], [1], [0, 0, 1, 1], [], []>} : vector<50x50xf32>, vector<50x8xf32>, vector<50x8xf32> -> vector<50x8xf32>
    %116 = tpu.concatenate %64, %81, %98, %115 in 1 : vector<50x8xf32>, vector<50x8xf32>, vector<50x8xf32>, vector<50x8xf32> -> vector<50x32xf32>
    %c0_53 = arith.constant 0 : index
    %c0_54 = arith.constant 0 : index
    %c0_55 = arith.constant 0 : index
    %117 = vector.load %arg9[%c0_53, %c0_54, %c0_55] : memref<2x32x32xf32, #tpu.memory_space<vmem>>, vector<1x32x32xf32>
    %118 = vector.shape_cast %117 : vector<1x32x32xf32> to vector<32x32xf32>
    %cst_56 = arith.constant dense<0.000000e+00> : vector<50x32xf32>
    %119 = tpu.matmul %116, %118, %cst_56 {dimension_numbers = #tpu.dot_dimension_numbers<[1], [0], [0], [1], [0, 0, 1, 1], [], []>} : vector<50x32xf32>, vector<32x32xf32>, vector<50x32xf32> -> vector<50x32xf32>
    %120 = arith.addf %18, %119 : vector<50x32xf32>
    %c0_57 = arith.constant 0 : index
    %c0_58 = arith.constant 0 : index
    %c0_59 = arith.constant 0 : index
    %121 = vector.load %arg10[%c0_57, %c0_58, %c0_59] : memref<2x1x32xf32, #tpu.memory_space<vmem>>, vector<1x1x32xf32>
    %122 = vector.shape_cast %121 : vector<1x1x32xf32> to vector<1x32xf32>
    %123 = vector.broadcast %122 : vector<1x32xf32> to vector<50x32xf32>
    %124 = arith.addf %120, %123 : vector<50x32xf32>
    %c0_60 = arith.constant 0 : index
    %c0_61 = arith.constant 0 : index
    %c0_62 = arith.constant 0 : index
    %125 = vector.load %arg11[%c0_60, %c0_61, %c0_62] : memref<2x1x32xf32, #tpu.memory_space<vmem>>, vector<1x1x32xf32>
    %126 = vector.shape_cast %125 : vector<1x1x32xf32> to vector<1x32xf32>
    %c0_63 = arith.constant 0 : index
    %c0_64 = arith.constant 0 : index
    %c0_65 = arith.constant 0 : index
    %127 = vector.load %arg12[%c0_63, %c0_64, %c0_65] : memref<2x1x32xf32, #tpu.memory_space<vmem>>, vector<1x1x32xf32>
    %128 = vector.shape_cast %127 : vector<1x1x32xf32> to vector<1x32xf32>
    %cst_66 = arith.constant dense<0.000000e+00> : vector<50xf32>
    %129 = vector.multi_reduction <add>, %124, %cst_66 [1] : vector<50x32xf32> to vector<50xf32>
    %130 = vector.shape_cast %129 : vector<50xf32> to vector<50x1xf32>
    %cst_67 = arith.constant 3.200000e+01 : f32
    %131 = vector.broadcast %cst_67 : f32 to vector<50x1xf32>
    %132 = arith.divf %130, %131 : vector<50x1xf32>
    %133 = arith.mulf %124, %124 : vector<50x32xf32>
    %cst_68 = arith.constant dense<0.000000e+00> : vector<50xf32>
    %134 = vector.multi_reduction <add>, %133, %cst_68 [1] : vector<50x32xf32> to vector<50xf32>
    %135 = vector.shape_cast %134 : vector<50xf32> to vector<50x1xf32>
    %cst_69 = arith.constant 3.200000e+01 : f32
    %136 = vector.broadcast %cst_69 : f32 to vector<50x1xf32>
    %137 = arith.divf %135, %136 : vector<50x1xf32>
    %138 = arith.mulf %132, %132 : vector<50x1xf32>
    %139 = arith.subf %137, %138 : vector<50x1xf32>
    %140 = vector.broadcast %132 : vector<50x1xf32> to vector<50x32xf32>
    %141 = arith.subf %124, %140 : vector<50x32xf32>
    %cst_70 = arith.constant 9.99999974E-6 : f32
    %142 = vector.broadcast %cst_70 : f32 to vector<50x1xf32>
    %143 = arith.addf %139, %142 : vector<50x1xf32>
    %144 = math.rsqrt %143 : vector<50x1xf32>
    %145 = vector.broadcast %144 : vector<50x1xf32> to vector<50x32xf32>
    %146 = arith.mulf %141, %145 : vector<50x32xf32>
    %147 = vector.broadcast %126 : vector<1x32xf32> to vector<50x32xf32>
    %148 = arith.mulf %146, %147 : vector<50x32xf32>
    %149 = vector.broadcast %128 : vector<1x32xf32> to vector<50x32xf32>
    %150 = arith.addf %148, %149 : vector<50x32xf32>
    %c0_71 = arith.constant 0 : index
    %c0_72 = arith.constant 0 : index
    %c0_73 = arith.constant 0 : index
    %151 = vector.load %arg13[%c0_71, %c0_72, %c0_73] : memref<2x32x64xf32, #tpu.memory_space<vmem>>, vector<1x32x64xf32>
    %152 = vector.shape_cast %151 : vector<1x32x64xf32> to vector<32x64xf32>
    %cst_74 = arith.constant dense<0.000000e+00> : vector<50x64xf32>
    %153 = tpu.matmul %150, %152, %cst_74 {dimension_numbers = #tpu.dot_dimension_numbers<[1], [0], [0], [1], [0, 0, 1, 1], [], []>} : vector<50x32xf32>, vector<32x64xf32>, vector<50x64xf32> -> vector<50x64xf32>
    %c0_75 = arith.constant 0 : index
    %c0_76 = arith.constant 0 : index
    %c0_77 = arith.constant 0 : index
    %154 = vector.load %arg14[%c0_75, %c0_76, %c0_77] : memref<2x1x64xf32, #tpu.memory_space<vmem>>, vector<1x1x64xf32>
    %155 = vector.shape_cast %154 : vector<1x1x64xf32> to vector<1x64xf32>
    %156 = vector.broadcast %155 : vector<1x64xf32> to vector<50x64xf32>
    %157 = arith.addf %153, %156 : vector<50x64xf32>
    %cst_78 = arith.constant 5.000000e-01 : f32
    %158 = vector.broadcast %cst_78 : f32 to vector<50x64xf32>
    %159 = arith.mulf %158, %157 : vector<50x64xf32>
    %cst_79 = arith.constant 0.707106769 : f32
    %160 = vector.broadcast %cst_79 : f32 to vector<50x64xf32>
    %161 = arith.mulf %157, %160 : vector<50x64xf32>
    %cst_80 = arith.constant 0.000000e+00 : f32
    %162 = vector.broadcast %cst_80 : f32 to vector<50x64xf32>
    %163 = arith.cmpf oge, %161, %162 : vector<50x64xf32>
    %cst_81 = arith.constant 1.000000e+00 : f32
    %cst_82 = arith.constant -1.000000e+00 : f32
    %164 = vector.broadcast %cst_81 : f32 to vector<50x64xf32>
    %165 = vector.broadcast %cst_82 : f32 to vector<50x64xf32>
    %166 = arith.select %163, %164, %165 : vector<50x64xi1>, vector<50x64xf32>
    %167 = math.absf %161 : vector<50x64xf32>
    %cst_83 = arith.constant 0.327591091 : f32
    %168 = vector.broadcast %cst_83 : f32 to vector<50x64xf32>
    %169 = arith.mulf %168, %167 : vector<50x64xf32>
    %cst_84 = arith.constant 1.000000e+00 : f32
    %170 = vector.broadcast %cst_84 : f32 to vector<50x64xf32>
    %171 = arith.addf %170, %169 : vector<50x64xf32>
    %cst_85 = arith.constant 1.000000e+00 : f32
    %172 = vector.broadcast %cst_85 : f32 to vector<50x64xf32>
    %173 = arith.divf %172, %171 : vector<50x64xf32>
    %cst_86 = arith.constant 1.06140542 : f32
    %174 = vector.broadcast %cst_86 : f32 to vector<50x64xf32>
    %175 = arith.mulf %174, %173 : vector<50x64xf32>
    %cst_87 = arith.constant -1.45315206 : f32
    %176 = vector.broadcast %cst_87 : f32 to vector<50x64xf32>
    %177 = arith.addf %175, %176 : vector<50x64xf32>
    %178 = arith.mulf %177, %173 : vector<50x64xf32>
    %cst_88 = arith.constant 1.42141378 : f32
    %179 = vector.broadcast %cst_88 : f32 to vector<50x64xf32>
    %180 = arith.addf %178, %179 : vector<50x64xf32>
    %181 = arith.mulf %180, %173 : vector<50x64xf32>
    %cst_89 = arith.constant -0.284496725 : f32
    %182 = vector.broadcast %cst_89 : f32 to vector<50x64xf32>
    %183 = arith.addf %181, %182 : vector<50x64xf32>
    %184 = arith.mulf %183, %173 : vector<50x64xf32>
    %cst_90 = arith.constant 0.254829586 : f32
    %185 = vector.broadcast %cst_90 : f32 to vector<50x64xf32>
    %186 = arith.addf %184, %185 : vector<50x64xf32>
    %187 = arith.mulf %186, %173 : vector<50x64xf32>
    %cst_91 = arith.constant 0.000000e+00 : f32
    %188 = vector.broadcast %cst_91 : f32 to vector<50x64xf32>
    %189 = arith.subf %188, %167 : vector<50x64xf32>
    %190 = arith.mulf %189, %167 : vector<50x64xf32>
    %191 = math.exp %190 : vector<50x64xf32>
    %192 = arith.mulf %187, %191 : vector<50x64xf32>
    %cst_92 = arith.constant 1.000000e+00 : f32
    %193 = vector.broadcast %cst_92 : f32 to vector<50x64xf32>
    %194 = arith.subf %193, %192 : vector<50x64xf32>
    %195 = arith.mulf %166, %194 : vector<50x64xf32>
    %cst_93 = arith.constant 1.000000e+00 : f32
    %196 = vector.broadcast %cst_93 : f32 to vector<50x64xf32>
    %197 = arith.addf %196, %195 : vector<50x64xf32>
    %198 = arith.mulf %159, %197 : vector<50x64xf32>
    %c0_94 = arith.constant 0 : index
    %c0_95 = arith.constant 0 : index
    %c0_96 = arith.constant 0 : index
    %199 = vector.load %arg15[%c0_94, %c0_95, %c0_96] : memref<2x64x32xf32, #tpu.memory_space<vmem>>, vector<1x64x32xf32>
    %200 = vector.shape_cast %199 : vector<1x64x32xf32> to vector<64x32xf32>
    %cst_97 = arith.constant dense<0.000000e+00> : vector<50x32xf32>
    %201 = tpu.matmul %198, %200, %cst_97 {dimension_numbers = #tpu.dot_dimension_numbers<[1], [0], [0], [1], [0, 0, 1, 1], [], []>} : vector<50x64xf32>, vector<64x32xf32>, vector<50x32xf32> -> vector<50x32xf32>
    %202 = arith.addf %124, %201 : vector<50x32xf32>
    %c0_98 = arith.constant 0 : index
    %c0_99 = arith.constant 0 : index
    %c0_100 = arith.constant 0 : index
    %203 = vector.load %arg16[%c0_98, %c0_99, %c0_100] : memref<2x1x32xf32, #tpu.memory_space<vmem>>, vector<1x1x32xf32>
    %204 = vector.shape_cast %203 : vector<1x1x32xf32> to vector<1x32xf32>
    %205 = vector.broadcast %204 : vector<1x32xf32> to vector<50x32xf32>
    %206 = arith.addf %202, %205 : vector<50x32xf32>
    %c1 = arith.constant 1 : index
    %c0_101 = arith.constant 0 : index
    %c0_102 = arith.constant 0 : index
    %207 = vector.load %arg6[%c1, %c0_101, %c0_102] : memref<2x1x32xf32, #tpu.memory_space<vmem>>, vector<1x1x32xf32>
    %208 = vector.shape_cast %207 : vector<1x1x32xf32> to vector<1x32xf32>
    %c1_103 = arith.constant 1 : index
    %c0_104 = arith.constant 0 : index
    %c0_105 = arith.constant 0 : index
    %209 = vector.load %arg7[%c1_103, %c0_104, %c0_105] : memref<2x1x32xf32, #tpu.memory_space<vmem>>, vector<1x1x32xf32>
    %210 = vector.shape_cast %209 : vector<1x1x32xf32> to vector<1x32xf32>
    %cst_106 = arith.constant dense<0.000000e+00> : vector<50xf32>
    %211 = vector.multi_reduction <add>, %206, %cst_106 [1] : vector<50x32xf32> to vector<50xf32>
    %212 = vector.shape_cast %211 : vector<50xf32> to vector<50x1xf32>
    %cst_107 = arith.constant 3.200000e+01 : f32
    %213 = vector.broadcast %cst_107 : f32 to vector<50x1xf32>
    %214 = arith.divf %212, %213 : vector<50x1xf32>
    %215 = arith.mulf %206, %206 : vector<50x32xf32>
    %cst_108 = arith.constant dense<0.000000e+00> : vector<50xf32>
    %216 = vector.multi_reduction <add>, %215, %cst_108 [1] : vector<50x32xf32> to vector<50xf32>
    %217 = vector.shape_cast %216 : vector<50xf32> to vector<50x1xf32>
    %cst_109 = arith.constant 3.200000e+01 : f32
    %218 = vector.broadcast %cst_109 : f32 to vector<50x1xf32>
    %219 = arith.divf %217, %218 : vector<50x1xf32>
    %220 = arith.mulf %214, %214 : vector<50x1xf32>
    %221 = arith.subf %219, %220 : vector<50x1xf32>
    %222 = vector.broadcast %214 : vector<50x1xf32> to vector<50x32xf32>
    %223 = arith.subf %206, %222 : vector<50x32xf32>
    %cst_110 = arith.constant 9.99999974E-6 : f32
    %224 = vector.broadcast %cst_110 : f32 to vector<50x1xf32>
    %225 = arith.addf %221, %224 : vector<50x1xf32>
    %226 = math.rsqrt %225 : vector<50x1xf32>
    %227 = vector.broadcast %226 : vector<50x1xf32> to vector<50x32xf32>
    %228 = arith.mulf %223, %227 : vector<50x32xf32>
    %229 = vector.broadcast %208 : vector<1x32xf32> to vector<50x32xf32>
    %230 = arith.mulf %228, %229 : vector<50x32xf32>
    %231 = vector.broadcast %210 : vector<1x32xf32> to vector<50x32xf32>
    %232 = arith.addf %230, %231 : vector<50x32xf32>
    %c1_111 = arith.constant 1 : index
    %c0_112 = arith.constant 0 : index
    %c0_113 = arith.constant 0 : index
    %233 = vector.load %arg8[%c1_111, %c0_112, %c0_113] : memref<2x32x96xf32, #tpu.memory_space<vmem>>, vector<1x32x96xf32>
    %234 = vector.shape_cast %233 : vector<1x32x96xf32> to vector<32x96xf32>
    %cst_114 = arith.constant dense<0.000000e+00> : vector<50x96xf32>
    %235 = tpu.matmul %232, %234, %cst_114 {dimension_numbers = #tpu.dot_dimension_numbers<[1], [0], [0], [1], [0, 0, 1, 1], [], []>} : vector<50x32xf32>, vector<32x96xf32>, vector<50x96xf32> -> vector<50x96xf32>
    %236 = vector.extract_strided_slice %235 {offsets = [0, 0], sizes = [50, 8], strides = [1, 1]} : vector<50x96xf32> to vector<50x8xf32>
    %237 = vector.extract_strided_slice %235 {offsets = [0, 32], sizes = [50, 8], strides = [1, 1]} : vector<50x96xf32> to vector<50x8xf32>
    %238 = vector.extract_strided_slice %235 {offsets = [0, 64], sizes = [50, 8], strides = [1, 1]} : vector<50x96xf32> to vector<50x8xf32>
    %cst_115 = arith.constant dense<0.000000e+00> : vector<50x50xf32>
    %239 = tpu.matmul %236, %237, %cst_115 {dimension_numbers = #tpu.dot_dimension_numbers<[1], [1], [0], [0], [0, 0, 1, 0], [], []>} : vector<50x8xf32>, vector<50x8xf32>, vector<50x50xf32> -> vector<50x50xf32>
    %cst_116 = arith.constant 0.353553385 : f32
    %240 = vector.broadcast %cst_116 : f32 to vector<50x50xf32>
    %241 = arith.mulf %239, %240 : vector<50x50xf32>
    %cst_117 = arith.constant dense<0xFF800000> : vector<50xf32>
    %242 = vector.multi_reduction <maximumf>, %241, %cst_117 [1] : vector<50x50xf32> to vector<50xf32>
    %243 = vector.shape_cast %242 : vector<50xf32> to vector<50x1xf32>
    %244 = vector.broadcast %243 : vector<50x1xf32> to vector<50x50xf32>
    %245 = arith.subf %241, %244 : vector<50x50xf32>
    %246 = math.exp %245 : vector<50x50xf32>
    %cst_118 = arith.constant dense<0.000000e+00> : vector<50xf32>
    %247 = vector.multi_reduction <add>, %246, %cst_118 [1] : vector<50x50xf32> to vector<50xf32>
    %248 = vector.shape_cast %247 : vector<50xf32> to vector<50x1xf32>
    %249 = tpu.reciprocal %248 {approx = true} : vector<50x1xf32> -> vector<50x1xf32>
    %250 = vector.broadcast %249 : vector<50x1xf32> to vector<50x50xf32>
    %251 = arith.mulf %246, %250 : vector<50x50xf32>
    %cst_119 = arith.constant dense<0.000000e+00> : vector<50x8xf32>
    %252 = tpu.matmul %251, %238, %cst_119 {dimension_numbers = #tpu.dot_dimension_numbers<[1], [0], [0], [1], [0, 0, 1, 1], [], []>} : vector<50x50xf32>, vector<50x8xf32>, vector<50x8xf32> -> vector<50x8xf32>
    %253 = vector.extract_strided_slice %235 {offsets = [0, 8], sizes = [50, 8], strides = [1, 1]} : vector<50x96xf32> to vector<50x8xf32>
    %254 = vector.extract_strided_slice %235 {offsets = [0, 40], sizes = [50, 8], strides = [1, 1]} : vector<50x96xf32> to vector<50x8xf32>
    %255 = vector.extract_strided_slice %235 {offsets = [0, 72], sizes = [50, 8], strides = [1, 1]} : vector<50x96xf32> to vector<50x8xf32>
    %cst_120 = arith.constant dense<0.000000e+00> : vector<50x50xf32>
    %256 = tpu.matmul %253, %254, %cst_120 {dimension_numbers = #tpu.dot_dimension_numbers<[1], [1], [0], [0], [0, 0, 1, 0], [], []>} : vector<50x8xf32>, vector<50x8xf32>, vector<50x50xf32> -> vector<50x50xf32>
    %cst_121 = arith.constant 0.353553385 : f32
    %257 = vector.broadcast %cst_121 : f32 to vector<50x50xf32>
    %258 = arith.mulf %256, %257 : vector<50x50xf32>
    %cst_122 = arith.constant dense<0xFF800000> : vector<50xf32>
    %259 = vector.multi_reduction <maximumf>, %258, %cst_122 [1] : vector<50x50xf32> to vector<50xf32>
    %260 = vector.shape_cast %259 : vector<50xf32> to vector<50x1xf32>
    %261 = vector.broadcast %260 : vector<50x1xf32> to vector<50x50xf32>
    %262 = arith.subf %258, %261 : vector<50x50xf32>
    %263 = math.exp %262 : vector<50x50xf32>
    %cst_123 = arith.constant dense<0.000000e+00> : vector<50xf32>
    %264 = vector.multi_reduction <add>, %263, %cst_123 [1] : vector<50x50xf32> to vector<50xf32>
    %265 = vector.shape_cast %264 : vector<50xf32> to vector<50x1xf32>
    %266 = tpu.reciprocal %265 {approx = true} : vector<50x1xf32> -> vector<50x1xf32>
    %267 = vector.broadcast %266 : vector<50x1xf32> to vector<50x50xf32>
    %268 = arith.mulf %263, %267 : vector<50x50xf32>
    %cst_124 = arith.constant dense<0.000000e+00> : vector<50x8xf32>
    %269 = tpu.matmul %268, %255, %cst_124 {dimension_numbers = #tpu.dot_dimension_numbers<[1], [0], [0], [1], [0, 0, 1, 1], [], []>} : vector<50x50xf32>, vector<50x8xf32>, vector<50x8xf32> -> vector<50x8xf32>
    %270 = vector.extract_strided_slice %235 {offsets = [0, 16], sizes = [50, 8], strides = [1, 1]} : vector<50x96xf32> to vector<50x8xf32>
    %271 = vector.extract_strided_slice %235 {offsets = [0, 48], sizes = [50, 8], strides = [1, 1]} : vector<50x96xf32> to vector<50x8xf32>
    %272 = vector.extract_strided_slice %235 {offsets = [0, 80], sizes = [50, 8], strides = [1, 1]} : vector<50x96xf32> to vector<50x8xf32>
    %cst_125 = arith.constant dense<0.000000e+00> : vector<50x50xf32>
    %273 = tpu.matmul %270, %271, %cst_125 {dimension_numbers = #tpu.dot_dimension_numbers<[1], [1], [0], [0], [0, 0, 1, 0], [], []>} : vector<50x8xf32>, vector<50x8xf32>, vector<50x50xf32> -> vector<50x50xf32>
    %cst_126 = arith.constant 0.353553385 : f32
    %274 = vector.broadcast %cst_126 : f32 to vector<50x50xf32>
    %275 = arith.mulf %273, %274 : vector<50x50xf32>
    %cst_127 = arith.constant dense<0xFF800000> : vector<50xf32>
    %276 = vector.multi_reduction <maximumf>, %275, %cst_127 [1] : vector<50x50xf32> to vector<50xf32>
    %277 = vector.shape_cast %276 : vector<50xf32> to vector<50x1xf32>
    %278 = vector.broadcast %277 : vector<50x1xf32> to vector<50x50xf32>
    %279 = arith.subf %275, %278 : vector<50x50xf32>
    %280 = math.exp %279 : vector<50x50xf32>
    %cst_128 = arith.constant dense<0.000000e+00> : vector<50xf32>
    %281 = vector.multi_reduction <add>, %280, %cst_128 [1] : vector<50x50xf32> to vector<50xf32>
    %282 = vector.shape_cast %281 : vector<50xf32> to vector<50x1xf32>
    %283 = tpu.reciprocal %282 {approx = true} : vector<50x1xf32> -> vector<50x1xf32>
    %284 = vector.broadcast %283 : vector<50x1xf32> to vector<50x50xf32>
    %285 = arith.mulf %280, %284 : vector<50x50xf32>
    %cst_129 = arith.constant dense<0.000000e+00> : vector<50x8xf32>
    %286 = tpu.matmul %285, %272, %cst_129 {dimension_numbers = #tpu.dot_dimension_numbers<[1], [0], [0], [1], [0, 0, 1, 1], [], []>} : vector<50x50xf32>, vector<50x8xf32>, vector<50x8xf32> -> vector<50x8xf32>
    %287 = vector.extract_strided_slice %235 {offsets = [0, 24], sizes = [50, 8], strides = [1, 1]} : vector<50x96xf32> to vector<50x8xf32>
    %288 = vector.extract_strided_slice %235 {offsets = [0, 56], sizes = [50, 8], strides = [1, 1]} : vector<50x96xf32> to vector<50x8xf32>
    %289 = vector.extract_strided_slice %235 {offsets = [0, 88], sizes = [50, 8], strides = [1, 1]} : vector<50x96xf32> to vector<50x8xf32>
    %cst_130 = arith.constant dense<0.000000e+00> : vector<50x50xf32>
    %290 = tpu.matmul %287, %288, %cst_130 {dimension_numbers = #tpu.dot_dimension_numbers<[1], [1], [0], [0], [0, 0, 1, 0], [], []>} : vector<50x8xf32>, vector<50x8xf32>, vector<50x50xf32> -> vector<50x50xf32>
    %cst_131 = arith.constant 0.353553385 : f32
    %291 = vector.broadcast %cst_131 : f32 to vector<50x50xf32>
    %292 = arith.mulf %290, %291 : vector<50x50xf32>
    %cst_132 = arith.constant dense<0xFF800000> : vector<50xf32>
    %293 = vector.multi_reduction <maximumf>, %292, %cst_132 [1] : vector<50x50xf32> to vector<50xf32>
    %294 = vector.shape_cast %293 : vector<50xf32> to vector<50x1xf32>
    %295 = vector.broadcast %294 : vector<50x1xf32> to vector<50x50xf32>
    %296 = arith.subf %292, %295 : vector<50x50xf32>
    %297 = math.exp %296 : vector<50x50xf32>
    %cst_133 = arith.constant dense<0.000000e+00> : vector<50xf32>
    %298 = vector.multi_reduction <add>, %297, %cst_133 [1] : vector<50x50xf32> to vector<50xf32>
    %299 = vector.shape_cast %298 : vector<50xf32> to vector<50x1xf32>
    %300 = tpu.reciprocal %299 {approx = true} : vector<50x1xf32> -> vector<50x1xf32>
    %301 = vector.broadcast %300 : vector<50x1xf32> to vector<50x50xf32>
    %302 = arith.mulf %297, %301 : vector<50x50xf32>
    %cst_134 = arith.constant dense<0.000000e+00> : vector<50x8xf32>
    %303 = tpu.matmul %302, %289, %cst_134 {dimension_numbers = #tpu.dot_dimension_numbers<[1], [0], [0], [1], [0, 0, 1, 1], [], []>} : vector<50x50xf32>, vector<50x8xf32>, vector<50x8xf32> -> vector<50x8xf32>
    %304 = tpu.concatenate %252, %269, %286, %303 in 1 : vector<50x8xf32>, vector<50x8xf32>, vector<50x8xf32>, vector<50x8xf32> -> vector<50x32xf32>
    %c1_135 = arith.constant 1 : index
    %c0_136 = arith.constant 0 : index
    %c0_137 = arith.constant 0 : index
    %305 = vector.load %arg9[%c1_135, %c0_136, %c0_137] : memref<2x32x32xf32, #tpu.memory_space<vmem>>, vector<1x32x32xf32>
    %306 = vector.shape_cast %305 : vector<1x32x32xf32> to vector<32x32xf32>
    %cst_138 = arith.constant dense<0.000000e+00> : vector<50x32xf32>
    %307 = tpu.matmul %304, %306, %cst_138 {dimension_numbers = #tpu.dot_dimension_numbers<[1], [0], [0], [1], [0, 0, 1, 1], [], []>} : vector<50x32xf32>, vector<32x32xf32>, vector<50x32xf32> -> vector<50x32xf32>
    %308 = arith.addf %206, %307 : vector<50x32xf32>
    %c1_139 = arith.constant 1 : index
    %c0_140 = arith.constant 0 : index
    %c0_141 = arith.constant 0 : index
    %309 = vector.load %arg10[%c1_139, %c0_140, %c0_141] : memref<2x1x32xf32, #tpu.memory_space<vmem>>, vector<1x1x32xf32>
    %310 = vector.shape_cast %309 : vector<1x1x32xf32> to vector<1x32xf32>
    %311 = vector.broadcast %310 : vector<1x32xf32> to vector<50x32xf32>
    %312 = arith.addf %308, %311 : vector<50x32xf32>
    %c1_142 = arith.constant 1 : index
    %c0_143 = arith.constant 0 : index
    %c0_144 = arith.constant 0 : index
    %313 = vector.load %arg11[%c1_142, %c0_143, %c0_144] : memref<2x1x32xf32, #tpu.memory_space<vmem>>, vector<1x1x32xf32>
    %314 = vector.shape_cast %313 : vector<1x1x32xf32> to vector<1x32xf32>
    %c1_145 = arith.constant 1 : index
    %c0_146 = arith.constant 0 : index
    %c0_147 = arith.constant 0 : index
    %315 = vector.load %arg12[%c1_145, %c0_146, %c0_147] : memref<2x1x32xf32, #tpu.memory_space<vmem>>, vector<1x1x32xf32>
    %316 = vector.shape_cast %315 : vector<1x1x32xf32> to vector<1x32xf32>
    %cst_148 = arith.constant dense<0.000000e+00> : vector<50xf32>
    %317 = vector.multi_reduction <add>, %312, %cst_148 [1] : vector<50x32xf32> to vector<50xf32>
    %318 = vector.shape_cast %317 : vector<50xf32> to vector<50x1xf32>
    %cst_149 = arith.constant 3.200000e+01 : f32
    %319 = vector.broadcast %cst_149 : f32 to vector<50x1xf32>
    %320 = arith.divf %318, %319 : vector<50x1xf32>
    %321 = arith.mulf %312, %312 : vector<50x32xf32>
    %cst_150 = arith.constant dense<0.000000e+00> : vector<50xf32>
    %322 = vector.multi_reduction <add>, %321, %cst_150 [1] : vector<50x32xf32> to vector<50xf32>
    %323 = vector.shape_cast %322 : vector<50xf32> to vector<50x1xf32>
    %cst_151 = arith.constant 3.200000e+01 : f32
    %324 = vector.broadcast %cst_151 : f32 to vector<50x1xf32>
    %325 = arith.divf %323, %324 : vector<50x1xf32>
    %326 = arith.mulf %320, %320 : vector<50x1xf32>
    %327 = arith.subf %325, %326 : vector<50x1xf32>
    %328 = vector.broadcast %320 : vector<50x1xf32> to vector<50x32xf32>
    %329 = arith.subf %312, %328 : vector<50x32xf32>
    %cst_152 = arith.constant 9.99999974E-6 : f32
    %330 = vector.broadcast %cst_152 : f32 to vector<50x1xf32>
    %331 = arith.addf %327, %330 : vector<50x1xf32>
    %332 = math.rsqrt %331 : vector<50x1xf32>
    %333 = vector.broadcast %332 : vector<50x1xf32> to vector<50x32xf32>
    %334 = arith.mulf %329, %333 : vector<50x32xf32>
    %335 = vector.broadcast %314 : vector<1x32xf32> to vector<50x32xf32>
    %336 = arith.mulf %334, %335 : vector<50x32xf32>
    %337 = vector.broadcast %316 : vector<1x32xf32> to vector<50x32xf32>
    %338 = arith.addf %336, %337 : vector<50x32xf32>
    %c1_153 = arith.constant 1 : index
    %c0_154 = arith.constant 0 : index
    %c0_155 = arith.constant 0 : index
    %339 = vector.load %arg13[%c1_153, %c0_154, %c0_155] : memref<2x32x64xf32, #tpu.memory_space<vmem>>, vector<1x32x64xf32>
    %340 = vector.shape_cast %339 : vector<1x32x64xf32> to vector<32x64xf32>
    %cst_156 = arith.constant dense<0.000000e+00> : vector<50x64xf32>
    %341 = tpu.matmul %338, %340, %cst_156 {dimension_numbers = #tpu.dot_dimension_numbers<[1], [0], [0], [1], [0, 0, 1, 1], [], []>} : vector<50x32xf32>, vector<32x64xf32>, vector<50x64xf32> -> vector<50x64xf32>
    %c1_157 = arith.constant 1 : index
    %c0_158 = arith.constant 0 : index
    %c0_159 = arith.constant 0 : index
    %342 = vector.load %arg14[%c1_157, %c0_158, %c0_159] : memref<2x1x64xf32, #tpu.memory_space<vmem>>, vector<1x1x64xf32>
    %343 = vector.shape_cast %342 : vector<1x1x64xf32> to vector<1x64xf32>
    %344 = vector.broadcast %343 : vector<1x64xf32> to vector<50x64xf32>
    %345 = arith.addf %341, %344 : vector<50x64xf32>
    %cst_160 = arith.constant 5.000000e-01 : f32
    %346 = vector.broadcast %cst_160 : f32 to vector<50x64xf32>
    %347 = arith.mulf %346, %345 : vector<50x64xf32>
    %cst_161 = arith.constant 0.707106769 : f32
    %348 = vector.broadcast %cst_161 : f32 to vector<50x64xf32>
    %349 = arith.mulf %345, %348 : vector<50x64xf32>
    %cst_162 = arith.constant 0.000000e+00 : f32
    %350 = vector.broadcast %cst_162 : f32 to vector<50x64xf32>
    %351 = arith.cmpf oge, %349, %350 : vector<50x64xf32>
    %cst_163 = arith.constant 1.000000e+00 : f32
    %cst_164 = arith.constant -1.000000e+00 : f32
    %352 = vector.broadcast %cst_163 : f32 to vector<50x64xf32>
    %353 = vector.broadcast %cst_164 : f32 to vector<50x64xf32>
    %354 = arith.select %351, %352, %353 : vector<50x64xi1>, vector<50x64xf32>
    %355 = math.absf %349 : vector<50x64xf32>
    %cst_165 = arith.constant 0.327591091 : f32
    %356 = vector.broadcast %cst_165 : f32 to vector<50x64xf32>
    %357 = arith.mulf %356, %355 : vector<50x64xf32>
    %cst_166 = arith.constant 1.000000e+00 : f32
    %358 = vector.broadcast %cst_166 : f32 to vector<50x64xf32>
    %359 = arith.addf %358, %357 : vector<50x64xf32>
    %cst_167 = arith.constant 1.000000e+00 : f32
    %360 = vector.broadcast %cst_167 : f32 to vector<50x64xf32>
    %361 = arith.divf %360, %359 : vector<50x64xf32>
    %cst_168 = arith.constant 1.06140542 : f32
    %362 = vector.broadcast %cst_168 : f32 to vector<50x64xf32>
    %363 = arith.mulf %362, %361 : vector<50x64xf32>
    %cst_169 = arith.constant -1.45315206 : f32
    %364 = vector.broadcast %cst_169 : f32 to vector<50x64xf32>
    %365 = arith.addf %363, %364 : vector<50x64xf32>
    %366 = arith.mulf %365, %361 : vector<50x64xf32>
    %cst_170 = arith.constant 1.42141378 : f32
    %367 = vector.broadcast %cst_170 : f32 to vector<50x64xf32>
    %368 = arith.addf %366, %367 : vector<50x64xf32>
    %369 = arith.mulf %368, %361 : vector<50x64xf32>
    %cst_171 = arith.constant -0.284496725 : f32
    %370 = vector.broadcast %cst_171 : f32 to vector<50x64xf32>
    %371 = arith.addf %369, %370 : vector<50x64xf32>
    %372 = arith.mulf %371, %361 : vector<50x64xf32>
    %cst_172 = arith.constant 0.254829586 : f32
    %373 = vector.broadcast %cst_172 : f32 to vector<50x64xf32>
    %374 = arith.addf %372, %373 : vector<50x64xf32>
    %375 = arith.mulf %374, %361 : vector<50x64xf32>
    %cst_173 = arith.constant 0.000000e+00 : f32
    %376 = vector.broadcast %cst_173 : f32 to vector<50x64xf32>
    %377 = arith.subf %376, %355 : vector<50x64xf32>
    %378 = arith.mulf %377, %355 : vector<50x64xf32>
    %379 = math.exp %378 : vector<50x64xf32>
    %380 = arith.mulf %375, %379 : vector<50x64xf32>
    %cst_174 = arith.constant 1.000000e+00 : f32
    %381 = vector.broadcast %cst_174 : f32 to vector<50x64xf32>
    %382 = arith.subf %381, %380 : vector<50x64xf32>
    %383 = arith.mulf %354, %382 : vector<50x64xf32>
    %cst_175 = arith.constant 1.000000e+00 : f32
    %384 = vector.broadcast %cst_175 : f32 to vector<50x64xf32>
    %385 = arith.addf %384, %383 : vector<50x64xf32>
    %386 = arith.mulf %347, %385 : vector<50x64xf32>
    %c1_176 = arith.constant 1 : index
    %c0_177 = arith.constant 0 : index
    %c0_178 = arith.constant 0 : index
    %387 = vector.load %arg15[%c1_176, %c0_177, %c0_178] : memref<2x64x32xf32, #tpu.memory_space<vmem>>, vector<1x64x32xf32>
    %388 = vector.shape_cast %387 : vector<1x64x32xf32> to vector<64x32xf32>
    %cst_179 = arith.constant dense<0.000000e+00> : vector<50x32xf32>
    %389 = tpu.matmul %386, %388, %cst_179 {dimension_numbers = #tpu.dot_dimension_numbers<[1], [0], [0], [1], [0, 0, 1, 1], [], []>} : vector<50x64xf32>, vector<64x32xf32>, vector<50x32xf32> -> vector<50x32xf32>
    %390 = arith.addf %312, %389 : vector<50x32xf32>
    %c1_180 = arith.constant 1 : index
    %c0_181 = arith.constant 0 : index
    %c0_182 = arith.constant 0 : index
    %391 = vector.load %arg16[%c1_180, %c0_181, %c0_182] : memref<2x1x32xf32, #tpu.memory_space<vmem>>, vector<1x1x32xf32>
    %392 = vector.shape_cast %391 : vector<1x1x32xf32> to vector<1x32xf32>
    %393 = vector.broadcast %392 : vector<1x32xf32> to vector<50x32xf32>
    %394 = arith.addf %390, %393 : vector<50x32xf32>
    %395 = vector.extract_strided_slice %394 {offsets = [49, 0], sizes = [1, 32], strides = [1, 1]} : vector<50x32xf32> to vector<1x32xf32>
    %c0_183 = arith.constant 0 : index
    %c0_184 = arith.constant 0 : index
    %396 = vector.load %arg17[%c0_183, %c0_184] : memref<32x64xf32, #tpu.memory_space<vmem>>, vector<32x64xf32>
    %cst_185 = arith.constant dense<0.000000e+00> : vector<1x64xf32>
    %397 = tpu.matmul %395, %396, %cst_185 {dimension_numbers = #tpu.dot_dimension_numbers<[1], [0], [0], [1], [0, 0, 1, 1], [], []>} : vector<1x32xf32>, vector<32x64xf32>, vector<1x64xf32> -> vector<1x64xf32>
    %c0_186 = arith.constant 0 : index
    %c0_187 = arith.constant 0 : index
    %398 = vector.load %arg18[%c0_186, %c0_187] : memref<1x64xf32, #tpu.memory_space<vmem>>, vector<1x64xf32>
    %399 = arith.addf %397, %398 : vector<1x64xf32>
    %cst_188 = arith.constant 0.000000e+00 : f32
    %400 = vector.broadcast %cst_188 : f32 to vector<1x64xf32>
    %401 = arith.maximumf %399, %400 : vector<1x64xf32>
    %c0_189 = arith.constant 0 : index
    %c0_190 = arith.constant 0 : index
    %402 = vector.load %arg19[%c0_189, %c0_190] : memref<64x128xf32, #tpu.memory_space<vmem>>, vector<64x128xf32>
    %cst_191 = arith.constant dense<0.000000e+00> : vector<1x128xf32>
    %403 = tpu.matmul %401, %402, %cst_191 {dimension_numbers = #tpu.dot_dimension_numbers<[1], [0], [0], [1], [0, 0, 1, 1], [], []>} : vector<1x64xf32>, vector<64x128xf32>, vector<1x128xf32> -> vector<1x128xf32>
    %c0_192 = arith.constant 0 : index
    %c0_193 = arith.constant 0 : index
    %404 = vector.load %arg20[%c0_192, %c0_193] : memref<1x128xf32, #tpu.memory_space<vmem>>, vector<1x128xf32>
    %405 = arith.addf %403, %404 : vector<1x128xf32>
    %c0_194 = arith.constant 0 : index
    %c0_195 = arith.constant 0 : index
    %c0_196 = arith.constant 0 : index
    %406 = vector.load %arg21[%c0_194, %c0_195, %c0_196] : memref<1x1x128xf32, #tpu.memory_space<vmem>>, vector<1x1x128xf32>
    %407 = vector.shape_cast %406 : vector<1x1x128xf32> to vector<1x128xf32>
    %408 = vector.shape_cast %405 : vector<1x128xf32> to vector<1x1x128xf32>
    tpu.vector_store %arg21[%c0_194, %c0_195, %c0_196], %408 {strides = array<i32>} : memref<1x1x128xf32, #tpu.memory_space<vmem>>, vector<1x1x128xf32>,
    return
  }
  func.func @transform_0(%arg0: i32) -> (i32, i32, i32) {
    %c0_i32 = arith.constant 0 : i32
    %c0_i32_0 = arith.constant 0 : i32
    %c0_i32_1 = arith.constant 0 : i32
    return %arg0, %c0_i32, %c0_i32_0 : i32, i32, i32
  }
  func.func @transform_1(%arg0: i32) -> (i32, i32, i32) {
    %c0_i32 = arith.constant 0 : i32
    %c0_i32_0 = arith.constant 0 : i32
    %c0_i32_1 = arith.constant 0 : i32
    return %arg0, %c0_i32, %c0_i32_0 : i32, i32, i32
  }
  func.func @transform_2(%arg0: i32) -> (i32, i32, i32) {
    %c0_i32 = arith.constant 0 : i32
    %c0_i32_0 = arith.constant 0 : i32
    %c0_i32_1 = arith.constant 0 : i32
    %c0_i32_2 = arith.constant 0 : i32
    return %c0_i32, %c0_i32_0, %c0_i32_1 : i32, i32, i32
  }
  func.func @transform_3(%arg0: i32) -> (i32, i32) {
    %c0_i32 = arith.constant 0 : i32
    %c0_i32_0 = arith.constant 0 : i32
    %c0_i32_1 = arith.constant 0 : i32
    return %c0_i32, %c0_i32_0 : i32, i32
  }
  func.func @transform_4(%arg0: i32) -> (i32, i32) {
    %c0_i32 = arith.constant 0 : i32
    %c0_i32_0 = arith.constant 0 : i32
    %c0_i32_1 = arith.constant 0 : i32
    return %c0_i32, %c0_i32_0 : i32, i32
  }
  func.func @transform_5(%arg0: i32) -> (i32, i32, i32) {
    %c0_i32 = arith.constant 0 : i32
    %c0_i32_0 = arith.constant 0 : i32
    %c0_i32_1 = arith.constant 0 : i32
    %c0_i32_2 = arith.constant 0 : i32
    return %c0_i32, %c0_i32_0, %c0_i32_1 : i32, i32, i32
  }
  func.func @transform_6(%arg0: i32) -> (i32, i32, i32) {
    %c0_i32 = arith.constant 0 : i32
    %c0_i32_0 = arith.constant 0 : i32
    %c0_i32_1 = arith.constant 0 : i32
    %c0_i32_2 = arith.constant 0 : i32
    return %c0_i32, %c0_i32_0, %c0_i32_1 : i32, i32, i32
  }
  func.func @transform_7(%arg0: i32) -> (i32, i32, i32) {
    %c0_i32 = arith.constant 0 : i32
    %c0_i32_0 = arith.constant 0 : i32
    %c0_i32_1 = arith.constant 0 : i32
    %c0_i32_2 = arith.constant 0 : i32
    return %c0_i32, %c0_i32_0, %c0_i32_1 : i32, i32, i32
  }
  func.func @transform_8(%arg0: i32) -> (i32, i32, i32) {
    %c0_i32 = arith.constant 0 : i32
    %c0_i32_0 = arith.constant 0 : i32
    %c0_i32_1 = arith.constant 0 : i32
    %c0_i32_2 = arith.constant 0 : i32
    return %c0_i32, %c0_i32_0, %c0_i32_1 : i32, i32, i32
  }
  func.func @transform_9(%arg0: i32) -> (i32, i32, i32) {
    %c0_i32 = arith.constant 0 : i32
    %c0_i32_0 = arith.constant 0 : i32
    %c0_i32_1 = arith.constant 0 : i32
    %c0_i32_2 = arith.constant 0 : i32
    return %c0_i32, %c0_i32_0, %c0_i32_1 : i32, i32, i32
  }
  func.func @transform_10(%arg0: i32) -> (i32, i32, i32) {
    %c0_i32 = arith.constant 0 : i32
    %c0_i32_0 = arith.constant 0 : i32
    %c0_i32_1 = arith.constant 0 : i32
    %c0_i32_2 = arith.constant 0 : i32
    return %c0_i32, %c0_i32_0, %c0_i32_1 : i32, i32, i32
  }
  func.func @transform_11(%arg0: i32) -> (i32, i32, i32) {
    %c0_i32 = arith.constant 0 : i32
    %c0_i32_0 = arith.constant 0 : i32
    %c0_i32_1 = arith.constant 0 : i32
    %c0_i32_2 = arith.constant 0 : i32
    return %c0_i32, %c0_i32_0, %c0_i32_1 : i32, i32, i32
  }
  func.func @transform_12(%arg0: i32) -> (i32, i32, i32) {
    %c0_i32 = arith.constant 0 : i32
    %c0_i32_0 = arith.constant 0 : i32
    %c0_i32_1 = arith.constant 0 : i32
    %c0_i32_2 = arith.constant 0 : i32
    return %c0_i32, %c0_i32_0, %c0_i32_1 : i32, i32, i32
  }
  func.func @transform_13(%arg0: i32) -> (i32, i32, i32) {
    %c0_i32 = arith.constant 0 : i32
    %c0_i32_0 = arith.constant 0 : i32
    %c0_i32_1 = arith.constant 0 : i32
    %c0_i32_2 = arith.constant 0 : i32
    return %c0_i32, %c0_i32_0, %c0_i32_1 : i32, i32, i32
  }
  func.func @transform_14(%arg0: i32) -> (i32, i32, i32) {
    %c0_i32 = arith.constant 0 : i32
    %c0_i32_0 = arith.constant 0 : i32
    %c0_i32_1 = arith.constant 0 : i32
    %c0_i32_2 = arith.constant 0 : i32
    return %c0_i32, %c0_i32_0, %c0_i32_1 : i32, i32, i32
  }
  func.func @transform_15(%arg0: i32) -> (i32, i32, i32) {
    %c0_i32 = arith.constant 0 : i32
    %c0_i32_0 = arith.constant 0 : i32
    %c0_i32_1 = arith.constant 0 : i32
    %c0_i32_2 = arith.constant 0 : i32
    return %c0_i32, %c0_i32_0, %c0_i32_1 : i32, i32, i32
  }
  func.func @transform_16(%arg0: i32) -> (i32, i32) {
    %c0_i32 = arith.constant 0 : i32
    %c0_i32_0 = arith.constant 0 : i32
    %c0_i32_1 = arith.constant 0 : i32
    return %c0_i32, %c0_i32_0 : i32, i32
  }
  func.func @transform_17(%arg0: i32) -> (i32, i32) {
    %c0_i32 = arith.constant 0 : i32
    %c0_i32_0 = arith.constant 0 : i32
    %c0_i32_1 = arith.constant 0 : i32
    return %c0_i32, %c0_i32_0 : i32, i32
  }
  func.func @transform_18(%arg0: i32) -> (i32, i32) {
    %c0_i32 = arith.constant 0 : i32
    %c0_i32_0 = arith.constant 0 : i32
    %c0_i32_1 = arith.constant 0 : i32
    return %c0_i32, %c0_i32_0 : i32, i32
  }
  func.func @transform_19(%arg0: i32) -> (i32, i32) {
    %c0_i32 = arith.constant 0 : i32
    %c0_i32_0 = arith.constant 0 : i32
    %c0_i32_1 = arith.constant 0 : i32
    return %c0_i32, %c0_i32_0 : i32, i32
  }
  func.func @transform_20(%arg0: i32) -> (i32, i32, i32) {
    %c0_i32 = arith.constant 0 : i32
    %c0_i32_0 = arith.constant 0 : i32
    %c0_i32_1 = arith.constant 0 : i32
    return %arg0, %c0_i32, %c0_i32_0 : i32, i32, i32
  }
}

</mosaic_0001>

<bundles_post_ra>
// kernel: tpu_custom_call.1
= control target key start
LH: loop header
LB: loop body
LE: loop exit
PB: predicated region body
PF: predicated region fallthrough
CT: control target
= control target key end

     0   :  { %s11978_s0 = inlined_call_operand.vmem [shape: f32[2,49,32], index: 0, kind: input, shape index: {}]   ;;  %s11979_s1 = inlined_call_operand.hbm [shape: f32[8,1,32], index: 1, kind: input, shape index: {}]   ;;  %s11980_s2 = inlined_call_operand.hbm [shape: f32[1,1,32], index: 2, kind: input, shape index: {}]   ;;  %s11981_s3 = inlined_call_operand.vmem [shape: f32[32,32], index: 3, kind: input, shape index: {}]   ;;  %s11982_s4 = inlined_call_operand.hbm [shape: f32[1,32], index: 4, kind: input, shape index: {}]   ;;  %s11983_s5 = inlined_call_operand.vmem [shape: f32[2,1,32], index: 5, kind: input, shape index: {}]   ;;  %s11984_s6 = inlined_call_operand.vmem [shape: f32[2,1,32], index: 6, kind: input, shape index: {}]   ;;  %s11985_s7 = inlined_call_operand.vmem [shape: f32[2,32,96], index: 7, kind: input, shape index: {}]   ;;  %s11986_s8 = inlined_call_operand.vmem [shape: f32[2,32,32], index: 8, kind: input, shape index: {}]   ;;  %s11987_s9 = inlined_call_operand.vmem [shape: f32[2,1,32], index: 9, kind: input, shape index: {}]   ;;  %s11988_s10 = inlined_call_operand.vmem [shape: f32[2,1,32], index: 10, kind: input, shape index: {}]   ;;  %s11989_s11 = inlined_call_operand.vmem [shape: f32[2,1,32], index: 11, kind: input, shape index: {}]   ;;  %s11990_s12 = inlined_call_operand.vmem [shape: f32[2,32,64], index: 12, kind: input, shape index: {}]   ;;  %s11991_s13 = inlined_call_operand.vmem [shape: f32[2,1,64], index: 13, kind: input, shape index: {}]   ;;  %s11992_s14 = inlined_call_operand.vmem [shape: f32[2,64,32], index: 14, kind: input, shape index: {}]   ;;  %s11993_s15 = inlined_call_operand.vmem [shape: f32[2,1,32], index: 15, kind: input, shape index: {}]   ;;  %s11994_s16 = inlined_call_operand.vmem [shape: f32[32,64], index: 16, kind: input, shape index: {}]   ;;  %s11995_s17 = inlined_call_operand.vmem [shape: f32[1,64], index: 17, kind: input, shape index: {}]   ;;  %s11996_s18 = inlined_call_operand.vmem [shape: f32[64,128], index: 18, kind: input, shape index: {}]   ;;  %s11997_s19 = inlined_call_operand.vmem [shape: f32[1,128], index: 19, kind: input, shape index: {}]   ;;  %s11998_s20 = inlined_call_operand.hbm [shape: f32[2,1,128], index: 20, kind: output, shape index: {}]  }
   0x1   :  { %12043 = sst [smem:[#allocation15_spill]] %s11978_s0 }
   0x2   :  { %12044 = sst [smem:[#allocation16_spill]] %s11979_s1 }
   0x3   :  { %12045 = sst [smem:[#allocation17_spill]] %s11980_s2 }
   0x4   :  { %12046 = sst [smem:[#allocation18_spill]] %s11981_s3 }
   0x5   :  { %12047 = sst [smem:[#allocation19_spill]] %s11982_s4 }
   0x6   :  { %12048 = sst [smem:[#allocation20_spill]] %s11983_s5 }
   0x7   :  { %12049 = sst [smem:[#allocation21_spill]] %s11984_s6 }
   0x8   :  { %12050 = sst [smem:[#allocation22_spill]] %s11993_s15 }
   0x9   :  { %12051 = sst [smem:[#allocation23_spill]] %s11994_s16 }
   0xa   :  { %12052 = sst [smem:[#allocation24_spill]] %s11995_s17 }
   0xb   :  { %12053 = sst [smem:[#allocation25_spill]] %s11996_s18 }
   0xc   :  { %12054 = sst [smem:[#allocation26_spill]] %s11997_s19 }
   0xd   :  { %12055 = sst [smem:[#allocation27_spill]] %s11998_s20 }
   0xe   :  { %25 = vsyncpa [#allocation4], 0 }
   0xf   :  { %27 = vsyncpa [#allocation4 + $0x1], 0 }
  0x10   :  { %28 = vsyncpa [#allocation7], 0 }
  0x11   :  { %29 = vsyncpa [#allocation5], 0 }
  0x12   :  { %31 = vsyncpa [#allocation5 + $0x1], 0  ;;  %s9132_s1 = smov 0   ;;  %s9134_s22 = smov 0  }
  0x13   :  { %s9136_s23 = smov 0   ;;  %s9138_s24 = smov 0  }
  0x14 LB: > { %12056 = sst [smem:[#allocation13_spill]] %s8991_s1  ;;  %s9153_s2 = sadd.s32 4294967295, %s9003_s24   ;;  %s9003_s24 = sphi %s9138_s24, %s12108_s24   ;;  %s8999_s23 = sphi %s9136_s23, %s12107_s23   ;;  %s8995_s22 = sphi %s9134_s22, %s12106_s22   ;;  %s8991_s1 = sphi %s9132_s1, %s12105_s1  }
  0x15   : > { %s6418_s25 = sadd.s32 4294967294, %s9003_s24   ;;  %p83_p0 = scmp.ne.s32.totalorder %s8995_s22, %s8991_s1 }
  0x16   : > { %p12008_p1 = scmp.eq.s32.totalorder %s9153_s2, 0  ;;  %p491_p3 = scmp.eq.s32.totalorder %s6418_s25, 1 }
  0x17   : > { %p6419_p5 = scmp.ge.s32.totalorder %s9003_s24, 1  ;;  %p498_p7 = scmp.lt.s32.totalorder %s9003_s24, 3 }
  0x18   : > { %p9162_p4 = por %p12008_p1, %p83_p0  ;;  %p9167_p6 = por %p491_p3, %p83_p0 }
  0x19   : > { %p9172_p8 = pnand %p6419_p5, %p498_p7  ;;  %s9005_s28 = smov [#allocation6]  }
  0x1a   : > { %s12057_s3 = scalar_select %p9162_p4, 1, 0 }
  0x1b   : > { %s12058_s26 = scalar_select %p9167_p6, 1, 0 }
  0x1c   : > { %s12060_s27 = scalar_select %p9172_p8, 1, 0 }
  0x1d   : > { %12059 = sst [smem:[#allocation14_spill]] %s12058_s26  ;;  %s511_s4 = sshll.u32 %s9005_s28, 4  ;;  %s512_s4 = int_to_ptr.vmem [resolvable:$true] %s511_s4 }
  0x1e   : > { %p8191_p10 = pneg %p9172_p8  ;;  %s9006_s29 = smov [#allocation8]  }
  0x1f   : > { %s525_s30 = sshll.u32 %s9006_s29, 4  ;;  %s9188_s21 = sadd.s32 1, %s9003_s24   ;;  %s9185_s30 = int_to_ptr.vmem [resolvable:$true] %s525_s30 }
  0x20   : > { %p9181_p11 = pnand %p8191_p10, %p12008_p1  ;;  %s12062_s1 = sld [smem:[#allocation17_spill]] }
  0x22   : > { %p8849_p13 = pneg %p9181_p11 }
  0x26   : > { %s12063_s20 = smov %s12062_s1  ;;  %s8847_s19 = scalar_lea.hbm %s12062_s1, 16 }
  0x27   : > { %p8848_p12 = scmp.ne.s32.totalorder %s12063_s20, %s8847_s19  ;;  %p8854_p5 = scmp.lt.u32.totalorder %s8847_s19, %s12063_s20 }
  0x29   : > { %p8850_p0 = pnand %p8849_p13, %p8848_p12 }
  0x2b   : > { %p8851_p3 = pneg %p8850_p0 }
  0x2d   : > { %p8856_p7 = pnand %p8854_p5, %p8851_p3 }
  0x2f   : > { %8859 = shalt.err (!%p8856_p7)
}
  0x30   : > { %s8860_s25 = scalar_lea.vmem %s512_s4, 16  ;;  %s8867_s17 = scalar_lea.vmem %s512_s4, 32 }
  0x31   : > { %p8861_p10 = scmp.ne.s32.totalorder %s512_s4, %s8860_s25  ;;  %p8868_p2 = scmp.lt.s32.totalorder %s512_s4, %s512_s4 }
  0x32   : > { %p8869_p6 = scmp.lt.s32.totalorder %s8867_s17, %s8860_s25 }
  0x33   : > { %p8863_p9 = pnand %p8861_p10, %p8849_p13 }
  0x34   : > { %p8870_p4 = por %p8869_p6, %p8868_p2 }
  0x35   : > { %p8864_p1 = pneg %p8863_p9 }
  0x37   : > { %p8871_p8 = pnand %p8870_p4, %p8864_p1 }
  0x39   : > { %8874 = shalt.err (!%p8871_p8)
}
  0x3a   : > { %8194 = dma.hbm_to_vmem [thread:$0]  (!%p9181_p11), %s12063_s20, 16, %s512_s4, [#allocation7]  }
  0x3b   : > { %s12064_s26 = sld [smem:[#allocation19_spill]] }
  0x41   : > { %s8875_s28 = scalar_lea.hbm %s12064_s26, 16 }
  0x42   : > { %p8876_p9 = scmp.ne.s32.totalorder %s12064_s26, %s8875_s28  ;;  %p8882_p4 = scmp.lt.u32.totalorder %s8875_s28, %s12064_s26 }
  0x44   : > { %p8878_p2 = pnand %p8876_p9, %p8849_p13 }
  0x46   : > { %p8879_p1 = pneg %p8878_p2 }
  0x48   : > { %p8884_p6 = pnand %p8882_p4, %p8879_p1 }
  0x4a   : > { %8887 = shalt.err (!%p8884_p6)
}
  0x4b   : > { %s8888_s4 = scalar_lea.vmem %s9185_s30, 16  ;;  %s8895_s15 = scalar_lea.vmem %s9185_s30, 32 }
  0x4c   : > { %p8889_p8 = scmp.ne.s32.totalorder %s9185_s30, %s8888_s4  ;;  %p8896_p3 = scmp.lt.s32.totalorder %s9185_s30, %s9185_s30 }
  0x4d   : > { %p8897_p5 = scmp.lt.s32.totalorder %s8895_s15, %s8888_s4 }
  0x4e   : > { %p8891_p12 = pnand %p8889_p8, %p8849_p13 }
  0x4f   : > { %p8898_p7 = por %p8897_p5, %p8896_p3 }
  0x50   : > { %p8892_p0 = pneg %p8891_p12 }
  0x52   : > { %p8899_p10 = pnand %p8898_p7, %p8892_p0 }
  0x54   : > { %8902 = shalt.err (!%p8899_p10)
}
  0x55   : > { %8197 = dma.hbm_to_vmem [thread:$0]  (!%p9181_p11), %s12064_s26, 16, %s9185_s30, [#allocation7]  }
  0x56   : > { %s12065_s19 = ssub.s32 %s9003_s24, %s9188_s21  ;;  %s70_s1 = sadd.s32 1, %s8999_s23 }
  0x57   : > { %p68_p13 = scmp.eq.s32.totalorder %s12065_s19, 0  ;;  %p77_p9 = scmp.ne.s32.totalorder %s8999_s23, %s8995_s22 }
  0x58   : > { %p78_p2 = scmp.eq.s32.totalorder %s9003_s24, 0  ;;  %p12066_p4 = scmp.eq.s32.totalorder %s9153_s2, 1 }
  0x59   : > { %s9248_s0 = scalar_select %p68_p13, %s8999_s23, %s70_s1  }
  0x5a   : > { %p79_p1 = por %p78_p2, %p77_p9  ;;  %p9252_p6 = por %p12066_p4, %p77_p9 }
  0x5b   : > { %p8208_p8 = scmp.lt.s32.totalorder %s9003_s24, 2  ;;  %s589_s29 = sand.u32 1, %s8999_s23  }
  0x5c   : > { %s6423_s25 = sshll.u32 %s9003_s24, 4  ;;  %s592_s17 = scalar_lea.vmem [#allocation3], %s589_s29 }
  0x5d   : > { %s599_s4 = sshll.u32 %s592_s17, 4  ;;  %s12068_s18 = sld [smem:[#allocation16_spill]]  ;;  %s9264_s4 = int_to_ptr.vmem [resolvable:$true] %s599_s4 }
  0x5e   : > { %p9266_p11 = pnand %p8208_p8, %p79_p1  ;;  %s590_s1 = scalar_lea.sflag [#allocation4], %s589_s29 }
  0x60   : > { %p8905_p0 = pneg %p9266_p11 }
  0x63   : > { %s9262_s16 = scalar_lea.hbm %s12068_s18, %s6423_s25  ;;  %s8908_s15 = scalar_lea.hbm %s12068_s18, 128 }
  0x64   : > { %s8903_s20 = scalar_lea.hbm %s9262_s16, 16  ;;  %p8909_p7 = scmp.lt.u32.totalorder %s9262_s16, %s12068_s18 }
  0x65   : > { %p8904_p12 = scmp.ne.s32.totalorder %s9262_s16, %s8903_s20  ;;  %p8910_p10 = scmp.lt.u32.totalorder %s8908_s15, %s8903_s20 }
  0x66   : > { %p8912_p9 = scmp.lt.u32.totalorder %s8903_s20, %s9262_s16 }
  0x67   : > { %p8906_p3 = pnand %p8905_p0, %p8904_p12  ;;  %p8911_p13 = por %p8910_p10, %p8909_p7 }
  0x69   : > { %p8907_p5 = pneg %p8906_p3  ;;  %p8913_p2 = por %p8912_p9, %p8911_p13 }
  0x6b   : > { %p8914_p1 = pnand %p8913_p2, %p8907_p5 }
  0x6d   : > { %8917 = shalt.err (!%p8914_p1)
}
  0x6e   : > { %s8918_s29 = scalar_lea.vmem %s9264_s4, 16  ;;  %s9007_s25 = smov [#allocation3]  }
  0x6f   : > { %p8919_p4 = scmp.ne.s32.totalorder %s9264_s4, %s8918_s29  ;;  %s8923_s17 = sshll.u32 %s9007_s25, 4  ;;  %s8924_s17 = int_to_ptr.vmem [resolvable:$false] %s8923_s17 }
  0x70   : > { %s8925_s26 = scalar_lea.vmem %s8924_s17, 32  ;;  %p8926_p3 = scmp.lt.s32.totalorder %s9264_s4, %s8924_s17 }
  0x71   : > { %p8921_p8 = pnand %p8919_p4, %p8905_p0  ;;  %p8927_p7 = scmp.lt.s32.totalorder %s8925_s26, %s8918_s29 }
  0x73   : > { %p8922_p12 = pneg %p8921_p8  ;;  %p8928_p10 = por %p8927_p7, %p8926_p3 }
  0x75   : > { %p8929_p13 = pnand %p8928_p10, %p8922_p12 }
  0x77   : > { %8932 = shalt.err (!%p8929_p13)
}
  0x78   : > { %8201 = dma.hbm_to_vmem [thread:$0]  (!%p9266_p11), %s9262_s16, 16, %s9264_s4, %s590_s1  }
  0x79   : > { %p12070_p5 = scmp.ne.s32.totalorder %s12060_s27, 0 }
  0x7a   : > { %s9298_s20 = sand.u32 (!%p12070_p5), 1, %s8995_s22   ;;  %p12071_p0 = scmp.ne.s32.totalorder (!%p12070_p5), %s12057_s3, 0 }
  0x7b   : > { %608 = sbr.rel (%p12070_p5) target bundleno = 5643 (0x160b), region = 100  ;;  %s611_s15 = scalar_lea.sflag (!%p12070_p5), [#allocation4], %s9298_s20 }
  0x82   : > { %8978 = dma.done.wait (%p12071_p0), %s611_s15, 16  }
  0x83   : > { %8980 = vsyncadd (%p12071_p0), %s611_s15, 4294967280  ;;  %p12072_p9 = scmp.eq.s32.totalorder %s9153_s2, 0 }
  0x85   : > { %8982 = dma.done.wait (%p12072_p9), [#allocation7], 32   ;;  %p12073_p11 = pmov %p12072_p9 }
  0x86   : > { %p681_p2 = scmp.lt.s32.totalorder %s9153_s2, 1  ;;  %v12039_v0 = vmov 0.0|0.0   ;;  %vm9009_vm0 = vmmov 0   ;;  %v12041_v1 = vmov 0.0   ;;  %s12074_s16 = sld [smem:[#allocation18_spill]]  ;;  %vm706_vm1 = vcmask 261120  }
  0x87   : > { %8984 = vsyncadd (%p12073_p11), [#allocation7], 4294967264  ;;  %7926 = vmatprep.subr.bf16.mxu0 %v12039_v0  ;;  %7067 = vmatprep.mubr.msk.f32.mxu0 %vm9009_vm0, %v12041_v1  ;;  %s12075_s30 = sld [smem:[#allocation15_spill]]  ;;  %v830_v15 = vlaneseq  ;;  %v686_v16 = vld [vmem:[#allocation6] sm:$0x1]  ;;  %vm841_vm2 = vcmask 254976  }
  0x88   : > { %7932 = vmatprep.subr.bf16.mxu1 %v12039_v0  ;;  %7096 = vmatprep.mubr.msk.f32.mxu1 %vm9009_vm0, %v12041_v1  ;;  %s682_s3 = scalar_select %p681_p2, %s9153_s2, 1  ;;  %v6428_v23 = vld [vmem:[#allocation8] ss:$0 sm:$0xff]  ;;  %vm862_vm3 = vcmask 253952   ;;  %vm1151_vm4 = vcmask 64512   ;;  %vm1407_vm6 = vcmask 1041408  }
  0x89   : > { %v831_v18 = vshrl.u32 %v830_v15, 7  ;;  %s12077_s5 = sld [smem:[#allocation20_spill]]  ;;  %s12078_s6 = sld [smem:[#allocation21_spill]]  ;;  %vm9601_vm5 = vmpackc.low %vm1151_vm4, %vm1151_vm4  ;;  %vm1287_vm7 = vcmask 408576   ;;  %vm1306_vm8 = vcmask 402432   ;;  %vm2750_vm9 = vcmask 130048  }
  0x8a   : > { %s8178_s17 = smul.u32 56, %s682_s3  ;;  %s9012_s3 = smov 88   ;;  %vm2758_vm10 = vcmask 195584   ;;  %vm3374_vm12 = vcmask 523264  }
  0x8b   : > { %v832_v19 = vsub.s32 0, %v831_v18  ;;  %v1005_v18 = vld [vmem:[%s11985_s7] sm:$0xff]  ;;  %s12031_s19 = smov 80   ;;  %s12029_s1 = smov 120  }
  0x8c   : > { %v695_v2 = vld [vmem:[%s12074_s16] sm:$0xff]  ;;  %v696_v3 = vld [vmem:[%s12074_s16 + $0x8] sm:$0xff]  ;;  %v697_v4 = vld [vmem:[%s12074_s16 + $0x10] sm:$0xff]  ;;  %s12025_s29 = smov 112   ;;  %s12027_s25 = smov 72  }
  0x8d   : > { %v7927_v5 = vpack.c.bf16 %v696_v3, %v695_v2  ;;  %v698_v6 = vld [vmem:[%s12074_s16 + $0x18] sm:$0xff]  ;;  %s685_s18 = scalar_lea.vmem %s12075_s30, %s8178_s17  ;;  %s12076_s30 = scalar_lea.vmem [#allocation3], %s9298_s20 }
  0x8e   : > { %v7930_v7 = vpack.c.bf16 %v698_v6, %v697_v4  ;;  %v688_v8 = vld [vmem:[%s685_s18] sm:$0xff]  ;;  %v689_v9 = vld [vmem:[%s685_s18 + $0x8] sm:$0xff]  ;;  %v690_v10 = vld [vmem:[%s685_s18 + $0x10] sm:$0xff]  ;;  %s12023_s17 = smov 104   ;;  %s12021_s26 = smov 64  }
  0x8f   : > { %7928 = vmatpush3.bf16.msra.mxu0 %v7927_v5  ;;  %v691_v11 = vld [vmem:[%s685_s18 + $0x18] sm:$0xff]  ;;  %v692_v12 = vld [vmem:[%s685_s18 + $0x20] sm:$0xff]  ;;  %v693_v13 = vld [vmem:[%s685_s18 + $0x28] sm:$0xff]  ;;  %s12019_s15 = smov 56   ;;  %s12017_s27 = smov 48  }
  0x90   : > { %7929 = vmatprep.subr.bf16.mxu0 %v12039_v0  ;;  %v694_v14 = vld [vmem:[%s685_s18 + $0x30] sm:$0x1]  ;;  %v687_v17 = vld [vmem:[%s12076_s30] sm:$0x1]  ;;  %s9011_s18 = smov 96   ;;  %s12015_s4 = smov 40  }
  0x91   : > { %v828_v20 = vadd.f32 %v687_v17, %v686_v16  ;;  %v9358_v21 = vrot.slane %v687_v17, %v832_v19  ;;  %s9022_s30 = smov 8  }
  0x93   : > { %7931 = vmatpush3.bf16.msra.mxu0 %v7930_v7  ;;  %v833_v22 = vrot.slane %v828_v20, %v832_v19  ;;  %v1006_v19 = vld [vmem:[%s11985_s7 + $0x8] sm:$0xff] }
  0x94   : > { %7938 = vmatprep.subr.bf16.mxu0 %v12039_v0  ;;  %v7933_v20 = vpack.c.bf16 %v1006_v19, %v1005_v18 }
  0x95   : > { %835 = vst.msk [vmem:[#allocation2] sm:$0xff] %vm706_vm1, %v833_v22  ;;  %836 = vst.msk [vmem:[#allocation2 + $0x8] sm:$0xff] %vm706_vm1, %v833_v22 }
  0x96   : > { %7068 = vmatmul.mubr.msk.f32.vlgmr.msra.gmra.mrb[0].mxu0 %vm706_vm1, %v688_v8  ;;  %837 = vst.msk [vmem:[#allocation2 + $0x10] sm:$0xff] %vm706_vm1, %v833_v22  ;;  %838 = vst.msk [vmem:[#allocation2 + $0x18] sm:$0xff] %vm706_vm1, %v833_v22  ;;  %7934 = vmatpush3.bf16.msra.mxu1 %v7933_v20 }
  0x97   : > { %7070 = vmatprep.mubr.msk.f32.mxu0 %vm9009_vm0, %v12041_v1  ;;  %839 = vst.msk [vmem:[#allocation2 + $0x20] sm:$0xff] %vm706_vm1, %v833_v22  ;;  %840 = vst.msk [vmem:[#allocation2 + $0x28] sm:$0xff] %vm706_vm1, %v833_v22  ;;  %7935 = vmatprep.subr.bf16.mxu1 %v12039_v0 }
  0x98   : > { %842 = vst.msk [vmem:[#allocation2 + $0x30] sm:$0x3] %vm841_vm2, %v833_v22  ;;  %v1008_v22 = vld [vmem:[%s11985_s7 + $0x18] sm:$0xff] }
  0x9a   : > { %7071 = vmatmul.mubr.msk.f32.gmra.mrb[2].mxu0 %vm706_vm1, %v689_v9 }
  0x9b   : > { %7073 = vmatprep.mubr.msk.f32.mxu0 %vm9009_vm0, %v12041_v1 }
  0x9e   : > { %7074 = vmatmul.mubr.msk.f32.gmra.mrb[4].mxu0 %vm706_vm1, %v690_v10 }
  0x9f   : > { %7076 = vmatprep.mubr.msk.f32.mxu0 %vm9009_vm0, %v12041_v1 }
  0xa2   : > { %7077 = vmatmul.mubr.msk.f32.gmra.mrb[6].mxu0 %vm706_vm1, %v691_v11 }
  0xa3   : > { %7079 = vmatprep.mubr.msk.f32.mxu0 %vm9009_vm0, %v12041_v1 }
  0xa6   : > { %7080 = vmatmul.mubr.msk.f32.gmra.mrb[8].mxu0 %vm706_vm1, %v692_v12 }
  0xa7   : > { %7082 = vmatprep.mubr.msk.f32.mxu0 %vm9009_vm0, %v12041_v1 }
  0xaa   : > { %7083 = vmatmul.mubr.msk.f32.gmra.mrb[10].mxu0 %vm706_vm1, %v693_v13 }
  0xab   : > { %7085 = vmatprep.mubr.msk.f32.mxu0 %vm9009_vm0, %v12041_v1 }
  0xae   : > { %7086 = vmatmul.mubr.msk.f32.gmra.mrb[12].mxu0 %vm706_vm1, %v694_v14 }
  0xaf   : > { %7131 = vmatprep.mubr.msk.f32.mxu0 %vm9009_vm0, %v12041_v1 }
 0x169   : > { %v794_v24 = vpop.f32.mrb[0].mxu0 }
 0x16a   : > { %v795_v25 = vadd.f32 %v6428_v23, %v794_v24  ;;  %v7069_v26 = vpop.f32.mrb[1].mxu0 }
 0x16c   : > { %v849_v27 = vadd.f32 %v9358_v21, %v795_v25 }
 0x16d   : > { %v799_v28 = vpop.f32.mrb[2].mxu0 }
 0x16e   : > { %856 = vst.msk [vmem:[#allocation2] sm:$0xff] %vm706_vm1, %v849_v27  ;;  %v800_v29 = vadd.f32 %v6428_v23, %v799_v28  ;;  %v7072_v30 = vpop.f32.mrb[3].mxu0 }
 0x170   : > { %v850_v31 = vadd.f32 %v9358_v21, %v800_v29 }
 0x171   : > { %v804_v32 = vpop.f32.mrb[4].mxu0 }
 0x172   : > { %857 = vst.msk [vmem:[#allocation2 + $0x8] sm:$0xff] %vm706_vm1, %v850_v31  ;;  %v805_v33 = vadd.f32 %v6428_v23, %v804_v32  ;;  %v7075_v34 = vpop.f32.mrb[5].mxu0 }
 0x174   : > { %v851_v35 = vadd.f32 %v9358_v21, %v805_v33 }
 0x175   : > { %v809_v36 = vpop.f32.mrb[6].mxu0  ;;  %v9372_v37 = vld [vmem:[#allocation2] sm:$0xff] }
 0x176   : > { %858 = vst.msk [vmem:[#allocation2 + $0x10] sm:$0xff] %vm706_vm1, %v851_v35  ;;  %v810_v38 = vadd.f32 %v6428_v23, %v809_v36  ;;  %v7078_v39 = vpop.f32.mrb[7].mxu0  ;;  %v873_v40 = vsel %vm706_vm1, %v9372_v37, 0.0  ;;  %v902_v41 = vmul.f32 %v9372_v37, %v9372_v37 }
 0x177   : > { %874 = vadd.xlane.f32.xlu0 %v873_v40 }
 0x178   : > { %v852_v42 = vadd.f32 %v9358_v21, %v810_v38  ;;  %v909_v48 = vsel %vm706_vm1, %v902_v41, 0.0 }
 0x179   : > { %v814_v43 = vpop.f32.mrb[8].mxu0  ;;  %v9380_v44 = vld [vmem:[#allocation2 + $0x8] sm:$0xff] }
 0x17a   : > { %859 = vst.msk [vmem:[#allocation2 + $0x18] sm:$0xff] %vm706_vm1, %v852_v42  ;;  %v815_v45 = vadd.f32 %v6428_v23, %v814_v43  ;;  %v7081_v46 = vpop.f32.mrb[9].mxu0  ;;  %v876_v47 = vsel %vm706_vm1, %v9380_v44, 0.0  ;;  %v903_v49 = vmul.f32 %v9380_v44, %v9380_v44 }
 0x17b   : > { %877 = vadd.xlane.f32.xlu1 %v876_v47  ;;  %910 = vadd.xlane.f32.xlu0 %v909_v48 }
 0x17c   : > { %v853_v50 = vadd.f32 %v9358_v21, %v815_v45  ;;  %v912_v55 = vsel %vm706_vm1, %v903_v49, 0.0 }
 0x17d   : > { %v819_v51 = vpop.f32.mrb[10].mxu0  ;;  %v9389_v52 = vld [vmem:[#allocation2 + $0x10] sm:$0xff] }
 0x17e   : > { %860 = vst.msk [vmem:[#allocation2 + $0x20] sm:$0xff] %vm706_vm1, %v853_v50  ;;  %v820_v53 = vadd.f32 %v6428_v23, %v819_v51  ;;  %v7084_v54 = vpop.f32.mrb[11].mxu0  ;;  %v879_v56 = vsel %vm706_vm1, %v9389_v52, 0.0  ;;  %v904_v57 = vmul.f32 %v9389_v52, %v9389_v52 }
 0x17f   : > { %913 = vadd.xlane.f32.xlu1 %v912_v55  ;;  %880 = vadd.xlane.f32.xlu0 %v879_v56 }
 0x180   : > { %v854_v58 = vadd.f32 %v9358_v21, %v820_v53  ;;  %v915_v59 = vsel %vm706_vm1, %v904_v57, 0.0 }
 0x181   : > { %v824_v60 = vpop.f32.mrb[12].mxu0  ;;  %v9399_v61 = vld [vmem:[#allocation2 + $0x18] sm:$0xff] }
 0x182   : > { %861 = vst.msk [vmem:[#allocation2 + $0x28] sm:$0xff] %vm706_vm1, %v854_v58  ;;  %v825_v62 = vadd.f32 %v6428_v23, %v824_v60  ;;  %v882_v63 = vsel %vm706_vm1, %v9399_v61, 0.0  ;;  %v905_v2 = vmul.f32 %v9399_v61, %v9399_v61  ;;  %v7087_v3 = vpop.f32.mrb[13].mxu0 }
 0x183   : > { %916 = vadd.xlane.f32.xlu1 %v915_v59  ;;  %883 = vadd.xlane.f32.xlu0 %v882_v63  ;;  %v6436_v3 = vld [vmem:[%s12077_s5] ss:$0 sm:$0xff] }
 0x184   : > { %v855_v4 = vadd.f32 %v9358_v21, %v825_v62  ;;  %v918_v5 = vsel %vm706_vm1, %v905_v2, 0.0  ;;  %v1007_v21 = vld [vmem:[%s11985_s7 + $0x10] sm:$0xff] }
 0x185   : > { %v9408_v6 = vld [vmem:[#allocation2 + $0x20] sm:$0xff]  ;;  %v7936_v23 = vpack.c.bf16 %v1008_v22, %v1007_v21 }
 0x186   : > { %863 = vst.msk [vmem:[#allocation2 + $0x30] sm:$0x1] %vm862_vm3, %v855_v4  ;;  %v885_v7 = vsel %vm706_vm1, %v9408_v6, 0.0  ;;  %v906_v8 = vmul.f32 %v9408_v6, %v9408_v6 }
 0x187   : > { %919 = vadd.xlane.f32.xlu1 %v918_v5  ;;  %886 = vadd.xlane.f32.xlu0 %v885_v7 }
 0x188   : > { %v921_v9 = vsel %vm706_vm1, %v906_v8, 0.0  ;;  %7937 = vmatpush3.bf16.msra.mxu1 %v7936_v23  ;;  %v6437_v8 = vld [vmem:[%s12078_s6] ss:$0 sm:$0xff] }
 0x189   : > { %v9415_v10 = vld [vmem:[#allocation2 + $0x28] sm:$0xff]  ;;  %7950 = vmatprep.subr.bf16.mxu1 %v12039_v0 }
 0x18a   : > { %v888_v11 = vsel %vm706_vm1, %v9415_v10, 0.0  ;;  %v907_v12 = vmul.f32 %v9415_v10, %v9415_v10 }
 0x18b   : > { %922 = vadd.xlane.f32.xlu1 %v921_v9  ;;  %889 = vadd.xlane.f32.xlu0 %v888_v11 }
 0x18c   : > { %v924_v13 = vsel %vm706_vm1, %v907_v12, 0.0 }
 0x18d   : > { %v9422_v14 = vld [vmem:[#allocation2 + $0x30] sm:$0x3] }
 0x18e   : > { %v891_v15 = vsel %vm841_vm2, %v9422_v14, 0.0  ;;  %v908_v16 = vmul.f32 %v9422_v14, %v9422_v14 }
 0x18f   : > { %925 = vadd.xlane.f32.xlu1 %v924_v13  ;;  %892 = vadd.xlane.f32.xlu0 %v891_v15 }
 0x190   : > { %v927_v17 = vsel %vm841_vm2, %v908_v16, 0.0 }
 0x193   : > { %928 = vadd.xlane.f32.xlu1 %v927_v17 }
 0x204   : > { %v875_v24 = vpop.xlane.xlu0 %874 }
 0x205   : > { %v895_v25 = vmul.f32 0.03125, %v875_v24 }
 0x207   : > { %v937_v28 = vmul.f32 %v895_v25, %v895_v25  ;;  %v951_v57 = vsub.f32 %v9372_v37, %v895_v25 }
 0x208   : > { %v878_v26 = vpop.xlane.xlu1 %877  ;;  %v911_v27 = vpop.xlane.xlu0 %910 }
 0x209   : > { %v896_v29 = vmul.f32 0.03125, %v878_v26  ;;  %v930_v30 = vmul.f32 0.03125, %v911_v27 }
 0x20b   : > { %v944_v31 = vsub.f32 %v930_v30, %v937_v28  ;;  %v938_v34 = vmul.f32 %v896_v29, %v896_v29  ;;  %v952_v37 = vsub.f32 %v9380_v44, %v896_v29 }
 0x20c   : > { %v914_v32 = vpop.xlane.xlu1 %913  ;;  %v881_v33 = vpop.xlane.xlu0 %880 }
 0x20d   : > { %v958_v35 = vadd.f32 1e-05, %v944_v31  ;;  %v931_v36 = vmul.f32 0.03125, %v914_v32  ;;  %v897_v38 = vmul.f32 0.03125, %v881_v33 }
 0x20f   : > { %8504 = vrsqrt.f32 %v958_v35  ;;  %v945_v39 = vsub.f32 %v931_v36, %v938_v34  ;;  %v939_v40 = vmul.f32 %v897_v38, %v897_v38  ;;  %v953_v22 = vsub.f32 %v9389_v52, %v897_v38 }
 0x210   : > { %v917_v41 = vpop.xlane.xlu1 %916  ;;  %v884_v42 = vpop.xlane.xlu0 %883 }
 0x211   : > { %v959_v43 = vadd.f32 1e-05, %v945_v39  ;;  %v932_v45 = vmul.f32 0.03125, %v917_v41  ;;  %v898_v46 = vmul.f32 0.03125, %v884_v42 }
 0x213   : > { %8506 = vrsqrt.f32 %v959_v43  ;;  %v946_v47 = vsub.f32 %v932_v45, %v939_v40  ;;  %v940_v48 = vmul.f32 %v898_v46, %v898_v46  ;;  %v954_v30 = vsub.f32 %v9399_v61, %v898_v46 }
 0x214   : > { %v920_v49 = vpop.xlane.xlu1 %919  ;;  %v887_v50 = vpop.xlane.xlu0 %886 }
 0x215   : > { %v960_v51 = vadd.f32 1e-05, %v946_v47  ;;  %v933_v53 = vmul.f32 0.03125, %v920_v49  ;;  %v899_v54 = vmul.f32 0.03125, %v887_v50 }
 0x217   : > { %8508 = vrsqrt.f32 %v960_v51  ;;  %v947_v55 = vsub.f32 %v933_v53, %v940_v48  ;;  %v941_v56 = vmul.f32 %v899_v54, %v899_v54  ;;  %v955_v35 = vsub.f32 %v9408_v6, %v899_v54 }
 0x218   : > { %v923_v58 = vpop.xlane.xlu1 %922  ;;  %v890_v59 = vpop.xlane.xlu0 %889 }
 0x219   : > { %v8505_v60 = vpop.eup %8504  ;;  %v961_v62 = vadd.f32 1e-05, %v947_v55  ;;  %v934_v63 = vmul.f32 0.03125, %v923_v58  ;;  %v900_v2 = vmul.f32 0.03125, %v890_v59 }
 0x21a   : > { %v972_v4 = vmul.f32 %v8505_v60, %v951_v57 }
 0x21b   : > { %8510 = vrsqrt.f32 %v961_v62  ;;  %v948_v5 = vsub.f32 %v934_v63, %v941_v56  ;;  %v942_v7 = vmul.f32 %v900_v2, %v900_v2  ;;  %v956_v40 = vsub.f32 %v9415_v10, %v900_v2 }
 0x21c   : > { %v926_v9 = vpop.xlane.xlu1 %925  ;;  %v893_v11 = vpop.xlane.xlu0 %892  ;;  %v985_v12 = vmul.f32 %v6436_v3, %v972_v4 }
 0x21d   : > { %v8507_v13 = vpop.eup %8506  ;;  %v962_v15 = vadd.f32 1e-05, %v948_v5  ;;  %v935_v16 = vmul.f32 0.03125, %v926_v9  ;;  %v901_v17 = vmul.f32 0.03125, %v893_v11 }
 0x21e   : > { %v998_v18 = vadd.f32 %v6437_v8, %v985_v12  ;;  %v973_v19 = vmul.f32 %v8507_v13, %v952_v37 }
 0x21f   : > { %8512 = vrsqrt.f32 %v962_v15  ;;  %v949_v20 = vsub.f32 %v935_v16, %v942_v7  ;;  %v943_v21 = vmul.f32 %v901_v17, %v901_v17  ;;  %v957_v45 = vsub.f32 %v9422_v14, %v901_v17 }
 0x220   : > { %v929_v23 = vpop.xlane.xlu1 %928  ;;  %7097 = vmatmul.mubr.msk.f32.vlgmr.msra.gmra.mrb[0].mxu1 %vm706_vm1, %v998_v18  ;;  %v986_v24 = vmul.f32 %v6436_v3, %v973_v19 }
 0x221   : > { %v8509_v25 = vpop.eup %8508  ;;  %v963_v44 = vadd.f32 1e-05, %v949_v20  ;;  %v936_v26 = vmul.f32 0.03125, %v929_v23  ;;  %7099 = vmatprep.mubr.msk.f32.mxu1 %vm9009_vm0, %v12041_v1 }
 0x222   : > { %v999_v27 = vadd.f32 %v6437_v8, %v986_v24  ;;  %v974_v28 = vmul.f32 %v8509_v25, %v953_v22 }
 0x223   : > { %8514 = vrsqrt.f32 %v963_v44  ;;  %v950_v29 = vsub.f32 %v936_v26, %v943_v21 }
 0x224   : > { %7100 = vmatmul.mubr.msk.f32.gmra.mrb[2].mxu1 %vm706_vm1, %v999_v27  ;;  %v987_v31 = vmul.f32 %v6436_v3, %v974_v28 }
 0x225   : > { %v8511_v52 = vpop.eup %8510  ;;  %v964_v32 = vadd.f32 1e-05, %v950_v29  ;;  %7102 = vmatprep.mubr.msk.f32.mxu1 %vm9009_vm0, %v12041_v1 }
 0x226   : > { %v1000_v33 = vadd.f32 %v6437_v8, %v987_v31  ;;  %v975_v34 = vmul.f32 %v8511_v52, %v954_v30 }
 0x227   : > { %8516 = vrsqrt.f32 %v964_v32 }
 0x228   : > { %7103 = vmatmul.mubr.msk.f32.gmra.mrb[4].mxu1 %vm706_vm1, %v1000_v33  ;;  %v988_v36 = vmul.f32 %v6436_v3, %v975_v34 }
 0x229   : > { %v8513_v38 = vpop.eup %8512  ;;  %7105 = vmatprep.mubr.msk.f32.mxu1 %vm9009_vm0, %v12041_v1 }
 0x22a   : > { %v1001_v61 = vadd.f32 %v6437_v8, %v988_v36  ;;  %v976_v39 = vmul.f32 %v8513_v38, %v955_v35 }
 0x22c   : > { %7106 = vmatmul.mubr.msk.f32.gmra.mrb[6].mxu1 %vm706_vm1, %v1001_v61  ;;  %v989_v41 = vmul.f32 %v6436_v3, %v976_v39 }
 0x22d   : > { %v8515_v42 = vpop.eup %8514  ;;  %7108 = vmatprep.mubr.msk.f32.mxu1 %vm9009_vm0, %v12041_v1 }
 0x22e   : > { %v1002_v43 = vadd.f32 %v6437_v8, %v989_v41  ;;  %v977_v6 = vmul.f32 %v8515_v42, %v956_v40 }
 0x230   : > { %7109 = vmatmul.mubr.msk.f32.gmra.mrb[8].mxu1 %vm706_vm1, %v1002_v43  ;;  %v990_v46 = vmul.f32 %v6436_v3, %v977_v6 }
 0x231   : > { %v8517_v47 = vpop.eup %8516  ;;  %7111 = vmatprep.mubr.msk.f32.mxu1 %vm9009_vm0, %v12041_v1 }
 0x232   : > { %v1003_v48 = vadd.f32 %v6437_v8, %v990_v46  ;;  %v978_v10 = vmul.f32 %v8517_v47, %v957_v45 }
 0x234   : > { %7112 = vmatmul.mubr.msk.f32.gmra.mrb[10].mxu1 %vm706_vm1, %v1003_v48  ;;  %v991_v49 = vmul.f32 %v6436_v3, %v978_v10 }
 0x235   : > { %7114 = vmatprep.mubr.msk.f32.mxu1 %vm9009_vm0, %v12041_v1 }
 0x236   : > { %v1004_v50 = vadd.f32 %v6437_v8, %v991_v49 }
 0x238   : > { %7115 = vmatmul.mubr.msk.f32.gmra.mrb[12].mxu1 %vm706_vm1, %v1004_v50 }
 0x239   : > { %7166 = vmatprep.mubr.msk.f32.mxu1 %vm9009_vm0, %v12041_v1 }
 0x2f3   : > { %v9477_v14 = vpop.f32.mrb[0].mxu1 }
 0x2f4   : > { %v7098_v51 = vpop.f32.mrb[1].mxu1 }
 0x2f7   : > { %v9479_v53 = vpop.f32.mrb[2].mxu1 }
 0x2f8   : > { %v7101_v54 = vpop.f32.mrb[3].mxu1  ;;  %v9483_v55 = vpack.i.bf16 %v9479_v53, %v9477_v14 }
 0x2fa   : > { %8265 = vrot.lane.b32.xlu0 %v9483_v55, %s9011_s18 }
 0x2fb   : > { %v9487_v56 = vpop.f32.mrb[4].mxu1 }
 0x2fc   : > { %v7104_v57 = vpop.f32.mrb[5].mxu1 }
 0x2fe   : > { %8280 = vrot.lane.b32.xlu0 %v9483_v55, %s9012_s3 }
 0x2ff   : > { %v9491_v58 = vpop.f32.mrb[6].mxu1 }
 0x300   : > { %v7107_v59 = vpop.f32.mrb[7].mxu1  ;;  %v9495_v60 = vpack.i.bf16 %v9491_v58, %v9487_v56 }
 0x302   : > { %8270 = vrot.lane.b32.xlu1 %v9495_v60, %s9011_s18 }
 0x303   : > { %v9499_v62 = vpop.f32.mrb[8].mxu1 }
 0x304   : > { %v7110_v63 = vpop.f32.mrb[9].mxu1 }
 0x307   : > { %v9501_v2 = vpop.f32.mrb[10].mxu1 }
 0x308   : > { %v7113_v3 = vpop.f32.mrb[11].mxu1  ;;  %v9505_v4 = vpack.i.bf16 %v9501_v2, %v9499_v62 }
 0x30a   : > { %8290 = vrot.lane.b32.xlu0 %v9505_v4, %s9012_s3  ;;  %8275 = vrot.lane.b32.xlu1 %v9505_v4, %s9011_s18 }
 0x30b   : > { %v9511_v5 = vpop.f32.mrb[12].mxu1 }
 0x30c   : > { %v7116_v7 = vpop.f32.mrb[13].mxu1 }
 0x30e   : > { %8295 = vrot.lane.b32.xlu0 %v9483_v55, %s12031_s19  ;;  %1149 = vrot.lane.b32.xlu1 %v9511_v5, %s9011_s18 }
 0x312   : > { %1512 = vrot.lane.b32.xlu0 %v9479_v53, %s12029_s1  ;;  %8285 = vrot.lane.b32.xlu1 %v9495_v60, %s9012_s3 }
 0x316   : > { %1514 = vrot.lane.b32.xlu0 %v9487_v56, %s12029_s1  ;;  %1536 = vrot.lane.b32.xlu1 %v9511_v5, %s9012_s3 }
 0x31a   : > { %8305 = vrot.lane.b32.xlu0 %v9505_v4, %s12031_s19  ;;  %1510 = vrot.lane.b32.xlu1 %v9477_v14, %s12029_s1 }
 0x31e   : > { %1520 = vrot.lane.b32.xlu0 %v9501_v2, %s12029_s1  ;;  %8300 = vrot.lane.b32.xlu1 %v9495_v60, %s12031_s19 }
 0x322   : > { %1919 = vrot.lane.b32.xlu0 %v9511_v5, %s12031_s19  ;;  %1516 = vrot.lane.b32.xlu1 %v9491_v58, %s12029_s1  ;;  %s12033_s19 = smov 24  }
 0x326   : > { %1893 = vrot.lane.b32.xlu0 %v9477_v14, %s12025_s29  ;;  %1518 = vrot.lane.b32.xlu1 %v9499_v62, %s12029_s1 }
 0x32a   : > { %8315 = vrot.lane.b32.xlu0 %v9495_v60, %s12027_s25  ;;  %1522 = vrot.lane.b32.xlu1 %v9511_v5, %s12029_s1  ;;  %s12086_s1 = smov 104  }
 0x32e   : > { %1899 = vrot.lane.b32.xlu0 %v9491_v58, %s12025_s29  ;;  %8310 = vrot.lane.b32.xlu1 %v9483_v55, %s12027_s25 }
 0x332   : > { %1901 = vrot.lane.b32.xlu0 %v9499_v62, %s12025_s29  ;;  %1895 = vrot.lane.b32.xlu1 %v9479_v53, %s12025_s29 }
 0x336   : > { %1905 = vrot.lane.b32.xlu0 %v9511_v5, %s12025_s29  ;;  %1897 = vrot.lane.b32.xlu1 %v9487_v56, %s12025_s29 }
 0x33a   : > { %2276 = vrot.lane.b32.xlu0 %v9477_v14, %s12023_s17  ;;  %8320 = vrot.lane.b32.xlu1 %v9505_v4, %s12027_s25 }
 0x33e   : > { %2280 = vrot.lane.b32.xlu0 %v9487_v56, %s12023_s17  ;;  %1903 = vrot.lane.b32.xlu1 %v9501_v2, %s12025_s29  ;;  %s12087_s29 = smov 64  }
 0x342   : > { %2284 = vrot.lane.b32.xlu0 %v9499_v62, %s12023_s17  ;;  %2302 = vrot.lane.b32.xlu1 %v9511_v5, %s12027_s25  ;;  %s12035_s25 = smov 16  }
 0x346   : > { %2288 = vrot.lane.b32.xlu0 %v9511_v5, %s12023_s17  ;;  %2278 = vrot.lane.b32.xlu1 %v9479_v53, %s12023_s17 }
 0x34a   : > { %8325 = vrot.lane.b32.xlu0 %v9483_v55, %s12021_s26  ;;  %2282 = vrot.lane.b32.xlu1 %v9491_v58, %s12023_s17 }
 0x34e   : > { %8335 = vrot.lane.b32.xlu0 %v9505_v4, %s12021_s26  ;;  %2286 = vrot.lane.b32.xlu1 %v9501_v2, %s12023_s17  ;;  %s12089_s17 = smov 48  }
 0x352   : > { %8340 = vrot.lane.b32.xlu0 %v9483_v55, %s12019_s15  ;;  %8330 = vrot.lane.b32.xlu1 %v9495_v60, %s12021_s26 }
 0x356   : > { %8350 = vrot.lane.b32.xlu0 %v9505_v4, %s12019_s15  ;;  %8345 = vrot.lane.b32.xlu1 %v9495_v60, %s12019_s15 }
 0x35a   : > { %8365 = vrot.lane.b32.xlu0 %v9505_v4, %s12017_s27  ;;  %8355 = vrot.lane.b32.xlu1 %v9483_v55, %s12017_s27 }
 0x35e   : > { %1762 = vrot.lane.b32.xlu0 %v9511_v5, %s12019_s15  ;;  %8360 = vrot.lane.b32.xlu1 %v9495_v60, %s12017_s27  ;;  %s12096_s15 = sld [smem:[#allocation23_spill]] }
 0x362   : > { %1378 = vrot.lane.b32.xlu1 %v9511_v5, %s12021_s26  ;;  %s12090_s26 = smov 40  }
 0x36c   : > { %v8266_v8 = vpop.permute.xlu0 %8265 }
 0x36d   : > { %v8268_v37 = vunpack.i.h.bf16 %v8266_v8  ;;  %v8267_v9 = vunpack.i.l.bf16 %v8266_v8 }
 0x36f   : > { %v7939_v12 = vpack.c.bf16 %v8268_v37, %v8267_v9 }
 0x370   : > { %v8281_v18 = vpop.permute.xlu0 %8280 }
 0x371   : > { %7941 = vmatpush3.bf16.xpose.msk.msra.mxu0 %vm9601_vm5, %v7939_v12  ;;  %v8283_v27 = vunpack.i.h.bf16 %v8281_v18  ;;  %v8282_v28 = vunpack.i.l.bf16 %v8281_v18 }
 0x372   : > { %7942 = vmatprep.subr.bf16.mxu0 %v12039_v0 }
 0x373   : > { %v7960_v31 = vpack.c.bf16 %v8283_v27, %v8282_v28 }
 0x374   : > { %v8271_v13 = vpop.permute.xlu1 %8270 }
 0x375   : > { %v8273_v15 = vunpack.i.h.bf16 %v8271_v13  ;;  %v8272_v16 = vunpack.i.l.bf16 %v8271_v13 }
 0x377   : > { %v7943_v17 = vpack.c.bf16 %v8273_v15, %v8272_v16 }
 0x379   : > { %7945 = vmatpush3.bf16.xpose.msk.msra.mxu0 %vm9601_vm5, %v7943_v17 }
 0x37a   : > { %7946 = vmatprep.subr.bf16.mxu0 %v12039_v0 }
 0x37c   : > { %v8276_v19 = vpop.permute.xlu1 %8275  ;;  %v8291_v20 = vpop.permute.xlu0 %8290 }
 0x37d   : > { %v8278_v21 = vunpack.i.h.bf16 %v8276_v19  ;;  %v8277_v22 = vunpack.i.l.bf16 %v8276_v19  ;;  %v8293_v40 = vunpack.i.h.bf16 %v8291_v20  ;;  %v8292_v41 = vunpack.i.l.bf16 %v8291_v20 }
 0x37f   : > { %v7947_v23 = vpack.c.bf16 %v8278_v21, %v8277_v22  ;;  %v7968_v6 = vpack.c.bf16 %v8293_v40, %v8292_v41 }
 0x380   : > { %v1150_v24 = vpop.permute.xlu1 %1149  ;;  %v8296_v25 = vpop.permute.xlu0 %8295 }
 0x381   : > { %7949 = vmatpush3.bf16.xpose.msk.msra.mxu0 %vm9601_vm5, %v7947_v23  ;;  %v8298_v10 = vunpack.i.h.bf16 %v8296_v25  ;;  %v8297_v49 = vunpack.i.l.bf16 %v8296_v25 }
 0x382   : > { %7129 = vmatprep.subr.mxu0 %v12041_v1 }
 0x383   : > { %v7981_v51 = vpack.c.bf16 %v8298_v10, %v8297_v49 }
 0x384   : > { %v8286_v44 = vpop.permute.xlu1 %8285  ;;  %v9614_v26 = vpop.permute.xlu0 %1512 }
 0x385   : > { %v8288_v33 = vunpack.i.h.bf16 %v8286_v44  ;;  %v8287_v34 = vunpack.i.l.bf16 %v8286_v44 }
 0x387   : > { %v7964_v38 = vpack.c.bf16 %v8288_v33, %v8287_v34 }
 0x388   : > { %v1537_v29 = vpop.permute.xlu1 %1536  ;;  %v9616_v30 = vpop.permute.xlu0 %1514 }
 0x389   : > { %7130 = vmatpush3.xpose.msk.msra.mxu0 %vm1151_vm4, %v1150_v24 }
 0x38a   : > { %7959 = vmatprep.subr.bf16.mxu0 %v12039_v0 }
 0x38c   : > { %v1511_v52 = vpop.permute.xlu1 %1510  ;;  %v9620_v32 = vpop.permute.xlu0 %8305  ;;  %7132 = vmatmul.mubr.msk.f32.vlgmr.msra.gmra.mrb[14].mxu0 %vm1151_vm4, %v9477_v14 }
 0x38d   : > { %7962 = vmatpush3.bf16.xpose.msk.msra.mxu0 %vm9601_vm5, %v7960_v31  ;;  %7134 = vmatprep.mubr.msk.f32.mxu0 %vm9009_vm0, %v12041_v1  ;;  %v8308_v3 = vunpack.i.h.bf16 %v9620_v32  ;;  %v8307_v7 = vunpack.i.l.bf16 %v9620_v32 }
 0x38e   : > { %7963 = vmatprep.subr.bf16.mxu0 %v12039_v0 }
 0x38f   : > { %v7989_v9 = vpack.c.bf16 %v8308_v3, %v8307_v7 }
 0x390   : > { %v8301_v35 = vpop.permute.xlu1 %8300  ;;  %v9629_v36 = vpop.permute.xlu0 %1520  ;;  %7135 = vmatmul.mubr.msk.f32.gmra.mrb[16].mxu0 %vm1151_vm4, %v9479_v53 }
 0x391   : > { %7137 = vmatprep.mubr.msk.f32.mxu0 %vm9009_vm0, %v12041_v1  ;;  %v8302_v57 = vunpack.i.l.bf16 %v8301_v35 }
 0x394   : > { %v1517_v61 = vpop.permute.xlu1 %1516  ;;  %v9635_v39 = vpop.permute.xlu0 %1919  ;;  %7138 = vmatmul.mubr.msk.f32.gmra.mrb[18].mxu0 %vm1151_vm4, %v9487_v56  ;;  %v8303_v56 = vunpack.i.h.bf16 %v8301_v35 }
 0x395   : > { %7966 = vmatpush3.bf16.xpose.msk.msra.mxu0 %vm9601_vm5, %v7964_v38  ;;  %7140 = vmatprep.mubr.msk.f32.mxu0 %vm9009_vm0, %v12041_v1 }
 0x396   : > { %7967 = vmatprep.subr.bf16.mxu0 %v12039_v0 }
 0x398   : > { %v1519_v42 = vpop.permute.xlu1 %1518  ;;  %v9644_v43 = vpop.permute.xlu0 %1893  ;;  %7141 = vmatmul.mubr.msk.f32.gmra.mrb[20].mxu0 %vm1151_vm4, %v9491_v58 }
 0x399   : > { %7143 = vmatprep.mubr.msk.f32.mxu0 %vm9009_vm0, %v12041_v1 }
 0x39c   : > { %v1523_v45 = vpop.permute.xlu1 %1522  ;;  %v9650_v46 = vpop.permute.xlu0 %8315  ;;  %7144 = vmatmul.mubr.msk.f32.gmra.mrb[22].mxu0 %vm1151_vm4, %v9499_v62  ;;  %v7985_v62 = vpack.c.bf16 %v8303_v56, %v8302_v57 }
 0x39d   : > { %7970 = vmatpush3.bf16.xpose.msk.msra.mxu0 %vm9601_vm5, %v7968_v6  ;;  %7146 = vmatprep.mubr.msk.f32.mxu0 %vm9009_vm0, %v12041_v1  ;;  %v8318_v27 = vunpack.i.h.bf16 %v9650_v46  ;;  %v8317_v28 = vunpack.i.l.bf16 %v9650_v46 }
 0x39e   : > { %7199 = vmatprep.subr.mxu0 %v12041_v1 }
 0x39f   : > { %v8006_v32 = vpack.c.bf16 %v8318_v27, %v8317_v28 }
 0x3a0   : > { %v8311_v47 = vpop.permute.xlu1 %8310  ;;  %v9659_v48 = vpop.permute.xlu0 %1899  ;;  %7147 = vmatmul.mubr.msk.f32.gmra.mrb[24].mxu0 %vm1151_vm4, %v9501_v2 }
 0x3a1   : > { %7149 = vmatprep.mubr.msk.f32.mxu0 %vm9009_vm0, %v12041_v1  ;;  %v8313_v19 = vunpack.i.h.bf16 %v8311_v47  ;;  %v8312_v20 = vunpack.i.l.bf16 %v8311_v47 }
 0x3a3   : > { %v8002_v23 = vpack.c.bf16 %v8313_v19, %v8312_v20 }
 0x3a4   : > { %v9665_v50 = vpop.permute.xlu1 %1895  ;;  %v9667_v14 = vpop.permute.xlu0 %1901  ;;  %7150 = vmatmul.mubr.msk.f32.gmra.mrb[26].mxu0 %vm1151_vm4, %v9511_v5 }
 0x3a5   : > { %7200 = vmatpush3.xpose.msk.msra.mxu0 %vm1151_vm4, %v1537_v29  ;;  %7201 = vmatprep.mubr.msk.f32.mxu0 %vm9009_vm0, %v12041_v1 }
 0x3a6   : > { %7980 = vmatprep.subr.bf16.mxu0 %v12039_v0 }
 0x3a8   : > { %v9675_v53 = vpop.permute.xlu1 %1897  ;;  %v9677_v54 = vpop.permute.xlu0 %1905  ;;  %7202 = vmatmul.mubr.msk.f32.vlgmr.msra.gmra.mrb[28].mxu0 %vm1151_vm4, %v1511_v52 }
 0x3a9   : > { %7983 = vmatpush3.bf16.xpose.msk.msra.mxu0 %vm9601_vm5, %v7981_v51  ;;  %7204 = vmatprep.mubr.msk.f32.mxu0 %vm9009_vm0, %v12041_v1 }
 0x3aa   : > { %7984 = vmatprep.subr.bf16.mxu0 %v12039_v0 }
 0x3ac   : > { %v9685_v58 = vpop.permute.xlu1 %8320  ;;  %v9687_v59 = vpop.permute.xlu0 %2276  ;;  %7205 = vmatmul.mubr.msk.f32.gmra.mrb[30].mxu0 %vm1151_vm4, %v9614_v26 }
 0x3ad   : > { %7207 = vmatprep.mubr.msk.f32.mxu0 %vm9009_vm0, %v12041_v1  ;;  %v8323_v35 = vunpack.i.h.bf16 %v9685_v58 }
 0x3b0   : > { %v9693_v63 = vpop.permute.xlu1 %1903  ;;  %v9695_v2 = vpop.permute.xlu0 %2280  ;;  %7208 = vmatmul.mubr.msk.f32.gmra.mrb[32].mxu0 %vm1151_vm4, %v9616_v30 }
 0x3b1   : > { %7987 = vmatpush3.bf16.xpose.msk.msra.mxu0 %vm9601_vm5, %v7985_v62  ;;  %7210 = vmatprep.mubr.msk.f32.mxu0 %vm9009_vm0, %v12041_v1 }
 0x3b2   : > { %7988 = vmatprep.subr.bf16.mxu0 %v12039_v0 }
 0x3b4   : > { %v9706_v8 = vpop.permute.xlu1 %2302  ;;  %v9708_v37 = vpop.permute.xlu0 %2284  ;;  %7211 = vmatmul.mubr.msk.f32.gmra.mrb[34].mxu0 %vm1151_vm4, %v1517_v61 }
 0x3b5   : > { %7213 = vmatprep.mubr.msk.f32.mxu0 %vm9009_vm0, %v12041_v1 }
 0x3b8   : > { %v9713_v12 = vpop.permute.xlu1 %2278  ;;  %v9715_v13 = vpop.permute.xlu0 %2288  ;;  %7214 = vmatmul.mubr.msk.f32.gmra.mrb[36].mxu0 %vm1151_vm4, %v1519_v42 }
 0x3b9   : > { %7991 = vmatpush3.bf16.xpose.msk.msra.mxu0 %vm9601_vm5, %v7989_v9  ;;  %7216 = vmatprep.mubr.msk.f32.mxu0 %vm9009_vm0, %v12041_v1 }
 0x3ba   : > { %7269 = vmatprep.subr.mxu0 %v12041_v1 }
 0x3bc   : > { %v9723_v15 = vpop.permute.xlu1 %2282  ;;  %v8326_v16 = vpop.permute.xlu0 %8325  ;;  %7217 = vmatmul.mubr.msk.f32.gmra.mrb[38].mxu0 %vm1151_vm4, %v9629_v36  ;;  %v8322_v36 = vunpack.i.l.bf16 %v9685_v58 }
 0x3bd   : > { %v8328_v17 = vunpack.i.h.bf16 %v8326_v16  ;;  %v8327_v18 = vunpack.i.l.bf16 %v8326_v16  ;;  %7219 = vmatprep.mubr.msk.f32.mxu0 %vm9009_vm0, %v12041_v1 }
 0x3be   : > { %v8010_v61 = vpack.c.bf16 %v8323_v35, %v8322_v36 }
 0x3bf   : > { %v7951_v21 = vpack.c.bf16 %v8328_v17, %v8327_v18 }
 0x3c0   : > { %v9729_v22 = vpop.permute.xlu1 %2286  ;;  %7220 = vmatmul.mubr.msk.f32.gmra.mrb[40].mxu0 %vm1151_vm4, %v1523_v45  ;;  %v8336_v24 = vpop.permute.xlu0 %8335 }
 0x3c1   : > { %7952 = vmatpush3.bf16.msra.mxu1 %v7951_v21  ;;  %7270 = vmatpush3.xpose.msk.msra.mxu0 %vm1151_vm4, %v9635_v39  ;;  %v8338_v29 = vunpack.i.h.bf16 %v8336_v24  ;;  %v8337_v30 = vunpack.i.l.bf16 %v8336_v24 }
 0x3c2   : > { %7271 = vmatprep.mubr.msk.f32.mxu0 %vm9009_vm0, %v12041_v1  ;;  %8001 = vmatprep.subr.bf16.mxu0 %v12039_v0 }
 0x3c3   : > { %7953 = vmatprep.subr.bf16.mxu1 %v12039_v0  ;;  %v7957_v33 = vpack.c.bf16 %v8338_v29, %v8337_v30 }
 0x3c4   : > { %v8331_v25 = vpop.permute.xlu1 %8330  ;;  %7272 = vmatmul.mubr.msk.f32.vlgmr.msra.gmra.mrb[42].mxu0 %vm1151_vm4, %v9644_v43 }
 0x3c5   : > { %v8333_v44 = vunpack.i.h.bf16 %v8331_v25  ;;  %v8332_v26 = vunpack.i.l.bf16 %v8331_v25  ;;  %8004 = vmatpush3.bf16.xpose.msk.msra.mxu0 %vm9601_vm5, %v8002_v23  ;;  %7274 = vmatprep.mubr.msk.f32.mxu0 %vm9009_vm0, %v12041_v1 }
 0x3c6   : > { %8005 = vmatprep.subr.bf16.mxu0 %v12039_v0 }
 0x3c7   : > { %v7954_v31 = vpack.c.bf16 %v8333_v44, %v8332_v26 }
 0x3c8   : > { %v9747_v52 = vpop.permute.xlu1 %8345  ;;  %7275 = vmatmul.mubr.msk.f32.gmra.mrb[44].mxu0 %vm1151_vm4, %v9665_v50 }
 0x3c9   : > { %7955 = vmatpush3.bf16.msra.mxu1 %v7954_v31  ;;  %7277 = vmatprep.mubr.msk.f32.mxu0 %vm9009_vm0, %v12041_v1 }
 0x3ca   : > { %7956 = vmatprep.subr.bf16.mxu1 %v12039_v0 }
 0x3cc   : > { %v9754_v34 = vpop.permute.xlu1 %8355  ;;  %7278 = vmatmul.mubr.msk.f32.gmra.mrb[46].mxu0 %vm1151_vm4, %v9675_v53 }
 0x3cd   : > { %7958 = vmatpush3.bf16.msra.mxu1 %v7957_v33  ;;  %8008 = vmatpush3.bf16.xpose.msk.msra.mxu0 %vm9601_vm5, %v8006_v32 }
 0x3ce   : > { %7280 = vmatprep.mubr.msk.f32.mxu0 %vm9009_vm0, %v12041_v1  ;;  %7164 = vmatprep.subr.mxu1 %v12041_v1 }
 0x3cf   : > { %8009 = vmatprep.subr.bf16.mxu0 %v12039_v0 }
 0x3d0   : > { %v9766_v38 = vpop.permute.xlu1 %8360  ;;  %7281 = vmatmul.mubr.msk.f32.gmra.mrb[48].mxu0 %vm1151_vm4, %v9659_v48 }
 0x3d1   : > { %7283 = vmatprep.mubr.msk.f32.mxu0 %vm9009_vm0, %v12041_v1 }
 0x3d4   : > { %v1379_v39 = vpop.permute.xlu1 %1378  ;;  %7284 = vmatmul.mubr.msk.f32.gmra.mrb[50].mxu0 %vm1151_vm4, %v9667_v14 }
 0x3d5   : > { %7165 = vmatpush3.msk.msra.mxu1 %vm1407_vm6, %v1379_v39  ;;  %8012 = vmatpush3.bf16.xpose.msk.msra.mxu0 %vm9601_vm5, %v8010_v61 }
 0x3d6   : > { %7286 = vmatprep.mubr.msk.f32.mxu0 %vm9009_vm0, %v12041_v1  ;;  %7339 = vmatprep.subr.mxu0 %v12041_v1 }
 0x3d7   : > { %7971 = vmatprep.subr.bf16.mxu1 %v12039_v0 }
 0x3d8   : > { %7287 = vmatmul.mubr.msk.f32.gmra.mrb[52].mxu0 %vm1151_vm4, %v9693_v63 }
 0x3d9   : > { %7289 = vmatprep.mubr.msk.f32.mxu0 %vm9009_vm0, %v12041_v1 }
 0x3dc   : > { %7290 = vmatmul.mubr.msk.f32.gmra.mrb[54].mxu0 %vm1151_vm4, %v9677_v54 }
 0x3dd   : > { %7340 = vmatpush3.xpose.msk.msra.mxu0 %vm1151_vm4, %v9706_v8  ;;  %7341 = vmatprep.mubr.msk.f32.mxu0 %vm9009_vm0, %v12041_v1 }
 0x3de   : > { %8022 = vmatprep.subr.bf16.mxu0 %v12039_v0 }
 0x3e0   : > { %7342 = vmatmul.mubr.msk.f32.vlgmr.msra.gmra.mrb[56].mxu0 %vm1151_vm4, %v9687_v59 }
 0x3e1   : > { %7344 = vmatprep.mubr.msk.f32.mxu0 %vm9009_vm0, %v12041_v1 }
 0x3e4   : > { %7345 = vmatmul.mubr.msk.f32.gmra.mrb[58].mxu0 %vm1151_vm4, %v9713_v12 }
 0x3e5   : > { %7347 = vmatprep.mubr.msk.f32.mxu0 %vm9009_vm0, %v12041_v1 }
 0x3e8   : > { %7348 = vmatmul.mubr.msk.f32.gmra.mrb[60].mxu0 %vm1151_vm4, %v9695_v2 }
 0x3e9   : > { %7350 = vmatprep.mubr.msk.f32.mxu0 %vm9009_vm0, %v12041_v1 }
 0x3ec   : > { %7351 = vmatmul.mubr.msk.f32.gmra.mrb[62].mxu0 %vm1151_vm4, %v9723_v15 }
 0x3ed   : > { %7353 = vmatprep.mubr.msk.f32.mxu0 %vm9009_vm0, %v12041_v1 }
 0x3f0   : > { %7354 = vmatmul.mubr.msk.f32.gmra.mrb[64].mxu0 %vm1151_vm4, %v9708_v37 }
 0x3f1   : > { %7356 = vmatprep.mubr.msk.f32.mxu0 %vm9009_vm0, %v12041_v1 }
 0x3f4   : > { %7357 = vmatmul.mubr.msk.f32.gmra.mrb[66].mxu0 %vm1151_vm4, %v9729_v22 }
 0x3f5   : > { %7359 = vmatprep.mubr.msk.f32.mxu0 %vm9009_vm0, %v12041_v1 }
 0x3f8   : > { %7360 = vmatmul.mubr.msk.f32.gmra.mrb[68].mxu0 %vm1151_vm4, %v9715_v13 }
 0x3f9   : > { %7405 = vmatprep.mubr.msk.f32.mxu0 %vm9009_vm0, %v12041_v1 }
 0x45f   : > { %v1246_v40 = vpop.f32.mrb[14].mxu0 }
 0x460   : > { %v9820_v41 = vmul.f32 0.35355338, %v1246_v40  ;;  %v7133_v42 = vpop.f32.mrb[15].mxu0 }
 0x462   : > { %v1288_v43 = vsel %vm1287_vm7, %v9820_v41, -inf }
 0x463   : > { %1289 = vmax.xlane.f32.xlu1 %v1288_v43  ;;  %v1251_v6 = vpop.f32.mrb[16].mxu0 }
 0x464   : > { %v9824_v45 = vmul.f32 0.35355338, %v1251_v6  ;;  %v7136_v46 = vpop.f32.mrb[17].mxu0 }
 0x466   : > { %v1291_v47 = vsel %vm1287_vm7, %v9824_v45, -inf }
 0x467   : > { %1292 = vmax.xlane.f32.xlu0 %v1291_v47  ;;  %v1256_v48 = vpop.f32.mrb[18].mxu0 }
 0x468   : > { %v9828_v10 = vmul.f32 0.35355338, %v1256_v48  ;;  %v7139_v49 = vpop.f32.mrb[19].mxu0 }
 0x46a   : > { %v1294_v50 = vsel %vm1287_vm7, %v9828_v10, -inf }
 0x46b   : > { %1295 = vmax.xlane.f32.xlu0 %v1294_v50  ;;  %v1261_v14 = vpop.f32.mrb[20].mxu0 }
 0x46c   : > { %v9832_v51 = vmul.f32 0.35355338, %v1261_v14  ;;  %v7142_v53 = vpop.f32.mrb[21].mxu0 }
 0x46e   : > { %v1297_v54 = vsel %vm1287_vm7, %v9832_v51, -inf }
 0x46f   : > { %1298 = vmax.xlane.f32.xlu0 %v1297_v54  ;;  %v1266_v56 = vpop.f32.mrb[22].mxu0 }
 0x470   : > { %v9836_v57 = vmul.f32 0.35355338, %v1266_v56  ;;  %v7145_v58 = vpop.f32.mrb[23].mxu0 }
 0x472   : > { %v1300_v59 = vsel %vm1287_vm7, %v9836_v57, -inf }
 0x473   : > { %1301 = vmax.xlane.f32.xlu1 %v1300_v59  ;;  %v1271_v62 = vpop.f32.mrb[24].mxu0 }
 0x474   : > { %v9840_v63 = vmul.f32 0.35355338, %v1271_v62  ;;  %v7148_v2 = vpop.f32.mrb[25].mxu0 }
 0x476   : > { %v1303_v3 = vsel %vm1287_vm7, %v9840_v63, -inf }
 0x477   : > { %1304 = vmax.xlane.f32.xlu0 %v1303_v3  ;;  %v1276_v7 = vpop.f32.mrb[26].mxu0 }
 0x478   : > { %v9844_v8 = vmul.f32 0.35355338, %v1276_v7  ;;  %v7151_v37 = vpop.f32.mrb[27].mxu0 }
 0x47a   : > { %v1307_v9 = vsel %vm1306_vm8, %v9844_v8, -inf }
 0x47b   : > { %1308 = vmax.xlane.f32.xlu1 %v1307_v9  ;;  %v1632_v12 = vpop.f32.mrb[28].mxu0 }
 0x47c   : > { %v9848_v13 = vmul.f32 0.35355338, %v1632_v12  ;;  %v7203_v15 = vpop.f32.mrb[29].mxu0 }
 0x47e   : > { %v1673_v16 = vsel %vm1287_vm7, %v9848_v13, -inf }
 0x47f   : > { %1674 = vmax.xlane.f32.xlu0 %v1673_v16  ;;  %v1637_v17 = vpop.f32.mrb[30].mxu0 }
 0x480   : > { %v9852_v18 = vmul.f32 0.35355338, %v1637_v17  ;;  %v7206_v19 = vpop.f32.mrb[31].mxu0 }
 0x482   : > { %v1676_v20 = vsel %vm1287_vm7, %v9852_v18, -inf }
 0x483   : > { %1677 = vmax.xlane.f32.xlu1 %v1676_v20  ;;  %v1642_v21 = vpop.f32.mrb[32].mxu0 }
 0x484   : > { %v9856_v22 = vmul.f32 0.35355338, %v1642_v21  ;;  %v7209_v23 = vpop.f32.mrb[33].mxu0 }
 0x486   : > { %v1679_v24 = vsel %vm1287_vm7, %v9856_v22, -inf }
 0x487   : > { %1680 = vmax.xlane.f32.xlu0 %v1679_v24  ;;  %v1647_v25 = vpop.f32.mrb[34].mxu0 }
 0x488   : > { %v9860_v44 = vmul.f32 0.35355338, %v1647_v25  ;;  %v7212_v26 = vpop.f32.mrb[35].mxu0 }
 0x48a   : > { %v1682_v27 = vsel %vm1287_vm7, %v9860_v44, -inf }
 0x48b   : > { %1683 = vmax.xlane.f32.xlu1 %v1682_v27  ;;  %v1652_v28 = vpop.f32.mrb[36].mxu0 }
 0x48c   : > { %v9864_v29 = vmul.f32 0.35355338, %v1652_v28  ;;  %v7215_v30 = vpop.f32.mrb[37].mxu0 }
 0x48e   : > { %v1685_v31 = vsel %vm1287_vm7, %v9864_v29, -inf }
 0x48f   : > { %1686 = vmax.xlane.f32.xlu0 %v1685_v31  ;;  %v1657_v32 = vpop.f32.mrb[38].mxu0 }
 0x490   : > { %v9868_v33 = vmul.f32 0.35355338, %v1657_v32  ;;  %v7218_v35 = vpop.f32.mrb[39].mxu0 }
 0x492   : > { %v1688_v36 = vsel %vm1287_vm7, %v9868_v33, -inf }
 0x493   : > { %1689 = vmax.xlane.f32.xlu1 %v1688_v36  ;;  %v1662_v61 = vpop.f32.mrb[40].mxu0 }
 0x494   : > { %v9872_v39 = vmul.f32 0.35355338, %v1662_v61  ;;  %v7221_v40 = vpop.f32.mrb[41].mxu0 }
 0x496   : > { %v1691_v42 = vsel %vm1306_vm8, %v9872_v39, -inf }
 0x497   : > { %1692 = vmax.xlane.f32.xlu0 %v1691_v42  ;;  %v2015_v43 = vpop.f32.mrb[42].mxu0 }
 0x498   : > { %v9876_v6 = vmul.f32 0.35355338, %v2015_v43  ;;  %v7273_v46 = vpop.f32.mrb[43].mxu0 }
 0x49a   : > { %v2056_v47 = vsel %vm1287_vm7, %v9876_v6, -inf }
 0x49b   : > { %2057 = vmax.xlane.f32.xlu1 %v2056_v47  ;;  %v2020_v48 = vpop.f32.mrb[44].mxu0 }
 0x49c   : > { %v9880_v49 = vmul.f32 0.35355338, %v2020_v48  ;;  %v7276_v50 = vpop.f32.mrb[45].mxu0 }
 0x49e   : > { %v2059_v14 = vsel %vm1287_vm7, %v9880_v49, -inf }
 0x49f   : > { %2060 = vmax.xlane.f32.xlu0 %v2059_v14  ;;  %v2025_v53 = vpop.f32.mrb[46].mxu0 }
 0x4a0   : > { %v9884_v54 = vmul.f32 0.35355338, %v2025_v53  ;;  %v7279_v56 = vpop.f32.mrb[47].mxu0 }
 0x4a2   : > { %v2062_v58 = vsel %vm1287_vm7, %v9884_v54, -inf }
 0x4a3   : > { %2063 = vmax.xlane.f32.xlu1 %v2062_v58  ;;  %v2030_v59 = vpop.f32.mrb[48].mxu0 }
 0x4a4   : > { %v9888_v62 = vmul.f32 0.35355338, %v2030_v59  ;;  %v7282_v2 = vpop.f32.mrb[49].mxu0 }
 0x4a6   : > { %v2065_v3 = vsel %vm1287_vm7, %v9888_v62, -inf }
 0x4a7   : > { %2066 = vmax.xlane.f32.xlu0 %v2065_v3  ;;  %v2035_v7 = vpop.f32.mrb[50].mxu0 }
 0x4a8   : > { %v9892_v37 = vmul.f32 0.35355338, %v2035_v7  ;;  %v7285_v9 = vpop.f32.mrb[51].mxu0 }
 0x4aa   : > { %v2068_v12 = vsel %vm1287_vm7, %v9892_v37, -inf }
 0x4ab   : > { %2069 = vmax.xlane.f32.xlu1 %v2068_v12  ;;  %v2040_v15 = vpop.f32.mrb[52].mxu0 }
 0x4ac   : > { %v9896_v16 = vmul.f32 0.35355338, %v2040_v15  ;;  %v7288_v17 = vpop.f32.mrb[53].mxu0 }
 0x4ad   : > { %v9934_v17 = vpop.permute.xlu0 %8340 }
 0x4ae   : > { %v2071_v19 = vsel %vm1287_vm7, %v9896_v16, -inf }
 0x4af   : > { %2072 = vmax.xlane.f32.xlu0 %v2071_v19  ;;  %v2045_v20 = vpop.f32.mrb[54].mxu0 }
 0x4b0   : > { %v9900_v21 = vmul.f32 0.35355338, %v2045_v20  ;;  %v7291_v23 = vpop.f32.mrb[55].mxu0 }
 0x4b1   : > { %v9936_v19 = vpop.permute.xlu0 %8350 }
 0x4b2   : > { %v2074_v24 = vsel %vm1306_vm8, %v9900_v21, -inf }
 0x4b3   : > { %2075 = vmax.xlane.f32.xlu1 %v2074_v24  ;;  %v2398_v25 = vpop.f32.mrb[56].mxu0 }
 0x4b4   : > { %v9904_v26 = vmul.f32 0.35355338, %v2398_v25  ;;  %v7343_v27 = vpop.f32.mrb[57].mxu0 }
 0x4b5   : > { %v9940_v20 = vpop.permute.xlu0 %8365 }
 0x4b6   : > { %v2439_v28 = vsel %vm1287_vm7, %v9904_v26, -inf }
 0x4b7   : > { %2440 = vmax.xlane.f32.xlu0 %v2439_v28  ;;  %v2403_v30 = vpop.f32.mrb[58].mxu0 }
 0x4b8   : > { %v9908_v31 = vmul.f32 0.35355338, %v2403_v30  ;;  %v7346_v32 = vpop.f32.mrb[59].mxu0 }
 0x4b9   : > { %v9942_v23 = vpop.permute.xlu0 %1762 }
 0x4ba   : > { %v2442_v35 = vsel %vm1287_vm7, %v9908_v31, -inf }
 0x4bb   : > { %2443 = vmax.xlane.f32.xlu0 %v2442_v35  ;;  %v2408_v36 = vpop.f32.mrb[60].mxu0 }
 0x4bc   : > { %v9912_v61 = vmul.f32 0.35355338, %v2408_v36  ;;  %v7349_v40 = vpop.f32.mrb[61].mxu0 }
 0x4be   : > { %v2445_v42 = vsel %vm1287_vm7, %v9912_v61, -inf }
 0x4bf   : > { %2446 = vmax.xlane.f32.xlu0 %v2445_v42  ;;  %v2413_v43 = vpop.f32.mrb[62].mxu0 }
 0x4c0   : > { %v9916_v46 = vmul.f32 0.35355338, %v2413_v43  ;;  %v7352_v47 = vpop.f32.mrb[63].mxu0 }
 0x4c2   : > { %v2448_v48 = vsel %vm1287_vm7, %v9916_v46, -inf }
 0x4c3   : > { %2449 = vmax.xlane.f32.xlu0 %v2448_v48  ;;  %v2418_v50 = vpop.f32.mrb[64].mxu0 }
 0x4c4   : > { %v9920_v14 = vmul.f32 0.35355338, %v2418_v50  ;;  %v7355_v53 = vpop.f32.mrb[65].mxu0 }
 0x4c6   : > { %v2451_v56 = vsel %vm1287_vm7, %v9920_v14, -inf }
 0x4c7   : > { %2452 = vmax.xlane.f32.xlu1 %v2451_v56  ;;  %v2423_v58 = vpop.f32.mrb[66].mxu0 }
 0x4c8   : > { %v9924_v59 = vmul.f32 0.35355338, %v2423_v58  ;;  %v7358_v2 = vpop.f32.mrb[67].mxu0 }
 0x4ca   : > { %v2454_v3 = vsel %vm1287_vm7, %v9924_v59, -inf }
 0x4cb   : > { %2455 = vmax.xlane.f32.xlu0 %v2454_v3  ;;  %v2428_v7 = vpop.f32.mrb[68].mxu0 }
 0x4cc   : > { %v9928_v9 = vmul.f32 0.35355338, %v2428_v7  ;;  %v7361_v12 = vpop.f32.mrb[69].mxu0 }
 0x4ce   : > { %v2457_v15 = vsel %vm1306_vm8, %v9928_v9, -inf }
 0x4cf   : > { %2458 = vmax.xlane.f32.xlu0 %v2457_v15 }
 0x4d8   : > { %8370 = vrot.lane.b32.xlu1 %v9483_v55, %s12015_s4 }
 0x4e5   : > { %2145 = vrot.lane.b32.xlu0 %v9511_v5, %s12017_s27  ;;  %s12082_s27 = smov 80  }
 0x4f0   : > { %v1290_v24 = vpop.xlane.xlu1 %1289 }
 0x4f1   : > { %v1310_v25 = vsub.f32 %v9820_v41, %v1290_v24 }
 0x4f3   : > { %v1317_v27 = vmul.f32 1.442695, %v1310_v25 }
 0x4f4   : > { %v1293_v28 = vpop.xlane.xlu0 %1292 }
 0x4f5   : > { %8518 = vpow2.f32 %v1317_v27  ;;  %v1311_v30 = vsub.f32 %v9824_v45, %v1293_v28 }
 0x4f7   : > { %v1319_v55 = vmul.f32 1.442695, %v1311_v30 }
 0x4f8   : > { %v1296_v32 = vpop.xlane.xlu0 %1295 }
 0x4f9   : > { %8520 = vpow2.f32 %v1319_v55  ;;  %v1312_v35 = vsub.f32 %v9828_v10, %v1296_v32 }
 0x4fb   : > { %v1321_v36 = vmul.f32 1.442695, %v1312_v35 }
 0x4fc   : > { %v1299_v40 = vpop.xlane.xlu0 %1298 }
 0x4fd   : > { %8522 = vpow2.f32 %v1321_v36  ;;  %v1313_v42 = vsub.f32 %v9832_v51, %v1299_v40 }
 0x4ff   : > { %v9948_v43 = vpop.eup %8518  ;;  %v1323_v47 = vmul.f32 1.442695, %v1313_v42 }
 0x500   : > { %v1302_v48 = vpop.xlane.xlu1 %1301  ;;  %v1331_v41 = vsel %vm1287_vm7, %v9948_v43, 0.0 }
 0x501   : > { %8524 = vpow2.f32 %v1323_v47  ;;  %v1314_v45 = vsub.f32 %v9836_v57, %v1302_v48  ;;  %1332 = vadd.xlane.f32.xlu1 %v1331_v41 }
 0x503   : > { %v9953_v50 = vpop.eup %8520  ;;  %v1325_v53 = vmul.f32 1.442695, %v1314_v45 }
 0x504   : > { %v1305_v10 = vpop.xlane.xlu0 %1304  ;;  %v1334_v56 = vsel %vm1287_vm7, %v9953_v50, 0.0 }
 0x505   : > { %8526 = vpow2.f32 %v1325_v53  ;;  %v1315_v51 = vsub.f32 %v9840_v63, %v1305_v10  ;;  %1335 = vadd.xlane.f32.xlu1 %v1334_v56 }
 0x507   : > { %v9958_v58 = vpop.eup %8522  ;;  %v1327_v2 = vmul.f32 1.442695, %v1315_v51 }
 0x508   : > { %v1309_v3 = vpop.xlane.xlu1 %1308  ;;  %v1337_v7 = vsel %vm1287_vm7, %v9958_v58, 0.0 }
 0x509   : > { %8528 = vpow2.f32 %v1327_v2  ;;  %v1316_v57 = vsub.f32 %v9844_v8, %v1309_v3  ;;  %1338 = vadd.xlane.f32.xlu1 %v1337_v7 }
 0x50b   : > { %v9963_v12 = vpop.eup %8524  ;;  %v1329_v15 = vmul.f32 1.442695, %v1316_v57 }
 0x50c   : > { %v1675_v24 = vpop.xlane.xlu0 %1674  ;;  %v1340_v25 = vsel %vm1287_vm7, %v9963_v12, 0.0 }
 0x50d   : > { %8530 = vpow2.f32 %v1329_v15  ;;  %v1694_v63 = vsub.f32 %v9848_v13, %v1675_v24  ;;  %1341 = vadd.xlane.f32.xlu1 %v1340_v25 }
 0x50f   : > { %v9968_v27 = vpop.eup %8526  ;;  %v1701_v28 = vmul.f32 1.442695, %v1694_v63 }
 0x510   : > { %v1678_v30 = vpop.xlane.xlu1 %1677  ;;  %v1343_v55 = vsel %vm1287_vm7, %v9968_v27, 0.0 }
 0x511   : > { %8532 = vpow2.f32 %v1701_v28  ;;  %v1695_v8 = vsub.f32 %v9852_v18, %v1678_v30  ;;  %1344 = vadd.xlane.f32.xlu1 %v1343_v55 }
 0x513   : > { %v9973_v32 = vpop.eup %8528  ;;  %v1703_v35 = vmul.f32 1.442695, %v1695_v8 }
 0x514   : > { %v1681_v36 = vpop.xlane.xlu0 %1680  ;;  %v1346_v40 = vsel %vm1287_vm7, %v9973_v32, 0.0 }
 0x515   : > { %8534 = vpow2.f32 %v1703_v35  ;;  %v1696_v13 = vsub.f32 %v9856_v22, %v1681_v36  ;;  %1347 = vadd.xlane.f32.xlu1 %v1346_v40 }
 0x517   : > { %v9978_v42 = vpop.eup %8530  ;;  %v1705_v47 = vmul.f32 1.442695, %v1696_v13 }
 0x518   : > { %v1684_v48 = vpop.xlane.xlu1 %1683  ;;  %v1349_v41 = vsel %vm1306_vm8, %v9978_v42, 0.0 }
 0x519   : > { %8536 = vpow2.f32 %v1705_v47  ;;  %v1697_v18 = vsub.f32 %v9860_v44, %v1684_v48  ;;  %1350 = vadd.xlane.f32.xlu1 %v1349_v41 }
 0x51b   : > { %v9983_v45 = vpop.eup %8532  ;;  %v1707_v53 = vmul.f32 1.442695, %v1697_v18 }
 0x51c   : > { %v1687_v10 = vpop.xlane.xlu0 %1686  ;;  %v1715_v56 = vsel %vm1287_vm7, %v9983_v45, 0.0 }
 0x51d   : > { %8538 = vpow2.f32 %v1707_v53  ;;  %v1698_v22 = vsub.f32 %v9864_v29, %v1687_v10  ;;  %1716 = vadd.xlane.f32.xlu1 %v1715_v56 }
 0x51f   : > { %v9988_v51 = vpop.eup %8534  ;;  %v1709_v2 = vmul.f32 1.442695, %v1698_v22 }
 0x520   : > { %v1690_v3 = vpop.xlane.xlu1 %1689  ;;  %v1718_v7 = vsel %vm1287_vm7, %v9988_v51, 0.0 }
 0x521   : > { %8540 = vpow2.f32 %v1709_v2  ;;  %v1699_v44 = vsub.f32 %v9868_v33, %v1690_v3  ;;  %1719 = vadd.xlane.f32.xlu0 %v1718_v7 }
 0x523   : > { %v9993_v57 = vpop.eup %8536  ;;  %v1711_v15 = vmul.f32 1.442695, %v1699_v44 }
 0x524   : > { %v1693_v24 = vpop.xlane.xlu0 %1692  ;;  %v1721_v25 = vsel %vm1287_vm7, %v9993_v57, 0.0 }
 0x525   : > { %8542 = vpow2.f32 %v1711_v15  ;;  %v1700_v29 = vsub.f32 %v9872_v39, %v1693_v24  ;;  %1722 = vadd.xlane.f32.xlu0 %v1721_v25 }
 0x527   : > { %v9998_v63 = vpop.eup %8538  ;;  %v1713_v28 = vmul.f32 1.442695, %v1700_v29 }
 0x528   : > { %v2058_v30 = vpop.xlane.xlu1 %2057  ;;  %v1724_v55 = vsel %vm1287_vm7, %v9998_v63, 0.0 }
 0x529   : > { %8544 = vpow2.f32 %v1713_v28  ;;  %v2077_v33 = vsub.f32 %v9876_v6, %v2058_v30  ;;  %1725 = vadd.xlane.f32.xlu0 %v1724_v55 }
 0x52b   : > { %v10003_v8 = vpop.eup %8540  ;;  %v2084_v35 = vmul.f32 1.442695, %v2077_v33 }
 0x52c   : > { %v2061_v36 = vpop.xlane.xlu0 %2060  ;;  %v1727_v40 = vsel %vm1287_vm7, %v10003_v8, 0.0 }
 0x52d   : > { %8546 = vpow2.f32 %v2084_v35  ;;  %v2078_v39 = vsub.f32 %v9880_v49, %v2061_v36  ;;  %1728 = vadd.xlane.f32.xlu1 %v1727_v40 }
 0x52f   : > { %v10008_v13 = vpop.eup %8542  ;;  %v2086_v47 = vmul.f32 1.442695, %v2078_v39 }
 0x530   : > { %v2064_v48 = vpop.xlane.xlu1 %2063  ;;  %v1730_v41 = vsel %vm1287_vm7, %v10008_v13, 0.0 }
 0x531   : > { %8548 = vpow2.f32 %v2086_v47  ;;  %v2079_v6 = vsub.f32 %v9884_v54, %v2064_v48  ;;  %1731 = vadd.xlane.f32.xlu1 %v1730_v41 }
 0x533   : > { %v10013_v18 = vpop.eup %8544  ;;  %v2088_v53 = vmul.f32 1.442695, %v2079_v6 }
 0x534   : > { %v2067_v10 = vpop.xlane.xlu0 %2066  ;;  %v1733_v56 = vsel %vm1306_vm8, %v10013_v18, 0.0 }
 0x535   : > { %8550 = vpow2.f32 %v2088_v53  ;;  %v2080_v49 = vsub.f32 %v9888_v62, %v2067_v10  ;;  %1734 = vadd.xlane.f32.xlu0 %v1733_v56 }
 0x537   : > { %v10018_v22 = vpop.eup %8546  ;;  %v2090_v2 = vmul.f32 1.442695, %v2080_v49 }
 0x538   : > { %v2070_v3 = vpop.xlane.xlu1 %2069  ;;  %v2098_v7 = vsel %vm1287_vm7, %v10018_v22, 0.0 }
 0x539   : > { %8552 = vpow2.f32 %v2090_v2  ;;  %v2081_v54 = vsub.f32 %v9892_v37, %v2070_v3  ;;  %2099 = vadd.xlane.f32.xlu1 %v2098_v7 }
 0x53b   : > { %v10023_v44 = vpop.eup %8548  ;;  %v2092_v15 = vmul.f32 1.442695, %v2081_v54 }
 0x53c   : > { %v2073_v24 = vpop.xlane.xlu0 %2072  ;;  %v2101_v25 = vsel %vm1287_vm7, %v10023_v44, 0.0 }
 0x53d   : > { %8554 = vpow2.f32 %v2092_v15  ;;  %v2082_v62 = vsub.f32 %v9896_v16, %v2073_v24  ;;  %2102 = vadd.xlane.f32.xlu1 %v2101_v25 }
 0x53f   : > { %v10028_v29 = vpop.eup %8550  ;;  %v2094_v28 = vmul.f32 1.442695, %v2082_v62 }
 0x540   : > { %v2076_v30 = vpop.xlane.xlu1 %2075  ;;  %v2104_v55 = vsel %vm1287_vm7, %v10028_v29, 0.0 }
 0x541   : > { %8556 = vpow2.f32 %v2094_v28  ;;  %v2083_v37 = vsub.f32 %v9900_v21, %v2076_v30  ;;  %2105 = vadd.xlane.f32.xlu1 %v2104_v55 }
 0x543   : > { %v10033_v33 = vpop.eup %8552  ;;  %v2096_v35 = vmul.f32 1.442695, %v2083_v37 }
 0x544   : > { %v2441_v36 = vpop.xlane.xlu0 %2440  ;;  %v2107_v40 = vsel %vm1287_vm7, %v10033_v33, 0.0 }
 0x545   : > { %8558 = vpow2.f32 %v2096_v35  ;;  %v2460_v16 = vsub.f32 %v9904_v26, %v2441_v36  ;;  %2108 = vadd.xlane.f32.xlu1 %v2107_v40 }
 0x547   : > { %v10038_v39 = vpop.eup %8554  ;;  %v2467_v47 = vmul.f32 1.442695, %v2460_v16 }
 0x548   : > { %v2444_v48 = vpop.xlane.xlu0 %2443  ;;  %v2110_v41 = vsel %vm1287_vm7, %v10038_v39, 0.0 }
 0x549   : > { %8560 = vpow2.f32 %v2467_v47  ;;  %v2461_v21 = vsub.f32 %v9908_v31, %v2444_v48  ;;  %2111 = vadd.xlane.f32.xlu0 %v2110_v41 }
 0x54b   : > { %v10043_v6 = vpop.eup %8556  ;;  %v2469_v53 = vmul.f32 1.442695, %v2461_v21 }
 0x54c   : > { %v2447_v10 = vpop.xlane.xlu0 %2446  ;;  %v2113_v56 = vsel %vm1287_vm7, %v10043_v6, 0.0 }
 0x54d   : > { %8562 = vpow2.f32 %v2469_v53  ;;  %v2462_v26 = vsub.f32 %v9912_v61, %v2447_v10  ;;  %2114 = vadd.xlane.f32.xlu1 %v2113_v56 }
 0x54f   : > { %v10048_v49 = vpop.eup %8558  ;;  %v2471_v2 = vmul.f32 1.442695, %v2462_v26  ;;  %v8343_v26 = vunpack.i.h.bf16 %v9934_v17 }
 0x550   : > { %v2450_v3 = vpop.xlane.xlu0 %2449  ;;  %v2116_v7 = vsel %vm1306_vm8, %v10048_v49, 0.0 }
 0x551   : > { %8564 = vpow2.f32 %v2471_v2  ;;  %v2463_v31 = vsub.f32 %v9916_v46, %v2450_v3  ;;  %2117 = vadd.xlane.f32.xlu1 %v2116_v7  ;;  %v8342_v2 = vunpack.i.l.bf16 %v9934_v17 }
 0x553   : > { %v10053_v54 = vpop.eup %8560  ;;  %v2473_v15 = vmul.f32 1.442695, %v2463_v31 }
 0x554   : > { %v2453_v24 = vpop.xlane.xlu1 %2452  ;;  %v2481_v25 = vsel %vm1287_vm7, %v10053_v54, 0.0 }
 0x555   : > { %8566 = vpow2.f32 %v2473_v15  ;;  %v2464_v61 = vsub.f32 %v9920_v14, %v2453_v24  ;;  %2482 = vadd.xlane.f32.xlu1 %v2481_v25  ;;  %v7972_v15 = vpack.c.bf16 %v8343_v26, %v8342_v2  ;;  %v8348_v24 = vunpack.i.h.bf16 %v9747_v52 }
 0x556   : > { %v8347_v25 = vunpack.i.l.bf16 %v9747_v52 }
 0x557   : > { %v10058_v62 = vpop.eup %8562  ;;  %v2475_v28 = vmul.f32 1.442695, %v2464_v61 }
 0x558   : > { %v2484_v30 = vsel %vm1287_vm7, %v10058_v62, 0.0  ;;  %v2456_v40 = vpop.xlane.xlu0 %2455  ;;  %v10084_v10 = vpop.permute.xlu1 %8370 }
 0x559   : > { %8568 = vpow2.f32 %v2475_v28  ;;  %2485 = vadd.xlane.f32.xlu0 %v2484_v30  ;;  %v2465_v16 = vsub.f32 %v9924_v59, %v2456_v40  ;;  %v8353_v30 = vunpack.i.h.bf16 %v9936_v19 }
 0x55b   : > { %v10062_v46 = vpop.eup %8564  ;;  %v2477_v48 = vmul.f32 1.442695, %v2465_v16 }
 0x55c   : > { %v2487_v55 = vsel %vm1287_vm7, %v10062_v46, 0.0  ;;  %v2459_v47 = vpop.xlane.xlu0 %2458 }
 0x55d   : > { %2488 = vadd.xlane.f32.xlu1 %v2487_v55  ;;  %v2466_v41 = vsub.f32 %v9928_v9, %v2459_v47  ;;  %8570 = vpow2.f32 %v2477_v48  ;;  %v8352_v55 = vunpack.i.l.bf16 %v9936_v19 }
 0x55f   : > { %v10066_v37 = vpop.eup %8566  ;;  %v2479_v21 = vmul.f32 1.442695, %v2466_v41  ;;  %v7978_v40 = vpack.c.bf16 %v8353_v30, %v8352_v55 }
 0x560   : > { %v2490_v14 = vsel %vm1287_vm7, %v10066_v37, 0.0 }
 0x561   : > { %2491 = vadd.xlane.f32.xlu1 %v2490_v14  ;;  %8572 = vpow2.f32 %v2479_v21 }
 0x563   : > { %v10070_v35 = vpop.eup %8568 }
 0x564   : > { %v2493_v36 = vsel %vm1287_vm7, %v10070_v35, 0.0 }
 0x565   : > { %2494 = vadd.xlane.f32.xlu1 %v2493_v36 }
 0x567   : > { %v10082_v53 = vpop.eup %8570 }
 0x56f   : > { %8375 = vrot.lane.b32.xlu0 %v9495_v60, %s12015_s4  ;;  %v2496_v60 = vsel %vm1287_vm7, %v10082_v53, 0.0 }
 0x576   : > { %8380 = vrot.lane.b32.xlu1 %v9505_v4, %s12015_s4  ;;  %v10088_v4 = vpop.eup %8572 }
 0x57a   : > { %2528 = vrot.lane.b32.xlu1 %v9511_v5, %s12015_s4  ;;  %v2499_v5 = vsel %vm1306_vm8, %v10088_v4, 0.0  ;;  %s12083_s4 = smov 120  }
 0x58e   : > { %v1333_v59 = vpop.xlane.xlu1 %1332  ;;  %2497 = vadd.xlane.f32.xlu0 %v2496_v60 }
 0x58f   : > { %8574 = vrcp.f32 %v1333_v59 }
 0x592   : > { %v1336_v56 = vpop.xlane.xlu1 %1335  ;;  %2500 = vadd.xlane.f32.xlu0 %v2499_v5  ;;  %v8358_v5 = vunpack.i.h.bf16 %v9754_v34 }
 0x593   : > { %8576 = vrcp.f32 %v1336_v56  ;;  %v8357_v56 = vunpack.i.l.bf16 %v9754_v34 }
 0x595   : > { %v7993_v2 = vpack.c.bf16 %v8358_v5, %v8357_v56 }
 0x596   : > { %v1339_v9 = vpop.xlane.xlu1 %1338 }
 0x597   : > { %8578 = vrcp.f32 %v1339_v9 }
 0x599   : > { %v8575_v3 = vpop.eup %8574 }
 0x59a   : > { %v1359_v7 = vmul.f32 %v8575_v3, %v9948_v43  ;;  %v1342_v31 = vpop.xlane.xlu1 %1341  ;;  %v7975_v43 = vpack.c.bf16 %v8348_v24, %v8347_v25  ;;  %v8363_v3 = vunpack.i.h.bf16 %v9766_v38 }
 0x59b   : > { %8580 = vrcp.f32 %v1342_v31 }
 0x59c   : > { %7167 = vmatmul.mubr.msk.f32.vlgmr.msra.gmra.mrb[14].mxu1 %vm1287_vm7, %v1359_v7  ;;  %v8362_v7 = vunpack.i.l.bf16 %v9766_v38 }
 0x59d   : > { %v8577_v61 = vpop.eup %8576  ;;  %7973 = vmatpush3.bf16.msra.mxu1 %v7972_v15  ;;  %7169 = vmatprep.mubr.msk.f32.mxu1 %vm9009_vm0, %v12041_v1  ;;  %v8367_v15 = vunpack.i.l.bf16 %v9940_v20 }
 0x59e   : > { %v1345_v28 = vpop.xlane.xlu1 %1344  ;;  %7974 = vmatprep.subr.bf16.mxu1 %v12039_v0  ;;  %v1360_v17 = vmul.f32 %v8577_v61, %v9953_v50  ;;  %v7996_v24 = vpack.c.bf16 %v8363_v3, %v8362_v7 }
 0x59f   : > { %8582 = vrcp.f32 %v1345_v28 }
 0x5a0   : > { %7170 = vmatmul.mubr.msk.f32.gmra.mrb[16].mxu1 %vm1287_vm7, %v1360_v17 }
 0x5a1   : > { %v8579_v52 = vpop.eup %8578  ;;  %7976 = vmatpush3.bf16.msra.mxu1 %v7975_v43  ;;  %7172 = vmatprep.mubr.msk.f32.mxu1 %vm9009_vm0, %v12041_v1 }
 0x5a2   : > { %v1348_v14 = vpop.xlane.xlu1 %1347  ;;  %7977 = vmatprep.subr.bf16.mxu1 %v12039_v0  ;;  %v1361_v36 = vmul.f32 %v8579_v52, %v9958_v58  ;;  %v2146_v58 = vpop.permute.xlu0 %2145 }
 0x5a3   : > { %8584 = vrcp.f32 %v1348_v14 }
 0x5a4   : > { %7173 = vmatmul.mubr.msk.f32.gmra.mrb[18].mxu1 %vm1287_vm7, %v1361_v36 }
 0x5a5   : > { %v8581_v50 = vpop.eup %8580  ;;  %7979 = vmatpush3.bf16.msra.mxu1 %v7978_v40  ;;  %7175 = vmatprep.mubr.msk.f32.mxu1 %vm9009_vm0, %v12041_v1  ;;  %v8373_v40 = vunpack.i.h.bf16 %v10084_v10 }
 0x5a6   : > { %v1351_v19 = vpop.xlane.xlu1 %1350  ;;  %7234 = vmatprep.subr.mxu1 %v12041_v1  ;;  %v1362_v16 = vmul.f32 %v8581_v50, %v9963_v12  ;;  %v8372_v50 = vunpack.i.l.bf16 %v10084_v10 }
 0x5a7   : > { %8586 = vrcp.f32 %v1351_v19 }
 0x5a8   : > { %7176 = vmatmul.mubr.msk.f32.gmra.mrb[20].mxu1 %vm1287_vm7, %v1362_v16 }
 0x5a9   : > { %v8583_v47 = vpop.eup %8582  ;;  %7235 = vmatpush3.msk.msra.mxu1 %vm1407_vm6, %v9942_v23  ;;  %7178 = vmatprep.mubr.msk.f32.mxu1 %vm9009_vm0, %v12041_v1 }
 0x5aa   : > { %v1717_v48 = vpop.xlane.xlu1 %1716  ;;  %v1363_v41 = vmul.f32 %v8583_v47, %v9968_v27  ;;  %7992 = vmatprep.subr.bf16.mxu1 %v12039_v0  ;;  %v8014_v47 = vpack.c.bf16 %v8373_v40, %v8372_v50 }
 0x5ab   : > { %8588 = vrcp.f32 %v1717_v48 }
 0x5ac   : > { %7179 = vmatmul.mubr.msk.f32.gmra.mrb[22].mxu1 %vm1287_vm7, %v1363_v41 }
 0x5ad   : > { %v8585_v12 = vpop.eup %8584  ;;  %7181 = vmatprep.mubr.msk.f32.mxu1 %vm9009_vm0, %v12041_v1 }
 0x5ae   : > { %v1720_v21 = vpop.xlane.xlu0 %1719  ;;  %v1364_v60 = vmul.f32 %v8585_v12, %v9973_v32 }
 0x5af   : > { %8590 = vrcp.f32 %v1720_v21 }
 0x5b0   : > { %7182 = vmatmul.mubr.msk.f32.gmra.mrb[24].mxu1 %vm1287_vm7, %v1364_v60 }
 0x5b1   : > { %v8587_v23 = vpop.eup %8586  ;;  %7184 = vmatprep.mubr.msk.f32.mxu1 %vm9009_vm0, %v12041_v1 }
 0x5b2   : > { %v1723_v27 = vpop.xlane.xlu0 %1722  ;;  %v1365_v59 = vmul.f32 %v8587_v23, %v9978_v42 }
 0x5b3   : > { %8592 = vrcp.f32 %v1723_v27 }
 0x5b4   : > { %7185 = vmatmul.mubr.msk.f32.gmra.mrb[26].mxu1 %vm1287_vm7, %v1365_v59 }
 0x5b5   : > { %v8589_v9 = vpop.eup %8588  ;;  %7236 = vmatprep.mubr.msk.f32.mxu1 %vm9009_vm0, %v12041_v1 }
 0x5b6   : > { %v1743_v32 = vmul.f32 %v8589_v9, %v9983_v45  ;;  %v1726_v26 = vpop.xlane.xlu0 %1725  ;;  %v8368_v45 = vunpack.i.h.bf16 %v9940_v20 }
 0x5b7   : > { %8594 = vrcp.f32 %v1726_v26 }
 0x5b8   : > { %7237 = vmatmul.mubr.msk.f32.vlgmr.msra.gmra.mrb[28].mxu1 %vm1287_vm7, %v1743_v32  ;;  %v7999_v28 = vpack.c.bf16 %v8368_v45, %v8367_v15 }
 0x5b9   : > { %v8591_v42 = vpop.eup %8590  ;;  %7994 = vmatpush3.bf16.msra.mxu1 %v7993_v2  ;;  %7239 = vmatprep.mubr.msk.f32.mxu1 %vm9009_vm0, %v12041_v1 }
 0x5ba   : > { %v1729_v34 = vpop.xlane.xlu1 %1728  ;;  %7995 = vmatprep.subr.bf16.mxu1 %v12039_v0  ;;  %v1744_v31 = vmul.f32 %v8591_v42, %v9988_v51 }
 0x5bb   : > { %8596 = vrcp.f32 %v1729_v34 }
 0x5bc   : > { %7240 = vmatmul.mubr.msk.f32.gmra.mrb[30].mxu1 %vm1287_vm7, %v1744_v31 }
 0x5bd   : > { %v8593_v38 = vpop.eup %8592  ;;  %7997 = vmatpush3.bf16.msra.mxu1 %v7996_v24  ;;  %7242 = vmatprep.mubr.msk.f32.mxu1 %vm9009_vm0, %v12041_v1 }
 0x5be   : > { %v1732_v25 = vpop.xlane.xlu1 %1731  ;;  %7998 = vmatprep.subr.bf16.mxu1 %v12039_v0  ;;  %v1745_v61 = vmul.f32 %v8593_v38, %v9993_v57 }
 0x5bf   : > { %8598 = vrcp.f32 %v1732_v25 }
 0x5c0   : > { %7243 = vmatmul.mubr.msk.f32.gmra.mrb[32].mxu1 %vm1287_vm7, %v1745_v61 }
 0x5c1   : > { %v8595_v51 = vpop.eup %8594  ;;  %8000 = vmatpush3.bf16.msra.mxu1 %v7999_v28  ;;  %7245 = vmatprep.mubr.msk.f32.mxu1 %vm9009_vm0, %v12041_v1 }
 0x5c2   : > { %v1735_v20 = vpop.xlane.xlu0 %1734  ;;  %7304 = vmatprep.subr.mxu1 %v12041_v1  ;;  %v1746_v17 = vmul.f32 %v8595_v51, %v9998_v63 }
 0x5c3   : > { %8600 = vrcp.f32 %v1735_v20 }
 0x5c4   : > { %7246 = vmatmul.mubr.msk.f32.gmra.mrb[34].mxu1 %vm1287_vm7, %v1746_v17 }
 0x5c5   : > { %v8597_v43 = vpop.eup %8596  ;;  %7305 = vmatpush3.msk.msra.mxu1 %vm1407_vm6, %v2146_v58  ;;  %7248 = vmatprep.mubr.msk.f32.mxu1 %vm9009_vm0, %v12041_v1 }
 0x5c6   : > { %v2100_v57 = vpop.xlane.xlu1 %2099  ;;  %v1747_v30 = vmul.f32 %v8597_v43, %v10003_v8  ;;  %8013 = vmatprep.subr.bf16.mxu1 %v12039_v0 }
 0x5c7   : > { %8602 = vrcp.f32 %v2100_v57 }
 0x5c8   : > { %7249 = vmatmul.mubr.msk.f32.gmra.mrb[36].mxu1 %vm1287_vm7, %v1747_v30 }
 0x5c9   : > { %v8599_v55 = vpop.eup %8598  ;;  %7251 = vmatprep.mubr.msk.f32.mxu1 %vm9009_vm0, %v12041_v1 }
 0x5ca   : > { %v2103_v63 = vpop.xlane.xlu1 %2102  ;;  %v1748_v52 = vmul.f32 %v8599_v55, %v10008_v13 }
 0x5cb   : > { %8604 = vrcp.f32 %v2103_v63 }
 0x5cc   : > { %7252 = vmatmul.mubr.msk.f32.gmra.mrb[38].mxu1 %vm1287_vm7, %v1748_v52 }
 0x5cd   : > { %v8601_v14 = vpop.eup %8600  ;;  %7254 = vmatprep.mubr.msk.f32.mxu1 %vm9009_vm0, %v12041_v1 }
 0x5ce   : > { %v2106_v8 = vpop.xlane.xlu1 %2105  ;;  %v1749_v36 = vmul.f32 %v8601_v14, %v10013_v18 }
 0x5cf   : > { %8606 = vrcp.f32 %v2106_v8 }
 0x5d0   : > { %7255 = vmatmul.mubr.msk.f32.gmra.mrb[40].mxu1 %vm1287_vm7, %v1749_v36 }
 0x5d1   : > { %v8603_v19 = vpop.eup %8602  ;;  %7306 = vmatprep.mubr.msk.f32.mxu1 %vm9009_vm0, %v12041_v1 }
 0x5d2   : > { %v2126_v13 = vmul.f32 %v8603_v19, %v10018_v22  ;;  %v2109_v16 = vpop.xlane.xlu1 %2108 }
 0x5d3   : > { %8608 = vrcp.f32 %v2109_v16 }
 0x5d4   : > { %7307 = vmatmul.mubr.msk.f32.vlgmr.msra.gmra.mrb[42].mxu1 %vm1287_vm7, %v2126_v13 }
 0x5d5   : > { %v8605_v58 = vpop.eup %8604  ;;  %8015 = vmatpush3.bf16.msra.mxu1 %v8014_v47  ;;  %7309 = vmatprep.mubr.msk.f32.mxu1 %vm9009_vm0, %v12041_v1 }
 0x5d6   : > { %v2112_v18 = vpop.xlane.xlu0 %2111  ;;  %v2127_v10 = vmul.f32 %v8605_v58, %v10023_v44  ;;  %8016 = vmatprep.subr.bf16.mxu1 %v12039_v0 }
 0x5d7   : > { %8610 = vrcp.f32 %v2112_v18 }
 0x5d8   : > { %7310 = vmatmul.mubr.msk.f32.gmra.mrb[44].mxu1 %vm1287_vm7, %v2127_v10 }
 0x5d9   : > { %v8607_v48 = vpop.eup %8606  ;;  %7312 = vmatprep.mubr.msk.f32.mxu1 %vm9009_vm0, %v12041_v1 }
 0x5da   : > { %v2115_v22 = vpop.xlane.xlu1 %2114  ;;  %v2128_v41 = vmul.f32 %v8607_v48, %v10028_v29 }
 0x5db   : > { %8612 = vrcp.f32 %v2115_v22 }
 0x5dc   : > { %7313 = vmatmul.mubr.msk.f32.gmra.mrb[46].mxu1 %vm1287_vm7, %v2128_v41 }
 0x5dd   : > { %v8609_v12 = vpop.eup %8608  ;;  %7315 = vmatprep.mubr.msk.f32.mxu1 %vm9009_vm0, %v12041_v1 }
 0x5de   : > { %v2118_v44 = vpop.xlane.xlu1 %2117  ;;  %v2129_v21 = vmul.f32 %v8609_v12, %v10033_v33 }
 0x5df   : > { %8614 = vrcp.f32 %v2118_v44 }
 0x5e0   : > { %7316 = vmatmul.mubr.msk.f32.gmra.mrb[48].mxu1 %vm1287_vm7, %v2129_v21 }
 0x5e1   : > { %v8611_v60 = vpop.eup %8610  ;;  %7318 = vmatprep.mubr.msk.f32.mxu1 %vm9009_vm0, %v12041_v1 }
 0x5e2   : > { %v2130_v23 = vmul.f32 %v8611_v60, %v10038_v39  ;;  %v2483_v27 = vpop.xlane.xlu1 %2482 }
 0x5e3   : > { %8616 = vrcp.f32 %v2483_v27 }
 0x5e4   : > { %7319 = vmatmul.mubr.msk.f32.gmra.mrb[50].mxu1 %vm1287_vm7, %v2130_v23 }
 0x5e5   : > { %v8613_v29 = vpop.eup %8612  ;;  %7321 = vmatprep.mubr.msk.f32.mxu1 %vm9009_vm0, %v12041_v1 }
 0x5e6   : > { %v2486_v59 = vpop.xlane.xlu0 %2485  ;;  %v2131_v5 = vmul.f32 %v8613_v29, %v10043_v6 }
 0x5e7   : > { %8618 = vrcp.f32 %v2486_v59  ;;  %v2766_v59 = vld [vmem:[%s11986_s8] sm:$0xff] }
 0x5e8   : > { %7322 = vmatmul.mubr.msk.f32.gmra.mrb[52].mxu1 %vm1287_vm7, %v2131_v5  ;;  %v2767_v5 = vld [vmem:[%s11986_s8 + $0x8] sm:$0xff] }
 0x5e9   : > { %v8615_v33 = vpop.eup %8614  ;;  %7324 = vmatprep.mubr.msk.f32.mxu1 %vm9009_vm0, %v12041_v1 }
 0x5ea   : > { %v2489_v56 = vpop.xlane.xlu1 %2488  ;;  %v8376_v9 = vpop.permute.xlu0 %8375  ;;  %v2132_v39 = vmul.f32 %v8615_v33, %v10048_v49  ;;  %v2768_v33 = vld [vmem:[%s11986_s8 + $0x10] sm:$0xff] }
 0x5eb   : > { %v8378_v32 = vunpack.i.h.bf16 %v8376_v9  ;;  %v8377_v26 = vunpack.i.l.bf16 %v8376_v9  ;;  %8620 = vrcp.f32 %v2489_v56  ;;  %v8023_v9 = vpack.c.bf16 %v2767_v5, %v2766_v59 }
 0x5ec   : > { %7325 = vmatmul.mubr.msk.f32.gmra.mrb[54].mxu1 %vm1287_vm7, %v2132_v39  ;;  %v2769_v39 = vld [vmem:[%s11986_s8 + $0x18] sm:$0xff] }
 0x5ed   : > { %v8017_v2 = vpack.c.bf16 %v8378_v32, %v8377_v26  ;;  %7376 = vmatprep.mubr.msk.f32.mxu1 %vm9009_vm0, %v12041_v1  ;;  %v8617_v31 = vpop.eup %8616  ;;  %8024 = vmatpush3.bf16.msra.mxu0 %v8023_v9  ;;  %v8026_v32 = vpack.c.bf16 %v2769_v39, %v2768_v33 }
 0x5ee   : > { %v2492_v3 = vpop.xlane.xlu1 %2491  ;;  %v2509_v45 = vmul.f32 %v8617_v31, %v10053_v54  ;;  %8025 = vmatprep.subr.bf16.mxu0 %v12039_v0 }
 0x5ef   : > { %8018 = vmatpush3.bf16.msra.mxu1 %v8017_v2  ;;  %8622 = vrcp.f32 %v2492_v3 }
 0x5f0   : > { %8019 = vmatprep.subr.bf16.mxu1 %v12039_v0 }
 0x5f1   : > { %v8619_v24 = vpop.eup %8618  ;;  %8027 = vmatpush3.bf16.msra.mxu0 %v8026_v32 }
 0x5f2   : > { %v2495_v6 = vpop.xlane.xlu1 %2494  ;;  %v2510_v38 = vmul.f32 %v8619_v24, %v10058_v62  ;;  %8034 = vmatprep.subr.bf16.mxu0 %v12039_v0 }
 0x5f3   : > { %8624 = vrcp.f32 %v2495_v6 }
 0x5f5   : > { %v8621_v25 = vpop.eup %8620 }
 0x5f6   : > { %v8381_v7 = vpop.permute.xlu1 %8380  ;;  %v2511_v54 = vmul.f32 %v8621_v25, %v10062_v46 }
 0x5f7   : > { %v8383_v42 = vunpack.i.h.bf16 %v8381_v7  ;;  %v8382_v34 = vunpack.i.l.bf16 %v8381_v7 }
 0x5f9   : > { %v8020_v49 = vpack.c.bf16 %v8383_v42, %v8382_v34  ;;  %v8623_v61 = vpop.eup %8622 }
 0x5fa   : > { %v2529_v15 = vpop.permute.xlu1 %2528  ;;  %v2512_v28 = vmul.f32 %v8623_v61, %v10066_v37 }
 0x5fb   : > { %8021 = vmatpush3.bf16.msra.mxu1 %v8020_v49 }
 0x5fc   : > { %7374 = vmatprep.subr.mxu1 %v12041_v1 }
 0x5fd   : > { %v8625_v51 = vpop.eup %8624 }
 0x5fe   : > { %v2513_v62 = vmul.f32 %v8625_v51, %v10070_v35 }
 0x5ff   : > { %7375 = vmatpush3.msk.msra.mxu1 %vm1407_vm6, %v2529_v15 }
 0x600   : > { %7377 = vmatmul.mubr.msk.f32.vlgmr.msra.gmra.mrb[56].mxu1 %vm1287_vm7, %v2509_v45  ;;  %8028 = vmatprep.subr.bf16.mxu1 %v12039_v0 }
 0x601   : > { %7379 = vmatprep.mubr.msk.f32.mxu1 %vm9009_vm0, %v12041_v1 }
 0x604   : > { %7380 = vmatmul.mubr.msk.f32.gmra.mrb[58].mxu1 %vm1287_vm7, %v2510_v38 }
 0x605   : > { %7382 = vmatprep.mubr.msk.f32.mxu1 %vm9009_vm0, %v12041_v1 }
 0x608   : > { %7383 = vmatmul.mubr.msk.f32.gmra.mrb[60].mxu1 %vm1287_vm7, %v2511_v54 }
 0x609   : > { %7385 = vmatprep.mubr.msk.f32.mxu1 %vm9009_vm0, %v12041_v1 }
 0x60c   : > { %7386 = vmatmul.mubr.msk.f32.gmra.mrb[62].mxu1 %vm1287_vm7, %v2512_v28 }
 0x60d   : > { %7388 = vmatprep.mubr.msk.f32.mxu1 %vm9009_vm0, %v12041_v1 }
 0x610   : > { %7389 = vmatmul.mubr.msk.f32.gmra.mrb[64].mxu1 %vm1287_vm7, %v2513_v62 }
 0x611   : > { %7391 = vmatprep.mubr.msk.f32.mxu1 %vm9009_vm0, %v12041_v1 }
 0x61b   : > { %v2498_v46 = vpop.xlane.xlu0 %2497 }
 0x61c   : > { %8626 = vrcp.f32 %v2498_v46 }
 0x61f   : > { %v2501_v20 = vpop.xlane.xlu0 %2500 }
 0x620   : > { %8628 = vrcp.f32 %v2501_v20 }
 0x626   : > { %v8627_v17 = vpop.eup %8626 }
 0x627   : > { %v2514_v37 = vmul.f32 %v8627_v17, %v10082_v53 }
 0x629   : > { %7392 = vmatmul.mubr.msk.f32.gmra.mrb[66].mxu1 %vm1287_vm7, %v2514_v37 }
 0x62a   : > { %v8629_v43 = vpop.eup %8628  ;;  %7394 = vmatprep.mubr.msk.f32.mxu1 %vm9009_vm0, %v12041_v1 }
 0x62b   : > { %v2515_v35 = vmul.f32 %v8629_v43, %v10088_v4 }
 0x62d   : > { %7395 = vmatmul.mubr.msk.f32.gmra.mrb[68].mxu1 %vm1287_vm7, %v2515_v35 }
 0x62e   : > { %7434 = vmatprep.mubr.msk.f32.mxu1 %vm9009_vm0, %v12041_v1 }
 0x66f   : > { %v10234_v57 = vpop.f32.mrb[14].mxu1 }
 0x670   : > { %v7168_v30 = vpop.f32.mrb[15].mxu1 }
 0x673   : > { %v10236_v55 = vpop.f32.mrb[16].mxu1 }
 0x674   : > { %v7171_v63 = vpop.f32.mrb[17].mxu1 }
 0x677   : > { %v10238_v53 = vpop.f32.mrb[18].mxu1 }
 0x678   : > { %v7174_v52 = vpop.f32.mrb[19].mxu1 }
 0x67b   : > { %v10240_v14 = vpop.f32.mrb[20].mxu1 }
 0x67c   : > { %v7177_v8 = vpop.f32.mrb[21].mxu1 }
 0x67f   : > { %v10242_v36 = vpop.f32.mrb[22].mxu1 }
 0x680   : > { %v7180_v4 = vpop.f32.mrb[23].mxu1 }
 0x683   : > { %v10244_v40 = vpop.f32.mrb[24].mxu1 }
 0x684   : > { %v7183_v50 = vpop.f32.mrb[25].mxu1 }
 0x687   : > { %v10246_v19 = vpop.f32.mrb[26].mxu1 }
 0x688   : > { %v7186_v13 = vpop.f32.mrb[27].mxu1 }
 0x68b   : > { %v1859_v16 = vpop.f32.mrb[28].mxu1 }
 0x68c   : > { %2666 = vrot.lane.b32.xlu1 %v1859_v16, %s9022_s30  ;;  %v7238_v47 = vpop.f32.mrb[29].mxu1 }
 0x68f   : > { %v1864_v58 = vpop.f32.mrb[30].mxu1 }
 0x690   : > { %2668 = vrot.lane.b32.xlu1 %v1864_v58, %s9022_s30  ;;  %v7241_v18 = vpop.f32.mrb[31].mxu1 }
 0x693   : > { %v1869_v10 = vpop.f32.mrb[32].mxu1 }
 0x694   : > { %2670 = vrot.lane.b32.xlu1 %v1869_v10, %s9022_s30  ;;  %v7244_v48 = vpop.f32.mrb[33].mxu1 }
 0x697   : > { %v1874_v22 = vpop.f32.mrb[34].mxu1 }
 0x698   : > { %2672 = vrot.lane.b32.xlu1 %v1874_v22, %s9022_s30  ;;  %v7247_v41 = vpop.f32.mrb[35].mxu1 }
 0x69b   : > { %v1879_v12 = vpop.f32.mrb[36].mxu1 }
 0x69c   : > { %v7250_v44 = vpop.f32.mrb[37].mxu1 }
 0x69f   : > { %v1884_v21 = vpop.f32.mrb[38].mxu1 }
 0x6a0   : > { %v7253_v60 = vpop.f32.mrb[39].mxu1 }
 0x6a3   : > { %v1889_v23 = vpop.f32.mrb[40].mxu1 }
 0x6a4   : > { %v7256_v29 = vpop.f32.mrb[41].mxu1 }
 0x6a7   : > { %v2242_v27 = vpop.f32.mrb[42].mxu1 }
 0x6a8   : > { %2694 = vrot.lane.b32.xlu0 %v2242_v27, %s12035_s25  ;;  %v7308_v56 = vpop.f32.mrb[43].mxu1 }
 0x6ab   : > { %v2247_v26 = vpop.f32.mrb[44].mxu1 }
 0x6ac   : > { %2696 = vrot.lane.b32.xlu1 %v2247_v26, %s12035_s25  ;;  %v7311_v2 = vpop.f32.mrb[45].mxu1 }
 0x6af   : > { %v2252_v3 = vpop.f32.mrb[46].mxu1 }
 0x6b0   : > { %2698 = vrot.lane.b32.xlu1 %v2252_v3, %s12035_s25  ;;  %v7314_v6 = vpop.f32.mrb[47].mxu1 }
 0x6b3   : > { %v2257_v7 = vpop.f32.mrb[48].mxu1 }
 0x6b4   : > { %2700 = vrot.lane.b32.xlu0 %v2257_v7, %s12035_s25  ;;  %v7317_v42 = vpop.f32.mrb[49].mxu1 }
 0x6b7   : > { %v2262_v34 = vpop.f32.mrb[50].mxu1 }
 0x6b8   : > { %v7320_v49 = vpop.f32.mrb[51].mxu1 }
 0x6bb   : > { %v2267_v31 = vpop.f32.mrb[52].mxu1 }
 0x6bc   : > { %v7323_v45 = vpop.f32.mrb[53].mxu1 }
 0x6bd   : > { %v10335_v45 = vld [vmem:[%s11987_s9] ss:$0 sm:$0xff] }
 0x6bf   : > { %v2272_v15 = vpop.f32.mrb[54].mxu1 }
 0x6c0   : > { %v7326_v24 = vpop.f32.mrb[55].mxu1 }
 0x6d3   : > { %v2625_v38 = vpop.f32.mrb[56].mxu1 }
 0x6d4   : > { %2722 = vrot.lane.b32.xlu1 %v2625_v38, %s12033_s19  ;;  %v7378_v25 = vpop.f32.mrb[57].mxu1 }
 0x6d7   : > { %v2630_v54 = vpop.f32.mrb[58].mxu1 }
 0x6d8   : > { %2724 = vrot.lane.b32.xlu1 %v2630_v54, %s12033_s19  ;;  %v7381_v61 = vpop.f32.mrb[59].mxu1  ;;  %v8841_v54 = vld [vmem:[#allocation2 + $0x8] sm:$0xff] }
 0x6db   : > { %v2635_v28 = vpop.f32.mrb[60].mxu1 }
 0x6dc   : > { %2702 = vrot.lane.b32.xlu1 %v2262_v34, %s12035_s25  ;;  %2726 = vrot.lane.b32.xlu0 %v2635_v28, %s12033_s19  ;;  %v7384_v51 = vpop.f32.mrb[61].mxu1 }
 0x6df   : > { %v2640_v62 = vpop.f32.mrb[62].mxu1 }
 0x6e0   : > { %2674 = vrot.lane.b32.xlu0 %v1879_v12, %s9022_s30  ;;  %2728 = vrot.lane.b32.xlu1 %v2640_v62, %s12033_s19  ;;  %v7387_v46 = vpop.f32.mrb[63].mxu1 }
 0x6e3   : > { %v2645_v20 = vpop.f32.mrb[64].mxu1 }
 0x6e4   : > { %2676 = vrot.lane.b32.xlu1 %v1884_v21, %s9022_s30  ;;  %2730 = vrot.lane.b32.xlu0 %v2645_v20, %s12033_s19  ;;  %v7390_v17 = vpop.f32.mrb[65].mxu1 }
 0x6e8   : > { %2704 = vrot.lane.b32.xlu0 %v2267_v31, %s12035_s25 }
 0x6ec   : > { %2678 = vrot.lane.b32.xlu0 %v1889_v23, %s9022_s30 }
 0x6fc   : > { %v2650_v37 = vpop.f32.mrb[66].mxu1 }
 0x6fd   : > { %2732 = vrot.lane.b32.xlu1 %v2650_v37, %s12033_s19  ;;  %v7393_v43 = vpop.f32.mrb[67].mxu1  ;;  %v8842_v37 = vld [vmem:[#allocation2 + $0x10] sm:$0xff] }
 0x6fe   : > { %v2667_v63 = vpop.permute.xlu1 %2666 }
 0x6ff   : > { %v2743_v47 = vsel %vm1151_vm4, %v10234_v57, %v2667_v63 }
 0x700   : > { %v2655_v35 = vpop.f32.mrb[68].mxu1 }
 0x701   : > { %2706 = vrot.lane.b32.xlu1 %v2272_v15, %s12035_s25  ;;  %2734 = vrot.lane.b32.xlu0 %v2655_v35, %s12033_s19  ;;  %v7396_v30 = vpop.f32.mrb[69].mxu1  ;;  %v8840_v15 = vld [vmem:[#allocation2] sm:$0xff]  ;;  %s12081_s19 = sld [smem:[#allocation22_spill]]  ;;  %s12088_s25 = smov 56  }
 0x702   : > { %v2669_v52 = vpop.permute.xlu1 %2668 }
 0x703   : > { %v2744_v48 = vsel %vm1151_vm4, %v10236_v55, %v2669_v52 }
 0x706   : > { %v2671_v8 = vpop.permute.xlu1 %2670 }
 0x707   : > { %v2745_v57 = vsel %vm1151_vm4, %v10238_v53, %v2671_v8 }
 0x70a   : > { %v2673_v4 = vpop.permute.xlu1 %2672 }
 0x70b   : > { %v2746_v29 = vsel %vm1151_vm4, %v10240_v14, %v2673_v4 }
 0x71a   : > { %v2695_v16 = vpop.permute.xlu0 %2694 }
 0x71b   : > { %v2751_v58 = vsel %vm2750_vm9, %v2743_v47, %v2695_v16 }
 0x71e   : > { %v2697_v50 = vpop.permute.xlu1 %2696 }
 0x71f   : > { %v2752_v22 = vsel %vm2750_vm9, %v2744_v48, %v2697_v50  ;;  %v8843_v50 = vld [vmem:[#allocation2 + $0x18] sm:$0xff] }
 0x722   : > { %v2699_v13 = vpop.permute.xlu1 %2698 }
 0x723   : > { %v2753_v21 = vsel %vm2750_vm9, %v2745_v57, %v2699_v13 }
 0x726   : > { %v2701_v41 = vpop.permute.xlu0 %2700 }
 0x727   : > { %v2754_v27 = vsel %vm2750_vm9, %v2746_v29, %v2701_v41 }
 0x746   : > { %v2723_v18 = vpop.permute.xlu1 %2722 }
 0x747   : > { %v2759_v10 = vsel %vm2758_vm10, %v2751_v58, %v2723_v18 }
 0x748   : > { %7406 = vmatmul.mubr.msk.f32.vlgmr.msra.gmra.mrb[70].mxu0 %vm706_vm1, %v2759_v10 }
 0x749   : > { %7408 = vmatprep.mubr.msk.f32.mxu0 %vm9009_vm0, %v12041_v1 }
 0x74a   : > { %v2725_v12 = vpop.permute.xlu1 %2724 }
 0x74b   : > { %v2760_v44 = vsel %vm2758_vm10, %v2752_v22, %v2725_v12  ;;  %v8844_v22 = vld [vmem:[#allocation2 + $0x20] sm:$0xff] }
 0x74c   : > { %7409 = vmatmul.mubr.msk.f32.gmra.mrb[72].mxu0 %vm706_vm1, %v2760_v44 }
 0x74d   : > { %7411 = vmatprep.mubr.msk.f32.mxu0 %vm9009_vm0, %v12041_v1 }
 0x74e   : > { %v2703_v55 = vpop.permute.xlu1 %2702  ;;  %v2727_v60 = vpop.permute.xlu0 %2726 }
 0x74f   : > { %v2761_v23 = vsel %vm2758_vm10, %v2753_v21, %v2727_v60 }
 0x750   : > { %7412 = vmatmul.mubr.msk.f32.gmra.mrb[74].mxu0 %vm706_vm1, %v2761_v23 }
 0x751   : > { %7414 = vmatprep.mubr.msk.f32.mxu0 %vm9009_vm0, %v12041_v1 }
 0x752   : > { %v2675_v53 = vpop.permute.xlu0 %2674  ;;  %v2729_v59 = vpop.permute.xlu1 %2728 }
 0x753   : > { %v2747_v5 = vsel %vm1151_vm4, %v10242_v36, %v2675_v53  ;;  %v2762_v33 = vsel %vm2758_vm10, %v2754_v27, %v2729_v59  ;;  %v3045_v27 = vld [vmem:[%s11990_s12] sm:$0xff]  ;;  %v3046_v53 = vld [vmem:[%s11990_s12 + $0x8] sm:$0xff] }
 0x754   : > { %7415 = vmatmul.mubr.msk.f32.gmra.mrb[76].mxu0 %vm706_vm1, %v2762_v33  ;;  %v2755_v56 = vsel %vm2750_vm9, %v2747_v5, %v2703_v55  ;;  %v8029_v59 = vpack.c.bf16 %v3046_v53, %v3045_v27  ;;  %v3047_v5 = vld [vmem:[%s11990_s12 + $0x10] sm:$0xff]  ;;  %v3048_v33 = vld [vmem:[%s11990_s12 + $0x18] sm:$0xff] }
 0x755   : > { %7417 = vmatprep.mubr.msk.f32.mxu0 %vm9009_vm0, %v12041_v1 }
 0x756   : > { %v2731_v14 = vpop.permute.xlu0 %2730  ;;  %v2677_v32 = vpop.permute.xlu1 %2676  ;;  %8030 = vmatpush3.bf16.msra.mxu1 %v8029_v59 }
 0x757   : > { %v2763_v9 = vsel %vm2758_vm10, %v2755_v56, %v2731_v14  ;;  %v2748_v36 = vsel %vm1151_vm4, %v10244_v40, %v2677_v32  ;;  %8031 = vmatprep.subr.bf16.mxu1 %v12039_v0  ;;  %v8032_v14 = vpack.c.bf16 %v3048_v33, %v3047_v5  ;;  %v10416_v5 = vld [vmem:[%s11989_s11] ss:$0 sm:$0xff] }
 0x758   : > { %7418 = vmatmul.mubr.msk.f32.gmra.mrb[78].mxu0 %vm706_vm1, %v2763_v9  ;;  %v8845_v9 = vld [vmem:[#allocation2 + $0x28] sm:$0xff] }
 0x759   : > { %7420 = vmatprep.mubr.msk.f32.mxu0 %vm9009_vm0, %v12041_v1 }
 0x75a   : > { %v2705_v39 = vpop.permute.xlu0 %2704  ;;  %8033 = vmatpush3.bf16.msra.mxu1 %v8032_v14 }
 0x75b   : > { %v2756_v26 = vsel %vm2750_vm9, %v2748_v36, %v2705_v39  ;;  %8046 = vmatprep.subr.bf16.mxu1 %v12039_v0 }
 0x75e   : > { %v2679_v2 = vpop.permute.xlu0 %2678 }
 0x75f   : > { %v2749_v7 = vsel %vm1151_vm4, %v10246_v19, %v2679_v2 }
 0x76f   : > { %v2733_v3 = vpop.permute.xlu1 %2732 }
 0x770   : > { %v2764_v6 = vsel %vm2758_vm10, %v2756_v26, %v2733_v3 }
 0x771   : > { %7421 = vmatmul.mubr.msk.f32.gmra.mrb[80].mxu0 %vm706_vm1, %v2764_v6  ;;  %v8846_v6 = vld [vmem:[#allocation2 + $0x30] sm:$0x3] }
 0x772   : > { %7423 = vmatprep.mubr.msk.f32.mxu0 %vm9009_vm0, %v12041_v1 }
 0x773   : > { %v2707_v42 = vpop.permute.xlu1 %2706  ;;  %v2735_v34 = vpop.permute.xlu0 %2734 }
 0x774   : > { %v2757_v49 = vsel %vm2750_vm9, %v2749_v7, %v2707_v42 }
 0x775   : > { %v2765_v40 = vsel %vm2758_vm10, %v2757_v49, %v2735_v34 }
 0x776   : > { %7424 = vmatmul.mubr.msk.f32.gmra.mrb[82].mxu0 %vm706_vm1, %v2765_v40 }
 0x777   : > { %7471 = vmatprep.mubr.msk.f32.mxu0 %vm9009_vm0, %v12041_v1 }
 0x81b   : > { %v2857_v31 = vpop.f32.mrb[70].mxu0 }
 0x81c   : > { %v2891_v24 = vadd.f32 %v8840_v15, %v2857_v31  ;;  %v7407_v19 = vpop.f32.mrb[71].mxu0 }
 0x81e   : > { %v10338_v38 = vadd.f32 %v10335_v45, %v2891_v24 }
 0x81f   : > { %v2862_v25 = vpop.f32.mrb[72].mxu0 }
 0x820   : > { %v2892_v61 = vadd.f32 %v8841_v54, %v2862_v25  ;;  %v7410_v28 = vpop.f32.mrb[73].mxu0  ;;  %v2914_v51 = vsel %vm706_vm1, %v10338_v38, 0.0  ;;  %v2942_v62 = vmul.f32 %v10338_v38, %v10338_v38 }
 0x821   : > { %2915 = vadd.xlane.f32.xlu1 %v2914_v51 }
 0x822   : > { %v10345_v46 = vadd.f32 %v10335_v45, %v2892_v61  ;;  %v2949_v20 = vsel %vm706_vm1, %v2942_v62, 0.0 }
 0x823   : > { %2950 = vadd.xlane.f32.xlu0 %v2949_v20  ;;  %v2867_v17 = vpop.f32.mrb[74].mxu0 }
 0x824   : > { %v2893_v43 = vadd.f32 %v8842_v37, %v2867_v17  ;;  %v7413_v35 = vpop.f32.mrb[75].mxu0  ;;  %v2943_v30 = vmul.f32 %v10345_v46, %v10345_v46  ;;  %v2917_v8 = vsel %vm706_vm1, %v10345_v46, 0.0 }
 0x826   : > { %v10351_v63 = vadd.f32 %v10335_v45, %v2893_v43  ;;  %v2952_v52 = vsel %vm706_vm1, %v2943_v30, 0.0 }
 0x827   : > { %2953 = vadd.xlane.f32.xlu1 %v2952_v52  ;;  %2918 = vadd.xlane.f32.xlu0 %v2917_v8  ;;  %v2872_v4 = vpop.f32.mrb[76].mxu0 }
 0x828   : > { %v2894_v13 = vadd.f32 %v8843_v50, %v2872_v4  ;;  %v7416_v16 = vpop.f32.mrb[77].mxu0  ;;  %v2944_v47 = vmul.f32 %v10351_v63, %v10351_v63  ;;  %v2920_v10 = vsel %vm706_vm1, %v10351_v63, 0.0 }
 0x82a   : > { %v10359_v58 = vadd.f32 %v10335_v45, %v2894_v13  ;;  %v2955_v18 = vsel %vm706_vm1, %v2944_v47, 0.0 }
 0x82b   : > { %2956 = vadd.xlane.f32.xlu1 %v2955_v18  ;;  %2921 = vadd.xlane.f32.xlu0 %v2920_v10  ;;  %v2877_v48 = vpop.f32.mrb[78].mxu0 }
 0x82c   : > { %v2895_v41 = vadd.f32 %v8844_v22, %v2877_v48  ;;  %v7419_v12 = vpop.f32.mrb[79].mxu0  ;;  %v2945_v44 = vmul.f32 %v10359_v58, %v10359_v58  ;;  %v2923_v55 = vsel %vm706_vm1, %v10359_v58, 0.0 }
 0x82e   : > { %v10367_v57 = vadd.f32 %v10335_v45, %v2895_v41  ;;  %v2958_v21 = vsel %vm706_vm1, %v2945_v44, 0.0 }
 0x82f   : > { %2959 = vadd.xlane.f32.xlu1 %v2958_v21  ;;  %2924 = vadd.xlane.f32.xlu0 %v2923_v55  ;;  %v10411_v55 = vld [vmem:[%s11988_s10] ss:$0 sm:$0xff] }
 0x830   : > { %v2946_v60 = vmul.f32 %v10367_v57, %v10367_v57  ;;  %v2926_v29 = vsel %vm706_vm1, %v10367_v57, 0.0 }
 0x832   : > { %v2961_v23 = vsel %vm706_vm1, %v2946_v60, 0.0 }
 0x833   : > { %2962 = vadd.xlane.f32.xlu1 %v2961_v23  ;;  %2927 = vadd.xlane.f32.xlu0 %v2926_v29 }
 0x844   : > { %v2882_v56 = vpop.f32.mrb[80].mxu0 }
 0x845   : > { %v2896_v39 = vadd.f32 %v8845_v9, %v2882_v56  ;;  %v7422_v32 = vpop.f32.mrb[81].mxu0 }
 0x847   : > { %v10391_v36 = vadd.f32 %v10335_v45, %v2896_v39 }
 0x849   : > { %v2887_v26 = vpop.f32.mrb[82].mxu0  ;;  %v2929_v2 = vsel %vm706_vm1, %v10391_v36, 0.0  ;;  %v2947_v3 = vmul.f32 %v10391_v36, %v10391_v36 }
 0x84a   : > { %v2897_v7 = vadd.f32 %v8846_v6, %v2887_v26  ;;  %2930 = vadd.xlane.f32.xlu0 %v2929_v2  ;;  %v7425_v42 = vpop.f32.mrb[83].mxu0 }
 0x84b   : > { %v2964_v34 = vsel %vm706_vm1, %v2947_v3, 0.0 }
 0x84c   : > { %v10400_v49 = vadd.f32 %v10335_v45, %v2897_v7  ;;  %2965 = vadd.xlane.f32.xlu1 %v2964_v34 }
 0x84e   : > { %v2932_v40 = vsel %vm841_vm2, %v10400_v49, 0.0  ;;  %v2948_v31 = vmul.f32 %v10400_v49, %v10400_v49 }
 0x84f   : > { %2933 = vadd.xlane.f32.xlu0 %v2932_v40 }
 0x850   : > { %v2967_v15 = vsel %vm841_vm2, %v2948_v31, 0.0 }
 0x851   : > { %2968 = vadd.xlane.f32.xlu1 %v2967_v15 }
 0x8ae   : > { %v2916_v24 = vpop.xlane.xlu1 %2915 }
 0x8af   : > { %v2935_v19 = vmul.f32 0.03125, %v2916_v24 }
 0x8b0   : > { %v2951_v25 = vpop.xlane.xlu0 %2950 }
 0x8b1   : > { %v2977_v54 = vmul.f32 %v2935_v19, %v2935_v19  ;;  %v2970_v61 = vmul.f32 0.03125, %v2951_v25  ;;  %v2991_v41 = vsub.f32 %v10338_v38, %v2935_v19 }
 0x8b3   : > { %v2984_v28 = vsub.f32 %v2970_v61, %v2977_v54 }
 0x8b4   : > { %v2954_v51 = vpop.xlane.xlu1 %2953  ;;  %v2919_v45 = vpop.xlane.xlu0 %2918 }
 0x8b5   : > { %v2998_v62 = vadd.f32 1e-05, %v2984_v28  ;;  %v2936_v20 = vmul.f32 0.03125, %v2919_v45  ;;  %v2971_v17 = vmul.f32 0.03125, %v2954_v51 }
 0x8b7   : > { %8630 = vrsqrt.f32 %v2998_v62  ;;  %v2978_v37 = vmul.f32 %v2936_v20, %v2936_v20  ;;  %v2992_v14 = vsub.f32 %v10345_v46, %v2936_v20 }
 0x8b8   : > { %v2957_v43 = vpop.xlane.xlu1 %2956  ;;  %v2922_v35 = vpop.xlane.xlu0 %2921 }
 0x8b9   : > { %v2985_v30 = vsub.f32 %v2971_v17, %v2978_v37  ;;  %v2937_v52 = vmul.f32 0.03125, %v2922_v35  ;;  %v2972_v4 = vmul.f32 0.03125, %v2957_v43 }
 0x8bb   : > { %v2999_v8 = vadd.f32 1e-05, %v2985_v30  ;;  %v2979_v50 = vmul.f32 %v2937_v52, %v2937_v52  ;;  %v2993_v3 = vsub.f32 %v10351_v63, %v2937_v52 }
 0x8bc   : > { %v2960_v13 = vpop.xlane.xlu1 %2959  ;;  %v2925_v16 = vpop.xlane.xlu0 %2924 }
 0x8bd   : > { %8632 = vrsqrt.f32 %v2999_v8  ;;  %v2986_v47 = vsub.f32 %v2972_v4, %v2979_v50  ;;  %v2938_v18 = vmul.f32 0.03125, %v2925_v16  ;;  %v2973_v48 = vmul.f32 0.03125, %v2960_v13 }
 0x8bf   : > { %v3000_v10 = vadd.f32 1e-05, %v2986_v47  ;;  %v2980_v22 = vmul.f32 %v2938_v18, %v2938_v18  ;;  %v2994_v40 = vsub.f32 %v10359_v58, %v2938_v18 }
 0x8c0   : > { %v2963_v12 = vpop.xlane.xlu1 %2962  ;;  %v2928_v44 = vpop.xlane.xlu0 %2927 }
 0x8c1   : > { %v8631_v21 = vpop.eup %8630  ;;  %8634 = vrsqrt.f32 %v3000_v10  ;;  %v2987_v60 = vsub.f32 %v2973_v48, %v2980_v22  ;;  %v2939_v23 = vmul.f32 0.03125, %v2928_v44  ;;  %v2974_v53 = vmul.f32 0.03125, %v2963_v12 }
 0x8c2   : > { %v3012_v29 = vmul.f32 %v8631_v21, %v2991_v41 }
 0x8c3   : > { %v3001_v27 = vadd.f32 1e-05, %v2987_v60  ;;  %v2981_v59 = vmul.f32 %v2939_v23, %v2939_v23  ;;  %v2995_v25 = vsub.f32 %v10367_v57, %v2939_v23 }
 0x8c4   : > { %v3025_v33 = vmul.f32 %v10411_v55, %v3012_v29  ;;  %v3366_v29 = vld [vmem:[%s11992_s14] sm:$0xff] }
 0x8c5   : > { %8636 = vrsqrt.f32 %v3001_v27  ;;  %v2988_v56 = vsub.f32 %v2974_v53, %v2981_v59  ;;  %v3367_v27 = vld [vmem:[%s11992_s14 + $0x8] sm:$0xff]  ;;  %v3369_v59 = vld [vmem:[%s11992_s14 + $0x18] sm:$0xff] }
 0x8c6   : > { %v3038_v9 = vadd.f32 %v10416_v5, %v3025_v33  ;;  %v8035_v53 = vpack.c.bf16 %v3367_v27, %v3366_v29  ;;  %v3370_v33 = vld [vmem:[%s11992_s14 + $0x20] sm:$0xff] }
 0x8c7   : > { %v8633_v39 = vpop.eup %8632  ;;  %v3002_v32 = vadd.f32 1e-05, %v2988_v56  ;;  %v3371_v56 = vld [vmem:[%s11992_s14 + $0x28] sm:$0xff] }
 0x8c8   : > { %v3013_v26 = vmul.f32 %v8633_v39, %v2992_v14  ;;  %7435 = vmatmul.mubr.msk.f32.vlgmr.msra.gmra.mrb[70].mxu1 %vm706_vm1, %v3038_v9  ;;  %8036 = vmatpush3.bf16.msra.mxu0 %v8035_v53  ;;  %v8041_v14 = vpack.c.bf16 %v3371_v56, %v3370_v33  ;;  %v3372_v9 = vld [vmem:[%s11992_s14 + $0x30] sm:$0xff]  ;;  %v3373_v39 = vld [vmem:[%s11992_s14 + $0x38] sm:$0xff] }
 0x8c9   : > { %8638 = vrsqrt.f32 %v3002_v32  ;;  %7437 = vmatprep.mubr.msk.f32.mxu1 %vm9009_vm0, %v12041_v1  ;;  %8037 = vmatprep.subr.bf16.mxu0 %v12039_v0  ;;  %v8044_v32 = vpack.c.bf16 %v3373_v39, %v3372_v9 }
 0x8ca   : > { %v3026_v2 = vmul.f32 %v10411_v55, %v3013_v26  ;;  %v10490_v26 = vld [vmem:[%s11991_s13] ss:$0 sm:$0xff] }
 0x8cb   : > { %v8635_v6 = vpop.eup %8634 }
 0x8cc   : > { %v3014_v7 = vmul.f32 %v8635_v6, %v2993_v3  ;;  %v3039_v42 = vadd.f32 %v10416_v5, %v3026_v2 }
 0x8ce   : > { %v3027_v34 = vmul.f32 %v10411_v55, %v3014_v7  ;;  %7438 = vmatmul.mubr.msk.f32.gmra.mrb[72].mxu1 %vm706_vm1, %v3039_v42 }
 0x8cf   : > { %v8637_v31 = vpop.eup %8636  ;;  %7440 = vmatprep.mubr.msk.f32.mxu1 %vm9009_vm0, %v12041_v1 }
 0x8d0   : > { %v3015_v15 = vmul.f32 %v8637_v31, %v2994_v40  ;;  %v3040_v24 = vadd.f32 %v10416_v5, %v3027_v34 }
 0x8d2   : > { %v3028_v19 = vmul.f32 %v10411_v55, %v3015_v15  ;;  %7441 = vmatmul.mubr.msk.f32.gmra.mrb[74].mxu1 %vm706_vm1, %v3040_v24 }
 0x8d3   : > { %v8639_v54 = vpop.eup %8638  ;;  %7443 = vmatprep.mubr.msk.f32.mxu1 %vm9009_vm0, %v12041_v1 }
 0x8d4   : > { %v3016_v61 = vmul.f32 %v8639_v54, %v2995_v25  ;;  %v3041_v28 = vadd.f32 %v10416_v5, %v3028_v19 }
 0x8d6   : > { %v3029_v51 = vmul.f32 %v10411_v55, %v3016_v61  ;;  %7444 = vmatmul.mubr.msk.f32.gmra.mrb[76].mxu1 %vm706_vm1, %v3041_v28 }
 0x8d7   : > { %v2931_v45 = vpop.xlane.xlu0 %2930  ;;  %7446 = vmatprep.mubr.msk.f32.mxu1 %vm9009_vm0, %v12041_v1 }
 0x8d8   : > { %v2940_v62 = vmul.f32 0.03125, %v2931_v45  ;;  %v3042_v20 = vadd.f32 %v10416_v5, %v3029_v51 }
 0x8d9   : > { %v2966_v17 = vpop.xlane.xlu1 %2965 }
 0x8da   : > { %v2982_v37 = vmul.f32 %v2940_v62, %v2940_v62  ;;  %v2975_v43 = vmul.f32 0.03125, %v2966_v17  ;;  %7447 = vmatmul.mubr.msk.f32.gmra.mrb[78].mxu1 %vm706_vm1, %v3042_v20  ;;  %v2996_v18 = vsub.f32 %v10391_v36, %v2940_v62 }
 0x8db   : > { %7449 = vmatprep.mubr.msk.f32.mxu1 %vm9009_vm0, %v12041_v1 }
 0x8dc   : > { %v2989_v35 = vsub.f32 %v2975_v43, %v2982_v37  ;;  %v2934_v30 = vpop.xlane.xlu0 %2933 }
 0x8dd   : > { %v2941_v52 = vmul.f32 0.03125, %v2934_v30 }
 0x8de   : > { %v3003_v8 = vadd.f32 1e-05, %v2989_v35  ;;  %v2969_v4 = vpop.xlane.xlu1 %2968 }
 0x8df   : > { %v2983_v50 = vmul.f32 %v2941_v52, %v2941_v52  ;;  %v2976_v13 = vmul.f32 0.03125, %v2969_v4  ;;  %v2997_v41 = vsub.f32 %v10400_v49, %v2941_v52 }
 0x8e0   : > { %8640 = vrsqrt.f32 %v3003_v8 }
 0x8e1   : > { %v2990_v16 = vsub.f32 %v2976_v13, %v2983_v50 }
 0x8e3   : > { %v3004_v47 = vadd.f32 1e-05, %v2990_v16 }
 0x8e5   : > { %8642 = vrsqrt.f32 %v3004_v47 }
 0x8ea   : > { %v8641_v10 = vpop.eup %8640 }
 0x8eb   : > { %v3017_v48 = vmul.f32 %v8641_v10, %v2996_v18 }
 0x8ed   : > { %v3030_v22 = vmul.f32 %v10411_v55, %v3017_v48 }
 0x8ef   : > { %v8643_v12 = vpop.eup %8642  ;;  %v3043_v44 = vadd.f32 %v10416_v5, %v3030_v22 }
 0x8f0   : > { %v3018_v21 = vmul.f32 %v8643_v12, %v2997_v41 }
 0x8f1   : > { %7450 = vmatmul.mubr.msk.f32.gmra.mrb[80].mxu1 %vm706_vm1, %v3043_v44 }
 0x8f2   : > { %7452 = vmatprep.mubr.msk.f32.mxu1 %vm9009_vm0, %v12041_v1  ;;  %v3031_v60 = vmul.f32 %v10411_v55, %v3018_v21  ;;  %v3368_v55 = vld [vmem:[%s11992_s14 + $0x10] sm:$0xff] }
 0x8f4   : > { %v3044_v23 = vadd.f32 %v10416_v5, %v3031_v60  ;;  %v8038_v5 = vpack.c.bf16 %v3369_v59, %v3368_v55 }
 0x8f6   : > { %7453 = vmatmul.mubr.msk.f32.gmra.mrb[82].mxu1 %vm706_vm1, %v3044_v23  ;;  %8039 = vmatpush3.bf16.msra.mxu0 %v8038_v5 }
 0x8f7   : > { %7500 = vmatprep.mubr.msk.f32.mxu1 %vm9009_vm0, %v12041_v1  ;;  %8040 = vmatprep.subr.bf16.mxu0 %v12039_v0 }
 0x8fa   : > { %8042 = vmatpush3.bf16.msra.mxu0 %v8041_v14 }
 0x8fb   : > { %8043 = vmatprep.subr.bf16.mxu0 %v12039_v0 }
 0x8fe   : > { %8045 = vmatpush3.bf16.msra.mxu0 %v8044_v32 }
 0x8ff   : > { %8052 = vmatprep.subr.bf16.mxu0 %v12039_v0 }
 0x99b   : > { %v3143_v2 = vpop.f32.mrb[70].mxu1 }
 0x99c   : > { %v10493_v3 = vadd.f32 %v10490_v26, %v3143_v2  ;;  %v7436_v6 = vpop.f32.mrb[71].mxu1 }
 0x99e   : > { %v10496_v7 = vmul.f32 0.70710677, %v10493_v3 }
 0x9a0   : > { %v3205_v42 = vand.u32 2147483647, %v10496_v7  ;;  %vm3191_vm11 = vcmp.ge.f32.partialorder %v10496_v7, 0.0  ;;  %v3177_v7 = vmul.f32 0.5, %v10493_v3 }
 0x9a1   : > { %v3148_v34 = vpop.f32.mrb[72].mxu1 }
 0x9a2   : > { %v3212_v40 = vmul.f32 0.3275911, %v3205_v42  ;;  %v10500_v31 = vadd.f32 %v10490_v26, %v3148_v34  ;;  %v7439_v15 = vpop.f32.mrb[73].mxu1  ;;  %v3303_v35 = vsub.f32 0.0, %v3205_v42 }
 0x9a4   : > { %v3219_v24 = vadd.f32 1.0, %v3212_v40  ;;  %v10503_v19 = vmul.f32 0.70710677, %v10500_v31  ;;  %v3310_v18 = vmul.f32 %v3303_v35, %v3205_v42 }
 0x9a5   : > { %v3153_v25 = vpop.f32.mrb[74].mxu1 }
 0x9a6   : > { %8644 = vrcp.f32 %v3219_v24  ;;  %v3206_v54 = vand.u32 2147483647, %v10503_v19  ;;  %v7442_v61 = vpop.f32.mrb[75].mxu1  ;;  %v10507_v28 = vadd.f32 %v10490_v26, %v3153_v25  ;;  %v3317_v60 = vmul.f32 1.442695, %v3310_v18 }
 0x9a7   : > { %vm3192_vm13 = vcmp.ge.f32.partialorder %v10503_v19, 0.0 }
 0x9a8   : > { %v3213_v51 = vmul.f32 0.3275911, %v3206_v54  ;;  %v10510_v45 = vmul.f32 0.70710677, %v10507_v28  ;;  %v3304_v41 = vsub.f32 0.0, %v3206_v54 }
 0x9a9   : > { %v3158_v62 = vpop.f32.mrb[76].mxu1 }
 0x9aa   : > { %v3220_v20 = vadd.f32 1.0, %v3213_v51  ;;  %v10513_v17 = vadd.f32 %v10490_v26, %v3158_v62  ;;  %v7445_v37 = vpop.f32.mrb[77].mxu1  ;;  %v3207_v43 = vand.u32 2147483647, %v10510_v45  ;;  %v3311_v53 = vmul.f32 %v3304_v41, %v3206_v54 }
 0x9ab   : > { %vm3193_vm14 = vcmp.ge.f32.partialorder %v10510_v45, 0.0 }
 0x9ac   : > { %8646 = vrcp.f32 %v3220_v20  ;;  %v3214_v30 = vmul.f32 0.3275911, %v3207_v43  ;;  %v10517_v52 = vmul.f32 0.70710677, %v10513_v17  ;;  %v3305_v33 = vsub.f32 0.0, %v3207_v43 }
 0x9ad   : > { %v3163_v8 = vpop.f32.mrb[78].mxu1  ;;  %v3319_v9 = vmul.f32 1.442695, %v3311_v53 }
 0x9ae   : > { %v10520_v4 = vadd.f32 %v10490_v26, %v3163_v8  ;;  %v7448_v50 = vpop.f32.mrb[79].mxu1  ;;  %v3221_v13 = vadd.f32 1.0, %v3214_v30  ;;  %v3208_v16 = vand.u32 2147483647, %v10517_v52  ;;  %v3312_v42 = vmul.f32 %v3305_v33, %v3207_v43 }
 0x9af   : > { %vm3194_vm15 = vcmp.ge.f32.partialorder %v10517_v52, 0.0 }
 0x9b0   : > { %v8645_v47 = vpop.eup %8644  ;;  %v10524_v10 = vmul.f32 0.70710677, %v10520_v4  ;;  %8648 = vrcp.f32 %v3221_v13  ;;  %v3215_v22 = vmul.f32 0.3275911, %v3208_v16  ;;  %v3306_v39 = vsub.f32 0.0, %v3208_v16 }
 0x9b1   : > { %v3240_v48 = vmul.f32 1.0614054, %v8645_v47  ;;  %v3321_v62 = vmul.f32 1.442695, %v3312_v42 }
 0x9b2   : > { %v3209_v12 = vand.u32 2147483647, %v10524_v10  ;;  %v3222_v21 = vadd.f32 1.0, %v3215_v22  ;;  %v3313_v25 = vmul.f32 %v3306_v39, %v3208_v16  ;;  %vm3195_vm3 = vcmp.ge.f32.partialorder %v10524_v10, 0.0 }
 0x9b3   : > { %v3247_v44 = vadd.f32 -1.4531521, %v3240_v48  ;;  %v3181_v10 = vmul.f32 0.5, %v10520_v4 }
 0x9b4   : > { %v3216_v23 = vmul.f32 0.3275911, %v3209_v12  ;;  %8650 = vrcp.f32 %v3222_v21  ;;  %v3307_v20 = vsub.f32 0.0, %v3209_v12  ;;  %v3323_v18 = vmul.f32 1.442695, %v3313_v25 }
 0x9b5   : > { %v3254_v29 = vmul.f32 %v8645_v47, %v3247_v44  ;;  %8652 = vpow2.f32 %v3317_v60 }
 0x9b6   : > { %v8647_v27 = vpop.eup %8646  ;;  %v3223_v55 = vadd.f32 1.0, %v3216_v23  ;;  %v3314_v41 = vmul.f32 %v3307_v20, %v3209_v12 }
 0x9b7   : > { %v3261_v59 = vadd.f32 1.4214138, %v3254_v29  ;;  %v3241_v5 = vmul.f32 1.0614054, %v8647_v27 }
 0x9b8   : > { %8654 = vrcp.f32 %v3223_v55  ;;  %v3325_v39 = vmul.f32 1.442695, %v3314_v41 }
 0x9b9   : > { %v3268_v56 = vmul.f32 %v8645_v47, %v3261_v59  ;;  %v3248_v14 = vadd.f32 -1.4531521, %v3241_v5  ;;  %8656 = vpow2.f32 %v3319_v9 }
 0x9ba   : > { %v10527_v32 = vpop.eup %8648  ;;  %8658 = vpow2.f32 %v3321_v62 }
 0x9bb   : > { %v3275_v2 = vadd.f32 -0.28449672, %v3268_v56  ;;  %v3255_v6 = vmul.f32 %v8647_v27, %v3248_v14  ;;  %v3242_v34 = vmul.f32 1.0614054, %v10527_v32  ;;  %8660 = vpow2.f32 %v3323_v18 }
 0x9bc   : > { %8662 = vpow2.f32 %v3325_v39 }
 0x9bd   : > { %v3282_v40 = vmul.f32 %v8645_v47, %v3275_v2  ;;  %v3262_v15 = vadd.f32 1.4214138, %v3255_v6  ;;  %v3249_v24 = vadd.f32 -1.4531521, %v3242_v34 }
 0x9be   : > { %v10530_v54 = vpop.eup %8650 }
 0x9bf   : > { %v3289_v61 = vadd.f32 0.2548296, %v3282_v40  ;;  %v3269_v51 = vmul.f32 %v8647_v27, %v3262_v15  ;;  %v3256_v37 = vmul.f32 %v10527_v32, %v3249_v24  ;;  %v3243_v35 = vmul.f32 1.0614054, %v10530_v54  ;;  %v8653_v8 = vpop.eup %8652 }
 0x9c1   : > { %v3296_v43 = vmul.f32 %v8645_v47, %v3289_v61  ;;  %v3276_v30 = vadd.f32 -0.28449672, %v3269_v51  ;;  %v3263_v50 = vadd.f32 1.4214138, %v3256_v37  ;;  %v3250_v13 = vadd.f32 -1.4531521, %v3243_v35 }
 0x9c2   : > { %v10535_v48 = vpop.eup %8654  ;;  %v12037_v47 = vmov -1.0  }
 0x9c3   : > { %v3331_v16 = vmul.f32 %v8653_v8, %v3296_v43  ;;  %v3283_v22 = vmul.f32 %v8647_v27, %v3276_v30  ;;  %v3270_v44 = vmul.f32 %v10527_v32, %v3263_v50  ;;  %v3257_v21 = vmul.f32 %v10530_v54, %v3250_v13  ;;  %v8657_v6 = vpop.eup %8656 }
 0x9c4   : > { %v3244_v60 = vmul.f32 1.0614054, %v10535_v48  ;;  %v3168_v23 = vpop.f32.mrb[80].mxu1  ;;  %v3198_v29 = vsel %vm3191_vm11, 1.0, %v12037_v47  ;;  %v3199_v30 = vsel %vm3192_vm13, 1.0, %v12037_v47  ;;  %v8659_v13 = vpop.eup %8658  ;;  %v3200_v45 = vsel %vm3193_vm14, 1.0, %v12037_v47 }
 0x9c5   : > { %v3338_v53 = vsub.f32 1.0, %v3331_v16  ;;  %v3290_v55 = vadd.f32 0.2548296, %v3283_v22  ;;  %v10544_v59 = vadd.f32 %v10490_v26, %v3168_v23  ;;  %v7451_v5 = vpop.f32.mrb[81].mxu1  ;;  %v3277_v12 = vadd.f32 -0.28449672, %v3270_v44  ;;  %v8661_v23 = vpop.eup %8660 }
 0x9c6   : > { %v3264_v33 = vadd.f32 1.4214138, %v3257_v21  ;;  %v3251_v56 = vadd.f32 -1.4531521, %v3244_v60 }
 0x9c7   : > { %v3345_v14 = vmul.f32 %v3338_v53, %v3198_v29  ;;  %v3297_v9 = vmul.f32 %v8647_v27, %v3290_v55  ;;  %v10547_v2 = vmul.f32 0.70710677, %v10544_v59  ;;  %v3284_v42 = vmul.f32 %v10527_v32, %v3277_v12 }
 0x9c8   : > { %v3271_v34 = vmul.f32 %v10530_v54, %v3264_v33  ;;  %v3258_v40 = vmul.f32 %v10535_v48, %v3251_v56 }
 0x9c9   : > { %v3352_v15 = vadd.f32 1.0, %v3345_v14  ;;  %v3332_v24 = vmul.f32 %v8657_v6, %v3297_v9  ;;  %v3210_v25 = vand.u32 2147483647, %v10547_v2  ;;  %v3173_v27 = vpop.f32.mrb[82].mxu1  ;;  %v3291_v61 = vadd.f32 0.2548296, %v3284_v42 }
 0x9ca   : > { %v3278_v51 = vadd.f32 -0.28449672, %v3271_v34  ;;  %v3265_v62 = vadd.f32 1.4214138, %v3258_v40  ;;  %v10556_v20 = vadd.f32 %v10490_v26, %v3173_v27  ;;  %v7454_v43 = vpop.f32.mrb[83].mxu1  ;;  %v3179_v9 = vmul.f32 0.5, %v10507_v28 }
 0x9cb   : > { %v3359_v3 = vmul.f32 %v3352_v15, %v3177_v7  ;;  %v3339_v37 = vsub.f32 1.0, %v3332_v24  ;;  %v3217_v35 = vmul.f32 0.3275911, %v3210_v25  ;;  %v3298_v8 = vmul.f32 %v10527_v32, %v3291_v61  ;;  %v8663_v7 = vpop.eup %8662 }
 0x9cc   : > { %v3285_v19 = vmul.f32 %v10530_v54, %v3278_v51  ;;  %v3272_v50 = vmul.f32 %v10535_v48, %v3265_v62  ;;  %v10563_v22 = vmul.f32 0.70710677, %v10556_v20  ;;  %v3178_v32 = vmul.f32 0.5, %v10500_v31 }
 0x9cd   : > { %v3346_v18 = vmul.f32 %v3339_v37, %v3199_v30  ;;  %v3224_v16 = vadd.f32 1.0, %v3217_v35  ;;  %7472 = vmatmul.mubr.msk.f32.vlgmr.msra.gmra.mrb[84].mxu0 %vm3374_vm12, %v3359_v3  ;;  %v3333_v26 = vmul.f32 %v8659_v13, %v3298_v8  ;;  %v3201_v42 = vsel %vm3194_vm15, 1.0, %v12037_v47 }
 0x9ce   : > { %v3292_v41 = vadd.f32 0.2548296, %v3285_v19  ;;  %v3279_v44 = vadd.f32 -0.28449672, %v3272_v50  ;;  %7474 = vmatprep.mubr.msk.f32.mxu0 %vm9009_vm0, %v12041_v1  ;;  %v3211_v60 = vand.u32 2147483647, %v10563_v22 }
 0x9cf   : > { %v3353_v21 = vadd.f32 1.0, %v3346_v18  ;;  %8664 = vrcp.f32 %v3224_v16  ;;  %v3340_v29 = vsub.f32 1.0, %v3333_v26  ;;  %v3308_v34 = vsub.f32 0.0, %v3210_v25 }
 0x9d0   : > { %v3299_v53 = vmul.f32 %v10530_v54, %v3292_v41  ;;  %v3286_v55 = vmul.f32 %v10535_v48, %v3279_v44  ;;  %v3218_v12 = vmul.f32 0.3275911, %v3211_v60  ;;  %v3180_v24 = vmul.f32 0.5, %v10513_v17 }
 0x9d1   : > { %v3360_v5 = vmul.f32 %v3353_v21, %v3178_v32  ;;  %v3347_v33 = vmul.f32 %v3340_v29, %v3200_v45  ;;  %v3202_v61 = vsel %vm3195_vm3, 1.0, %v12037_v47  ;;  %v3315_v51 = vmul.f32 %v3308_v34, %v3210_v25 }
 0x9d2   : > { %v3334_v56 = vmul.f32 %v8661_v23, %v3299_v53  ;;  %v3293_v14 = vadd.f32 0.2548296, %v3286_v55  ;;  %v3225_v31 = vadd.f32 1.0, %v3218_v12  ;;  %v3309_v35 = vsub.f32 0.0, %v3211_v60 }
 0x9d3   : > { %7475 = vmatmul.mubr.msk.f32.gmra.mrb[86].mxu0 %vm3374_vm12, %v3360_v5  ;;  %v3354_v39 = vadd.f32 1.0, %v3347_v33  ;;  %v3327_v17 = vmul.f32 1.442695, %v3315_v51  ;;  %vm3196_vm11 = vcmp.ge.f32.partialorder %v10547_v2, 0.0  ;;  %vm3197_vm13 = vcmp.ge.f32.partialorder %v10563_v22, 0.0 }
 0x9d4   : > { %v3341_v6 = vsub.f32 1.0, %v3334_v56  ;;  %v3300_v54 = vmul.f32 %v10535_v48, %v3293_v14  ;;  %7477 = vmatprep.mubr.msk.f32.mxu0 %vm9009_vm0, %v12041_v1  ;;  %8666 = vrcp.f32 %v3225_v31  ;;  %v3316_v50 = vmul.f32 %v3309_v35, %v3211_v60  ;;  %v10609_v22 = vld [vmem:[%s12081_s19] ss:$0 sm:$0xff] }
 0x9d5   : > { %v3361_v52 = vmul.f32 %v3354_v39, %v3179_v9  ;;  %8668 = vpow2.f32 %v3327_v17  ;;  %v3203_v56 = vsel %vm3196_vm11, 1.0, %v12037_v47  ;;  %v3182_v39 = vmul.f32 0.5, %v10544_v59 }
 0x9d6   : > { %v3348_v40 = vmul.f32 %v3341_v6, %v3201_v42  ;;  %v3335_v15 = vmul.f32 %v8663_v7, %v3300_v54  ;;  %v3329_v26 = vmul.f32 1.442695, %v3316_v50  ;;  %v3204_v34 = vsel %vm3197_vm13, 1.0, %v12037_v47 }
 0x9d7   : > { %7478 = vmatmul.mubr.msk.f32.gmra.mrb[88].mxu0 %vm3374_vm12, %v3361_v52  ;;  %v3183_v52 = vmul.f32 0.5, %v10556_v20 }
 0x9d8   : > { %v3355_v28 = vadd.f32 1.0, %v3348_v40  ;;  %v3342_v27 = vsub.f32 1.0, %v3335_v15  ;;  %7480 = vmatprep.mubr.msk.f32.mxu0 %vm9009_vm0, %v12041_v1  ;;  %8670 = vpow2.f32 %v3329_v26 }
 0x9d9   : > { %v8665_v48 = vpop.eup %8664 }
 0x9da   : > { %v3362_v62 = vmul.f32 %v3355_v28, %v3180_v24  ;;  %v3349_v3 = vmul.f32 %v3342_v27, %v3202_v61  ;;  %v3245_v37 = vmul.f32 1.0614054, %v8665_v48 }
 0x9dc   : > { %v3356_v43 = vadd.f32 1.0, %v3349_v3  ;;  %v3252_v30 = vadd.f32 -1.4531521, %v3245_v37  ;;  %7481 = vmatmul.mubr.msk.f32.gmra.mrb[90].mxu0 %vm3374_vm12, %v3362_v62 }
 0x9dd   : > { %7483 = vmatprep.mubr.msk.f32.mxu0 %vm9009_vm0, %v12041_v1 }
 0x9de   : > { %v3363_v8 = vmul.f32 %v3356_v43, %v3181_v10  ;;  %v3259_v19 = vmul.f32 %v8665_v48, %v3252_v30  ;;  %v8667_v25 = vpop.eup %8666 }
 0x9df   : > { %v3246_v18 = vmul.f32 1.0614054, %v8667_v25  ;;  %v8669_v55 = vpop.eup %8668 }
 0x9e0   : > { %v3266_v13 = vadd.f32 1.4214138, %v3259_v19  ;;  %7484 = vmatmul.mubr.msk.f32.gmra.mrb[92].mxu0 %vm3374_vm12, %v3363_v8 }
 0x9e1   : > { %7486 = vmatprep.mubr.msk.f32.mxu0 %vm9009_vm0, %v12041_v1  ;;  %v3253_v16 = vadd.f32 -1.4531521, %v3246_v18 }
 0x9e2   : > { %v3273_v4 = vmul.f32 %v8665_v48, %v3266_v13  ;;  %v8671_v9 = vpop.eup %8670 }
 0x9e3   : > { %v3260_v44 = vmul.f32 %v8667_v25, %v3253_v16 }
 0x9e4   : > { %v3280_v41 = vadd.f32 -0.28449672, %v3273_v4 }
 0x9e5   : > { %v3267_v21 = vadd.f32 1.4214138, %v3260_v44 }
 0x9e6   : > { %v3287_v32 = vmul.f32 %v8665_v48, %v3280_v41 }
 0x9e7   : > { %v3274_v29 = vmul.f32 %v8667_v25, %v3267_v21 }
 0x9e8   : > { %v3294_v23 = vadd.f32 0.2548296, %v3287_v32 }
 0x9e9   : > { %v3281_v60 = vadd.f32 -0.28449672, %v3274_v29  ;;  %v6563_v29 = vld [vmem:[%s11985_s7 + $0x20] sm:$0xff] }
 0x9ea   : > { %v3301_v53 = vmul.f32 %v8665_v48, %v3294_v23 }
 0x9eb   : > { %v3288_v45 = vmul.f32 %v8667_v25, %v3281_v60 }
 0x9ec   : > { %v3336_v5 = vmul.f32 %v8669_v55, %v3301_v53  ;;  %v6564_v53 = vld [vmem:[%s11985_s7 + $0x28] sm:$0xff] }
 0x9ed   : > { %v3295_v33 = vadd.f32 0.2548296, %v3288_v45  ;;  %v8047_v60 = vpack.c.bf16 %v6564_v53, %v6563_v29  ;;  %v6566_v45 = vld [vmem:[%s11985_s7 + $0x38] sm:$0xff] }
 0x9ee   : > { %v3343_v12 = vsub.f32 1.0, %v3336_v5  ;;  %v6565_v5 = vld [vmem:[%s11985_s7 + $0x30] sm:$0xff] }
 0x9ef   : > { %v3302_v31 = vmul.f32 %v8667_v25, %v3295_v33  ;;  %8048 = vmatpush3.bf16.msra.mxu1 %v8047_v60 }
 0x9f0   : > { %v3350_v14 = vmul.f32 %v3343_v12, %v3203_v56  ;;  %8049 = vmatprep.subr.bf16.mxu1 %v12039_v0  ;;  %v8050_v56 = vpack.c.bf16 %v6566_v45, %v6565_v5 }
 0x9f1   : > { %v3337_v54 = vmul.f32 %v8671_v9, %v3302_v31 }
 0x9f2   : > { %v3357_v6 = vadd.f32 1.0, %v3350_v14 }
 0x9f3   : > { %v3344_v42 = vsub.f32 1.0, %v3337_v54  ;;  %8051 = vmatpush3.bf16.msra.mxu1 %v8050_v56 }
 0x9f4   : > { %v3364_v7 = vmul.f32 %v3357_v6, %v3182_v39  ;;  %8064 = vmatprep.subr.bf16.mxu1 %v12039_v0 }
 0x9f5   : > { %v3351_v2 = vmul.f32 %v3344_v42, %v3204_v34 }
 0x9f6   : > { %7487 = vmatmul.mubr.msk.f32.gmra.mrb[94].mxu0 %vm3374_vm12, %v3364_v7 }
 0x9f7   : > { %7489 = vmatprep.mubr.msk.f32.mxu0 %vm9009_vm0, %v12041_v1  ;;  %v3358_v40 = vadd.f32 1.0, %v3351_v2 }
 0x9f9   : > { %v3365_v15 = vmul.f32 %v3358_v40, %v3183_v52 }
 0x9fb   : > { %7490 = vmatmul.mubr.msk.f32.gmra.mrb[96].mxu0 %vm3374_vm12, %v3365_v15 }
 0x9fc   : > { %7535 = vmatprep.mubr.msk.f32.mxu0 %vm9009_vm0, %v12041_v1 }
 0xaa0   : > { %v3462_v59 = vpop.f32.mrb[84].mxu0 }
 0xaa1   : > { %v3496_v24 = vadd.f32 %v3462_v59, %v10338_v38  ;;  %v7473_v28 = vpop.f32.mrb[85].mxu0 }
 0xaa3   : > { %v10613_v27 = vadd.f32 %v10609_v22, %v3496_v24 }
 0xaa5   : > { %v3521_v20 = vsel %vm706_vm1, %v10613_v27, 0.0  ;;  %v3549_v48 = vmul.f32 %v10613_v27, %v10613_v27 }
 0xaa6   : > { %3522 = vadd.xlane.f32.xlu0 %v3521_v20  ;;  %v3467_v61 = vpop.f32.mrb[86].mxu0 }
 0xaa7   : > { %v3497_v51 = vadd.f32 %v3467_v61, %v10345_v46  ;;  %v7476_v62 = vpop.f32.mrb[87].mxu0  ;;  %v3556_v3 = vsel %vm706_vm1, %v3549_v48, 0.0 }
 0xaa8   : > { %3557 = vadd.xlane.f32.xlu1 %v3556_v3 }
 0xaa9   : > { %v10622_v38 = vadd.f32 %v10609_v22, %v3497_v51 }
 0xaaa   : > { %v3472_v37 = vpop.f32.mrb[88].mxu0 }
 0xaab   : > { %v3524_v35 = vsel %vm706_vm1, %v10622_v38, 0.0  ;;  %v3550_v10 = vmul.f32 %v10622_v38, %v10622_v38  ;;  %v3498_v43 = vadd.f32 %v3472_v37, %v10351_v63  ;;  %v7479_v30 = vpop.f32.mrb[89].mxu0 }
 0xaac   : > { %3525 = vadd.xlane.f32.xlu0 %v3524_v35 }
 0xaad   : > { %v3559_v46 = vsel %vm706_vm1, %v3550_v10, 0.0  ;;  %v10631_v17 = vadd.f32 %v10609_v22, %v3498_v43 }
 0xaae   : > { %3560 = vadd.xlane.f32.xlu1 %v3559_v46 }
 0xaaf   : > { %v3477_v8 = vpop.f32.mrb[90].mxu0  ;;  %v3527_v50 = vsel %vm706_vm1, %v10631_v17, 0.0  ;;  %v3551_v13 = vmul.f32 %v10631_v17, %v10631_v17 }
 0xab0   : > { %v3499_v19 = vadd.f32 %v3477_v8, %v10359_v58  ;;  %v7482_v25 = vpop.f32.mrb[91].mxu0  ;;  %3528 = vadd.xlane.f32.xlu0 %v3527_v50 }
 0xab1   : > { %v3562_v18 = vsel %vm706_vm1, %v3551_v13, 0.0 }
 0xab2   : > { %v10639_v63 = vadd.f32 %v10609_v22, %v3499_v19  ;;  %3563 = vadd.xlane.f32.xlu1 %v3562_v18 }
 0xab3   : > { %v3482_v4 = vpop.f32.mrb[92].mxu0 }
 0xab4   : > { %v3500_v16 = vadd.f32 %v3482_v4, %v10367_v57  ;;  %v7485_v26 = vpop.f32.mrb[93].mxu0  ;;  %v3530_v58 = vsel %vm706_vm1, %v10639_v63, 0.0  ;;  %v3552_v41 = vmul.f32 %v10639_v63, %v10639_v63 }
 0xab5   : > { %3531 = vadd.xlane.f32.xlu0 %v3530_v58  ;;  %v10692_v26 = vld [vmem:[%s12077_s5 + $0x1] ss:$0 sm:$0xff] }
 0xab6   : > { %v10648_v44 = vadd.f32 %v10609_v22, %v3500_v16  ;;  %v3565_v32 = vsel %vm706_vm1, %v3552_v41, 0.0 }
 0xab7   : > { %3566 = vadd.xlane.f32.xlu1 %v3565_v32 }
 0xab8   : > { %v3533_v21 = vsel %vm706_vm1, %v10648_v44, 0.0  ;;  %v3553_v57 = vmul.f32 %v10648_v44, %v10648_v44 }
 0xab9   : > { %3534 = vadd.xlane.f32.xlu0 %v3533_v21 }
 0xaba   : > { %v3568_v23 = vsel %vm706_vm1, %v3553_v57, 0.0 }
 0xabb   : > { %3569 = vadd.xlane.f32.xlu1 %v3568_v23  ;;  %v10697_v23 = vld [vmem:[%s12078_s6 + $0x1] ss:$0 sm:$0xff]  ;;  %s6312_s6 = scalar_lea.sflag [#allocation5], %s9298_s20 }
 0xac9   : > { %v3487_v55 = vpop.f32.mrb[94].mxu0 }
 0xaca   : > { %v3501_v12 = vadd.f32 %v3487_v55, %v10391_v36  ;;  %v7488_v33 = vpop.f32.mrb[95].mxu0 }
 0xacc   : > { %v10671_v14 = vadd.f32 %v10609_v22, %v3501_v12 }
 0xace   : > { %v3536_v31 = vsel %vm706_vm1, %v10671_v14, 0.0  ;;  %v3554_v9 = vmul.f32 %v10671_v14, %v10671_v14  ;;  %v3492_v39 = vpop.f32.mrb[96].mxu0 }
 0xacf   : > { %3537 = vadd.xlane.f32.xlu0 %v3536_v31  ;;  %v3502_v6 = vadd.f32 %v3492_v39, %v10400_v49  ;;  %v7491_v54 = vpop.f32.mrb[97].mxu0 }
 0xad0   : > { %v3571_v36 = vsel %vm706_vm1, %v3554_v9, 0.0 }
 0xad1   : > { %3572 = vadd.xlane.f32.xlu1 %v3571_v36  ;;  %v10681_v7 = vadd.f32 %v10609_v22, %v3502_v6 }
 0xad3   : > { %v3539_v42 = vsel %vm841_vm2, %v10681_v7, 0.0  ;;  %v3555_v34 = vmul.f32 %v10681_v7, %v10681_v7 }
 0xad4   : > { %3540 = vadd.xlane.f32.xlu0 %v3539_v42 }
 0xad5   : > { %v3574_v2 = vsel %vm841_vm2, %v3555_v34, 0.0 }
 0xad6   : > { %3575 = vadd.xlane.f32.xlu1 %v3574_v2 }
 0xb33   : > { %v3523_v52 = vpop.xlane.xlu0 %3522 }
 0xb34   : > { %v3542_v40 = vmul.f32 0.03125, %v3523_v52 }
 0xb35   : > { %v3558_v49 = vpop.xlane.xlu1 %3557 }
 0xb36   : > { %v3584_v15 = vmul.f32 %v3542_v40, %v3542_v40  ;;  %v3577_v59 = vmul.f32 0.03125, %v3558_v49  ;;  %v3598_v50 = vsub.f32 %v10613_v27, %v3542_v40 }
 0xb38   : > { %v3591_v24 = vsub.f32 %v3577_v59, %v3584_v15 }
 0xb39   : > { %v3526_v28 = vpop.xlane.xlu0 %3525 }
 0xb3a   : > { %v3605_v20 = vadd.f32 1e-05, %v3591_v24  ;;  %v3543_v22 = vmul.f32 0.03125, %v3526_v28 }
 0xb3b   : > { %v3561_v48 = vpop.xlane.xlu1 %3560 }
 0xb3c   : > { %8672 = vrsqrt.f32 %v3605_v20  ;;  %v3585_v61 = vmul.f32 %v3543_v22, %v3543_v22  ;;  %v3578_v51 = vmul.f32 0.03125, %v3561_v48  ;;  %v3599_v5 = vsub.f32 %v10622_v38, %v3543_v22 }
 0xb3d   : > { %v3529_v3 = vpop.xlane.xlu0 %3528 }
 0xb3e   : > { %v3592_v62 = vsub.f32 %v3578_v51, %v3585_v61  ;;  %v3544_v37 = vmul.f32 0.03125, %v3529_v3 }
 0xb3f   : > { %v3564_v10 = vpop.xlane.xlu1 %3563 }
 0xb40   : > { %v3606_v35 = vadd.f32 1e-05, %v3592_v62  ;;  %v3586_v43 = vmul.f32 %v3544_v37, %v3544_v37  ;;  %v3579_v30 = vmul.f32 0.03125, %v3564_v10  ;;  %v3600_v39 = vsub.f32 %v10631_v17, %v3544_v37 }
 0xb42   : > { %8674 = vrsqrt.f32 %v3606_v35  ;;  %v3532_v46 = vpop.xlane.xlu0 %3531  ;;  %v3593_v8 = vsub.f32 %v3579_v30, %v3586_v43 }
 0xb43   : > { %v3545_v19 = vmul.f32 0.03125, %v3532_v46 }
 0xb44   : > { %v3567_v25 = vpop.xlane.xlu1 %3566  ;;  %v3607_v13 = vadd.f32 1e-05, %v3593_v8 }
 0xb45   : > { %v3587_v18 = vmul.f32 %v3545_v19, %v3545_v19  ;;  %v3580_v4 = vmul.f32 0.03125, %v3567_v25  ;;  %v3601_v42 = vsub.f32 %v10639_v63, %v3545_v19 }
 0xb46   : > { %v8673_v16 = vpop.eup %8672  ;;  %v3535_v58 = vpop.xlane.xlu0 %3534  ;;  %8676 = vrsqrt.f32 %v3607_v13 }
 0xb47   : > { %v3619_v41 = vmul.f32 %v8673_v16, %v3598_v50  ;;  %v3594_v32 = vsub.f32 %v3580_v4, %v3587_v18  ;;  %v3546_v21 = vmul.f32 0.03125, %v3535_v58 }
 0xb48   : > { %v3570_v57 = vpop.xlane.xlu1 %3569 }
 0xb49   : > { %v3632_v29 = vmul.f32 %v10692_v26, %v3619_v41  ;;  %v3608_v53 = vadd.f32 1e-05, %v3594_v32  ;;  %v3588_v60 = vmul.f32 %v3546_v21, %v3546_v21  ;;  %v3581_v55 = vmul.f32 0.03125, %v3570_v57 }
 0xb4a   : > { %v3602_v15 = vsub.f32 %v10648_v44, %v3546_v21 }
 0xb4b   : > { %8678 = vrsqrt.f32 %v3608_v53  ;;  %v3645_v45 = vadd.f32 %v10697_v23, %v3632_v29  ;;  %v3595_v33 = vsub.f32 %v3581_v55, %v3588_v60 }
 0xb4c   : > { %v8675_v12 = vpop.eup %8674 }
 0xb4d   : > { %7501 = vmatmul.mubr.msk.f32.vlgmr.msra.gmra.mrb[84].mxu1 %vm706_vm1, %v3645_v45  ;;  %v3620_v56 = vmul.f32 %v8675_v12, %v3599_v5  ;;  %v3609_v31 = vadd.f32 1e-05, %v3595_v33 }
 0xb4e   : > { %7503 = vmatprep.mubr.msk.f32.mxu1 %vm9009_vm0, %v12041_v1 }
 0xb4f   : > { %v3633_v9 = vmul.f32 %v10692_v26, %v3620_v56  ;;  %8680 = vrsqrt.f32 %v3609_v31 }
 0xb50   : > { %v8677_v6 = vpop.eup %8676 }
 0xb51   : > { %v3646_v54 = vadd.f32 %v10697_v23, %v3633_v9  ;;  %v3621_v36 = vmul.f32 %v8677_v6, %v3600_v39 }
 0xb53   : > { %7504 = vmatmul.mubr.msk.f32.gmra.mrb[86].mxu1 %vm706_vm1, %v3646_v54  ;;  %v3634_v34 = vmul.f32 %v10692_v26, %v3621_v36 }
 0xb54   : > { %7506 = vmatprep.mubr.msk.f32.mxu1 %vm9009_vm0, %v12041_v1 }
 0xb55   : > { %v8679_v2 = vpop.eup %8678  ;;  %v3647_v52 = vadd.f32 %v10697_v23, %v3634_v34 }
 0xb56   : > { %v3622_v40 = vmul.f32 %v8679_v2, %v3601_v42 }
 0xb57   : > { %7507 = vmatmul.mubr.msk.f32.gmra.mrb[88].mxu1 %vm706_vm1, %v3647_v52 }
 0xb58   : > { %v3635_v49 = vmul.f32 %v10692_v26, %v3622_v40  ;;  %7509 = vmatprep.mubr.msk.f32.mxu1 %vm9009_vm0, %v12041_v1 }
 0xb59   : > { %v8681_v59 = vpop.eup %8680 }
 0xb5a   : > { %v3648_v24 = vadd.f32 %v10697_v23, %v3635_v49  ;;  %v3623_v28 = vmul.f32 %v8681_v59, %v3602_v15 }
 0xb5c   : > { %7510 = vmatmul.mubr.msk.f32.gmra.mrb[90].mxu1 %vm706_vm1, %v3648_v24  ;;  %v3538_v20 = vpop.xlane.xlu0 %3537  ;;  %v3636_v48 = vmul.f32 %v10692_v26, %v3623_v28 }
 0xb5d   : > { %v3547_v22 = vmul.f32 0.03125, %v3538_v20  ;;  %7512 = vmatprep.mubr.msk.f32.mxu1 %vm9009_vm0, %v12041_v1 }
 0xb5e   : > { %v3573_v61 = vpop.xlane.xlu1 %3572  ;;  %v3649_v3 = vadd.f32 %v10697_v23, %v3636_v48 }
 0xb5f   : > { %v3589_v51 = vmul.f32 %v3547_v22, %v3547_v22  ;;  %v3582_v62 = vmul.f32 0.03125, %v3573_v61  ;;  %v3603_v50 = vsub.f32 %v10671_v14, %v3547_v22 }
 0xb60   : > { %7513 = vmatmul.mubr.msk.f32.gmra.mrb[92].mxu1 %vm706_vm1, %v3649_v3 }
 0xb61   : > { %v3596_v37 = vsub.f32 %v3582_v62, %v3589_v51  ;;  %v3541_v35 = vpop.xlane.xlu0 %3540  ;;  %7515 = vmatprep.mubr.msk.f32.mxu1 %vm9009_vm0, %v12041_v1 }
 0xb62   : > { %v3548_v43 = vmul.f32 0.03125, %v3541_v35 }
 0xb63   : > { %v3610_v10 = vadd.f32 1e-05, %v3596_v37  ;;  %v3576_v30 = vpop.xlane.xlu1 %3575 }
 0xb64   : > { %v3590_v46 = vmul.f32 %v3548_v43, %v3548_v43  ;;  %v3583_v8 = vmul.f32 0.03125, %v3576_v30  ;;  %v3604_v16 = vsub.f32 %v10681_v7, %v3548_v43 }
 0xb65   : > { %8682 = vrsqrt.f32 %v3610_v10 }
 0xb66   : > { %v3597_v19 = vsub.f32 %v3583_v8, %v3590_v46 }
 0xb68   : > { %v3611_v25 = vadd.f32 1e-05, %v3597_v19 }
 0xb6a   : > { %8684 = vrsqrt.f32 %v3611_v25 }
 0xb6f   : > { %v8683_v13 = vpop.eup %8682 }
 0xb70   : > { %v3624_v18 = vmul.f32 %v8683_v13, %v3603_v50 }
 0xb72   : > { %v3637_v4 = vmul.f32 %v10692_v26, %v3624_v18 }
 0xb74   : > { %v3650_v58 = vadd.f32 %v10697_v23, %v3637_v4  ;;  %v8685_v41 = vpop.eup %8684 }
 0xb75   : > { %v3625_v32 = vmul.f32 %v8685_v41, %v3604_v16 }
 0xb76   : > { %7516 = vmatmul.mubr.msk.f32.gmra.mrb[94].mxu1 %vm706_vm1, %v3650_v58 }
 0xb77   : > { %7518 = vmatprep.mubr.msk.f32.mxu1 %vm9009_vm0, %v12041_v1  ;;  %v3638_v21 = vmul.f32 %v10692_v26, %v3625_v32 }
 0xb79   : > { %v3651_v57 = vadd.f32 %v10697_v23, %v3638_v21 }
 0xb7b   : > { %7519 = vmatmul.mubr.msk.f32.gmra.mrb[96].mxu1 %vm706_vm1, %v3651_v57 }
 0xb7c   : > { %7570 = vmatprep.mubr.msk.f32.mxu1 %vm9009_vm0, %v12041_v1 }
 0xc20   : > { %v10740_v29 = vpop.f32.mrb[84].mxu1 }
 0xc21   : > { %v7502_v53 = vpop.f32.mrb[85].mxu1 }
 0xc26   : > { %v10742_v60 = vpop.f32.mrb[86].mxu1 }
 0xc27   : > { %v7505_v55 = vpop.f32.mrb[87].mxu1  ;;  %v10746_v5 = vpack.i.bf16 %v10742_v60, %v10740_v29 }
 0xc29   : > { %8385 = vrot.lane.b32.xlu0 %v10746_v5, %s9011_s18 }
 0xc2a   : > { %v10750_v26 = vpop.f32.mrb[88].mxu1 }
 0xc2b   : > { %v7508_v23 = vpop.f32.mrb[89].mxu1 }
 0xc2f   : > { %v10752_v45 = vpop.f32.mrb[90].mxu1 }
 0xc30   : > { %v7511_v12 = vpop.f32.mrb[91].mxu1  ;;  %v10756_v33 = vpack.i.bf16 %v10752_v45, %v10750_v26 }
 0xc32   : > { %8390 = vrot.lane.b32.xlu1 %v10756_v33, %s9011_s18 }
 0xc33   : > { %v10760_v56 = vpop.f32.mrb[92].mxu1 }
 0xc34   : > { %v7514_v31 = vpop.f32.mrb[93].mxu1 }
 0xc49   : > { %v10762_v9 = vpop.f32.mrb[94].mxu1 }
 0xc4a   : > { %v7517_v39 = vpop.f32.mrb[95].mxu1  ;;  %v10766_v6 = vpack.i.bf16 %v10762_v9, %v10760_v56 }
 0xc4c   : > { %8395 = vrot.lane.b32.xlu1 %v10766_v6, %s9011_s18 }
 0xc4e   : > { %v10770_v54 = vpop.f32.mrb[96].mxu1 }
 0xc4f   : > { %3797 = vrot.lane.b32.xlu0 %v10770_v54, %s9011_s18  ;;  %v7520_v36 = vpop.f32.mrb[97].mxu1  ;;  %s12084_s18 = smov 72  }
 0xc50   : > { %8400 = vrot.lane.b32.xlu1 %v10746_v5, %s9012_s3 }
 0xc53   : > { %8405 = vrot.lane.b32.xlu0 %v10756_v33, %s9012_s3 }
 0xc54   : > { %8410 = vrot.lane.b32.xlu1 %v10766_v6, %s9012_s3 }
 0xc57   : > { %4180 = vrot.lane.b32.xlu0 %v10770_v54, %s9012_s3  ;;  %s12085_s3 = smov 112  }
 0xc58   : > { %8415 = vrot.lane.b32.xlu1 %v10746_v5, %s12082_s27 }
 0xc5b   : > { %4154 = vrot.lane.b32.xlu0 %v10740_v29, %s12083_s4 }
 0xc5c   : > { %4156 = vrot.lane.b32.xlu1 %v10742_v60, %s12083_s4 }
 0xc5f   : > { %8420 = vrot.lane.b32.xlu0 %v10756_v33, %s12082_s27 }
 0xc60   : > { %4158 = vrot.lane.b32.xlu1 %v10750_v26, %s12083_s4 }
 0xc63   : > { %4160 = vrot.lane.b32.xlu0 %v10752_v45, %s12083_s4 }
 0xc64   : > { %8425 = vrot.lane.b32.xlu1 %v10766_v6, %s12082_s27 }
 0xc67   : > { %4162 = vrot.lane.b32.xlu0 %v10760_v56, %s12083_s4 }
 0xc68   : > { %4164 = vrot.lane.b32.xlu1 %v10762_v9, %s12083_s4 }
 0xc6b   : > { %4166 = vrot.lane.b32.xlu0 %v10770_v54, %s12083_s4 }
 0xc6c   : > { %4563 = vrot.lane.b32.xlu1 %v10770_v54, %s12082_s27  ;;  %s12097_s27 = sld [smem:[#allocation25_spill]] }
 0xc6f   : > { %8430 = vrot.lane.b32.xlu0 %v10746_v5, %s12084_s18 }
 0xc70   : > { %4537 = vrot.lane.b32.xlu1 %v10740_v29, %s12085_s3 }
 0xc73   : > { %4539 = vrot.lane.b32.xlu0 %v10742_v60, %s12085_s3 }
 0xc74   : > { %8435 = vrot.lane.b32.xlu1 %v10756_v33, %s12084_s18 }
 0xc77   : > { %4541 = vrot.lane.b32.xlu0 %v10750_v26, %s12085_s3 }
 0xc78   : > { %4543 = vrot.lane.b32.xlu1 %v10752_v45, %s12085_s3 }
 0xc7b   : > { %8440 = vrot.lane.b32.xlu0 %v10766_v6, %s12084_s18 }
 0xc7c   : > { %4545 = vrot.lane.b32.xlu1 %v10760_v56, %s12085_s3 }
 0xc7f   : > { %4547 = vrot.lane.b32.xlu0 %v10762_v9, %s12085_s3 }
 0xc80   : > { %4549 = vrot.lane.b32.xlu1 %v10770_v54, %s12085_s3  ;;  %s12093_s3 = smov 16  }
 0xc83   : > { %4946 = vrot.lane.b32.xlu0 %v10770_v54, %s12084_s18  ;;  %s12099_s18 = sld [smem:[#allocation26_spill]] }
 0xc84   : > { %4920 = vrot.lane.b32.xlu1 %v10740_v29, %s12086_s1 }
 0xc87   : > { %4922 = vrot.lane.b32.xlu0 %v10742_v60, %s12086_s1 }
 0xc88   : > { %4924 = vrot.lane.b32.xlu1 %v10750_v26, %s12086_s1 }
 0xc8b   : > { %4926 = vrot.lane.b32.xlu0 %v10752_v45, %s12086_s1 }
 0xc8c   : > { %4928 = vrot.lane.b32.xlu1 %v10760_v56, %s12086_s1 }
 0xc8f   : > { %4930 = vrot.lane.b32.xlu0 %v10762_v9, %s12086_s1 }
 0xc90   : > { %4932 = vrot.lane.b32.xlu1 %v10770_v54, %s12086_s1  ;;  %s680_s1 = scalar_lea.vmem [#allocation9], %s9298_s20 }
 0xc93   : > { %8445 = vrot.lane.b32.xlu0 %v10746_v5, %s12087_s29 }
 0xc94   : > { %8450 = vrot.lane.b32.xlu1 %v10756_v33, %s12087_s29 }
 0xc97   : > { %8455 = vrot.lane.b32.xlu0 %v10766_v6, %s12087_s29 }
 0xc98   : > { %8465 = vrot.lane.b32.xlu1 %v10756_v33, %s12088_s25 }
 0xc9b   : > { %v8386_v42 = vpop.permute.xlu0 %8385  ;;  %8460 = vrot.lane.b32.xlu0 %v10746_v5, %s12088_s25 }
 0xc9c   : > { %v8388_v34 = vunpack.i.h.bf16 %v8386_v42  ;;  %v8387_v2 = vunpack.i.l.bf16 %v8386_v42  ;;  %8470 = vrot.lane.b32.xlu1 %v10766_v6, %s12088_s25 }
 0xc9e   : > { %v8053_v52 = vpack.c.bf16 %v8388_v34, %v8387_v2 }
 0xc9f   : > { %8480 = vrot.lane.b32.xlu0 %v10756_v33, %s12089_s17 }
 0xca0   : > { %8475 = vrot.lane.b32.xlu1 %v10746_v5, %s12089_s17  ;;  %8055 = vmatpush3.bf16.xpose.msk.msra.mxu0 %vm9601_vm5, %v8053_v52 }
 0xca1   : > { %8056 = vmatprep.subr.bf16.mxu0 %v12039_v0 }
 0xca3   : > { %4406 = vrot.lane.b32.xlu0 %v10770_v54, %s12088_s25 }
 0xca4   : > { %v8391_v40 = vpop.permute.xlu1 %8390  ;;  %8485 = vrot.lane.b32.xlu1 %v10766_v6, %s12089_s17 }
 0xca5   : > { %v8393_v49 = vunpack.i.h.bf16 %v8391_v40  ;;  %v8392_v15 = vunpack.i.l.bf16 %v8391_v40 }
 0xca7   : > { %v8057_v59 = vpack.c.bf16 %v8393_v49, %v8392_v15 }
 0xca8   : > { %4023 = vrot.lane.b32.xlu1 %v10770_v54, %s12087_s29  ;;  %s6324_s29 = sshll.u32 %s680_s1, 4  ;;  %s11936_s29 = int_to_ptr.vmem [resolvable:$true] %s6324_s29 }
 0xca9   : > { %8059 = vmatpush3.bf16.xpose.msk.msra.mxu0 %vm9601_vm5, %v8057_v59 }
 0xcaa   : > { %8060 = vmatprep.subr.bf16.mxu0 %v12039_v0 }
 0xcbe   : > { %v8396_v24 = vpop.permute.xlu1 %8395 }
 0xcbf   : > { %v8398_v28 = vunpack.i.h.bf16 %v8396_v24  ;;  %v8397_v20 = vunpack.i.l.bf16 %v8396_v24 }
 0xcc1   : > { %v8061_v22 = vpack.c.bf16 %v8398_v28, %v8397_v20  ;;  %v3798_v48 = vpop.permute.xlu0 %3797 }
 0xcc2   : > { %v8401_v61 = vpop.permute.xlu1 %8400 }
 0xcc3   : > { %8063 = vmatpush3.bf16.xpose.msk.msra.mxu0 %vm9601_vm5, %v8061_v22  ;;  %v8403_v3 = vunpack.i.h.bf16 %v8401_v61  ;;  %v8402_v37 = vunpack.i.l.bf16 %v8401_v61 }
 0xcc4   : > { %7533 = vmatprep.subr.mxu0 %v12041_v1 }
 0xcc5   : > { %v8406_v51 = vpop.permute.xlu0 %8405  ;;  %v8074_v43 = vpack.c.bf16 %v8403_v3, %v8402_v37 }
 0xcc6   : > { %v8411_v62 = vpop.permute.xlu1 %8410  ;;  %v8408_v8 = vunpack.i.h.bf16 %v8406_v51  ;;  %v8407_v19 = vunpack.i.l.bf16 %v8406_v51 }
 0xcc7   : > { %v8413_v16 = vunpack.i.h.bf16 %v8411_v62  ;;  %v8412_v58 = vunpack.i.l.bf16 %v8411_v62 }
 0xcc8   : > { %v8078_v13 = vpack.c.bf16 %v8408_v8, %v8407_v19 }
 0xcc9   : > { %v4181_v35 = vpop.permute.xlu0 %4180  ;;  %v8082_v21 = vpack.c.bf16 %v8413_v16, %v8412_v58 }
 0xcca   : > { %v8416_v10 = vpop.permute.xlu1 %8415 }
 0xccb   : > { %7534 = vmatpush3.xpose.msk.msra.mxu0 %vm1151_vm4, %v3798_v48  ;;  %v8418_v55 = vunpack.i.h.bf16 %v8416_v10 }
 0xccc   : > { %8073 = vmatprep.subr.bf16.mxu0 %v12039_v0 }
 0xccd   : > { %v4155_v30 = vpop.permute.xlu0 %4154 }
 0xcce   : > { %v4157_v46 = vpop.permute.xlu1 %4156  ;;  %7536 = vmatmul.mubr.msk.f32.vlgmr.msra.gmra.mrb[98].mxu0 %vm1151_vm4, %v10740_v29 }
 0xccf   : > { %8076 = vmatpush3.bf16.xpose.msk.msra.mxu0 %vm9601_vm5, %v8074_v43  ;;  %7538 = vmatprep.mubr.msk.f32.mxu0 %vm9009_vm0, %v12041_v1 }
 0xcd0   : > { %8077 = vmatprep.subr.bf16.mxu0 %v12039_v0 }
 0xcd1   : > { %v8421_v25 = vpop.permute.xlu0 %8420 }
 0xcd2   : > { %v4159_v50 = vpop.permute.xlu1 %4158  ;;  %7539 = vmatmul.mubr.msk.f32.gmra.mrb[100].mxu0 %vm1151_vm4, %v10742_v60  ;;  %v8422_v39 = vunpack.i.l.bf16 %v8421_v25 }
 0xcd3   : > { %7541 = vmatprep.mubr.msk.f32.mxu0 %vm9009_vm0, %v12041_v1 }
 0xcd5   : > { %v4161_v18 = vpop.permute.xlu0 %4160 }
 0xcd6   : > { %v8426_v4 = vpop.permute.xlu1 %8425  ;;  %7542 = vmatmul.mubr.msk.f32.gmra.mrb[102].mxu0 %vm1151_vm4, %v10750_v26  ;;  %v8417_v26 = vunpack.i.l.bf16 %v8416_v10 }
 0xcd7   : > { %8080 = vmatpush3.bf16.xpose.msk.msra.mxu0 %vm9601_vm5, %v8078_v13  ;;  %7544 = vmatprep.mubr.msk.f32.mxu0 %vm9009_vm0, %v12041_v1  ;;  %v8428_v40 = vunpack.i.h.bf16 %v8426_v4  ;;  %v8427_v49 = vunpack.i.l.bf16 %v8426_v4 }
 0xcd8   : > { %8081 = vmatprep.subr.bf16.mxu0 %v12039_v0  ;;  %v8095_v12 = vpack.c.bf16 %v8418_v55, %v8417_v26 }
 0xcd9   : > { %v4163_v41 = vpop.permute.xlu0 %4162  ;;  %v8103_v24 = vpack.c.bf16 %v8428_v40, %v8427_v49 }
 0xcda   : > { %v4165_v32 = vpop.permute.xlu1 %4164  ;;  %7545 = vmatmul.mubr.msk.f32.gmra.mrb[104].mxu0 %vm1151_vm4, %v10752_v45 }
 0xcdb   : > { %7547 = vmatprep.mubr.msk.f32.mxu0 %vm9009_vm0, %v12041_v1 }
 0xcdd   : > { %v4167_v57 = vpop.permute.xlu0 %4166 }
 0xcde   : > { %v4564_v29 = vpop.permute.xlu1 %4563  ;;  %7548 = vmatmul.mubr.msk.f32.gmra.mrb[106].mxu0 %vm1151_vm4, %v10760_v56 }
 0xcdf   : > { %8084 = vmatpush3.bf16.xpose.msk.msra.mxu0 %vm9601_vm5, %v8082_v21  ;;  %7550 = vmatprep.mubr.msk.f32.mxu0 %vm9009_vm0, %v12041_v1 }
 0xce0   : > { %7603 = vmatprep.subr.mxu0 %v12041_v1 }
 0xce1   : > { %v8431_v53 = vpop.permute.xlu0 %8430 }
 0xce2   : > { %v4538_v60 = vpop.permute.xlu1 %4537  ;;  %7551 = vmatmul.mubr.msk.f32.gmra.mrb[108].mxu0 %vm1151_vm4, %v10762_v9  ;;  %v8423_v9 = vunpack.i.h.bf16 %v8421_v25  ;;  %v8433_v61 = vunpack.i.h.bf16 %v8431_v53  ;;  %v8432_v51 = vunpack.i.l.bf16 %v8431_v53 }
 0xce3   : > { %7553 = vmatprep.mubr.msk.f32.mxu0 %vm9009_vm0, %v12041_v1 }
 0xce4   : > { %v8099_v34 = vpack.c.bf16 %v8423_v9, %v8422_v39  ;;  %v8116_v37 = vpack.c.bf16 %v8433_v61, %v8432_v51 }
 0xce5   : > { %v10906_v23 = vpop.permute.xlu0 %4539 }
 0xce6   : > { %v10908_v45 = vpop.permute.xlu1 %8435  ;;  %7554 = vmatmul.mubr.msk.f32.gmra.mrb[110].mxu0 %vm1151_vm4, %v10770_v54 }
 0xce7   : > { %7604 = vmatpush3.xpose.msk.msra.mxu0 %vm1151_vm4, %v4181_v35  ;;  %7605 = vmatprep.mubr.msk.f32.mxu0 %vm9009_vm0, %v12041_v1  ;;  %v8437_v8 = vunpack.i.l.bf16 %v10908_v45 }
 0xce8   : > { %8094 = vmatprep.subr.bf16.mxu0 %v12039_v0 }
 0xce9   : > { %v10916_v56 = vpop.permute.xlu0 %4541 }
 0xcea   : > { %v10918_v31 = vpop.permute.xlu1 %4543  ;;  %7606 = vmatmul.mubr.msk.f32.vlgmr.msra.gmra.mrb[112].mxu0 %vm1151_vm4, %v4155_v30 }
 0xceb   : > { %8097 = vmatpush3.bf16.xpose.msk.msra.mxu0 %vm9601_vm5, %v8095_v12  ;;  %7608 = vmatprep.mubr.msk.f32.mxu0 %vm9009_vm0, %v12041_v1 }
 0xcec   : > { %8098 = vmatprep.subr.bf16.mxu0 %v12039_v0 }
 0xced   : > { %v10926_v36 = vpop.permute.xlu0 %8440 }
 0xcee   : > { %v10928_v42 = vpop.permute.xlu1 %4545  ;;  %7609 = vmatmul.mubr.msk.f32.gmra.mrb[114].mxu0 %vm1151_vm4, %v4157_v46  ;;  %v8438_v46 = vunpack.i.h.bf16 %v10908_v45  ;;  %v8443_v21 = vunpack.i.h.bf16 %v10926_v36 }
 0xcef   : > { %7611 = vmatprep.mubr.msk.f32.mxu0 %vm9009_vm0, %v12041_v1 }
 0xcf0   : > { %v8120_v4 = vpack.c.bf16 %v8438_v46, %v8437_v8 }
 0xcf1   : > { %v10933_v2 = vpop.permute.xlu0 %4547 }
 0xcf2   : > { %v10935_v52 = vpop.permute.xlu1 %4549  ;;  %7612 = vmatmul.mubr.msk.f32.gmra.mrb[116].mxu0 %vm1151_vm4, %v4159_v50 }
 0xcf3   : > { %8101 = vmatpush3.bf16.xpose.msk.msra.mxu0 %vm9601_vm5, %v8099_v34  ;;  %7614 = vmatprep.mubr.msk.f32.mxu0 %vm9009_vm0, %v12041_v1 }
 0xcf4   : > { %8102 = vmatprep.subr.bf16.mxu0 %v12039_v0 }
 0xcf5   : > { %v10943_v15 = vpop.permute.xlu0 %4946 }
 0xcf6   : > { %v10945_v59 = vpop.permute.xlu1 %4920  ;;  %7615 = vmatmul.mubr.msk.f32.gmra.mrb[118].mxu0 %vm1151_vm4, %v4161_v18 }
 0xcf7   : > { %7617 = vmatprep.mubr.msk.f32.mxu0 %vm9009_vm0, %v12041_v1 }
 0xcf9   : > { %v10950_v28 = vpop.permute.xlu0 %4922 }
 0xcfa   : > { %v10952_v20 = vpop.permute.xlu1 %4924  ;;  %7618 = vmatmul.mubr.msk.f32.gmra.mrb[120].mxu0 %vm1151_vm4, %v4163_v41 }
 0xcfb   : > { %8105 = vmatpush3.bf16.xpose.msk.msra.mxu0 %vm9601_vm5, %v8103_v24  ;;  %7620 = vmatprep.mubr.msk.f32.mxu0 %vm9009_vm0, %v12041_v1 }
 0xcfc   : > { %7673 = vmatprep.subr.mxu0 %v12041_v1 }
 0xcfd   : > { %v10960_v22 = vpop.permute.xlu0 %4926 }
 0xcfe   : > { %v10962_v48 = vpop.permute.xlu1 %4928  ;;  %7621 = vmatmul.mubr.msk.f32.gmra.mrb[122].mxu0 %vm1151_vm4, %v4165_v32 }
 0xcff   : > { %7623 = vmatprep.mubr.msk.f32.mxu0 %vm9009_vm0, %v12041_v1 }
 0xd01   : > { %v10967_v62 = vpop.permute.xlu0 %4930 }
 0xd02   : > { %v10969_v3 = vpop.permute.xlu1 %4932  ;;  %7624 = vmatmul.mubr.msk.f32.gmra.mrb[124].mxu0 %vm1151_vm4, %v4167_v57  ;;  %v8442_v57 = vunpack.i.l.bf16 %v10926_v36 }
 0xd03   : > { %7674 = vmatpush3.xpose.msk.msra.mxu0 %vm1151_vm4, %v4564_v29  ;;  %7675 = vmatprep.mubr.msk.f32.mxu0 %vm9009_vm0, %v12041_v1 }
 0xd04   : > { %8115 = vmatprep.subr.bf16.mxu0 %v12039_v0 }
 0xd05   : > { %v8446_v35 = vpop.permute.xlu0 %8445 }
 0xd06   : > { %v8451_v10 = vpop.permute.xlu1 %8450  ;;  %7676 = vmatmul.mubr.msk.f32.vlgmr.msra.gmra.mrb[126].mxu0 %vm1151_vm4, %v4538_v60  ;;  %v8448_v43 = vunpack.i.h.bf16 %v8446_v35  ;;  %v8447_v30 = vunpack.i.l.bf16 %v8446_v35  ;;  %v8124_v60 = vpack.c.bf16 %v8443_v21, %v8442_v57 }
 0xd07   : > { %8118 = vmatpush3.bf16.xpose.msk.msra.mxu0 %vm9601_vm5, %v8116_v37  ;;  %7678 = vmatprep.mubr.msk.f32.mxu0 %vm9009_vm0, %v12041_v1  ;;  %v8453_v25 = vunpack.i.h.bf16 %v8451_v10  ;;  %v8452_v50 = vunpack.i.l.bf16 %v8451_v10 }
 0xd08   : > { %8119 = vmatprep.subr.bf16.mxu0 %v12039_v0  ;;  %v8065_v19 = vpack.c.bf16 %v8448_v43, %v8447_v30 }
 0xd09   : > { %v8456_v13 = vpop.permute.xlu0 %8455  ;;  %v8068_v16 = vpack.c.bf16 %v8453_v25, %v8452_v50 }
 0xd0a   : > { %v10984_v18 = vpop.permute.xlu1 %8465  ;;  %7679 = vmatmul.mubr.msk.f32.gmra.mrb[128].mxu0 %vm1151_vm4, %v10906_v23  ;;  %8066 = vmatpush3.bf16.msra.mxu1 %v8065_v19  ;;  %v8458_v58 = vunpack.i.h.bf16 %v8456_v13  ;;  %v8457_v41 = vunpack.i.l.bf16 %v8456_v13 }
 0xd0b   : > { %7681 = vmatprep.mubr.msk.f32.mxu0 %vm9009_vm0, %v12041_v1  ;;  %8067 = vmatprep.subr.bf16.mxu1 %v12039_v0 }
 0xd0c   : > { %v8071_v29 = vpack.c.bf16 %v8458_v58, %v8457_v41 }
 0xd0e   : > { %v10991_v32 = vpop.permute.xlu1 %8470  ;;  %7682 = vmatmul.mubr.msk.f32.gmra.mrb[130].mxu0 %vm1151_vm4, %v10916_v56  ;;  %8069 = vmatpush3.bf16.msra.mxu1 %v8068_v16 }
 0xd0f   : > { %8122 = vmatpush3.bf16.xpose.msk.msra.mxu0 %vm9601_vm5, %v8120_v4  ;;  %8070 = vmatprep.subr.bf16.mxu1 %v12039_v0 }
 0xd10   : > { %7684 = vmatprep.mubr.msk.f32.mxu0 %vm9009_vm0, %v12041_v1  ;;  %8123 = vmatprep.subr.bf16.mxu0 %v12039_v0 }
 0xd12   : > { %v11003_v53 = vpop.permute.xlu1 %8475  ;;  %7685 = vmatmul.mubr.msk.f32.gmra.mrb[132].mxu0 %vm1151_vm4, %v10918_v31  ;;  %8072 = vmatpush3.bf16.msra.mxu1 %v8071_v29 }
 0xd13   : > { %7687 = vmatprep.mubr.msk.f32.mxu0 %vm9009_vm0, %v12041_v1  ;;  %7568 = vmatprep.subr.mxu1 %v12041_v1 }
 0xd16   : > { %v11010_v55 = vpop.permute.xlu1 %8485  ;;  %7688 = vmatmul.mubr.msk.f32.gmra.mrb[134].mxu0 %vm1151_vm4, %v10928_v42 }
 0xd17   : > { %8126 = vmatpush3.bf16.xpose.msk.msra.mxu0 %vm9601_vm5, %v8124_v60  ;;  %7690 = vmatprep.mubr.msk.f32.mxu0 %vm9009_vm0, %v12041_v1 }
 0xd18   : > { %7743 = vmatprep.subr.mxu0 %v12041_v1 }
 0xd1a   : > { %v4024_v26 = vpop.permute.xlu1 %4023  ;;  %7691 = vmatmul.mubr.msk.f32.gmra.mrb[136].mxu0 %vm1151_vm4, %v10933_v2 }
 0xd1b   : > { %7569 = vmatpush3.msk.msra.mxu1 %vm1407_vm6, %v4024_v26  ;;  %7693 = vmatprep.mubr.msk.f32.mxu0 %vm9009_vm0, %v12041_v1 }
 0xd1c   : > { %8085 = vmatprep.subr.bf16.mxu1 %v12039_v0 }
 0xd1e   : > { %7694 = vmatmul.mubr.msk.f32.gmra.mrb[138].mxu0 %vm1151_vm4, %v10935_v52 }
 0xd1f   : > { %7744 = vmatpush3.xpose.msk.msra.mxu0 %vm1151_vm4, %v10943_v15  ;;  %7745 = vmatprep.mubr.msk.f32.mxu0 %vm9009_vm0, %v12041_v1 }
 0xd20   : > { %8136 = vmatprep.subr.bf16.mxu0 %v12039_v0 }
 0xd22   : > { %7746 = vmatmul.mubr.msk.f32.vlgmr.msra.gmra.mrb[140].mxu0 %vm1151_vm4, %v10945_v59 }
 0xd23   : > { %7748 = vmatprep.mubr.msk.f32.mxu0 %vm9009_vm0, %v12041_v1 }
 0xd26   : > { %7749 = vmatmul.mubr.msk.f32.gmra.mrb[142].mxu0 %vm1151_vm4, %v10950_v28 }
 0xd27   : > { %7751 = vmatprep.mubr.msk.f32.mxu0 %vm9009_vm0, %v12041_v1 }
 0xd2a   : > { %7752 = vmatmul.mubr.msk.f32.gmra.mrb[144].mxu0 %vm1151_vm4, %v10952_v20 }
 0xd2b   : > { %7754 = vmatprep.mubr.msk.f32.mxu0 %vm9009_vm0, %v12041_v1 }
 0xd2e   : > { %7755 = vmatmul.mubr.msk.f32.gmra.mrb[146].mxu0 %vm1151_vm4, %v10960_v22 }
 0xd2f   : > { %7757 = vmatprep.mubr.msk.f32.mxu0 %vm9009_vm0, %v12041_v1 }
 0xd32   : > { %7758 = vmatmul.mubr.msk.f32.gmra.mrb[148].mxu0 %vm1151_vm4, %v10962_v48 }
 0xd33   : > { %7760 = vmatprep.mubr.msk.f32.mxu0 %vm9009_vm0, %v12041_v1 }
 0xd36   : > { %7761 = vmatmul.mubr.msk.f32.gmra.mrb[150].mxu0 %vm1151_vm4, %v10967_v62 }
 0xd37   : > { %7763 = vmatprep.mubr.msk.f32.mxu0 %vm9009_vm0, %v12041_v1 }
 0xd3a   : > { %7764 = vmatmul.mubr.msk.f32.gmra.mrb[152].mxu0 %vm1151_vm4, %v10969_v3 }
 0xd3b   : > { %7809 = vmatprep.mubr.msk.f32.mxu0 %vm9009_vm0, %v12041_v1 }
 0xda1   : > { %v3893_v11 = vpop.f32.mrb[98].mxu0 }
 0xda2   : > { %v11060_v23 = vmul.f32 0.35355338, %v3893_v11  ;;  %v7537_v45 = vpop.f32.mrb[99].mxu0 }
 0xda4   : > { %v3934_v12 = vsel %vm1287_vm7, %v11060_v23, -inf }
 0xda5   : > { %3935 = vmax.xlane.f32.xlu0 %v3934_v12  ;;  %v3898_v56 = vpop.f32.mrb[100].mxu0 }
 0xda6   : > { %v11064_v31 = vmul.f32 0.35355338, %v3898_v56  ;;  %v7540_v9 = vpop.f32.mrb[101].mxu0 }
 0xda8   : > { %v3937_v39 = vsel %vm1287_vm7, %v11064_v31, -inf }
 0xda9   : > { %3938 = vmax.xlane.f32.xlu1 %v3937_v39  ;;  %v3903_v36 = vpop.f32.mrb[102].mxu0 }
 0xdaa   : > { %v7543_v42 = vpop.f32.mrb[103].mxu0  ;;  %v11090_v41 = vmul.f32 0.35355338, %v3903_v36 }
 0xdac   : > { %v3940_v26 = vsel %vm1287_vm7, %v11090_v41, -inf }
 0xdad   : > { %v3908_v34 = vpop.f32.mrb[104].mxu0 }
 0xdae   : > { %v7546_v2 = vpop.f32.mrb[105].mxu0  ;;  %v11092_v29 = vmul.f32 0.35355338, %v3908_v34 }
 0xdb0   : > { %v3943_v39 = vsel %vm1287_vm7, %v11092_v29, -inf }
 0xdb1   : > { %v3913_v52 = vpop.f32.mrb[106].mxu0 }
 0xdb2   : > { %v11068_v40 = vmul.f32 0.35355338, %v3913_v52  ;;  %v7549_v49 = vpop.f32.mrb[107].mxu0 }
 0xdb4   : > { %v3946_v15 = vsel %vm1287_vm7, %v11068_v40, -inf }
 0xdb5   : > { %3947 = vmax.xlane.f32.xlu1 %v3946_v15  ;;  %v3918_v59 = vpop.f32.mrb[108].mxu0 }
 0xdb6   : > { %v7552_v24 = vpop.f32.mrb[109].mxu0  ;;  %v11100_v56 = vmul.f32 0.35355338, %v3918_v59 }
 0xdb8   : > { %v3949_v2 = vsel %vm1287_vm7, %v11100_v56, -inf }
 0xdb9   : > { %v3923_v28 = vpop.f32.mrb[110].mxu0 }
 0xdba   : > { %v11072_v20 = vmul.f32 0.35355338, %v3923_v28  ;;  %v7555_v22 = vpop.f32.mrb[111].mxu0 }
 0xdbb   : > { %4789 = vrot.lane.b32.xlu0 %v10770_v54, %s12089_s17 }
 0xdbc   : > { %v3952_v48 = vsel %vm1306_vm8, %v11072_v20, -inf }
 0xdbd   : > { %3953 = vmax.xlane.f32.xlu1 %v3952_v48  ;;  %v4276_v61 = vpop.f32.mrb[112].mxu0 }
 0xdbe   : > { %v7607_v51 = vpop.f32.mrb[113].mxu0  ;;  %v11104_v42 = vmul.f32 0.35355338, %v4276_v61 }
 0xdc0   : > { %v4317_v28 = vsel %vm1287_vm7, %v11104_v42, -inf }
 0xdc1   : > { %v4281_v62 = vpop.f32.mrb[114].mxu0 }
 0xdc2   : > { %v11078_v3 = vmul.f32 0.35355338, %v4281_v62  ;;  %v7610_v37 = vpop.f32.mrb[115].mxu0 }
 0xdc4   : > { %v4320_v35 = vsel %vm1287_vm7, %v11078_v3, -inf }
 0xdc5   : > { %4321 = vmax.xlane.f32.xlu1 %v4320_v35  ;;  %v4286_v10 = vpop.f32.mrb[116].mxu0 }
 0xdc6   : > { %v7613_v43 = vpop.f32.mrb[117].mxu0  ;;  %v11112_v59 = vmul.f32 0.35355338, %v4286_v10 }
 0xdc8   : > { %v4323_v51 = vsel %vm1287_vm7, %v11112_v59, -inf }
 0xdc9   : > { %v4291_v30 = vpop.f32.mrb[118].mxu0 }
 0xdca   : > { %v11082_v46 = vmul.f32 0.35355338, %v4291_v30  ;;  %v7616_v8 = vpop.f32.mrb[119].mxu0 }
 0xdcc   : > { %v4326_v19 = vsel %vm1287_vm7, %v11082_v46, -inf }
 0xdcd   : > { %4327 = vmax.xlane.f32.xlu1 %v4326_v19  ;;  %v4296_v25 = vpop.f32.mrb[120].mxu0 }
 0xdce   : > { %v7619_v50 = vpop.f32.mrb[121].mxu0  ;;  %v11116_v48 = vmul.f32 0.35355338, %v4296_v25 }
 0xdd0   : > { %v4329_v30 = vsel %vm1287_vm7, %v11116_v48, -inf }
 0xdd1   : > { %v4301_v13 = vpop.f32.mrb[122].mxu0 }
 0xdd2   : > { %v11086_v4 = vmul.f32 0.35355338, %v4301_v13  ;;  %v7622_v16 = vpop.f32.mrb[123].mxu0 }
 0xdd4   : > { %v4332_v58 = vsel %vm1287_vm7, %v11086_v4, -inf }
 0xdd5   : > { %4333 = vmax.xlane.f32.xlu1 %v4332_v58  ;;  %v4306_v21 = vpop.f32.mrb[124].mxu0 }
 0xdd6   : > { %v7625_v57 = vpop.f32.mrb[125].mxu0  ;;  %v11124_v10 = vmul.f32 0.35355338, %v4306_v21 }
 0xdd8   : > { %v4335_v50 = vsel %vm1306_vm8, %v11124_v10, -inf }
 0xdd9   : > { %v4659_v60 = vpop.f32.mrb[126].mxu0 }
 0xdda   : > { %v11096_v11 = vmul.f32 0.35355338, %v4659_v60  ;;  %3941 = vmax.xlane.f32.xlu0 %v3940_v26  ;;  %v7677_v45 = vpop.f32.mrb[127].mxu0 }
 0xddc   : > { %v4700_v12 = vsel %vm1287_vm7, %v11096_v11, -inf }
 0xddd   : > { %4701 = vmax.xlane.f32.xlu1 %v4700_v12  ;;  %v4664_v9 = vpop.f32.mrb[128].mxu0 }
 0xdde   : > { %3944 = vmax.xlane.f32.xlu0 %v3943_v39  ;;  %v7680_v36 = vpop.f32.mrb[129].mxu0  ;;  %v11128_v19 = vmul.f32 0.35355338, %v4664_v9 }
 0xde0   : > { %v4703_v60 = vsel %vm1287_vm7, %v11128_v19, -inf }
 0xde1   : > { %v4669_v34 = vpop.f32.mrb[130].mxu0 }
 0xde2   : > { %v11108_v52 = vmul.f32 0.35355338, %v4669_v34  ;;  %3950 = vmax.xlane.f32.xlu0 %v3949_v2  ;;  %v7683_v49 = vpop.f32.mrb[131].mxu0 }
 0xde4   : > { %v4706_v15 = vsel %vm1287_vm7, %v11108_v52, -inf }
 0xde5   : > { %4707 = vmax.xlane.f32.xlu1 %v4706_v15  ;;  %v4674_v24 = vpop.f32.mrb[132].mxu0 }
 0xde6   : > { %4318 = vmax.xlane.f32.xlu0 %v4317_v28  ;;  %v7686_v22 = vpop.f32.mrb[133].mxu0  ;;  %v11136_v21 = vmul.f32 0.35355338, %v4674_v24 }
 0xde8   : > { %v4709_v9 = vsel %vm1287_vm7, %v11136_v21, -inf }
 0xde9   : > { %v4679_v61 = vpop.f32.mrb[134].mxu0 }
 0xdea   : > { %v11120_v62 = vmul.f32 0.35355338, %v4679_v61  ;;  %4324 = vmax.xlane.f32.xlu0 %v4323_v51  ;;  %v7689_v37 = vpop.f32.mrb[135].mxu0 }
 0xdec   : > { %v4712_v35 = vsel %vm1287_vm7, %v11120_v62, -inf }
 0xded   : > { %4713 = vmax.xlane.f32.xlu1 %v4712_v35  ;;  %v4684_v43 = vpop.f32.mrb[136].mxu0 }
 0xdee   : > { %4330 = vmax.xlane.f32.xlu0 %v4329_v30  ;;  %v7692_v8 = vpop.f32.mrb[137].mxu0  ;;  %v11140_v45 = vmul.f32 0.35355338, %v4684_v43 }
 0xdf0   : > { %v4715_v2 = vsel %vm1287_vm7, %v11140_v45, -inf }
 0xdf1   : > { %v4689_v25 = vpop.f32.mrb[138].mxu0 }
 0xdf2   : > { %v11132_v13 = vmul.f32 0.35355338, %v4689_v25  ;;  %4336 = vmax.xlane.f32.xlu0 %v4335_v50  ;;  %v7695_v16 = vpop.f32.mrb[139].mxu0 }
 0xdf4   : > { %v4718_v58 = vsel %vm1306_vm8, %v11132_v13, -inf }
 0xdf5   : > { %4719 = vmax.xlane.f32.xlu1 %v4718_v58  ;;  %v5042_v57 = vpop.f32.mrb[140].mxu0 }
 0xdf6   : > { %4704 = vmax.xlane.f32.xlu0 %v4703_v60  ;;  %v7747_v26 = vpop.f32.mrb[141].mxu0  ;;  %v11144_v36 = vmul.f32 0.35355338, %v5042_v57 }
 0xdf8   : > { %v5083_v28 = vsel %vm1287_vm7, %v11144_v36, -inf }
 0xdf9   : > { %v5047_v12 = vpop.f32.mrb[142].mxu0 }
 0xdfa   : > { %4710 = vmax.xlane.f32.xlu0 %v4709_v9  ;;  %v7750_v39 = vpop.f32.mrb[143].mxu0  ;;  %v11148_v15 = vmul.f32 0.35355338, %v5047_v12 }
 0xdfc   : > { %v5086_v37 = vsel %vm1287_vm7, %v11148_v15, -inf }
 0xdfd   : > { %v5052_v34 = vpop.f32.mrb[144].mxu0 }
 0xdfe   : > { %4716 = vmax.xlane.f32.xlu0 %v4715_v2  ;;  %v7753_v49 = vpop.f32.mrb[145].mxu0  ;;  %v11152_v61 = vmul.f32 0.35355338, %v5052_v34  ;;  %v11174_v34 = vpop.permute.xlu0 %8460 }
 0xe00   : > { %v5089_v50 = vsel %vm1287_vm7, %v11152_v61, -inf }
 0xe01   : > { %v5057_v24 = vpop.f32.mrb[146].mxu0 }
 0xe02   : > { %5084 = vmax.xlane.f32.xlu0 %v5083_v28  ;;  %v7756_v22 = vpop.f32.mrb[147].mxu0  ;;  %v11160_v8 = vmul.f32 0.35355338, %v5057_v24  ;;  %v11176_v2 = vpop.permute.xlu0 %8480 }
 0xe04   : > { %v5092_v60 = vsel %vm1287_vm7, %v11160_v8, -inf }
 0xe05   : > { %v5062_v51 = vpop.f32.mrb[148].mxu0 }
 0xe06   : > { %v11156_v35 = vmul.f32 0.35355338, %v5062_v51  ;;  %5087 = vmax.xlane.f32.xlu0 %v5086_v37  ;;  %v7759_v43 = vpop.f32.mrb[149].mxu0  ;;  %v11180_v49 = vpop.permute.xlu0 %4406 }
 0xe08   : > { %v5095_v30 = vsel %vm1287_vm7, %v11156_v35, -inf }
 0xe09   : > { %5096 = vmax.xlane.f32.xlu1 %v5095_v30  ;;  %v5067_v25 = vpop.f32.mrb[150].mxu0 }
 0xe0a   : > { %5090 = vmax.xlane.f32.xlu0 %v5089_v50  ;;  %v7762_v16 = vpop.f32.mrb[151].mxu0  ;;  %v11164_v58 = vmul.f32 0.35355338, %v5067_v25 }
 0xe0c   : > { %v5098_v39 = vsel %vm1287_vm7, %v11164_v58, -inf }
 0xe0d   : > { %v5072_v57 = vpop.f32.mrb[152].mxu0 }
 0xe0e   : > { %v11168_v26 = vmul.f32 0.35355338, %v5072_v57  ;;  %5093 = vmax.xlane.f32.xlu0 %v5092_v60  ;;  %v7765_v12 = vpop.f32.mrb[153].mxu0 }
 0xe10   : > { %v5101_v9 = vsel %vm1306_vm8, %v11168_v26, -inf }
 0xe11   : > { %5102 = vmax.xlane.f32.xlu1 %v5101_v9 }
 0xe12   : > { %5099 = vmax.xlane.f32.xlu0 %v5098_v39 }
 0xe28   : > { %8495 = vrot.lane.b32.xlu0 %v10756_v33, %s12090_s26 }
 0xe32   : > { %v3936_v24 = vpop.xlane.xlu0 %3935 }
 0xe33   : > { %v3955_v28 = vsub.f32 %v11060_v23, %v3936_v24 }
 0xe35   : > { %v3962_v22 = vmul.f32 1.442695, %v3955_v28 }
 0xe36   : > { %v3939_v51 = vpop.xlane.xlu1 %3938  ;;  %v11192_v23 = vpop.permute.xlu0 %4789 }
 0xe37   : > { %8686 = vpow2.f32 %v3962_v22  ;;  %v3956_v37 = vsub.f32 %v11064_v31, %v3939_v51 }
 0xe39   : > { %v3964_v43 = vmul.f32 1.442695, %v3956_v37 }
 0xe3b   : > { %8688 = vpow2.f32 %v3964_v43 }
 0xe41   : > { %v11184_v30 = vpop.eup %8686 }
 0xe42   : > { %v3976_v25 = vsel %vm1287_vm7, %v11184_v30, 0.0  ;;  %v3948_v16 = vpop.xlane.xlu1 %3947 }
 0xe43   : > { %3977 = vadd.xlane.f32.xlu1 %v3976_v25  ;;  %v3959_v60 = vsub.f32 %v11068_v40, %v3948_v16 }
 0xe45   : > { %v11188_v50 = vpop.eup %8688  ;;  %v3970_v28 = vmul.f32 1.442695, %v3959_v60 }
 0xe46   : > { %v3979_v33 = vsel %vm1287_vm7, %v11188_v50, 0.0 }
 0xe47   : > { %3980 = vadd.xlane.f32.xlu1 %v3979_v33 }
 0xe4a   : > { %v3954_v9 = vpop.xlane.xlu1 %3953 }
 0xe4b   : > { %v3961_v25 = vsub.f32 %v11072_v20, %v3954_v9 }
 0xe52   : > { %v11197_v51 = vpop.xlane.xlu1 %4321 }
 0xe5a   : > { %v4328_v33 = vpop.xlane.xlu1 %4327 }
 0xe67   : > { %v3942_v57 = vpop.xlane.xlu0 %3941 }
 0xe68   : > { %v3957_v31 = vsub.f32 %v11090_v41, %v3942_v57 }
 0xe6a   : > { %v3966_v12 = vmul.f32 1.442695, %v3957_v31  ;;  %v3974_v31 = vmul.f32 1.442695, %v3961_v25 }
 0xe6b   : > { %v3945_v39 = vpop.xlane.xlu0 %3944 }
 0xe6c   : > { %8690 = vpow2.f32 %v3966_v12  ;;  %v3958_v24 = vsub.f32 %v11092_v29, %v3945_v39  ;;  %v4341_v29 = vsub.f32 %v11082_v46, %v4328_v33  ;;  %v4334_v12 = vpop.xlane.xlu1 %4333 }
 0xe6e   : > { %v3968_v22 = vmul.f32 1.442695, %v3958_v24  ;;  %v4343_v24 = vsub.f32 %v11086_v4, %v4334_v12 }
 0xe6f   : > { %v3951_v37 = vpop.xlane.xlu0 %3950 }
 0xe70   : > { %8692 = vpow2.f32 %v3968_v22  ;;  %v3960_v43 = vsub.f32 %v11100_v56, %v3951_v37  ;;  %v4702_v12 = vpop.xlane.xlu1 %4701 }
 0xe71   : > { %8694 = vpow2.f32 %v3970_v28 }
 0xe72   : > { %v3972_v41 = vmul.f32 1.442695, %v3960_v43  ;;  %v4355_v43 = vmul.f32 1.442695, %v4343_v24 }
 0xe73   : > { %v4319_v40 = vpop.xlane.xlu0 %4318 }
 0xe74   : > { %v4338_v16 = vsub.f32 %v11104_v42, %v4319_v40  ;;  %8696 = vpow2.f32 %v3972_v41  ;;  %v4351_v42 = vmul.f32 1.442695, %v4341_v29 }
 0xe76   : > { %v11202_v57 = vpop.eup %8690  ;;  %v4345_v60 = vmul.f32 1.442695, %v4338_v16 }
 0xe77   : > { %v4325_v39 = vpop.xlane.xlu0 %4324  ;;  %v3982_v56 = vsel %vm1287_vm7, %v11202_v57, 0.0 }
 0xe78   : > { %8698 = vpow2.f32 %v4345_v60  ;;  %v4340_v20 = vsub.f32 %v11112_v59, %v4325_v39  ;;  %3983 = vadd.xlane.f32.xlu1 %v3982_v56 }
 0xe79   : > { %8700 = vpow2.f32 %v3974_v31 }
 0xe7a   : > { %v11208_v9 = vpop.eup %8692  ;;  %v4349_v28 = vmul.f32 1.442695, %v4340_v20 }
 0xe7b   : > { %v11211_v22 = vpop.xlane.xlu0 %4330  ;;  %v3985_v46 = vsel %vm1287_vm7, %v11208_v9, 0.0  ;;  %v11215_v37 = vpop.eup %8694 }
 0xe7c   : > { %8702 = vpow2.f32 %v4349_v28  ;;  %3986 = vadd.xlane.f32.xlu1 %v3985_v46  ;;  %v3988_v25 = vsel %vm1287_vm7, %v11215_v37, 0.0 }
 0xe7d   : > { %8704 = vpow2.f32 %v4351_v42 }
 0xe7e   : > { %v11221_v41 = vpop.eup %8696  ;;  %8706 = vpow2.f32 %v4355_v43 }
 0xe7f   : > { %v11217_v59 = vpop.xlane.xlu0 %4336  ;;  %v3991_v16 = vsel %vm1287_vm7, %v11221_v41, 0.0 }
 0xe80   : > { %3989 = vadd.xlane.f32.xlu1 %v3988_v25 }
 0xe82   : > { %v11223_v4 = vpop.eup %8698 }
 0xe83   : > { %v4705_v33 = vpop.xlane.xlu0 %4704  ;;  %v4359_v40 = vsel %vm1287_vm7, %v11223_v4, 0.0  ;;  %v11229_v31 = vpop.eup %8700 }
 0xe84   : > { %v4722_v29 = vsub.f32 %v11128_v19, %v4705_v33  ;;  %4360 = vadd.xlane.f32.xlu0 %v4359_v40  ;;  %3992 = vadd.xlane.f32.xlu1 %v3991_v16  ;;  %v3994_v42 = vsel %vm1306_vm8, %v11229_v31, 0.0  ;;  %v4708_v19 = vpop.xlane.xlu1 %4707 }
 0xe86   : > { %v11232_v60 = vpop.eup %8702  ;;  %v4730_v39 = vmul.f32 1.442695, %v4722_v29 }
 0xe87   : > { %v11234_v56 = vpop.xlane.xlu0 %4710  ;;  %v4365_v20 = vsel %vm1287_vm7, %v11232_v60, 0.0  ;;  %v11240_v24 = vpop.eup %8704 }
 0xe88   : > { %8708 = vpow2.f32 %v4730_v39  ;;  %4366 = vadd.xlane.f32.xlu0 %v4365_v20  ;;  %3995 = vadd.xlane.f32.xlu1 %v3994_v42  ;;  %v4368_v46 = vsel %vm1287_vm7, %v11240_v24, 0.0  ;;  %v11244_v43 = vpop.eup %8706  ;;  %v4714_v33 = vpop.xlane.xlu1 %4713 }
 0xe89   : > { %v4374_v29 = vsel %vm1287_vm7, %v11244_v43, 0.0 }
 0xe8b   : > { %v4717_v28 = vpop.xlane.xlu0 %4716 }
 0xe8c   : > { %v4726_v25 = vsub.f32 %v11140_v45, %v4717_v28  ;;  %4369 = vadd.xlane.f32.xlu0 %v4368_v46  ;;  %v4720_v42 = vpop.xlane.xlu1 %4719 }
 0xe8e   : > { %v4738_v40 = vmul.f32 1.442695, %v4726_v25 }
 0xe8f   : > { %v5085_v16 = vpop.xlane.xlu0 %5084 }
 0xe90   : > { %8710 = vpow2.f32 %v4738_v40  ;;  %v5104_v39 = vsub.f32 %v11144_v36, %v5085_v16  ;;  %4375 = vadd.xlane.f32.xlu0 %v4374_v29  ;;  %v4342_v29 = vsub.f32 %v11116_v48, %v11211_v22  ;;  %v4724_v48 = vsub.f32 %v11136_v21, %v11234_v56 }
 0xe91   : > { %v4727_v56 = vsub.f32 %v11132_v13, %v4720_v42 }
 0xe92   : > { %v11250_v20 = vpop.eup %8708  ;;  %v5111_v47 = vmul.f32 1.442695, %v5104_v39  ;;  %v4353_v39 = vmul.f32 1.442695, %v4342_v29 }
 0xe93   : > { %v4745_v0 = vsel %vm1287_vm7, %v11250_v20, 0.0 }
 0xe94   : > { %8712 = vpow2.f32 %v5111_v47  ;;  %4746 = vadd.xlane.f32.xlu0 %v4745_v0 }
 0xe96   : > { %v5097_v45 = vpop.xlane.xlu1 %5096 }
 0xe97   : > { %v5108_v28 = vsub.f32 %v11156_v35, %v5097_v45  ;;  %v4344_v45 = vsub.f32 %v11124_v10, %v11217_v59  ;;  %v4734_v10 = vmul.f32 1.442695, %v4724_v48 }
 0xe99   : > { %v5119_v46 = vmul.f32 1.442695, %v5108_v28  ;;  %8490 = vrot.lane.b32.xlu1 %v10746_v5, %s12090_s26  ;;  %v4339_v5 = vsub.f32 %v11078_v3, %v11197_v51  ;;  %v4721_v28 = vsub.f32 %v11096_v11, %v4702_v12  ;;  %v5088_v11 = vpop.xlane.xlu0 %5087 }
 0xe9a   : > { %v11257_v25 = vpop.eup %8710 }
 0xe9b   : > { %8714 = vpow2.f32 %v5119_v46  ;;  %v4757_v36 = vsel %vm1287_vm7, %v11257_v25, 0.0  ;;  %v4347_v16 = vmul.f32 1.442695, %v4339_v5  ;;  %v4357_v46 = vmul.f32 1.442695, %v4344_v45 }
 0xe9c   : > { %4758 = vadd.xlane.f32.xlu0 %v4757_v36  ;;  %v4728_v36 = vmul.f32 1.442695, %v4721_v28 }
 0xe9d   : > { %8716 = vpow2.f32 %v4347_v16  ;;  %v5105_v16 = vsub.f32 %v11148_v15, %v5088_v11 }
 0xe9e   : > { %v11261_v40 = vpop.eup %8712  ;;  %8718 = vpow2.f32 %v4353_v39 }
 0xe9f   : > { %v5125_v47 = vsel %vm1287_vm7, %v11261_v40, 0.0  ;;  %8720 = vpow2.f32 %v4357_v46  ;;  %v5113_v45 = vmul.f32 1.442695, %v5105_v16 }
 0xea0   : > { %5126 = vadd.xlane.f32.xlu0 %v5125_v47  ;;  %v4723_v47 = vsub.f32 %v11108_v52, %v4708_v19  ;;  %8722 = vpow2.f32 %v4728_v36  ;;  %v4725_v52 = vsub.f32 %v11120_v62, %v4714_v33  ;;  %v5103_v19 = vpop.xlane.xlu1 %5102  ;;  %v4740_v33 = vmul.f32 1.442695, %v4727_v56 }
 0xea1   : > { %v5110_v62 = vsub.f32 %v11168_v26, %v5103_v19 }
 0xea2   : > { %v4732_v3 = vmul.f32 1.442695, %v4723_v47  ;;  %v4736_v21 = vmul.f32 1.442695, %v4725_v52 }
 0xea3   : > { %v5123_v42 = vmul.f32 1.442695, %v5110_v62 }
 0xea4   : > { %8724 = vpow2.f32 %v4732_v3 }
 0xea5   : > { %v11265_v0 = vpop.eup %8714  ;;  %8726 = vpow2.f32 %v4734_v10 }
 0xea6   : > { %v5137_v35 = vsel %vm1287_vm7, %v11265_v0, 0.0  ;;  %8728 = vpow2.f32 %v4736_v21 }
 0xea7   : > { %5138 = vadd.xlane.f32.xlu0 %v5137_v35  ;;  %v11277_v1 = vpop.eup %8716  ;;  %v5091_v35 = vpop.xlane.xlu0 %5090  ;;  %8730 = vpow2.f32 %v4740_v33 }
 0xea8   : > { %v4362_v51 = vsel %vm1287_vm7, %v11277_v1, 0.0  ;;  %v11283_v22 = vpop.eup %8718  ;;  %v5106_v28 = vsub.f32 %v11152_v61, %v5091_v35  ;;  %8732 = vpow2.f32 %v5123_v42  ;;  %v8463_v35 = vunpack.i.h.bf16 %v11174_v34 }
 0xea9   : > { %v4371_v59 = vsel %vm1287_vm7, %v11283_v22, 0.0  ;;  %v11290_v12 = vpop.eup %8720  ;;  %8734 = vpow2.f32 %v5113_v45  ;;  %v8467_v42 = vunpack.i.l.bf16 %v10984_v18 }
 0xeaa   : > { %v11295_v5 = vpop.eup %8722  ;;  %v5115_v15 = vmul.f32 1.442695, %v5106_v28  ;;  %v12091_v28 = vmov 0.0  }
 0xeab   : > { %v4742_v29 = vsel %vm1287_vm7, %v11295_v5, 0.0  ;;  %v5094_v13 = vpop.xlane.xlu0 %5093 }
 0xeac   : > { %v5107_v36 = vsub.f32 %v11160_v8, %v5094_v13  ;;  %v8468_v13 = vunpack.i.h.bf16 %v10984_v18  ;;  %v8473_v18 = vunpack.i.h.bf16 %v10991_v32 }
 0xeae   : > { %v11301_v39 = vpop.eup %8724  ;;  %v5117_v61 = vmul.f32 1.442695, %v5107_v36 }
 0xeaf   : > { %v4748_v46 = vsel %vm1287_vm7, %v11301_v39, 0.0  ;;  %v11306_v26 = vpop.eup %8726  ;;  %v5100_v47 = vpop.xlane.xlu0 %5099 }
 0xeb0   : > { %v4751_v48 = vsel %vm1287_vm7, %v11306_v26, 0.0  ;;  %v5109_v11 = vsub.f32 %v11164_v58, %v5100_v47  ;;  %v8462_v58 = vunpack.i.l.bf16 %v11174_v34  ;;  %v8089_v47 = vpack.c.bf16 %v8468_v13, %v8467_v42 }
 0xeb2   : > { %v5121_v8 = vmul.f32 1.442695, %v5109_v11  ;;  %v8086_v45 = vpack.c.bf16 %v8463_v35, %v8462_v58 }
 0xeb3   : > { %v11363_v58 = vpop.permute.xlu0 %8495 }
 0xebd   : > { %8500 = vrot.lane.b32.xlu0 %v10766_v6, %s12090_s26  ;;  %4363 = vadd.xlane.f32.xlu1 %v4362_v51  ;;  %v4377_v6 = vsel %vm1306_vm8, %v11290_v12, 0.0  ;;  %v11311_v51 = vpop.eup %8728 }
 0xebe   : > { %v4754_v10 = vsel %vm1287_vm7, %v11311_v51, 0.0 }
 0xec1   : > { %4372 = vadd.xlane.f32.xlu1 %v4371_v59  ;;  %v11316_v59 = vpop.eup %8730 }
 0xec2   : > { %v11318_v21 = vpop.eup %8732  ;;  %v4760_v56 = vsel %vm1306_vm8, %v11316_v59, 0.0 }
 0xec3   : > { %v11322_v19 = vpop.eup %8734  ;;  %v5143_v62 = vsel %vm1306_vm8, %v11318_v21, 0.0 }
 0xec4   : > { %v5128_v16 = vsel %vm1287_vm7, %v11322_v19, 0.0 }
 0xec5   : > { %4378 = vadd.xlane.f32.xlu1 %v4377_v6 }
 0xec9   : > { %4743 = vadd.xlane.f32.xlu1 %v4742_v29 }
 0xecd   : > { %4749 = vadd.xlane.f32.xlu1 %v4748_v46  ;;  %v12092_v46 = vmov 0.0|0.0  }
 0xed0   : > { %v3978_v3 = vpop.xlane.xlu1 %3977 }
 0xed1   : > { %8736 = vrcp.f32 %v3978_v3  ;;  %4752 = vadd.xlane.f32.xlu1 %v4751_v48  ;;  %v8472_v3 = vunpack.i.l.bf16 %v10991_v32 }
 0xed2   : > { %8738 = vpow2.f32 %v5115_v15 }
 0xed4   : > { %v3981_v52 = vpop.xlane.xlu1 %3980 }
 0xed5   : > { %8740 = vrcp.f32 %v3981_v52  ;;  %4755 = vadd.xlane.f32.xlu1 %v4754_v10 }
 0xed6   : > { %8742 = vpow2.f32 %v5117_v61  ;;  %v8092_v61 = vpack.c.bf16 %v8473_v18, %v8472_v3  ;;  %v8487_v18 = vunpack.i.l.bf16 %v11010_v55 }
 0xed7   : > { %8744 = vpow2.f32 %v5121_v8 }
 0xed9   : > { %4761 = vadd.xlane.f32.xlu1 %v4760_v56 }
 0xedb   : > { %v8737_v6 = vpop.eup %8736 }
 0xedc   : > { %v4004_v33 = vmul.f32 %v8737_v6, %v11184_v30  ;;  %5144 = vadd.xlane.f32.xlu0 %v5143_v62  ;;  %v11331_v29 = vpop.eup %8738 }
 0xedd   : > { %5129 = vadd.xlane.f32.xlu1 %v5128_v16  ;;  %v5131_v30 = vsel %vm1287_vm7, %v11331_v29, 0.0 }
 0xede   : > { %7571 = vmatmul.mubr.msk.f32.vlgmr.msra.gmra.mrb[98].mxu1 %vm1287_vm7, %v4004_v33 }
 0xedf   : > { %v8741_v34 = vpop.eup %8740  ;;  %8087 = vmatpush3.bf16.msra.mxu1 %v8086_v45  ;;  %7573 = vmatprep.mubr.msk.f32.mxu1 %vm9009_vm0, %v12091_v28 }
 0xee0   : > { %8088 = vmatprep.subr.bf16.mxu1 %v12092_v46  ;;  %v4005_v15 = vmul.f32 %v8741_v34, %v11188_v50  ;;  %v11342_v36 = vpop.eup %8742  ;;  %v8478_v34 = vunpack.i.h.bf16 %v11003_v53 }
 0xee1   : > { %5132 = vadd.xlane.f32.xlu1 %v5131_v30  ;;  %v5134_v48 = vsel %vm1287_vm7, %v11342_v36, 0.0  ;;  %v11352_v50 = vpop.eup %8744  ;;  %v8483_v30 = vunpack.i.h.bf16 %v11176_v2 }
 0xee2   : > { %7574 = vmatmul.mubr.msk.f32.gmra.mrb[100].mxu1 %vm1287_vm7, %v4005_v15  ;;  %v5140_v32 = vsel %vm1287_vm7, %v11352_v50, 0.0  ;;  %v8482_v15 = vunpack.i.l.bf16 %v11176_v2 }
 0xee3   : > { %8090 = vmatpush3.bf16.msra.mxu1 %v8089_v47  ;;  %7576 = vmatprep.mubr.msk.f32.mxu1 %vm9009_vm0, %v12091_v28 }
 0xee4   : > { %8091 = vmatprep.subr.bf16.mxu1 %v12092_v46 }
 0xee5   : > { %5135 = vadd.xlane.f32.xlu1 %v5134_v48 }
 0xee7   : > { %8093 = vmatpush3.bf16.msra.mxu1 %v8092_v61 }
 0xee8   : > { %7638 = vmatprep.subr.mxu1 %v12091_v28 }
 0xee9   : > { %5141 = vadd.xlane.f32.xlu1 %v5140_v32 }
 0xeeb   : > { %7639 = vmatpush3.msk.msra.mxu1 %vm1407_vm6, %v11180_v49 }
 0xeec   : > { %8106 = vmatprep.subr.bf16.mxu1 %v12092_v46 }
 0xefa   : > { %5172 = vrot.lane.b32.xlu1 %v10770_v54, %s12090_s26  ;;  %s12094_s26 = smov 24  }
 0xf05   : > { %v3984_v11 = vpop.xlane.xlu1 %3983 }
 0xf06   : > { %8746 = vrcp.f32 %v3984_v11 }
 0xf09   : > { %v3987_v52 = vpop.xlane.xlu1 %3986 }
 0xf0a   : > { %8748 = vrcp.f32 %v3987_v52 }
 0xf0d   : > { %v3990_v10 = vpop.xlane.xlu1 %3989 }
 0xf0e   : > { %8750 = vrcp.f32 %v3990_v10 }
 0xf10   : > { %v8747_v8 = vpop.eup %8746 }
 0xf11   : > { %v3993_v56 = vpop.xlane.xlu1 %3992  ;;  %v4006_v35 = vmul.f32 %v8747_v8, %v11202_v57  ;;  %v4361_v62 = vpop.xlane.xlu0 %4360 }
 0xf12   : > { %8752 = vrcp.f32 %v3993_v56 }
 0xf13   : > { %7577 = vmatmul.mubr.msk.f32.gmra.mrb[102].mxu1 %vm1287_vm7, %v4006_v35 }
 0xf14   : > { %v8749_v49 = vpop.eup %8748  ;;  %7579 = vmatprep.mubr.msk.f32.mxu1 %vm9009_vm0, %v12091_v28 }
 0xf15   : > { %v3996_v54 = vpop.xlane.xlu1 %3995  ;;  %v4007_v6 = vmul.f32 %v8749_v49, %v11208_v9  ;;  %v4367_v3 = vpop.xlane.xlu0 %4366 }
 0xf16   : > { %8754 = vrcp.f32 %v3996_v54 }
 0xf17   : > { %7580 = vmatmul.mubr.msk.f32.gmra.mrb[104].mxu1 %vm1287_vm7, %v4007_v6  ;;  %8756 = vrcp.f32 %v4361_v62 }
 0xf18   : > { %v8751_v33 = vpop.eup %8750  ;;  %7582 = vmatprep.mubr.msk.f32.mxu1 %vm9009_vm0, %v12091_v28 }
 0xf19   : > { %v4008_v57 = vmul.f32 %v8751_v33, %v11215_v37  ;;  %v8477_v37 = vunpack.i.l.bf16 %v11003_v53  ;;  %v8110_v53 = vpack.c.bf16 %v8483_v30, %v8482_v15  ;;  %v8491_v2 = vpop.permute.xlu1 %8490  ;;  %v4370_v61 = vpop.xlane.xlu0 %4369 }
 0xf1a   : > { %v8492_v30 = vunpack.i.l.bf16 %v8491_v2 }
 0xf1b   : > { %7583 = vmatmul.mubr.msk.f32.gmra.mrb[106].mxu1 %vm1287_vm7, %v4008_v57  ;;  %v8107_v47 = vpack.c.bf16 %v8478_v34, %v8477_v37 }
 0xf1c   : > { %7585 = vmatprep.mubr.msk.f32.mxu1 %vm9009_vm0, %v12091_v28  ;;  %v8753_v16 = vpop.eup %8752 }
 0xf1d   : > { %v4009_v13 = vmul.f32 %v8753_v16, %v11221_v41  ;;  %v4376_v52 = vpop.xlane.xlu0 %4375 }
 0xf1f   : > { %7586 = vmatmul.mubr.msk.f32.gmra.mrb[108].mxu1 %vm1287_vm7, %v4009_v13 }
 0xf20   : > { %v8755_v9 = vpop.eup %8754  ;;  %7588 = vmatprep.mubr.msk.f32.mxu1 %vm9009_vm0, %v12091_v28 }
 0xf21   : > { %v4010_v42 = vmul.f32 %v8755_v9, %v11229_v31  ;;  %v8757_v45 = vpop.eup %8756  ;;  %v8488_v31 = vunpack.i.h.bf16 %v11010_v55  ;;  %v4747_v54 = vpop.xlane.xlu0 %4746 }
 0xf22   : > { %v4387_v41 = vmul.f32 %v8757_v45, %v11223_v4 }
 0xf23   : > { %7589 = vmatmul.mubr.msk.f32.gmra.mrb[110].mxu1 %vm1287_vm7, %v4010_v42  ;;  %v8113_v4 = vpack.c.bf16 %v8488_v31, %v8487_v18  ;;  %v8497_v31 = vunpack.i.l.bf16 %v11363_v58 }
 0xf24   : > { %7640 = vmatprep.mubr.msk.f32.mxu1 %vm9009_vm0, %v12091_v28 }
 0xf27   : > { %7641 = vmatmul.mubr.msk.f32.vlgmr.msra.gmra.mrb[112].mxu1 %vm1287_vm7, %v4387_v41  ;;  %v8493_v41 = vunpack.i.h.bf16 %v8491_v2 }
 0xf28   : > { %8108 = vmatpush3.bf16.msra.mxu1 %v8107_v47  ;;  %7643 = vmatprep.mubr.msk.f32.mxu1 %vm9009_vm0, %v12091_v28 }
 0xf29   : > { %8109 = vmatprep.subr.bf16.mxu1 %v12092_v46  ;;  %v4759_v33 = vpop.xlane.xlu0 %4758  ;;  %v8128_v18 = vpack.c.bf16 %v8493_v41, %v8492_v30 }
 0xf2c   : > { %8111 = vmatpush3.bf16.msra.mxu1 %v8110_v53  ;;  %v8498_v53 = vunpack.i.h.bf16 %v11363_v58 }
 0xf2d   : > { %8112 = vmatprep.subr.bf16.mxu1 %v12092_v46  ;;  %v5127_v13 = vpop.xlane.xlu0 %5126 }
 0xf30   : > { %8114 = vmatpush3.bf16.msra.mxu1 %v8113_v4 }
 0xf31   : > { %7708 = vmatprep.subr.mxu1 %v12091_v28 }
 0xf34   : > { %7709 = vmatpush3.msk.msra.mxu1 %vm1407_vm6, %v11192_v23  ;;  %v11420_v45 = vpop.xlane.xlu0 %5138 }
 0xf35   : > { %8127 = vmatprep.subr.bf16.mxu1 %v12092_v46 }
 0xf38   : > { %v8501_v4 = vpop.permute.xlu0 %8500 }
 0xf4a   : > { %v4364_v48 = vpop.xlane.xlu1 %4363 }
 0xf4b   : > { %8758 = vrcp.f32 %v4364_v48  ;;  %v8503_v48 = vunpack.i.h.bf16 %v8501_v4 }
 0xf4c   : > { %8760 = vrcp.f32 %v4367_v3  ;;  %v8131_v3 = vpack.c.bf16 %v8498_v53, %v8497_v31 }
 0xf4d   : > { %8762 = vrcp.f32 %v4370_v61  ;;  %v8502_v61 = vunpack.i.l.bf16 %v8501_v4 }
 0xf4e   : > { %v4373_v32 = vpop.xlane.xlu1 %4372 }
 0xf4f   : > { %8764 = vrcp.f32 %v4373_v32 }
 0xf50   : > { %8766 = vrcp.f32 %v4376_v52 }
 0xf52   : > { %v4379_v55 = vpop.xlane.xlu1 %4378 }
 0xf53   : > { %8768 = vrcp.f32 %v4379_v55 }
 0xf55   : > { %v8759_v11 = vpop.eup %8758 }
 0xf56   : > { %v4744_v10 = vpop.xlane.xlu1 %4743  ;;  %v4388_v8 = vmul.f32 %v8759_v11, %v11277_v1  ;;  %v8761_v56 = vpop.eup %8760  ;;  %v8134_v11 = vpack.c.bf16 %v8503_v48, %v8502_v61  ;;  %v6663_v48 = vld [vmem:[%s11986_s8 + $0x28] sm:$0xff] }
 0xf57   : > { %v4389_v35 = vmul.f32 %v8761_v56, %v11232_v60  ;;  %v8763_v49 = vpop.eup %8762  ;;  %8770 = vrcp.f32 %v4744_v10 }
 0xf58   : > { %7644 = vmatmul.mubr.msk.f32.gmra.mrb[114].mxu1 %vm1287_vm7, %v4388_v8  ;;  %v4390_v1 = vmul.f32 %v8763_v49, %v11240_v24  ;;  %8772 = vrcp.f32 %v4747_v54 }
 0xf59   : > { %7646 = vmatprep.mubr.msk.f32.mxu1 %vm9009_vm0, %v12091_v28  ;;  %v8765_v62 = vpop.eup %8764 }
 0xf5a   : > { %v4750_v23 = vpop.xlane.xlu1 %4749  ;;  %v4391_v57 = vmul.f32 %v8765_v62, %v11283_v22  ;;  %v8767_v16 = vpop.eup %8766 }
 0xf5b   : > { %v4392_v9 = vmul.f32 %v8767_v16, %v11244_v43  ;;  %8774 = vrcp.f32 %v4750_v23 }
 0xf5c   : > { %7647 = vmatmul.mubr.msk.f32.gmra.mrb[116].mxu1 %vm1287_vm7, %v4389_v35 }
 0xf5d   : > { %7649 = vmatprep.mubr.msk.f32.mxu1 %vm9009_vm0, %v12091_v28  ;;  %v8769_v42 = vpop.eup %8768 }
 0xf5e   : > { %v4753_v6 = vpop.xlane.xlu1 %4752  ;;  %v4393_v34 = vmul.f32 %v8769_v42, %v11290_v12 }
 0xf5f   : > { %8776 = vrcp.f32 %v4753_v6 }
 0xf60   : > { %7650 = vmatmul.mubr.msk.f32.gmra.mrb[118].mxu1 %vm1287_vm7, %v4390_v1 }
 0xf61   : > { %7652 = vmatprep.mubr.msk.f32.mxu1 %vm9009_vm0, %v12091_v28  ;;  %v8771_v37 = vpop.eup %8770 }
 0xf62   : > { %v4756_v60 = vpop.xlane.xlu1 %4755  ;;  %v4770_v43 = vmul.f32 %v8771_v37, %v11295_v5  ;;  %v8773_v47 = vpop.eup %8772 }
 0xf63   : > { %8778 = vrcp.f32 %v4756_v60  ;;  %v4771_v5 = vmul.f32 %v8773_v47, %v11250_v20 }
 0xf64   : > { %7653 = vmatmul.mubr.msk.f32.gmra.mrb[120].mxu1 %vm1287_vm7, %v4391_v57  ;;  %8780 = vrcp.f32 %v4759_v33 }
 0xf65   : > { %7655 = vmatprep.mubr.msk.f32.mxu1 %vm9009_vm0, %v12091_v28  ;;  %v8775_v2 = vpop.eup %8774 }
 0xf66   : > { %v4762_v24 = vpop.xlane.xlu1 %4761  ;;  %v4772_v32 = vmul.f32 %v8775_v2, %v11301_v39 }
 0xf67   : > { %8782 = vrcp.f32 %v4762_v24 }
 0xf68   : > { %7656 = vmatmul.mubr.msk.f32.gmra.mrb[122].mxu1 %vm1287_vm7, %v4392_v9  ;;  %8784 = vrcp.f32 %v5127_v13 }
 0xf69   : > { %7658 = vmatprep.mubr.msk.f32.mxu1 %vm9009_vm0, %v12091_v28  ;;  %v8777_v55 = vpop.eup %8776  ;;  %v5145_v54 = vpop.xlane.xlu0 %5144 }
 0xf6a   : > { %v5130_v22 = vpop.xlane.xlu1 %5129  ;;  %v4773_v52 = vmul.f32 %v8777_v55, %v11306_v26 }
 0xf6b   : > { %8786 = vrcp.f32 %v5130_v22 }
 0xf6c   : > { %7659 = vmatmul.mubr.msk.f32.gmra.mrb[124].mxu1 %vm1287_vm7, %v4393_v34 }
 0xf6d   : > { %7710 = vmatprep.mubr.msk.f32.mxu1 %vm9009_vm0, %v12091_v28  ;;  %v8779_v10 = vpop.eup %8778 }
 0xf6e   : > { %v5133_v15 = vpop.xlane.xlu1 %5132  ;;  %v4774_v39 = vmul.f32 %v8779_v10, %v11311_v51  ;;  %v8781_v8 = vpop.eup %8780  ;;  %v6664_v10 = vld [vmem:[%s11986_s8 + $0x30] sm:$0xff] }
 0xf6f   : > { %v4775_v26 = vmul.f32 %v8781_v8, %v11257_v25  ;;  %8788 = vrcp.f32 %v5133_v15 }
 0xf70   : > { %7711 = vmatmul.mubr.msk.f32.vlgmr.msra.gmra.mrb[126].mxu1 %vm1287_vm7, %v4770_v43 }
 0xf71   : > { %8129 = vmatpush3.bf16.msra.mxu1 %v8128_v18  ;;  %7713 = vmatprep.mubr.msk.f32.mxu1 %vm9009_vm0, %v12091_v28  ;;  %v8783_v56 = vpop.eup %8782 }
 0xf72   : > { %v5136_v12 = vpop.xlane.xlu1 %5135  ;;  %8130 = vmatprep.subr.bf16.mxu1 %v12092_v46  ;;  %v4776_v51 = vmul.f32 %v8783_v56, %v11316_v59  ;;  %v8785_v23 = vpop.eup %8784 }
 0xf73   : > { %8790 = vrcp.f32 %v5136_v12  ;;  %v5153_v35 = vmul.f32 %v8785_v23, %v11261_v40 }
 0xf74   : > { %7714 = vmatmul.mubr.msk.f32.gmra.mrb[128].mxu1 %vm1287_vm7, %v4771_v5  ;;  %8792 = vrcp.f32 %v11420_v45 }
 0xf75   : > { %8132 = vmatpush3.bf16.msra.mxu1 %v8131_v3  ;;  %7716 = vmatprep.mubr.msk.f32.mxu1 %vm9009_vm0, %v12091_v28  ;;  %v8787_v49 = vpop.eup %8786  ;;  %v6662_v3 = vld [vmem:[%s11986_s8 + $0x20] sm:$0xff] }
 0xf76   : > { %v5142_v58 = vpop.xlane.xlu1 %5141  ;;  %8133 = vmatprep.subr.bf16.mxu1 %v12092_v46  ;;  %v5154_v25 = vmul.f32 %v8787_v49, %v11322_v19 }
 0xf77   : > { %8794 = vrcp.f32 %v5142_v58  ;;  %v8137_v58 = vpack.c.bf16 %v6663_v48, %v6662_v3 }
 0xf78   : > { %7717 = vmatmul.mubr.msk.f32.gmra.mrb[130].mxu1 %vm1287_vm7, %v4772_v32  ;;  %8796 = vrcp.f32 %v5145_v54 }
 0xf79   : > { %8135 = vmatpush3.bf16.msra.mxu1 %v8134_v11  ;;  %7719 = vmatprep.mubr.msk.f32.mxu1 %vm9009_vm0, %v12091_v28  ;;  %v8789_v59 = vpop.eup %8788 }
 0xf7a   : > { %v5173_v20 = vpop.permute.xlu1 %5172  ;;  %7778 = vmatprep.subr.mxu1 %v12091_v28  ;;  %v5155_v40 = vmul.f32 %v8789_v59, %v11331_v29  ;;  %8138 = vmatpush3.bf16.msra.mxu0 %v8137_v58 }
 0xf7b   : > { %8139 = vmatprep.subr.bf16.mxu0 %v12092_v46 }
 0xf7c   : > { %7720 = vmatmul.mubr.msk.f32.gmra.mrb[132].mxu1 %vm1287_vm7, %v4773_v52 }
 0xf7d   : > { %7779 = vmatpush3.msk.msra.mxu1 %vm1407_vm6, %v5173_v20  ;;  %7722 = vmatprep.mubr.msk.f32.mxu1 %vm9009_vm0, %v12091_v28  ;;  %v8791_v6 = vpop.eup %8790 }
 0xf7e   : > { %8142 = vmatprep.subr.bf16.mxu1 %v12092_v46  ;;  %v5156_v1 = vmul.f32 %v8791_v6, %v11342_v36  ;;  %v8793_v19 = vpop.eup %8792 }
 0xf7f   : > { %v5157_v62 = vmul.f32 %v8793_v19, %v11265_v0 }
 0xf80   : > { %7723 = vmatmul.mubr.msk.f32.gmra.mrb[134].mxu1 %vm1287_vm7, %v4774_v39  ;;  %v6665_v39 = vld [vmem:[%s11986_s8 + $0x38] sm:$0xff] }
 0xf81   : > { %7725 = vmatprep.mubr.msk.f32.mxu1 %vm9009_vm0, %v12091_v28  ;;  %v8795_v33 = vpop.eup %8794 }
 0xf82   : > { %v5158_v29 = vmul.f32 %v8795_v33, %v11352_v50  ;;  %v8797_v60 = vpop.eup %8796 }
 0xf83   : > { %v5159_v36 = vmul.f32 %v8797_v60, %v11318_v21 }
 0xf84   : > { %7726 = vmatmul.mubr.msk.f32.gmra.mrb[136].mxu1 %vm1287_vm7, %v4775_v26  ;;  %v8140_v26 = vpack.c.bf16 %v6665_v39, %v6664_v10 }
 0xf85   : > { %7728 = vmatprep.mubr.msk.f32.mxu1 %vm9009_vm0, %v12091_v28 }
 0xf86   : > { %8141 = vmatpush3.bf16.msra.mxu0 %v8140_v26 }
 0xf87   : > { %8148 = vmatprep.subr.bf16.mxu0 %v12092_v46 }
 0xf88   : > { %7729 = vmatmul.mubr.msk.f32.gmra.mrb[138].mxu1 %vm1287_vm7, %v4776_v51 }
 0xf89   : > { %7780 = vmatprep.mubr.msk.f32.mxu1 %vm9009_vm0, %v12091_v28 }
 0xf8c   : > { %7781 = vmatmul.mubr.msk.f32.vlgmr.msra.gmra.mrb[140].mxu1 %vm1287_vm7, %v5153_v35 }
 0xf8d   : > { %7783 = vmatprep.mubr.msk.f32.mxu1 %vm9009_vm0, %v12091_v28 }
 0xf90   : > { %7784 = vmatmul.mubr.msk.f32.gmra.mrb[142].mxu1 %vm1287_vm7, %v5154_v25 }
 0xf91   : > { %7786 = vmatprep.mubr.msk.f32.mxu1 %vm9009_vm0, %v12091_v28 }
 0xf94   : > { %7787 = vmatmul.mubr.msk.f32.gmra.mrb[144].mxu1 %vm1287_vm7, %v5155_v40 }
 0xf95   : > { %7789 = vmatprep.mubr.msk.f32.mxu1 %vm9009_vm0, %v12091_v28 }
 0xf98   : > { %7790 = vmatmul.mubr.msk.f32.gmra.mrb[146].mxu1 %vm1287_vm7, %v5156_v1 }
 0xf99   : > { %7792 = vmatprep.mubr.msk.f32.mxu1 %vm9009_vm0, %v12091_v28 }
 0xf9c   : > { %7793 = vmatmul.mubr.msk.f32.gmra.mrb[148].mxu1 %vm1287_vm7, %v5157_v62 }
 0xf9d   : > { %7795 = vmatprep.mubr.msk.f32.mxu1 %vm9009_vm0, %v12091_v28 }
 0xfa0   : > { %7796 = vmatmul.mubr.msk.f32.gmra.mrb[150].mxu1 %vm1287_vm7, %v5158_v29 }
 0xfa1   : > { %7798 = vmatprep.mubr.msk.f32.mxu1 %vm9009_vm0, %v12091_v28 }
 0xfa4   : > { %7799 = vmatmul.mubr.msk.f32.gmra.mrb[152].mxu1 %vm1287_vm7, %v5159_v36 }
 0xfa5   : > { %7838 = vmatprep.mubr.msk.f32.mxu1 %vm9009_vm0, %v12091_v28 }
 0xfb1   : > { %v11490_v0 = vpop.f32.mrb[98].mxu1 }
 0xfb2   : > { %v7572_v57 = vpop.f32.mrb[99].mxu1 }
 0xfb5   : > { %v11492_v16 = vpop.f32.mrb[100].mxu1 }
 0xfb6   : > { %v7575_v13 = vpop.f32.mrb[101].mxu1 }
 0xfe6   : > { %v11494_v50 = vpop.f32.mrb[102].mxu1 }
 0xfe7   : > { %v7578_v24 = vpop.f32.mrb[103].mxu1 }
 0xfea   : > { %v11496_v9 = vpop.f32.mrb[104].mxu1 }
 0xfeb   : > { %v7581_v42 = vpop.f32.mrb[105].mxu1 }
 0xfee   : > { %v11498_v45 = vpop.f32.mrb[106].mxu1 }
 0xfef   : > { %v7584_v21 = vpop.f32.mrb[107].mxu1 }
 0xff2   : > { %v11500_v22 = vpop.f32.mrb[108].mxu1 }
 0xff3   : > { %v7587_v34 = vpop.f32.mrb[109].mxu1 }
 0xff6   : > { %v11502_v37 = vpop.f32.mrb[110].mxu1 }
 0xff7   : > { %v7590_v41 = vpop.f32.mrb[111].mxu1 }
 0xffa   : > { %v4503_v30 = vpop.f32.mrb[112].mxu1 }
 0xffb   : > { %5310 = vrot.lane.b32.xlu1 %v4503_v30, %s9022_s30  ;;  %v7642_v43 = vpop.f32.mrb[113].mxu1 }
0x102b   : > { %v4508_v15 = vpop.f32.mrb[114].mxu1 }
0x102c   : > { %5312 = vrot.lane.b32.xlu1 %v4508_v15, %s9022_s30  ;;  %v7645_v47 = vpop.f32.mrb[115].mxu1 }
0x102f   : > { %v4513_v53 = vpop.f32.mrb[116].mxu1 }
0x1030   : > { %5314 = vrot.lane.b32.xlu1 %v4513_v53, %s9022_s30  ;;  %v7648_v31 = vpop.f32.mrb[117].mxu1 }
0x1033   : > { %v4518_v18 = vpop.f32.mrb[118].mxu1 }
0x1034   : > { %5316 = vrot.lane.b32.xlu0 %v4518_v18, %s9022_s30  ;;  %v7651_v4 = vpop.f32.mrb[119].mxu1 }
0x1037   : > { %v4523_v12 = vpop.f32.mrb[120].mxu1 }
0x1038   : > { %5318 = vrot.lane.b32.xlu1 %v4523_v12, %s9022_s30  ;;  %v7654_v5 = vpop.f32.mrb[121].mxu1 }
0x103b   : > { %v4528_v2 = vpop.f32.mrb[122].mxu1 }
0x103c   : > { %v7657_v61 = vpop.f32.mrb[123].mxu1 }
0x103f   : > { %v4533_v32 = vpop.f32.mrb[124].mxu1 }
0x1040   : > { %v7660_v55 = vpop.f32.mrb[125].mxu1 }
0x1043   : > { %v4886_v11 = vpop.f32.mrb[126].mxu1 }
0x1044   : > { %5338 = vrot.lane.b32.xlu0 %v4886_v11, %s12093_s3  ;;  %v7712_v20 = vpop.f32.mrb[127].mxu1 }
0x1047   : > { %v4891_v52 = vpop.f32.mrb[128].mxu1 }
0x1048   : > { %5340 = vrot.lane.b32.xlu1 %v4891_v52, %s12093_s3  ;;  %v7715_v8 = vpop.f32.mrb[129].mxu1 }
0x104b   : > { %v4896_v56 = vpop.f32.mrb[130].mxu1 }
0x104c   : > { %5342 = vrot.lane.b32.xlu0 %v4896_v56, %s12093_s3  ;;  %v7718_v51 = vpop.f32.mrb[131].mxu1 }
0x104f   : > { %v4901_v23 = vpop.f32.mrb[132].mxu1 }
0x1050   : > { %5344 = vrot.lane.b32.xlu1 %v4901_v23, %s12093_s3  ;;  %v7721_v35 = vpop.f32.mrb[133].mxu1 }
0x1053   : > { %v4906_v49 = vpop.f32.mrb[134].mxu1 }
0x1054   : > { %5346 = vrot.lane.b32.xlu0 %v4906_v49, %s12093_s3  ;;  %v7724_v25 = vpop.f32.mrb[135].mxu1 }
0x1057   : > { %v4911_v59 = vpop.f32.mrb[136].mxu1 }
0x1058   : > { %v7727_v54 = vpop.f32.mrb[137].mxu1 }
0x105b   : > { %v4916_v40 = vpop.f32.mrb[138].mxu1 }
0x105c   : > { %v7730_v6 = vpop.f32.mrb[139].mxu1 }
0x105f   : > { %v5269_v1 = vpop.f32.mrb[140].mxu1 }
0x1060   : > { %5366 = vrot.lane.b32.xlu1 %v5269_v1, %s12094_s26  ;;  %v7782_v19 = vpop.f32.mrb[141].mxu1 }
0x1063   : > { %v5274_v62 = vpop.f32.mrb[142].mxu1 }
0x1064   : > { %5368 = vrot.lane.b32.xlu1 %v5274_v62, %s12094_s26  ;;  %v7785_v33 = vpop.f32.mrb[143].mxu1 }
0x1065   : > { %v6674_v33 = vld [vmem:[%s11987_s9 + $0x1] ss:$0 sm:$0xff] }
0x1067   : > { %v5279_v29 = vpop.f32.mrb[144].mxu1 }
0x1068   : > { %5370 = vrot.lane.b32.xlu1 %v5279_v29, %s12094_s26  ;;  %v7788_v60 = vpop.f32.mrb[145].mxu1 }
0x106b   : > { %v5284_v36 = vpop.f32.mrb[146].mxu1 }
0x106c   : > { %5348 = vrot.lane.b32.xlu1 %v4911_v59, %s12093_s3  ;;  %5372 = vrot.lane.b32.xlu0 %v5284_v36, %s12094_s26  ;;  %v7791_v57 = vpop.f32.mrb[147].mxu1 }
0x106d   : > { %v5311_v30 = vpop.permute.xlu1 %5310 }
0x106e   : > { %v5387_v12 = vsel %vm1151_vm4, %v11490_v0, %v5311_v30 }
0x106f   : > { %v5289_v13 = vpop.f32.mrb[148].mxu1 }
0x1070   : > { %5320 = vrot.lane.b32.xlu0 %v4528_v2, %s9022_s30  ;;  %5374 = vrot.lane.b32.xlu1 %v5289_v13, %s12094_s26  ;;  %v7794_v24 = vpop.f32.mrb[149].mxu1 }
0x1073   : > { %v5294_v42 = vpop.f32.mrb[150].mxu1 }
0x1074   : > { %5322 = vrot.lane.b32.xlu1 %v4533_v32, %s9022_s30  ;;  %5376 = vrot.lane.b32.xlu0 %v5294_v42, %s12094_s26  ;;  %v7797_v21 = vpop.f32.mrb[151].mxu1  ;;  %s8933_s30 = scalar_lea.vmem %s11936_s29, 16 }
0x1075   : > { %p8934_p1 = scmp.ne.s32.totalorder %s11936_s29, %s8933_s30 }
0x1077   : > { %v5299_v34 = vpop.f32.mrb[152].mxu1  ;;  %p8935_p4 = pnand %p8934_p1, %p9252_p6 }
0x1078   : > { %5350 = vrot.lane.b32.xlu0 %v4916_v40, %s12093_s3  ;;  %5378 = vrot.lane.b32.xlu1 %v5299_v34, %s12094_s26  ;;  %v7800_v41 = vpop.f32.mrb[153].mxu1  ;;  %s12098_s26 = sld [smem:[#allocation24_spill]]  ;;  %s6711_s3 = sshll.u32 %s9153_s2, 4 }
0x1079   : > { %p8936_p8 = pneg %p8935_p4  ;;  %s9026_s2 = smov [#allocation9]  }
0x107a   : > { %s8937_s4 = sshll.u32 %s9026_s2, 4  ;;  %s8938_s4 = int_to_ptr.vmem [resolvable:$false] %s8937_s4 }
0x107b   : > { %p8940_p12 = scmp.lt.s32.totalorder %s11936_s29, %s8938_s4 }
0x109e   : > { %v5313_v43 = vpop.permute.xlu1 %5312 }
0x109f   : > { %v5388_v48 = vsel %vm1151_vm4, %v11492_v16, %v5313_v43 }
0x10a2   : > { %v5315_v15 = vpop.permute.xlu1 %5314 }
0x10a3   : > { %v5389_v0 = vsel %vm1151_vm4, %v11494_v50, %v5315_v15 }
0x10a6   : > { %v5317_v31 = vpop.permute.xlu0 %5316 }
0x10a7   : > { %v5390_v10 = vsel %vm1151_vm4, %v11496_v9, %v5317_v31 }
0x10aa   : > { %v5319_v47 = vpop.permute.xlu1 %5318 }
0x10ab   : > { %v5391_v56 = vsel %vm1151_vm4, %v11498_v45, %v5319_v47 }
0x10b6   : > { %v5339_v4 = vpop.permute.xlu0 %5338 }
0x10b7   : > { %v5394_v5 = vsel %vm2750_vm9, %v5387_v12, %v5339_v4 }
0x10ba   : > { %v5341_v53 = vpop.permute.xlu1 %5340 }
0x10bb   : > { %v5395_v61 = vsel %vm2750_vm9, %v5388_v48, %v5341_v53 }
0x10be   : > { %v5343_v58 = vpop.permute.xlu0 %5342 }
0x10bf   : > { %v5396_v11 = vsel %vm2750_vm9, %v5389_v0, %v5343_v58 }
0x10c2   : > { %v5345_v18 = vpop.permute.xlu1 %5344 }
0x10c3   : > { %v5397_v39 = vsel %vm2750_vm9, %v5390_v10, %v5345_v18 }
0x10c6   : > { %v5347_v16 = vpop.permute.xlu0 %5346 }
0x10c7   : > { %v5398_v51 = vsel %vm2750_vm9, %v5391_v56, %v5347_v16 }
0x10d2   : > { %v5367_v2 = vpop.permute.xlu1 %5366 }
0x10d3   : > { %v5401_v3 = vsel %vm2758_vm10, %v5394_v5, %v5367_v2 }
0x10d4   : > { %7810 = vmatmul.mubr.msk.f32.vlgmr.msra.gmra.mrb[154].mxu0 %vm706_vm1, %v5401_v3 }
0x10d5   : > { %7812 = vmatprep.mubr.msk.f32.mxu0 %vm9009_vm0, %v12091_v28 }
0x10d6   : > { %v5369_v32 = vpop.permute.xlu1 %5368 }
0x10d7   : > { %v5402_v55 = vsel %vm2758_vm10, %v5395_v61, %v5369_v32 }
0x10d8   : > { %7813 = vmatmul.mubr.msk.f32.gmra.mrb[156].mxu0 %vm706_vm1, %v5402_v55 }
0x10d9   : > { %7815 = vmatprep.mubr.msk.f32.mxu0 %vm9009_vm0, %v12091_v28 }
0x10da   : > { %v5371_v20 = vpop.permute.xlu1 %5370 }
0x10db   : > { %v5403_v52 = vsel %vm2758_vm10, %v5396_v11, %v5371_v20 }
0x10dc   : > { %7816 = vmatmul.mubr.msk.f32.gmra.mrb[158].mxu0 %vm706_vm1, %v5403_v52 }
0x10dd   : > { %7818 = vmatprep.mubr.msk.f32.mxu0 %vm9009_vm0, %v12091_v28 }
0x10de   : > { %v5349_v50 = vpop.permute.xlu1 %5348  ;;  %v5373_v8 = vpop.permute.xlu0 %5372 }
0x10df   : > { %v5404_v26 = vsel %vm2758_vm10, %v5397_v39, %v5373_v8 }
0x10e0   : > { %7819 = vmatmul.mubr.msk.f32.gmra.mrb[160].mxu0 %vm706_vm1, %v5404_v26 }
0x10e1   : > { %7821 = vmatprep.mubr.msk.f32.mxu0 %vm9009_vm0, %v12091_v28 }
0x10e2   : > { %v5321_v9 = vpop.permute.xlu0 %5320  ;;  %v5375_v23 = vpop.permute.xlu1 %5374 }
0x10e3   : > { %v5392_v35 = vsel %vm1151_vm4, %v11500_v22, %v5321_v9  ;;  %v5405_v49 = vsel %vm2758_vm10, %v5398_v51, %v5375_v23 }
0x10e4   : > { %7822 = vmatmul.mubr.msk.f32.gmra.mrb[162].mxu0 %vm706_vm1, %v5405_v49  ;;  %v5399_v45 = vsel %vm2750_vm9, %v5392_v35, %v5349_v50  ;;  %v6680_v35 = vld [vmem:[%s11990_s12 + $0x28] sm:$0xff] }
0x10e5   : > { %7824 = vmatprep.mubr.msk.f32.mxu0 %vm9009_vm0, %v12091_v28 }
0x10e6   : > { %v5323_v25 = vpop.permute.xlu1 %5322  ;;  %v5377_v59 = vpop.permute.xlu0 %5376 }
0x10e7   : > { %v5406_v54 = vsel %vm2758_vm10, %v5399_v45, %v5377_v59  ;;  %v5393_v22 = vsel %vm1151_vm4, %v11502_v37, %v5323_v25  ;;  %v6681_v25 = vld [vmem:[%s11990_s12 + $0x30] sm:$0xff]  ;;  %v6682_v45 = vld [vmem:[%s11990_s12 + $0x38] sm:$0xff] }
0x10e8   : > { %7825 = vmatmul.mubr.msk.f32.gmra.mrb[164].mxu0 %vm706_vm1, %v5406_v54  ;;  %v8146_v59 = vpack.c.bf16 %v6682_v45, %v6681_v25 }
0x10e9   : > { %7827 = vmatprep.mubr.msk.f32.mxu0 %vm9009_vm0, %v12091_v28 }
0x10ea   : > { %v5351_v40 = vpop.permute.xlu0 %5350  ;;  %v5379_v6 = vpop.permute.xlu1 %5378 }
0x10eb   : > { %v5400_v1 = vsel %vm2750_vm9, %v5393_v22, %v5351_v40 }
0x10ec   : > { %v5407_v19 = vsel %vm2758_vm10, %v5400_v1, %v5379_v6 }
0x10ed   : > { %7828 = vmatmul.mubr.msk.f32.gmra.mrb[166].mxu0 %vm706_vm1, %v5407_v19 }
0x10ee   : > { %7875 = vmatprep.mubr.msk.f32.mxu0 %vm9009_vm0, %v12091_v28 }
0x11a7   : > { %v5500_v62 = vpop.f32.mrb[154].mxu0 }
0x11a8   : > { %v5534_v29 = vadd.f32 %v5500_v62, %v10613_v27  ;;  %v7811_v60 = vpop.f32.mrb[155].mxu0 }
0x11aa   : > { %v11592_v37 = vadd.f32 %v6674_v33, %v5534_v29 }
0x11ab   : > { %v5505_v36 = vpop.f32.mrb[156].mxu0 }
0x11ac   : > { %v5535_v57 = vadd.f32 %v5505_v36, %v10622_v38  ;;  %v7814_v13 = vpop.f32.mrb[157].mxu0  ;;  %v5560_v24 = vsel %vm706_vm1, %v11592_v37, 0.0  ;;  %v5588_v42 = vmul.f32 %v11592_v37, %v11592_v37 }
0x11ad   : > { %5561 = vadd.xlane.f32.xlu0 %v5560_v24 }
0x11ae   : > { %v11599_v21 = vadd.f32 %v6674_v33, %v5535_v57  ;;  %v5595_v34 = vsel %vm706_vm1, %v5588_v42, 0.0 }
0x11af   : > { %5596 = vadd.xlane.f32.xlu1 %v5595_v34  ;;  %v5510_v27 = vpop.f32.mrb[158].mxu0 }
0x11b0   : > { %v5536_v41 = vadd.f32 %v5510_v27, %v10631_v17  ;;  %v7817_v30 = vpop.f32.mrb[159].mxu0  ;;  %v5563_v38 = vsel %vm706_vm1, %v11599_v21, 0.0  ;;  %v5589_v43 = vmul.f32 %v11599_v21, %v11599_v21 }
0x11b1   : > { %5564 = vadd.xlane.f32.xlu0 %v5563_v38 }
0x11b2   : > { %v11607_v15 = vadd.f32 %v6674_v33, %v5536_v41  ;;  %v5598_v18 = vsel %vm706_vm1, %v5589_v43, 0.0 }
0x11b3   : > { %v5515_v47 = vpop.f32.mrb[160].mxu0 }
0x11b4   : > { %v5537_v53 = vadd.f32 %v5515_v47, %v10639_v63  ;;  %v7820_v31 = vpop.f32.mrb[161].mxu0  ;;  %v5566_v4 = vsel %vm706_vm1, %v11607_v15, 0.0  ;;  %v5590_v17 = vmul.f32 %v11607_v15, %v11607_v15 }
0x11b5   : > { %5599 = vadd.xlane.f32.xlu0 %v5598_v18  ;;  %5567 = vadd.xlane.f32.xlu1 %v5566_v4 }
0x11b6   : > { %v11615_v12 = vadd.f32 %v6674_v33, %v5537_v53  ;;  %v5601_v48 = vsel %vm706_vm1, %v5590_v17, 0.0 }
0x11b7   : > { %v5520_v5 = vpop.f32.mrb[162].mxu0 }
0x11b8   : > { %v5538_v2 = vadd.f32 %v5520_v5, %v10648_v44  ;;  %v7823_v3 = vpop.f32.mrb[163].mxu0  ;;  %v5569_v63 = vsel %vm706_vm1, %v11615_v12, 0.0  ;;  %v5591_v61 = vmul.f32 %v11615_v12, %v11615_v12 }
0x11b9   : > { %5602 = vadd.xlane.f32.xlu0 %v5601_v48  ;;  %5570 = vadd.xlane.f32.xlu1 %v5569_v63  ;;  %v11665_v48 = vld [vmem:[%s11988_s10 + $0x1] ss:$0 sm:$0xff] }
0x11ba   : > { %v11623_v58 = vadd.f32 %v6674_v33, %v5538_v2  ;;  %v5604_v11 = vsel %vm706_vm1, %v5591_v61, 0.0 }
0x11bb   : > { %v5525_v32 = vpop.f32.mrb[164].mxu0 }
0x11bc   : > { %v5539_v55 = vadd.f32 %v5525_v32, %v10671_v14  ;;  %v7826_v0 = vpop.f32.mrb[165].mxu0  ;;  %v5572_v44 = vsel %vm706_vm1, %v11623_v58, 0.0  ;;  %v5592_v16 = vmul.f32 %v11623_v58, %v11623_v58 }
0x11bd   : > { %5605 = vadd.xlane.f32.xlu0 %v5604_v11  ;;  %5573 = vadd.xlane.f32.xlu1 %v5572_v44 }
0x11be   : > { %v11631_v20 = vadd.f32 %v6674_v33, %v5539_v55  ;;  %v5607_v10 = vsel %vm706_vm1, %v5592_v16, 0.0 }
0x11c0   : > { %v5530_v52 = vpop.f32.mrb[166].mxu0  ;;  %v5575_v39 = vsel %vm706_vm1, %v11631_v20, 0.0  ;;  %v5593_v14 = vmul.f32 %v11631_v20, %v11631_v20 }
0x11c1   : > { %v5540_v50 = vadd.f32 %v5530_v52, %v10681_v7  ;;  %5608 = vadd.xlane.f32.xlu0 %v5607_v10  ;;  %5576 = vadd.xlane.f32.xlu1 %v5575_v39  ;;  %v7829_v8 = vpop.f32.mrb[167].mxu0  ;;  %v6679_v7 = vld [vmem:[%s11990_s12 + $0x20] sm:$0xff] }
0x11c2   : > { %v5610_v56 = vsel %vm706_vm1, %v5593_v14, 0.0  ;;  %v8143_v49 = vpack.c.bf16 %v6680_v35, %v6679_v7  ;;  %v6678_v52 = vld [vmem:[%s11989_s11 + $0x1] ss:$0 sm:$0xff] }
0x11c3   : > { %v11639_v26 = vadd.f32 %v6674_v33, %v5540_v50 }
0x11c4   : > { %8144 = vmatpush3.bf16.msra.mxu1 %v8143_v49 }
0x11c5   : > { %5611 = vadd.xlane.f32.xlu0 %v5610_v56  ;;  %v5578_v51 = vsel %vm841_vm2, %v11639_v26, 0.0  ;;  %v5594_v9 = vmul.f32 %v11639_v26, %v11639_v26  ;;  %8145 = vmatprep.subr.bf16.mxu1 %v12092_v46 }
0x11c6   : > { %5579 = vadd.xlane.f32.xlu1 %v5578_v51 }
0x11c7   : > { %v5613_v23 = vsel %vm841_vm2, %v5594_v9, 0.0 }
0x11c8   : > { %8147 = vmatpush3.bf16.msra.mxu1 %v8146_v59 }
0x11c9   : > { %5614 = vadd.xlane.f32.xlu0 %v5613_v23  ;;  %8160 = vmatprep.subr.bf16.mxu1 %v12092_v46 }
0x123a   : > { %v5562_v54 = vpop.xlane.xlu0 %5561 }
0x123b   : > { %v5581_v22 = vmul.f32 0.03125, %v5562_v54 }
0x123c   : > { %v5597_v40 = vpop.xlane.xlu1 %5596 }
0x123d   : > { %v5623_v6 = vmul.f32 %v5581_v22, %v5581_v22  ;;  %v5616_v1 = vmul.f32 0.03125, %v5597_v40  ;;  %v5637_v2 = vsub.f32 %v11592_v37, %v5581_v22 }
0x123e   : > { %v5565_v19 = vpop.xlane.xlu0 %5564 }
0x123f   : > { %v5630_v62 = vsub.f32 %v5616_v1, %v5623_v6  ;;  %v5582_v33 = vmul.f32 0.03125, %v5565_v19 }
0x1241   : > { %v5644_v29 = vadd.f32 1e-05, %v5630_v62  ;;  %v5624_v57 = vmul.f32 %v5582_v33, %v5582_v33  ;;  %v5638_v39 = vsub.f32 %v11599_v21, %v5582_v33 }
0x1242   : > { %v5600_v60 = vpop.xlane.xlu0 %5599  ;;  %v5568_v36 = vpop.xlane.xlu1 %5567 }
0x1243   : > { %8798 = vrsqrt.f32 %v5644_v29  ;;  %v5617_v13 = vmul.f32 0.03125, %v5600_v60  ;;  %v5583_v24 = vmul.f32 0.03125, %v5568_v36 }
0x1245   : > { %v5631_v42 = vsub.f32 %v5617_v13, %v5624_v57  ;;  %v5625_v30 = vmul.f32 %v5583_v24, %v5583_v24  ;;  %v5639_v25 = vsub.f32 %v11607_v15, %v5583_v24 }
0x1246   : > { %v5603_v34 = vpop.xlane.xlu0 %5602  ;;  %v5571_v27 = vpop.xlane.xlu1 %5570 }
0x1247   : > { %v5645_v41 = vadd.f32 1e-05, %v5631_v42  ;;  %v5618_v38 = vmul.f32 0.03125, %v5603_v34  ;;  %v5584_v43 = vmul.f32 0.03125, %v5571_v27 }
0x1249   : > { %8800 = vrsqrt.f32 %v5645_v41  ;;  %v5632_v47 = vsub.f32 %v5618_v38, %v5625_v30  ;;  %v5626_v4 = vmul.f32 %v5584_v43, %v5584_v43  ;;  %v5640_v62 = vsub.f32 %v11615_v12, %v5584_v43 }
0x124a   : > { %v5606_v53 = vpop.xlane.xlu0 %5605  ;;  %v5574_v31 = vpop.xlane.xlu1 %5573 }
0x124b   : > { %v5646_v18 = vadd.f32 1e-05, %v5632_v47  ;;  %v5619_v17 = vmul.f32 0.03125, %v5606_v53  ;;  %v5585_v5 = vmul.f32 0.03125, %v5574_v31 }
0x124d   : > { %v8799_v3 = vpop.eup %8798  ;;  %8802 = vrsqrt.f32 %v5646_v18  ;;  %v5633_v63 = vsub.f32 %v5619_v17, %v5626_v4  ;;  %v5627_v11 = vmul.f32 %v5585_v5, %v5585_v5  ;;  %v5641_v57 = vsub.f32 %v11623_v58, %v5585_v5  ;;  %v6692_v4 = vld [vmem:[%s11992_s14 + $0x40] sm:$0xff]  ;;  %v6693_v17 = vld [vmem:[%s11992_s14 + $0x48] sm:$0xff] }
0x124e   : > { %v5658_v61 = vmul.f32 %v8799_v3, %v5637_v2  ;;  %v5609_v32 = vpop.xlane.xlu0 %5608  ;;  %v5577_v55 = vpop.xlane.xlu1 %5576  ;;  %v8149_v5 = vpack.c.bf16 %v6693_v17, %v6692_v4  ;;  %v6694_v2 = vld [vmem:[%s11992_s14 + $0x50] sm:$0xff]  ;;  %v6695_v3 = vld [vmem:[%s11992_s14 + $0x58] sm:$0xff] }
0x124f   : > { %v5647_v0 = vadd.f32 1e-05, %v5633_v63  ;;  %v5620_v44 = vmul.f32 0.03125, %v5609_v32  ;;  %v5586_v16 = vmul.f32 0.03125, %v5577_v55  ;;  %v6696_v63 = vld [vmem:[%s11992_s14 + $0x60] sm:$0xff]  ;;  %v6698_v55 = vld [vmem:[%s11992_s14 + $0x70] sm:$0xff] }
0x1250   : > { %v5671_v37 = vmul.f32 %v11665_v48, %v5658_v61  ;;  %8150 = vmatpush3.bf16.msra.mxu0 %v8149_v5  ;;  %v6697_v61 = vld [vmem:[%s11992_s14 + $0x68] sm:$0xff] }
0x1251   : > { %8804 = vrsqrt.f32 %v5647_v0  ;;  %v5634_v10 = vsub.f32 %v5620_v44, %v5627_v11  ;;  %v5628_v51 = vmul.f32 %v5586_v16, %v5586_v16  ;;  %v5642_v34 = vsub.f32 %v11631_v20, %v5586_v16  ;;  %8151 = vmatprep.subr.bf16.mxu0 %v12092_v46  ;;  %v6699_v0 = vld [vmem:[%s11992_s14 + $0x78] sm:$0xff]  ;;  %v6684_v44 = vld [vmem:[%s11991_s13 + $0x1] ss:$0 sm:$0xff] }
0x1252   : > { %v5612_v14 = vpop.xlane.xlu0 %5611  ;;  %v5684_v50 = vadd.f32 %v6678_v52, %v5671_v37  ;;  %v8155_v32 = vpack.c.bf16 %v6697_v61, %v6696_v63  ;;  %v8158_v11 = vpack.c.bf16 %v6699_v0, %v6698_v55 }
0x1253   : > { %v8801_v8 = vpop.eup %8800  ;;  %v5648_v56 = vadd.f32 1e-05, %v5634_v10  ;;  %v5621_v9 = vmul.f32 0.03125, %v5612_v14  ;;  %v5580_v23 = vpop.xlane.xlu1 %5579 }
0x1254   : > { %v5587_v7 = vmul.f32 0.03125, %v5580_v23  ;;  %7839 = vmatmul.mubr.msk.f32.vlgmr.msra.gmra.mrb[154].mxu1 %vm706_vm1, %v5684_v50  ;;  %v5659_v35 = vmul.f32 %v8801_v8, %v5638_v39 }
0x1255   : > { %8806 = vrsqrt.f32 %v5648_v56  ;;  %v5635_v49 = vsub.f32 %v5621_v9, %v5628_v51  ;;  %7841 = vmatprep.mubr.msk.f32.mxu1 %vm9009_vm0, %v12091_v28 }
0x1256   : > { %v5629_v45 = vmul.f32 %v5587_v7, %v5587_v7  ;;  %v5615_v21 = vpop.xlane.xlu0 %5614  ;;  %v5672_v59 = vmul.f32 %v11665_v48, %v5659_v35  ;;  %v5643_v38 = vsub.f32 %v11639_v26, %v5587_v7 }
0x1257   : > { %v8803_v54 = vpop.eup %8802  ;;  %v5649_v22 = vadd.f32 1e-05, %v5635_v49  ;;  %v5622_v40 = vmul.f32 0.03125, %v5615_v21 }
0x1258   : > { %v5685_v6 = vadd.f32 %v6678_v52, %v5672_v59  ;;  %v5660_v1 = vmul.f32 %v8803_v54, %v5639_v25 }
0x1259   : > { %8808 = vrsqrt.f32 %v5649_v22  ;;  %v5636_v19 = vsub.f32 %v5622_v40, %v5629_v45 }
0x125a   : > { %7842 = vmatmul.mubr.msk.f32.gmra.mrb[156].mxu1 %vm706_vm1, %v5685_v6  ;;  %v5673_v33 = vmul.f32 %v11665_v48, %v5660_v1 }
0x125b   : > { %v8805_v29 = vpop.eup %8804  ;;  %v5650_v60 = vadd.f32 1e-05, %v5636_v19  ;;  %7844 = vmatprep.mubr.msk.f32.mxu1 %vm9009_vm0, %v12091_v28 }
0x125c   : > { %v5686_v15 = vadd.f32 %v6678_v52, %v5673_v33  ;;  %v5661_v36 = vmul.f32 %v8805_v29, %v5640_v62 }
0x125d   : > { %8810 = vrsqrt.f32 %v5650_v60 }
0x125e   : > { %7845 = vmatmul.mubr.msk.f32.gmra.mrb[158].mxu1 %vm706_vm1, %v5686_v15  ;;  %v5674_v13 = vmul.f32 %v11665_v48, %v5661_v36 }
0x125f   : > { %v8807_v24 = vpop.eup %8806  ;;  %7847 = vmatprep.mubr.msk.f32.mxu1 %vm9009_vm0, %v12091_v28 }
0x1260   : > { %v5687_v12 = vadd.f32 %v6678_v52, %v5674_v13  ;;  %v5662_v42 = vmul.f32 %v8807_v24, %v5641_v57 }
0x1262   : > { %7848 = vmatmul.mubr.msk.f32.gmra.mrb[160].mxu1 %vm706_vm1, %v5687_v12  ;;  %v5675_v27 = vmul.f32 %v11665_v48, %v5662_v42 }
0x1263   : > { %v8809_v41 = vpop.eup %8808  ;;  %7850 = vmatprep.mubr.msk.f32.mxu1 %vm9009_vm0, %v12091_v28 }
0x1264   : > { %v5688_v58 = vadd.f32 %v6678_v52, %v5675_v27  ;;  %v5663_v30 = vmul.f32 %v8809_v41, %v5642_v34 }
0x1266   : > { %7851 = vmatmul.mubr.msk.f32.gmra.mrb[162].mxu1 %vm706_vm1, %v5688_v58  ;;  %v5676_v43 = vmul.f32 %v11665_v48, %v5663_v30 }
0x1267   : > { %v8811_v47 = vpop.eup %8810  ;;  %7853 = vmatprep.mubr.msk.f32.mxu1 %vm9009_vm0, %v12091_v28 }
0x1268   : > { %v5689_v20 = vadd.f32 %v6678_v52, %v5676_v43  ;;  %v5664_v53 = vmul.f32 %v8811_v47, %v5643_v38 }
0x126a   : > { %7854 = vmatmul.mubr.msk.f32.gmra.mrb[164].mxu1 %vm706_vm1, %v5689_v20  ;;  %v5677_v31 = vmul.f32 %v11665_v48, %v5664_v53  ;;  %v8152_v48 = vpack.c.bf16 %v6695_v3, %v6694_v2 }
0x126b   : > { %7856 = vmatprep.mubr.msk.f32.mxu1 %vm9009_vm0, %v12091_v28 }
0x126c   : > { %v5690_v18 = vadd.f32 %v6678_v52, %v5677_v31  ;;  %8153 = vmatpush3.bf16.msra.mxu0 %v8152_v48 }
0x126d   : > { %8154 = vmatprep.subr.bf16.mxu0 %v12092_v46 }
0x126e   : > { %7857 = vmatmul.mubr.msk.f32.gmra.mrb[166].mxu1 %vm706_vm1, %v5690_v18 }
0x126f   : > { %7904 = vmatprep.mubr.msk.f32.mxu1 %vm9009_vm0, %v12091_v28 }
0x1270   : > { %8156 = vmatpush3.bf16.msra.mxu0 %v8155_v32 }
0x1271   : > { %8157 = vmatprep.subr.bf16.mxu0 %v12092_v46 }
0x1274   : > { %8159 = vmatpush3.bf16.msra.mxu0 %v8158_v11 }
0x1327   : > { %v5791_v16 = vpop.f32.mrb[154].mxu1 }
0x1328   : > { %v11734_v52 = vadd.f32 %v6684_v44, %v5791_v16  ;;  %v7840_v37 = vpop.f32.mrb[155].mxu1 }
0x132a   : > { %v11737_v10 = vmul.f32 0.70710677, %v11734_v52 }
0x132c   : > { %v5853_v39 = vand.u32 2147483647, %v11737_v10  ;;  %vm5839_vm2 = vcmp.ge.f32.partialorder %v11737_v10, 0.0 }
0x132d   : > { %v5796_v14 = vpop.f32.mrb[156].mxu1 }
0x132e   : > { %v5860_v50 = vmul.f32 0.3275911, %v5853_v39  ;;  %v11740_v8 = vadd.f32 %v6684_v44, %v5796_v14  ;;  %v7843_v56 = vpop.f32.mrb[157].mxu1  ;;  %v5951_v6 = vsub.f32 0.0, %v5853_v39 }
0x1330   : > { %v5867_v51 = vadd.f32 1.0, %v5860_v50  ;;  %v11743_v9 = vmul.f32 0.70710677, %v11740_v8  ;;  %v5958_v57 = vmul.f32 %v5951_v6, %v5853_v39 }
0x1331   : > { %v5801_v23 = vpop.f32.mrb[158].mxu1 }
0x1332   : > { %8812 = vrcp.f32 %v5867_v51  ;;  %v5854_v7 = vand.u32 2147483647, %v11743_v9  ;;  %v7846_v35 = vpop.f32.mrb[159].mxu1  ;;  %v11746_v49 = vadd.f32 %v6684_v44, %v5801_v23  ;;  %v5965_v38 = vmul.f32 1.442695, %v5958_v57 }
0x1333   : > { %vm5840_vm4 = vcmp.ge.f32.partialorder %v11743_v9, 0.0 }
0x1334   : > { %v5861_v25 = vmul.f32 0.3275911, %v5854_v7  ;;  %v11749_v45 = vmul.f32 0.70710677, %v11746_v49  ;;  %v5952_v12 = vsub.f32 0.0, %v5854_v7 }
0x1335   : > { %v5806_v21 = vpop.f32.mrb[160].mxu1 }
0x1336   : > { %v5868_v59 = vadd.f32 1.0, %v5861_v25  ;;  %v11751_v54 = vadd.f32 %v6684_v44, %v5806_v21  ;;  %v7849_v22 = vpop.f32.mrb[161].mxu1  ;;  %v5855_v40 = vand.u32 2147483647, %v11749_v45  ;;  %v5959_v53 = vmul.f32 %v5952_v12, %v5854_v7 }
0x1337   : > { %vm5841_vm5 = vcmp.ge.f32.partialorder %v11749_v45, 0.0 }
0x1338   : > { %8814 = vrcp.f32 %v5868_v59  ;;  %v5862_v1 = vmul.f32 0.3275911, %v5855_v40  ;;  %v11755_v19 = vmul.f32 0.70710677, %v11751_v54  ;;  %v5953_v4 = vsub.f32 0.0, %v5855_v40 }
0x1339   : > { %v5811_v62 = vpop.f32.mrb[162].mxu1  ;;  %v5967_v55 = vmul.f32 1.442695, %v5959_v53 }
0x133a   : > { %v11757_v33 = vadd.f32 %v6684_v44, %v5811_v62  ;;  %v7852_v29 = vpop.f32.mrb[163].mxu1  ;;  %v5869_v60 = vadd.f32 1.0, %v5862_v1  ;;  %v5856_v15 = vand.u32 2147483647, %v11755_v19  ;;  %v5960_v0 = vmul.f32 %v5953_v4, %v5855_v40 }
0x133b   : > { %v5825_v29 = vmul.f32 0.5, %v11734_v52  ;;  %vm5842_vm6 = vcmp.ge.f32.partialorder %v11755_v19, 0.0 }
0x133c   : > { %v8813_v36 = vpop.eup %8812  ;;  %v11761_v13 = vmul.f32 0.70710677, %v11757_v33  ;;  %8816 = vrcp.f32 %v5869_v60  ;;  %v5863_v42 = vmul.f32 0.3275911, %v5856_v15  ;;  %v5954_v11 = vsub.f32 0.0, %v5856_v15 }
0x133d   : > { %v5888_v24 = vmul.f32 1.0614054, %v8813_v36  ;;  %v5816_v27 = vpop.f32.mrb[164].mxu1  ;;  %v5969_v25 = vmul.f32 1.442695, %v5960_v0 }
0x133e   : > { %v11764_v34 = vand.u32 2147483647, %v11761_v13  ;;  %v5870_v58 = vadd.f32 1.0, %v5863_v42  ;;  %v7855_v30 = vpop.f32.mrb[165].mxu1  ;;  %v11767_v47 = vadd.f32 %v6684_v44, %v5816_v27  ;;  %v5961_v21 = vmul.f32 %v5954_v11, %v5856_v15 }
0x133f   : > { %v5895_v41 = vadd.f32 -1.4531521, %v5888_v24  ;;  %v12095_v24 = vmov -1.0   ;;  %vm5843_vm7 = vcmp.ge.f32.partialorder %v11761_v13, 0.0 }
0x1340   : > { %v5864_v43 = vmul.f32 0.3275911, %v11764_v34  ;;  %8818 = vrcp.f32 %v5870_v58  ;;  %v11773_v48 = vmul.f32 0.70710677, %v11767_v47  ;;  %v5955_v1 = vsub.f32 0.0, %v11764_v34 }
0x1341   : > { %v5902_v20 = vmul.f32 %v8813_v36, %v5895_v41  ;;  %v5821_v31 = vpop.f32.mrb[166].mxu1  ;;  %8820 = vpow2.f32 %v5965_v38  ;;  %v5846_v15 = vsel %vm5839_vm2, 1.0, %v12095_v24  ;;  %v5971_v38 = vmul.f32 1.442695, %v5961_v21 }
0x1342   : > { %v11769_v18 = vpop.eup %8814  ;;  %v5871_v17 = vadd.f32 1.0, %v5864_v43  ;;  %v7858_v5 = vpop.f32.mrb[167].mxu1  ;;  %v11775_v63 = vadd.f32 %v6684_v44, %v5821_v31  ;;  %v5858_v16 = vand.u32 2147483647, %v11773_v48  ;;  %v5962_v53 = vmul.f32 %v5955_v1, %v11764_v34 }
0x1343   : > { %v5909_v2 = vadd.f32 1.4214138, %v5902_v20  ;;  %v5889_v3 = vmul.f32 1.0614054, %v11769_v18  ;;  %v5826_v31 = vmul.f32 0.5, %v11740_v8  ;;  %v5847_v11 = vsel %vm5840_vm4, 1.0, %v12095_v24 }
0x1344   : > { %8822 = vrcp.f32 %v5871_v17  ;;  %v11782_v50 = vmul.f32 0.70710677, %v11775_v63  ;;  %v5865_v56 = vmul.f32 0.3275911, %v5858_v16  ;;  %v5973_v8 = vmul.f32 1.442695, %v5962_v53 }
0x1345   : > { %v5916_v61 = vmul.f32 %v8813_v36, %v5909_v2  ;;  %v5896_v32 = vadd.f32 -1.4531521, %v5889_v3  ;;  %8824 = vpow2.f32 %v5967_v55  ;;  %v5956_v2 = vsub.f32 0.0, %v5858_v16 }
0x1346   : > { %v11778_v37 = vpop.eup %8816  ;;  %v11787_v7 = vand.u32 2147483647, %v11782_v50  ;;  %v5872_v59 = vadd.f32 1.0, %v5865_v56  ;;  %v5850_v19 = vsel %vm5843_vm7, 1.0, %v12095_v24  ;;  %vm5844_vm8 = vcmp.ge.f32.partialorder %v11773_v48, 0.0 }
0x1347   : > { %v5923_v39 = vadd.f32 -0.28449672, %v5916_v61  ;;  %v5903_v14 = vmul.f32 %v11769_v18, %v5896_v32  ;;  %v5890_v44 = vmul.f32 1.0614054, %v11778_v37  ;;  %vm5845_vm9 = vcmp.ge.f32.partialorder %v11782_v50, 0.0 }
0x1348   : > { %v5866_v62 = vmul.f32 0.3275911, %v11787_v7  ;;  %8826 = vrcp.f32 %v5872_v59 }
0x1349   : > { %v5930_v51 = vmul.f32 %v8813_v36, %v5923_v39  ;;  %v5910_v23 = vadd.f32 1.4214138, %v5903_v14  ;;  %v5897_v35 = vadd.f32 -1.4531521, %v5890_v44  ;;  %8828 = vpow2.f32 %v5969_v25 }
0x134a   : > { %v11789_v22 = vpop.eup %8818  ;;  %v5873_v27 = vadd.f32 1.0, %v5866_v62 }
0x134b   : > { %v5937_v40 = vadd.f32 0.2548296, %v5930_v51  ;;  %v5917_v6 = vmul.f32 %v11769_v18, %v5910_v23  ;;  %v5904_v60 = vmul.f32 %v11778_v37, %v5897_v35  ;;  %v5891_v57 = vmul.f32 1.0614054, %v11789_v22  ;;  %v8821_v41 = vpop.eup %8820 }
0x134c   : > { %8830 = vrcp.f32 %v5873_v27  ;;  %v5963_v51 = vmul.f32 %v5956_v2, %v5858_v16  ;;  %v5957_v23 = vsub.f32 0.0, %v11787_v7 }
0x134d   : > { %v5944_v12 = vmul.f32 %v8813_v36, %v5937_v40  ;;  %v5924_v42 = vadd.f32 -0.28449672, %v5917_v6  ;;  %v5911_v58 = vadd.f32 1.4214138, %v5904_v60  ;;  %v5898_v30 = vadd.f32 -1.4531521, %v5891_v57 }
0x134e   : > { %v11800_v43 = vpop.eup %8822  ;;  %8832 = vpow2.f32 %v5971_v38  ;;  %v5848_v38 = vsel %vm5841_vm5, 1.0, %v12095_v24 }
0x134f   : > { %v5979_v52 = vmul.f32 %v8821_v41, %v5944_v12  ;;  %v5931_v20 = vmul.f32 %v11769_v18, %v5924_v42  ;;  %v5918_v10 = vmul.f32 %v11778_v37, %v5911_v58  ;;  %v5905_v36 = vmul.f32 %v11789_v22, %v5898_v30  ;;  %v8825_v55 = vpop.eup %8824 }
0x1350   : > { %v5892_v4 = vmul.f32 1.0614054, %v11800_v43  ;;  %8834 = vpow2.f32 %v5973_v8  ;;  %v5975_v42 = vmul.f32 1.442695, %v5963_v51 }
0x1351   : > { %v5986_v17 = vsub.f32 1.0, %v5979_v52  ;;  %v5938_v5 = vadd.f32 0.2548296, %v5931_v20  ;;  %v5925_v3 = vadd.f32 -0.28449672, %v5918_v10 }
0x1352   : > { %v5912_v61 = vadd.f32 1.4214138, %v5905_v36  ;;  %v5899_v32 = vadd.f32 -1.4531521, %v5892_v4  ;;  %v11815_v35 = vpop.eup %8826  ;;  %8836 = vpow2.f32 %v5975_v42 }
0x1353   : > { %v5993_v0 = vmul.f32 %v5986_v17, %v5846_v15  ;;  %v5945_v34 = vmul.f32 %v11769_v18, %v5938_v5  ;;  %v5932_v39 = vmul.f32 %v11778_v37, %v5925_v3  ;;  %v5893_v6 = vmul.f32 1.0614054, %v11815_v35  ;;  %v8829_v1 = vpop.eup %8828 }
0x1354   : > { %v5919_v14 = vmul.f32 %v11789_v22, %v5912_v61  ;;  %v5906_v44 = vmul.f32 %v11800_v43, %v5899_v32  ;;  %v5827_v32 = vmul.f32 0.5, %v11746_v49 }
0x1355   : > { %v6000_v9 = vadd.f32 1.0, %v5993_v0  ;;  %v5980_v56 = vmul.f32 %v8825_v55, %v5945_v34  ;;  %v5939_v25 = vadd.f32 0.2548296, %v5932_v39  ;;  %v5900_v12 = vadd.f32 -1.4531521, %v5893_v6 }
0x1356   : > { %v5926_v21 = vadd.f32 -0.28449672, %v5919_v14  ;;  %v5913_v18 = vadd.f32 1.4214138, %v5906_v44  ;;  %v11822_v57 = vpop.eup %8830 }
0x1357   : > { %v6007_v59 = vmul.f32 %v6000_v9, %v5825_v29  ;;  %v5987_v40 = vsub.f32 1.0, %v5980_v56  ;;  %v5946_v62 = vmul.f32 %v11778_v37, %v5939_v25  ;;  %v5964_v29 = vmul.f32 %v5957_v23, %v11787_v7 }
0x1358   : > { %v5933_v60 = vmul.f32 %v11789_v22, %v5926_v21  ;;  %v5920_v16 = vmul.f32 %v11800_v43, %v5913_v18  ;;  %v5894_v30 = vmul.f32 1.0614054, %v11822_v57  ;;  %v5907_v52 = vmul.f32 %v11815_v35, %v5900_v12  ;;  %v8833_v36 = vpop.eup %8832 }
0x1359   : > { %v5994_v15 = vmul.f32 %v5987_v40, %v5847_v11  ;;  %7876 = vmatmul.mubr.msk.f32.vlgmr.msra.gmra.mrb[168].mxu0 %vm3374_vm12, %v6007_v59  ;;  %v5981_v27 = vmul.f32 %v8829_v1, %v5946_v62  ;;  %v5977_v5 = vmul.f32 1.442695, %v5964_v29  ;;  %v5849_v11 = vsel %vm5842_vm6, 1.0, %v12095_v24 }
0x135a   : > { %v5940_v41 = vadd.f32 0.2548296, %v5933_v60  ;;  %v5927_v58 = vadd.f32 -0.28449672, %v5920_v16  ;;  %7878 = vmatprep.mubr.msk.f32.mxu0 %vm9009_vm0, %v12091_v28  ;;  %v5901_v10 = vadd.f32 -1.4531521, %v5894_v30 }
0x135b   : > { %v6001_v37 = vadd.f32 1.0, %v5994_v15  ;;  %v5988_v7 = vsub.f32 1.0, %v5981_v27  ;;  %v5914_v17 = vadd.f32 1.4214138, %v5907_v52  ;;  %8838 = vpow2.f32 %v5977_v5 }
0x135c   : > { %v5947_v20 = vmul.f32 %v11789_v22, %v5940_v41  ;;  %v5934_v53 = vmul.f32 %v11800_v43, %v5927_v58  ;;  %v5908_v45 = vmul.f32 %v11822_v57, %v5901_v10  ;;  %v5828_v56 = vmul.f32 0.5, %v11751_v54 }
0x135d   : > { %v6008_v4 = vmul.f32 %v6001_v37, %v5826_v31  ;;  %v5995_v2 = vmul.f32 %v5988_v7, %v5848_v38  ;;  %v5921_v55 = vmul.f32 %v11815_v35, %v5914_v17  ;;  %v8835_v31 = vpop.eup %8834  ;;  %v5829_v54 = vmul.f32 0.5, %v11757_v33  ;;  %v6151_v7 = vld [vmem:[%s12096_s15 + $0x18] sm:$0xff] }
0x135e   : > { %v5982_v3 = vmul.f32 %v8833_v36, %v5947_v20  ;;  %v5941_v61 = vadd.f32 0.2548296, %v5934_v53  ;;  %v5915_v8 = vadd.f32 1.4214138, %v5908_v45  ;;  %v8837_v40 = vpop.eup %8836  ;;  %v5851_v29 = vsel %vm5844_vm8, 1.0, %v12095_v24 }
0x135f   : > { %7879 = vmatmul.mubr.msk.f32.gmra.mrb[170].mxu0 %vm3374_vm12, %v6008_v4  ;;  %v6002_v22 = vadd.f32 1.0, %v5995_v2  ;;  %v5928_v49 = vadd.f32 -0.28449672, %v5921_v55  ;;  %v5830_v27 = vmul.f32 0.5, %v11767_v47  ;;  %v5852_v58 = vsel %vm5845_vm9, 1.0, %v12095_v24  ;;  %v6148_v47 = vld [vmem:[%s12096_s15] sm:$0xff] }
0x1360   : > { %v5989_v0 = vsub.f32 1.0, %v5982_v3  ;;  %v5948_v34 = vmul.f32 %v11800_v43, %v5941_v61  ;;  %7881 = vmatprep.mubr.msk.f32.mxu0 %vm9009_vm0, %v12091_v28  ;;  %v5922_v9 = vmul.f32 %v11822_v57, %v5915_v8  ;;  %v5831_v37 = vmul.f32 0.5, %v11775_v63  ;;  %v6149_v24 = vld [vmem:[%s12096_s15 + $0x8] sm:$0xff]  ;;  %v6150_v63 = vld [vmem:[%s12096_s15 + $0x10] sm:$0xff] }
0x1361   : > { %v6009_v39 = vmul.f32 %v6002_v22, %v5827_v32  ;;  %v5935_v43 = vmul.f32 %v11815_v35, %v5928_v49  ;;  %v8161_v52 = vpack.c.bf16 %v6149_v24, %v6148_v47  ;;  %v8164_v20 = vpack.c.bf16 %v6151_v7, %v6150_v63 }
0x1362   : > { %v5996_v14 = vmul.f32 %v5989_v0, %v5849_v11  ;;  %v5983_v44 = vmul.f32 %v8835_v31, %v5948_v34  ;;  %v5929_v25 = vadd.f32 -0.28449672, %v5922_v9  ;;  %v6708_v0 = vld [vmem:[%s12081_s19 + $0x1] ss:$0 sm:$0xff]  ;;  %v6229_v11 = vld [vmem:[%s12097_s27 + $0x8] sm:$0xff] }
0x1363   : > { %7882 = vmatmul.mubr.msk.f32.gmra.mrb[172].mxu0 %vm3374_vm12, %v6009_v39  ;;  %v5942_v21 = vadd.f32 0.2548296, %v5935_v43  ;;  %8162 = vmatpush3.bf16.msra.mxu1 %v8161_v52  ;;  %v6228_v31 = vld [vmem:[%s12097_s27] sm:$0xff] }
0x1364   : > { %v6003_v51 = vadd.f32 1.0, %v5996_v14  ;;  %v5990_v23 = vsub.f32 1.0, %v5983_v44  ;;  %7884 = vmatprep.mubr.msk.f32.mxu0 %vm9009_vm0, %v12091_v28  ;;  %v5936_v59 = vmul.f32 %v11822_v57, %v5929_v25  ;;  %8163 = vmatprep.subr.bf16.mxu1 %v12092_v46  ;;  %v8167_v39 = vpack.c.bf16 %v6229_v11, %v6228_v31  ;;  %v6230_v44 = vld [vmem:[%s12097_s27 + $0x10] sm:$0xff]  ;;  %v6232_v43 = vld [vmem:[%s12097_s27 + $0x20] sm:$0xff] }
0x1365   : > { %v5949_v6 = vmul.f32 %v11815_v35, %v5942_v21  ;;  %v8839_v12 = vpop.eup %8838 }
0x1366   : > { %v6010_v13 = vmul.f32 %v6003_v51, %v5828_v56  ;;  %v5997_v18 = vmul.f32 %v5990_v23, %v5850_v19  ;;  %v5943_v62 = vadd.f32 0.2548296, %v5936_v59  ;;  %v6233_v56 = vld [vmem:[%s12097_s27 + $0x28] sm:$0xff]  ;;  %v6235_v23 = vld [vmem:[%s12097_s27 + $0x38] sm:$0xff]  ;;  %v6152_v19 = vld [vmem:[%s12098_s26] sm:$0x1] }
0x1367   : > { %v5984_v60 = vmul.f32 %v8837_v40, %v5949_v6  ;;  %8165 = vmatpush3.bf16.msra.mxu1 %v8164_v20  ;;  %v8173_v51 = vpack.c.bf16 %v6233_v56, %v6232_v43  ;;  %v6236_v59 = vld [vmem:[%s12099_s18] sm:$0x1]  ;;  %s12100_s26 = sld [smem:[#allocation27_spill]]  ;;  %s8939_s18 = scalar_lea.vmem %s8938_s4, 32 }
0x1368   : > { %v6004_v1 = vadd.f32 1.0, %v5997_v18  ;;  %7885 = vmatmul.mubr.msk.f32.gmra.mrb[174].mxu0 %vm3374_vm12, %v6010_v13  ;;  %v5950_v15 = vmul.f32 %v11822_v57, %v5943_v62  ;;  %8166 = vmatprep.subr.bf16.mxu1 %v12092_v46  ;;  %p8941_p3 = scmp.lt.s32.totalorder %s8939_s18, %s8933_s30 }
0x1369   : > { %7887 = vmatprep.mubr.msk.f32.mxu0 %vm9009_vm0, %v12091_v28  ;;  %v5991_v42 = vsub.f32 1.0, %v5984_v60 }
0x136a   : > { %v6011_v16 = vmul.f32 %v6004_v1, %v5829_v54  ;;  %v5985_v33 = vmul.f32 %v8839_v12, %v5950_v15  ;;  %p8942_p7 = por %p8941_p3, %p8940_p12 }
0x136b   : > { %v5998_v35 = vmul.f32 %v5991_v42, %v5851_v29 }
0x136c   : > { %7888 = vmatmul.mubr.msk.f32.gmra.mrb[176].mxu0 %vm3374_vm12, %v6011_v16  ;;  %v5992_v48 = vsub.f32 1.0, %v5985_v33  ;;  %p8943_p10 = pnand %p8942_p7, %p8936_p8 }
0x136d   : > { %7890 = vmatprep.mubr.msk.f32.mxu0 %vm9009_vm0, %v12091_v28  ;;  %v6005_v41 = vadd.f32 1.0, %v5998_v35  ;;  %s11934_s5 = scalar_lea.hbm %s12100_s26, %s6711_s3 }
0x136e   : > { %v5999_v57 = vmul.f32 %v5992_v48, %v5852_v58 }
0x136f   : > { %v6012_v30 = vmul.f32 %v6005_v41, %v5830_v27 }
0x1370   : > { %v6006_v38 = vadd.f32 1.0, %v5999_v57 }
0x1371   : > { %7891 = vmatmul.mubr.msk.f32.gmra.mrb[178].mxu0 %vm3374_vm12, %v6012_v30 }
0x1372   : > { %v6013_v50 = vmul.f32 %v6006_v38, %v5831_v37  ;;  %7893 = vmatprep.mubr.msk.f32.mxu0 %vm9009_vm0, %v12091_v28 }
0x1375   : > { %7894 = vmatmul.mubr.msk.f32.gmra.mrb[180].mxu0 %vm3374_vm12, %v6013_v50 }
0x142c   : > { %v6110_v53 = vpop.f32.mrb[168].mxu0 }
0x142d   : > { %v7877_v10 = vpop.f32.mrb[169].mxu0 }
0x1432   : > { %v6114_v36 = vpop.f32.mrb[170].mxu0 }
0x1433   : > { %v7880_v4 = vpop.f32.mrb[171].mxu0 }
0x1436   : > { %v6118_v17 = vpop.f32.mrb[172].mxu0 }
0x1437   : > { %v7883_v5 = vpop.f32.mrb[173].mxu0 }
0x143b   : > { %v6122_v2 = vpop.f32.mrb[174].mxu0 }
0x143c   : > { %v7886_v3 = vpop.f32.mrb[175].mxu0 }
0x143f   : > { %v6126_v61 = vpop.f32.mrb[176].mxu0 }
0x1440   : > { %v7889_v45 = vpop.f32.mrb[177].mxu0 }
0x1444   : > { %v6130_v32 = vpop.f32.mrb[178].mxu0 }
0x1445   : > { %v7892_v55 = vpop.f32.mrb[179].mxu0 }
0x1448   : > { %v6134_v22 = vpop.f32.mrb[180].mxu0 }
0x1449   : > { %v6138_v34 = vadd.f32 %v6134_v22, %v11639_v26  ;;  %v7895_v8 = vpop.f32.mrb[181].mxu0  ;;  %v6231_v26 = vld [vmem:[%s12097_s27 + $0x18] sm:$0xff] }
0x144a   : > { %v8170_v9 = vpack.c.bf16 %v6231_v26, %v6230_v44 }
0x144b   : > { %v6147_v49 = vadd.f32 %v6708_v0, %v6138_v34 }
0x144d   : > { %v6154_v14 = vrot.slane %v6147_v49, 1 }
0x144f   : > { %7905 = vmatmul.mubr.msk.f32.vlgmr.msra.gmra.mrb[168].mxu1 %vm706_vm1, %v6154_v14 }
0x1450   : > { %8168 = vmatpush3.bf16.msra.mxu1 %v8167_v39  ;;  %7923 = vmatprep.mubr.msk.f32.mxu1 %vm9009_vm0, %v12091_v28  ;;  %v6234_v28 = vld [vmem:[%s12097_s27 + $0x30] sm:$0xff] }
0x1451   : > { %8169 = vmatprep.subr.bf16.mxu1 %v12092_v46  ;;  %v8176_v25 = vpack.c.bf16 %v6235_v23, %v6234_v28 }
0x1454   : > { %8171 = vmatpush3.bf16.msra.mxu1 %v8170_v9 }
0x1455   : > { %8172 = vmatprep.subr.bf16.mxu1 %v12092_v46 }
0x1458   : > { %8174 = vmatpush3.bf16.msra.mxu1 %v8173_v51 }
0x1459   : > { %8175 = vmatprep.subr.bf16.mxu1 %v12092_v46 }
0x145c   : > { %8177 = vmatpush3.bf16.msra.mxu1 %v8176_v25 }
0x1522   : > { %v6223_v21 = vpop.f32.mrb[168].mxu1 }
0x1523   : > { %v6224_v13 = vadd.f32 %v6223_v21, %v6152_v19  ;;  %v7906_v18 = vpop.f32.mrb[169].mxu1 }
0x1525   : > { %v6227_v46 = vmax.f32 %v6224_v13, 0.0 }
0x1527   : > { %7924 = vmatmul.mubr.msk.f32.vlgmr.msra.gmra.mrb[170].mxu1 %vm3374_vm12, %v6227_v46 }
0x15fa   : > { %v6306_v40 = vpop.f32.mrb[170].mxu1 }
0x15fb   : > { %v6307_v6 = vadd.f32 %v6306_v40, %v6236_v59  ;;  %v7925_v54 = vpop.f32.mrb[171].mxu1 }
0x15fd   : > { %6310 = vst [vmem:[%s680_s1] sm:$0x1] %v6307_v6 }
0x15fe   : > { %8946 = shalt.err (!%p8943_p10)
}
0x15ff   : > { %s8947_s20 = scalar_lea.hbm %s11934_s5, 16  ;;  %s8951_s25 = scalar_lea.hbm %s12100_s26, 32 }
0x1600   : > { %p8948_p13 = scmp.ne.s32.totalorder %s11934_s5, %s8947_s20  ;;  %p8952_p9 = scmp.lt.u32.totalorder %s11934_s5, %s12100_s26 }
0x1601   : > { %p8953_p11 = scmp.lt.u32.totalorder %s8951_s25, %s8947_s20  ;;  %p8955_p1 = scmp.lt.u32.totalorder %s8947_s20, %s11934_s5 }
0x1602   : > { %p8949_p5 = pnand %p8948_p13, %p9252_p6 }
0x1603   : > { %p8954_p2 = por %p8953_p11, %p8952_p9 }
0x1604   : > { %p8950_p0 = pneg %p8949_p5 }
0x1605   : > { %p8956_p4 = por %p8955_p1, %p8954_p2 }
0x1607   : > { %p8957_p8 = pnand %p8956_p4, %p8950_p0 }
0x1609   : > { %8960 = shalt.err (!%p8957_p8)
}
0x160a   : > { %8189 = dma.vmem_to_hbm [thread:$0]  (%p9252_p6), %s11936_s29, 16, %s11934_s5, %s6312_s6  }
0x160b PF: > { %s12101_s30 = sld [smem:[#allocation13_spill]]  ;;  %s12102_s4 = sld [smem:[#allocation14_spill]] }
0x160c   : > { %p12104_p3 = scmp.ge.s32.totalorder %s9003_s24, 2 }
0x1611   : > { %s6336_s18 = sand.u32 1, %s12101_s30   ;;  %p12103_p12 = scmp.ne.s32.totalorder %s12102_s4, 0 }
0x1612   : > { %s6337_s3 = scalar_lea.sflag [#allocation5], %s6336_s18 }
0x1613   : > { %p8203_p7 = pnand %p12104_p3, %p12103_p12 }
0x1615   : > { %8986 = dma.done.wait (!%p8203_p7), %s6337_s3, 16  }
0x1616   : > { %8988 = vsyncadd (!%p8203_p7), %s6337_s3, 4294967280  ;;  %p34_p10 = scmp.ge.s32.totalorder %s9188_s21, 4   ;;  %s12105_s1 = smov %s8995_s22 }
0x1617   : > { %s12106_s22 = smov %s8999_s23  ;;  %s12107_s23 = smov %s9248_s0 }
0x1618   : > { %s12108_s24 = smov %s9188_s21  ;;  %36 = sbr.rel (!%p34_p10) target bundleno = 20 (0x14), region = 167 }
0x161f   :  { %6341 = vsyncpa [#allocation4], 1 }
0x1620   :  { %6343 = vsyncpa [#allocation4 + $0x1], 1 }
0x1621   :  { %6344 = vsyncpa [#allocation7], 1 }
0x1622   :  { %6345 = vsyncpa [#allocation5], 1 }
0x1623   :  { %6347 = vsyncpa [#allocation5 + $0x1], 1 }

</bundles_post_ra>
